<compile_context>
chip_gen: v7x
topology: tpu7x:2x2x1
jax: 0.10.0
libtpu: 0.0.40
codegen_flags: <defaults>
</compile_context>

<pallas_src>
import functools

import jax
import jax.numpy as jnp
from jax.experimental import pallas as pl
from jax.experimental.pallas import tpu as pltpu

D_MODEL = 768
D_FF = 2048
FF_CHUNK = 1024          # d_ff reduction chunk -> caps f32 intermediate at (tm, 1024)
LN_EPS = 1e-5


def _ffn_kernel(x_ref, w1_ref, w2_ref, gamma_ref, beta_ref, o_ref):
    """One row-tile: out = LN( relu(x @ W1) @ W2 + x ).

    x_ref:      (tm, d_model)   f32
    w1_ref:     (d_model, d_ff) bf16   (VMEM-resident, single-buffered)
    w2_ref:     (d_ff, d_model) bf16   (VMEM-resident, single-buffered)
    gamma/beta: (1, d_model)    f32
    o_ref:      (tm, d_model)   f32
    """
    x = x_ref[...]                                  # f32 (tm, d_model)
    xb = x.astype(jnp.bfloat16)                     # MXU input

    # fc1 -> ReLU -> fc2, chunked over d_ff so the largest live f32
    # intermediate is (tm, FF_CHUNK) instead of (tm, d_ff).
    acc = jnp.zeros((x.shape[0], D_MODEL), dtype=jnp.float32)
    for c in range(D_FF // FF_CHUNK):               # static 2-iteration loop
        lo = c * FF_CHUNK
        h = jnp.dot(xb, w1_ref[:, lo:lo + FF_CHUNK],
                    preferred_element_type=jnp.float32)      # (tm, FF_CHUNK)
        h = jnp.maximum(h, 0.0)
        acc = acc + jnp.dot(h.astype(jnp.bfloat16),
                            w2_ref[lo:lo + FF_CHUNK, :],
                            preferred_element_type=jnp.float32)

    # residual + LayerNorm in f32 (row-local).
    y = acc + x
    mean = jnp.mean(y, axis=-1, keepdims=True)
    centered = y - mean
    var = jnp.mean(centered * centered, axis=-1, keepdims=True)
    inv = jax.lax.rsqrt(var + LN_EPS)
    out = centered * inv * gamma_ref[...] + beta_ref[...]
    o_ref[...] = out.astype(o_ref.dtype)


def _round_up(v, m):
    return ((v + m - 1) // m) * m


@functools.partial(jax.jit, static_argnames=("tm",))
def poswise_ffn(x, w1, w2, gamma, beta, *, tm=512):
    """x: [batch, seq, d_model] -> [batch, seq, d_model].

    w1/w2 should be passed pre-cast to bf16 (done once at parameter setup);
    f32 weights are accepted and cast as a fallback.
    """
    b, s, d_model = x.shape
    assert d_model == D_MODEL
    m = b * s
    x2d = x.reshape(m, d_model)

    # Effective row tile:
    #  - cap at tm,
    #  - if the whole problem fits in one tile, halve it so the "parallel"
    #    grid axis has >= 2 steps (keeps both v7x TensorCores busy),
    #  - keep it a multiple of 8 (sublane granularity).
    if m <= tm:
        tm_eff = max(8, _round_up(pl.cdiv(m, 2), 8))
    else:
        tm_eff = tm
    assert tm_eff % 8 == 0
    grid = pl.cdiv(m, tm_eff)

    # Weights: bf16 MXU inputs. No-op if already bf16 (pre-cast at load time).
    w1_b = w1 if w1.dtype == jnp.bfloat16 else w1.astype(jnp.bfloat16)
    w2_b = w2 if w2.dtype == jnp.bfloat16 else w2.astype(jnp.bfloat16)
    gamma2d = gamma.reshape(1, d_model).astype(jnp.float32)
    beta2d = beta.reshape(1, d_model).astype(jnp.float32)

    cost = pl.CostEstimate(
        flops=4 * m * D_MODEL * D_FF,                       # two matmuls
        transcendentals=0,
        bytes_accessed=2 * m * D_MODEL * 4                  # x in + out
        + 2 * D_MODEL * D_FF * 2,                           # bf16 W1 + W2
    )

    out2d = pl.pallas_call(
        _ffn_kernel,
        out_shape=jax.ShapeDtypeStruct((m, d_model), x.dtype),
        grid_spec=pltpu.PrefetchScalarGridSpec(
            num_scalar_prefetch=0,
            grid=(grid,),
            in_specs=[
                pl.BlockSpec((tm_eff, d_model), lambda i: (i, 0)),   # x rows
                pl.BlockSpec((D_MODEL, D_FF), lambda i: (0, 0),      # full W1
                             pipeline_mode=pl.Buffered(buffer_count=1)),
                pl.BlockSpec((D_FF, D_MODEL), lambda i: (0, 0),      # full W2
                             pipeline_mode=pl.Buffered(buffer_count=1)),
                pl.BlockSpec((1, d_model), lambda i: (0, 0)),        # gamma
                pl.BlockSpec((1, d_model), lambda i: (0, 0)),        # beta
            ],
            out_specs=pl.BlockSpec((tm_eff, d_model), lambda i: (i, 0)),
        ),
        compiler_params=pltpu.CompilerParams(
            dimension_semantics=("parallel",),
            # ~20-30 MiB actually used at tm=512; 48 MiB leaves headroom and
            # fits v5e/v6e (128 MiB) and v7x (64 MiB per TensorCore).
            vmem_limit_bytes=48 * 1024 * 1024,
        ),
        cost_estimate=cost,
    )(x2d, w1_b, w2_b, gamma2d, beta2d)

    return out2d.reshape(b, s, d_model)


def _reference(x, w1, w2, gamma, beta):
    y = jnp.maximum(x @ w1, 0.0) @ w2 + x
    mean = jnp.mean(y, axis=-1, keepdims=True)
    var = jnp.mean((y - mean) ** 2, axis=-1, keepdims=True)
    return (y - mean) / jnp.sqrt(var + LN_EPS) * gamma + beta


if __name__ == "__main__":
    key = jax.random.PRNGKey(0)
    k_x, k_w1, k_w2 = jax.random.split(key, 3)

    batch, seq = 2, 8                                   # small test: M = 16 rows
    x = jax.random.normal(k_x, (batch, seq, D_MODEL), dtype=jnp.float32)

    # Deterministic synthetic parameters (nn.Linear weights, bias=False),
    # stored pre-transposed so the kernel computes x @ W.
    w1 = jax.random.normal(k_w1, (D_MODEL, D_FF), dtype=jnp.float32) * 0.02
    w2 = jax.random.normal(k_w2, (D_FF, D_MODEL), dtype=jnp.float32) * 0.02
    gamma = jnp.ones((D_MODEL,), dtype=jnp.float32)     # LayerNorm default init
    beta = jnp.zeros((D_MODEL,), dtype=jnp.float32)

    # One-time parameter-load-time cast to bf16 (avoids a per-call HBM pass).
    w1_b = w1.astype(jnp.bfloat16)
    w2_b = w2.astype(jnp.bfloat16)

    out = poswise_ffn(x, w1_b, w2_b, gamma, beta)
    out = jax.block_until_ready(out)

    ref = _reference(x, w1, w2, gamma, beta)
    assert out.shape == (batch, seq, D_MODEL)
    # bf16 MXU inputs -> looser tolerance than a pure-f32 reference.
    assert jnp.allclose(out, ref, atol=2e-2, rtol=2e-2), "mismatch vs. reference"

    print("KERNEL_OK")
</pallas_src>

<mosaic_0001>
module attributes {stable_mosaic.version = 11 : i64} {
  func.func @_ffn_kernel(%arg0: i32, %arg1: memref<8x768xf32, #tpu.memory_space<vmem>>, %arg2: memref<768x2048xbf16, #tpu.memory_space<vmem>>, %arg3: memref<2048x768xbf16, #tpu.memory_space<vmem>>, %arg4: memref<1x768xf32, #tpu.memory_space<vmem>>, %arg5: memref<1x768xf32, #tpu.memory_space<vmem>>, %arg6: memref<8x768xf32, #tpu.memory_space<vmem>>) attributes {dimension_semantics = [#tpu.dimension_semantics<parallel>], iteration_bounds = array<i64: 2>, scalar_prefetch = 0 : i64, scratch_operands = 0 : i64, tpu.core_type = #tpu.core_type<tc>, window_params = [{transform_indices = @transform_0, window_bounds = array<i64: 8, 768>}, {pipeline_mode = #tpu.pipeline_mode<synchronous>, transform_indices = @transform_1, window_bounds = array<i64: 768, 2048>}, {pipeline_mode = #tpu.pipeline_mode<synchronous>, transform_indices = @transform_2, window_bounds = array<i64: 2048, 768>}, {pipeline_mode = #tpu.pipeline_mode<synchronous>, transform_indices = @transform_3, window_bounds = array<i64: 1, 768>}, {pipeline_mode = #tpu.pipeline_mode<synchronous>, transform_indices = @transform_4, window_bounds = array<i64: 1, 768>}, {transform_indices = @transform_5, window_bounds = array<i64: 8, 768>}]} {
    %c0 = arith.constant 0 : index
    %c0_0 = arith.constant 0 : index
    %0 = vector.load %arg1[%c0, %c0_0] : memref<8x768xf32, #tpu.memory_space<vmem>>, vector<8x768xf32>
    %1 = arith.truncf %0 : vector<8x768xf32> to vector<8x768xbf16>
    %cst = arith.constant 0.000000e+00 : f32
    %2 = vector.broadcast %cst : f32 to vector<8x768xf32>
    %c0_1 = arith.constant 0 : index
    %c0_2 = arith.constant 0 : index
    %3 = vector.load %arg2[%c0_1, %c0_2] : memref<768x2048xbf16, #tpu.memory_space<vmem>>, vector<768x1024xbf16>
    %cst_3 = arith.constant dense<0.000000e+00> : vector<8x1024xf32>
    %4 = tpu.matmul %1, %3, %cst_3 {dimension_numbers = #tpu.dot_dimension_numbers<[1], [0], [0], [1], [0, 0, 1, 1], [], []>} : vector<8x768xbf16>, vector<768x1024xbf16>, vector<8x1024xf32> -> vector<8x1024xf32>
    %cst_4 = arith.constant 0.000000e+00 : f32
    %5 = vector.broadcast %cst_4 : f32 to vector<8x1024xf32>
    %6 = arith.maximumf %4, %5 : vector<8x1024xf32>
    %7 = arith.truncf %6 : vector<8x1024xf32> to vector<8x1024xbf16>
    %c0_5 = arith.constant 0 : index
    %c0_6 = arith.constant 0 : index
    %8 = vector.load %arg3[%c0_5, %c0_6] : memref<2048x768xbf16, #tpu.memory_space<vmem>>, vector<1024x768xbf16>
    %cst_7 = arith.constant dense<0.000000e+00> : vector<8x768xf32>
    %9 = tpu.matmul %7, %8, %cst_7 {dimension_numbers = #tpu.dot_dimension_numbers<[1], [0], [0], [1], [0, 0, 1, 1], [], []>} : vector<8x1024xbf16>, vector<1024x768xbf16>, vector<8x768xf32> -> vector<8x768xf32>
    %10 = arith.addf %2, %9 : vector<8x768xf32>
    %c0_8 = arith.constant 0 : index
    %c1024 = arith.constant 1024 : index
    %11 = vector.load %arg2[%c0_8, %c1024] : memref<768x2048xbf16, #tpu.memory_space<vmem>>, vector<768x1024xbf16>
    %cst_9 = arith.constant dense<0.000000e+00> : vector<8x1024xf32>
    %12 = tpu.matmul %1, %11, %cst_9 {dimension_numbers = #tpu.dot_dimension_numbers<[1], [0], [0], [1], [0, 0, 1, 1], [], []>} : vector<8x768xbf16>, vector<768x1024xbf16>, vector<8x1024xf32> -> vector<8x1024xf32>
    %cst_10 = arith.constant 0.000000e+00 : f32
    %13 = vector.broadcast %cst_10 : f32 to vector<8x1024xf32>
    %14 = arith.maximumf %12, %13 : vector<8x1024xf32>
    %15 = arith.truncf %14 : vector<8x1024xf32> to vector<8x1024xbf16>
    %c1024_11 = arith.constant 1024 : index
    %c0_12 = arith.constant 0 : index
    %16 = vector.load %arg3[%c1024_11, %c0_12] : memref<2048x768xbf16, #tpu.memory_space<vmem>>, vector<1024x768xbf16>
    %cst_13 = arith.constant dense<0.000000e+00> : vector<8x768xf32>
    %17 = tpu.matmul %15, %16, %cst_13 {dimension_numbers = #tpu.dot_dimension_numbers<[1], [0], [0], [1], [0, 0, 1, 1], [], []>} : vector<8x1024xbf16>, vector<1024x768xbf16>, vector<8x768xf32> -> vector<8x768xf32>
    %18 = arith.addf %10, %17 : vector<8x768xf32>
    %19 = arith.addf %18, %0 : vector<8x768xf32>
    %cst_14 = arith.constant dense<0.000000e+00> : vector<8xf32>
    %20 = vector.multi_reduction <add>, %19, %cst_14 [1] : vector<8x768xf32> to vector<8xf32>
    %21 = vector.shape_cast %20 : vector<8xf32> to vector<8x1xf32>
    %cst_15 = arith.constant 7.680000e+02 : f32
    %22 = vector.broadcast %cst_15 : f32 to vector<8x1xf32>
    %23 = arith.divf %21, %22 : vector<8x1xf32>
    %24 = vector.broadcast %23 : vector<8x1xf32> to vector<8x768xf32>
    %25 = arith.subf %19, %24 : vector<8x768xf32>
    %26 = arith.mulf %25, %25 : vector<8x768xf32>
    %cst_16 = arith.constant dense<0.000000e+00> : vector<8xf32>
    %27 = vector.multi_reduction <add>, %26, %cst_16 [1] : vector<8x768xf32> to vector<8xf32>
    %28 = vector.shape_cast %27 : vector<8xf32> to vector<8x1xf32>
    %cst_17 = arith.constant 7.680000e+02 : f32
    %29 = vector.broadcast %cst_17 : f32 to vector<8x1xf32>
    %30 = arith.divf %28, %29 : vector<8x1xf32>
    %cst_18 = arith.constant 9.99999974E-6 : f32
    %31 = vector.broadcast %cst_18 : f32 to vector<8x1xf32>
    %32 = arith.addf %30, %31 : vector<8x1xf32>
    %33 = math.rsqrt %32 : vector<8x1xf32>
    %34 = vector.broadcast %33 : vector<8x1xf32> to vector<8x768xf32>
    %35 = arith.mulf %25, %34 : vector<8x768xf32>
    %c0_19 = arith.constant 0 : index
    %c0_20 = arith.constant 0 : index
    %36 = vector.load %arg4[%c0_19, %c0_20] : memref<1x768xf32, #tpu.memory_space<vmem>>, vector<1x768xf32>
    %37 = vector.broadcast %36 : vector<1x768xf32> to vector<8x768xf32>
    %38 = arith.mulf %35, %37 : vector<8x768xf32>
    %c0_21 = arith.constant 0 : index
    %c0_22 = arith.constant 0 : index
    %39 = vector.load %arg5[%c0_21, %c0_22] : memref<1x768xf32, #tpu.memory_space<vmem>>, vector<1x768xf32>
    %40 = vector.broadcast %39 : vector<1x768xf32> to vector<8x768xf32>
    %41 = arith.addf %38, %40 : vector<8x768xf32>
    %c0_23 = arith.constant 0 : index
    %c0_24 = arith.constant 0 : index
    %42 = vector.load %arg6[%c0_23, %c0_24] : memref<8x768xf32, #tpu.memory_space<vmem>>, vector<8x768xf32>
    tpu.vector_store %arg6[%c0_23, %c0_24], %41 {strides = array<i32>} : memref<8x768xf32, #tpu.memory_space<vmem>>, vector<8x768xf32>,
    return
  }
  func.func @transform_0(%arg0: i32) -> (i32, i32) {
    %c0_i32 = arith.constant 0 : i32
    %c0_i32_0 = arith.constant 0 : i32
    return %arg0, %c0_i32 : i32, i32
  }
  func.func @transform_1(%arg0: i32) -> (i32, i32) {
    %c0_i32 = arith.constant 0 : i32
    %c0_i32_0 = arith.constant 0 : i32
    %c0_i32_1 = arith.constant 0 : i32
    return %c0_i32, %c0_i32_0 : i32, i32
  }
  func.func @transform_2(%arg0: i32) -> (i32, i32) {
    %c0_i32 = arith.constant 0 : i32
    %c0_i32_0 = arith.constant 0 : i32
    %c0_i32_1 = arith.constant 0 : i32
    return %c0_i32, %c0_i32_0 : i32, i32
  }
  func.func @transform_3(%arg0: i32) -> (i32, i32) {
    %c0_i32 = arith.constant 0 : i32
    %c0_i32_0 = arith.constant 0 : i32
    %c0_i32_1 = arith.constant 0 : i32
    return %c0_i32, %c0_i32_0 : i32, i32
  }
  func.func @transform_4(%arg0: i32) -> (i32, i32) {
    %c0_i32 = arith.constant 0 : i32
    %c0_i32_0 = arith.constant 0 : i32
    %c0_i32_1 = arith.constant 0 : i32
    return %c0_i32, %c0_i32_0 : i32, i32
  }
  func.func @transform_5(%arg0: i32) -> (i32, i32) {
    %c0_i32 = arith.constant 0 : i32
    %c0_i32_0 = arith.constant 0 : i32
    return %arg0, %c0_i32 : i32, i32
  }
}

</mosaic_0001>

<bundles_post_ra>
// kernel: poswise_ffn.1
= control target key start
LH: loop header
LB: loop body
LE: loop exit
PB: predicated region body
PF: predicated region fallthrough
CT: control target
= control target key end

     0   :  { %10 = vsyncpa [#allocation3], 0  ;;  %s15241_s0 = inlined_call_operand.hbm [shape: f32[16,768], index: 0, kind: input, shape index: {}]   ;;  %s15242_s1 = inlined_call_operand.hbm [shape: bf16[768,2048], index: 1, kind: input, shape index: {}]   ;;  %s15243_s2 = inlined_call_operand.hbm [shape: bf16[2048,768], index: 2, kind: input, shape index: {}]   ;;  %s15244_s3 = inlined_call_operand.vmem [shape: f32[1,768], index: 3, kind: input, shape index: {}]   ;;  %s15245_s4 = inlined_call_operand.vmem [shape: f32[1,768], index: 4, kind: input, shape index: {}]   ;;  %s15246_s5 = inlined_call_operand.hbm [shape: f32[16,768], index: 5, kind: output, shape index: {}]  }
   0x1   :  { %12 = vsyncpa [#allocation3 + $0x1], 0 }
   0x2   :  { %13 = vsyncpa [#allocation6], 0 }
   0x3   :  { %14 = vsyncpa [#allocation4], 0 }
   0x4   :  { %16 = vsyncpa [#allocation4 + $0x1], 0  ;;  %s14770_s18 = smov 0   ;;  %s14772_s19 = smov 0  }
   0x5   :  { %s14774_s20 = smov 0   ;;  %s14776_s21 = smov 0  }
   0x6 LB: > { %s14791_s22 = sadd.s32 4294967295, %s14730_s21   ;;  %s11727_s23 = sadd.s32 4294967294, %s14730_s21   ;;  %s14730_s21 = sphi %s14776_s21, %s15266_s21   ;;  %s14726_s20 = sphi %s14774_s20, %s15265_s20   ;;  %s14722_s19 = sphi %s14772_s19, %s15264_s19   ;;  %s14718_s18 = sphi %s14770_s18, %s15263_s18  }
   0x7   : > { %p42_p0 = scmp.ne.s32.totalorder %s14722_s19, %s14718_s18  ;;  %p15247_p1 = scmp.eq.s32.totalorder %s14791_s22, 0 }
   0x8   : > { %p156_p3 = scmp.eq.s32.totalorder %s11727_s23, 1  ;;  %p11728_p5 = scmp.ge.s32.totalorder %s14730_s21, 1 }
   0x9   : > { %p14800_p4 = por %p15247_p1, %p42_p0  ;;  %p163_p7 = scmp.lt.s32.totalorder %s14730_s21, 3 }
   0xa   : > { %p14805_p6 = por %p156_p3, %p42_p0  ;;  %s14732_s27 = smov [#allocation5]  }
   0xb   : > { %s15250_s24 = scalar_select %p14800_p4, 1, 0 }
   0xc   : > { %s15251_s25 = scalar_select %p14805_p6, 1, 0 }
   0xd   : > { %p14810_p8 = pnand %p11728_p5, %p163_p7  ;;  %s175_s28 = sshll.u32 %s14732_s27, 4  ;;  %s14814_s28 = int_to_ptr.vmem [resolvable:$true] %s175_s28 }
   0xe   : > { %s14733_s30 = smov [#allocation7]   ;;  %s14574_s9 = scalar_lea.hbm %s15242_s1, 98304 }
   0xf   : > { %p13355_p9 = pneg %p14810_p8  ;;  %s188_s6 = sshll.u32 %s14733_s30, 4  ;;  %s14825_s6 = int_to_ptr.vmem [resolvable:$true] %s188_s6 }
  0x10   : > { %p14575_p12 = scmp.ne.s32.totalorder %s15242_s1, %s14574_s9  ;;  %p14581_p5 = scmp.lt.u32.totalorder %s14574_s9, %s15242_s1 }
  0x11   : > { %p14821_p11 = pnand %p13355_p9, %p15247_p1 }
  0x13   : > { %p14576_p13 = pneg %p14821_p11 }
  0x15   : > { %p14577_p0 = pnand %p14576_p13, %p14575_p12 }
  0x17   : > { %p14578_p3 = pneg %p14577_p0 }
  0x19   : > { %p14583_p7 = pnand %p14581_p5, %p14578_p3 }
  0x1b   : > { %14586 = shalt.err (!%p14583_p7)
}
  0x1c   : > { %s14587_s14 = scalar_lea.vmem %s14814_s28, 98304  ;;  %p14595_p2 = scmp.lt.s32.totalorder %s14814_s28, %s14814_s28 }
  0x1d   : > { %p14588_p9 = scmp.ne.s32.totalorder %s14814_s28, %s14587_s14  ;;  %p14596_p12 = scmp.lt.s32.totalorder %s14587_s14, %s14587_s14 }
  0x1f   : > { %p14590_p10 = pnand %p14588_p9, %p14576_p13  ;;  %p14597_p0 = por %p14596_p12, %p14595_p2 }
  0x21   : > { %p14591_p1 = pneg %p14590_p10 }
  0x23   : > { %p14598_p6 = pnand %p14597_p0, %p14591_p1 }
  0x25   : > { %14601 = shalt.err (!%p14598_p6)
}
  0x26   : > { %s14734_s15 = smov 1024   ;;  %s14735_s16 = smov 64  }
  0x27   : > { %13358 = dma.hbm_to_vmem [thread:$0]  (!%p14821_p11), %s15242_s1, 98304, %s14814_s28, [#allocation6], %s14734_s15, %s14734_s15, %s14735_s16  }
  0x28   : > { %s14602_s7 = scalar_lea.hbm %s15243_s2, 98304 }
  0x29   : > { %p14603_p2 = scmp.ne.s32.totalorder %s15243_s2, %s14602_s7  ;;  %p14609_p10 = scmp.lt.u32.totalorder %s14602_s7, %s15243_s2 }
  0x2b   : > { %p14605_p1 = pnand %p14603_p2, %p14576_p13 }
  0x2d   : > { %p14606_p6 = pneg %p14605_p1 }
  0x2f   : > { %p14611_p3 = pnand %p14609_p10, %p14606_p6 }
  0x31   : > { %14614 = shalt.err (!%p14611_p3)
}
  0x32   : > { %s14615_s28 = scalar_lea.vmem %s14825_s6, 98304  ;;  %p14623_p12 = scmp.lt.s32.totalorder %s14825_s6, %s14825_s6 }
  0x33   : > { %p14616_p5 = scmp.ne.s32.totalorder %s14825_s6, %s14615_s28  ;;  %p14624_p0 = scmp.lt.s32.totalorder %s14615_s28, %s14615_s28 }
  0x35   : > { %p14618_p7 = pnand %p14616_p5, %p14576_p13  ;;  %p14625_p2 = por %p14624_p0, %p14623_p12 }
  0x37   : > { %p14619_p9 = pneg %p14618_p7 }
  0x39   : > { %p14626_p1 = pnand %p14625_p2, %p14619_p9 }
  0x3b   : > { %14629 = shalt.err (!%p14626_p1)
}
  0x3c   : > { %s14736_s12 = smov 384   ;;  %s14737_s13 = smov 24  }
  0x3d   : > { %13361 = dma.hbm_to_vmem [thread:$0]  (!%p14821_p11), %s15243_s2, 98304, %s14825_s6, [#allocation6], %s14736_s12, %s14736_s12, %s14737_s13  }
  0x3e   : > { %s14880_s16 = sadd.s32 1, %s14730_s21   ;;  %s29_s23 = sadd.s32 1, %s14726_s20 }
  0x3f   : > { %s26_s17 = ssub.s32 %s14730_s21, %s14880_s16  ;;  %p36_p6 = scmp.ne.s32.totalorder %s14726_s20, %s14722_s19 }
  0x40   : > { %p27_p13 = scmp.eq.s32.totalorder %s26_s17, 0  ;;  %p37_p10 = scmp.eq.s32.totalorder %s14730_s21, 0 }
  0x41   : > { %p15254_p5 = scmp.eq.s32.totalorder %s14791_s22, 1  ;;  %p13372_p9 = scmp.lt.s32.totalorder %s14730_s21, 2 }
  0x42   : > { %s14889_s27 = scalar_select %p27_p13, %s14726_s20, %s29_s23  }
  0x43   : > { %p38_p3 = por %p37_p10, %p36_p6  ;;  %p14893_p7 = por %p15254_p5, %p36_p6 }
  0x44   : > { %s208_s29 = sand.u32 1, %s14726_s20   ;;  %s13340_s6 = smul.u32 768, %s14730_s21 }
  0x45   : > { %s15255_s30 = scalar_select %p14893_p7, 1, 0 }
  0x46   : > { %s13339_s7 = smul.u32 48, %s208_s29  ;;  %p14900_p11 = pnand %p13372_p9, %p38_p3 }
  0x47   : > { %s14907_s11 = scalar_lea.hbm %s15241_s0, %s13340_s6  ;;  %s209_s13 = scalar_lea.sflag [#allocation3], %s208_s29 }
  0x48   : > { %s212_s28 = scalar_lea.vmem [#allocation2], %s13339_s7  ;;  %s14630_s14 = scalar_lea.hbm %s14907_s11, 768 }
  0x49   : > { %s220_s12 = sshll.u32 %s212_s28, 4  ;;  %p14631_p12 = scmp.ne.s32.totalorder %s14907_s11, %s14630_s14  ;;  %s14909_s12 = int_to_ptr.vmem [resolvable:$true] %s220_s12 }
  0x4a   : > { %p14632_p0 = pneg %p14900_p11  ;;  %s14635_s23 = scalar_lea.hbm %s15241_s0, 1536 }
  0x4b   : > { %p14636_p13 = scmp.lt.u32.totalorder %s14907_s11, %s15241_s0  ;;  %p14637_p6 = scmp.lt.u32.totalorder %s14635_s23, %s14630_s14 }
  0x4c   : > { %p14633_p2 = pnand %p14632_p0, %p14631_p12  ;;  %p14639_p3 = scmp.lt.u32.totalorder %s14630_s14, %s14907_s11 }
  0x4d   : > { %p14638_p10 = por %p14637_p6, %p14636_p13 }
  0x4e   : > { %p14634_p1 = pneg %p14633_p2 }
  0x4f   : > { %p14640_p5 = por %p14639_p3, %p14638_p10 }
  0x51   : > { %p14641_p9 = pnand %p14640_p5, %p14634_p1 }
  0x53   : > { %14644 = shalt.err (!%p14641_p9)
}
  0x54   : > { %s14645_s29 = scalar_lea.vmem %s14909_s12, 768  ;;  %s14738_s7 = smov [#allocation2]  }
  0x55   : > { %p14646_p12 = scmp.ne.s32.totalorder %s14909_s12, %s14645_s29  ;;  %s14650_s10 = sshll.u32 %s14738_s7, 4  ;;  %s14651_s10 = int_to_ptr.vmem [resolvable:$false] %s14650_s10 }
  0x56   : > { %s14652_s28 = scalar_lea.vmem %s14651_s10, 1536  ;;  %p14653_p4 = scmp.lt.s32.totalorder %s14909_s12, %s14651_s10 }
  0x57   : > { %p14648_p2 = pnand %p14646_p12, %p14632_p0  ;;  %p14654_p13 = scmp.lt.s32.totalorder %s14652_s28, %s14645_s29 }
  0x59   : > { %p14649_p7 = pneg %p14648_p2  ;;  %p14655_p6 = por %p14654_p13, %p14653_p4 }
  0x5b   : > { %p14656_p10 = pnand %p14655_p6, %p14649_p7 }
  0x5d   : > { %14659 = shalt.err (!%p14656_p10)
}
  0x5e   : > { %13365 = dma.hbm_to_vmem [thread:$0]  (!%p14900_p11), %s14907_s11, 768, %s14909_s12, %s209_s13  }
  0x5f   : > { %229 = sbr.rel (%p14810_p8) target bundleno = 2295 (0x8f7), region = 40  ;;  %s14939_s14 = sand.u32 (!%p14810_p8), 1, %s14722_s19  }
  0x60   : > { %s13341_s15 = smul.u32 (!%p14810_p8), 48, %s14939_s14  ;;  %s232_s17 = scalar_lea.sflag (!%p14810_p8), [#allocation3], %s14939_s14 }
  0x61   : > { %p15257_p4 = scmp.ne.s32.totalorder (!%p14810_p8), %s15250_s24, 0 }
  0x62   : > { %s14945_s23 = scalar_lea.vmem (!%p14810_p8), [#allocation2], %s13341_s15 }
  0x66   : > { %14705 = dma.done.wait (%p15257_p4), %s232_s17, 768  }
  0x67   : > { %14707 = vsyncadd (%p15257_p4), %s232_s17, 4294966528  ;;  %p15258_p7 = scmp.eq.s32.totalorder %s14791_s22, 0 }
  0x69   : > { %14709 = dma.done.wait (%p15258_p7), [#allocation6], 196608   ;;  %p15259_p8 = pmov %p15258_p7 }
  0x6a   : > { %v282_v0 = vld [vmem:[#allocation5] sm:$0xff]  ;;  %v283_v2 = vld [vmem:[#allocation5 + $0x8] sm:$0xff]  ;;  %s13342_s12 = smul.u32 768, %s14791_s22  ;;  %s269_s13 = scalar_lea.vmem [#allocation8], %s13341_s15 }
  0x6b   : > { %14711 = vsyncadd (%p15259_p8), [#allocation6], 4294770688  ;;  %v286_v1 = vld [vmem:[#allocation5 + $0x40] sm:$0xff]  ;;  %v287_v4 = vld [vmem:[#allocation5 + $0x48] sm:$0xff]  ;;  %s11638_s6 = sshll.u32 %s269_s13, 4  ;;  %s11624_s7 = scalar_lea.sflag [#allocation4], %s14939_s14  ;;  %s15199_s6 = int_to_ptr.vmem [resolvable:$true] %s11638_s6 }
  0x6c   : > { %v11737_v3 = vcombine.high %v282_v0, %v286_v1  ;;  %v11736_v5 = vcombine.low %v282_v0, %v286_v1  ;;  %v290_v6 = vld [vmem:[#allocation5 + $0x80] sm:$0xff]  ;;  %v11739_v8 = vcombine.high %v283_v2, %v287_v4  ;;  %v11738_v9 = vcombine.low %v283_v2, %v287_v4  ;;  %v291_v11 = vld [vmem:[#allocation5 + $0x88] sm:$0xff]  ;;  %s15197_s22 = scalar_lea.hbm %s15246_s5, %s13342_s12  ;;  %s14660_s10 = scalar_lea.vmem %s15199_s6, 768 }
  0x6d   : > { %v294_v7 = vld [vmem:[#allocation5 + $0xc0] sm:$0xff]  ;;  %v295_v12 = vld [vmem:[#allocation5 + $0xc8] sm:$0xff]  ;;  %p14661_p11 = scmp.ne.s32.totalorder %s15199_s6, %s14660_s10  ;;  %p15260_p0 = scmp.ne.s32.totalorder %s15255_s30, 0 }
  0x6e   : > { %v11745_v10 = vcombine.high %v290_v6, %v294_v7  ;;  %v298_v13 = vld [vmem:[#allocation5 + $0x100] sm:$0xff]  ;;  %2586 = vmatprep.subr.bf16.mxu0 %v11737_v3  ;;  %v11747_v14 = vcombine.high %v291_v11, %v295_v12  ;;  %v299_v16 = vld [vmem:[#allocation5 + $0x108] sm:$0xff]  ;;  %2709 = vmatprep.subr.bf16.mxu1 %v11739_v8  ;;  %v11744_v18 = vcombine.low %v290_v6, %v294_v7  ;;  %s14739_s28 = smov [#allocation8]  }
  0x6f   : > { %v302_v15 = vld [vmem:[#allocation5 + $0x140] sm:$0xff]  ;;  %v303_v17 = vld [vmem:[#allocation5 + $0x148] sm:$0xff]  ;;  %2587 = vmatpush1.bf16.msra.mxu0 %v11736_v5  ;;  %2710 = vmatpush1.bf16.msra.mxu1 %v11738_v9  ;;  %v11746_v19 = vcombine.low %v291_v11, %v295_v12  ;;  %p14662_p1 = pnand %p14661_p11, %p15260_p0  ;;  %s14664_s15 = sshll.u32 %s14739_s28, 4  ;;  %s14665_s15 = int_to_ptr.vmem [resolvable:$false] %s14664_s15 }
  0x70   : > { %2588 = vmatprep.subr.bf16.mxu0 %v11745_v10  ;;  %v11753_v20 = vcombine.high %v298_v13, %v302_v15  ;;  %2711 = vmatprep.subr.bf16.mxu1 %v11747_v14  ;;  %v11755_v21 = vcombine.high %v299_v16, %v303_v17  ;;  %v306_v22 = vld [vmem:[#allocation5 + $0x180] sm:$0xff]  ;;  %v307_v24 = vld [vmem:[#allocation5 + $0x188] sm:$0xff]  ;;  %v11752_v26 = vcombine.low %v298_v13, %v302_v15  ;;  %s14666_s17 = scalar_lea.vmem %s14665_s15, 1536  ;;  %p14667_p5 = scmp.lt.s32.totalorder %s15199_s6, %s14665_s15 }
  0x71   : > { %v310_v23 = vld [vmem:[#allocation5 + $0x1c0] sm:$0xff]  ;;  %v311_v25 = vld [vmem:[#allocation5 + $0x1c8] sm:$0xff]  ;;  %v11754_v27 = vcombine.low %v299_v16, %v303_v17  ;;  %p14663_p3 = pneg %p14662_p1  ;;  %p14668_p9 = scmp.lt.s32.totalorder %s14666_s17, %s14660_s10 }
  0x72   : > { %v11761_v28 = vcombine.high %v306_v22, %v310_v23  ;;  %v11763_v29 = vcombine.high %v307_v24, %v311_v25  ;;  %v314_v30 = vld [vmem:[#allocation5 + $0x200] sm:$0xff]  ;;  %v315_v32 = vld [vmem:[#allocation5 + $0x208] sm:$0xff]  ;;  %v11760_v34 = vcombine.low %v306_v22, %v310_v23  ;;  %v11762_v35 = vcombine.low %v307_v24, %v311_v25 }
  0x73   : > { %2589 = vmatpush1.bf16.msra.mxu0 %v11744_v18  ;;  %2712 = vmatpush1.bf16.msra.mxu1 %v11746_v19  ;;  %v318_v31 = vld [vmem:[#allocation5 + $0x240] sm:$0xff]  ;;  %v319_v33 = vld [vmem:[#allocation5 + $0x248] sm:$0xff]  ;;  %p14669_p12 = por %p14668_p9, %p14667_p5 }
  0x74   : > { %2590 = vmatprep.subr.bf16.mxu0 %v11753_v20  ;;  %2713 = vmatprep.subr.bf16.mxu1 %v11755_v21  ;;  %v11769_v36 = vcombine.high %v314_v30, %v318_v31  ;;  %v11771_v37 = vcombine.high %v315_v32, %v319_v33  ;;  %v322_v38 = vld [vmem:[#allocation5 + $0x280] sm:$0xff]  ;;  %v323_v40 = vld [vmem:[#allocation5 + $0x288] sm:$0xff]  ;;  %v11768_v42 = vcombine.low %v314_v30, %v318_v31 }
  0x75   : > { %v326_v39 = vld [vmem:[#allocation5 + $0x2c0] sm:$0xff]  ;;  %v327_v41 = vld [vmem:[#allocation5 + $0x2c8] sm:$0xff]  ;;  %v11770_v43 = vcombine.low %v315_v32, %v319_v33  ;;  %p14670_p2 = pnand %p14669_p12, %p14663_p3 }
  0x76   : > { %v11777_v44 = vcombine.high %v322_v38, %v326_v39  ;;  %v11779_v45 = vcombine.high %v323_v40, %v327_v41  ;;  %v330_v46 = vld [vmem:[#allocation5 + $0x300] sm:$0xff]  ;;  %v331_v48 = vld [vmem:[#allocation5 + $0x308] sm:$0xff]  ;;  %v11776_v50 = vcombine.low %v322_v38, %v326_v39  ;;  %v11778_v51 = vcombine.low %v323_v40, %v327_v41 }
  0x77   : > { %2591 = vmatpush1.bf16.msra.mxu0 %v11752_v26  ;;  %2714 = vmatpush1.bf16.msra.mxu1 %v11754_v27  ;;  %v334_v47 = vld [vmem:[#allocation5 + $0x340] sm:$0xff]  ;;  %v335_v49 = vld [vmem:[#allocation5 + $0x348] sm:$0xff] }
  0x78   : > { %2592 = vmatprep.subr.bf16.mxu0 %v11761_v28  ;;  %2715 = vmatprep.subr.bf16.mxu1 %v11763_v29  ;;  %v11785_v52 = vcombine.high %v330_v46, %v334_v47  ;;  %v271_v53 = vld [vmem:[%s14945_s23 + $0x8] sm:$0xff]  ;;  %v11787_v54 = vcombine.high %v331_v48, %v335_v49  ;;  %v338_v55 = vld [vmem:[#allocation5 + $0x380] sm:$0xff]  ;;  %v11784_v60 = vcombine.low %v330_v46, %v334_v47 }
  0x79   : > { %v342_v56 = vld [vmem:[#allocation5 + $0x3c0] sm:$0xff]  ;;  %v14956_v57 = vpack.c.bf16 %v271_v53, %v271_v53  ;;  %v339_v58 = vld [vmem:[#allocation5 + $0x388] sm:$0xff]  ;;  %v11786_v61 = vcombine.low %v331_v48, %v335_v49 }
  0x7a   : > { %v343_v59 = vld [vmem:[#allocation5 + $0x3c8] sm:$0xff]  ;;  %v11793_v62 = vcombine.high %v338_v55, %v342_v56  ;;  %v346_v0 = vld [vmem:[#allocation5 + $0x400] sm:$0xff]  ;;  %v11792_v4 = vcombine.low %v338_v55, %v342_v56 }
  0x7b   : > { %2593 = vmatpush1.bf16.msra.mxu0 %v11760_v34  ;;  %2716 = vmatpush1.bf16.msra.mxu1 %v11762_v35  ;;  %v11795_v63 = vcombine.high %v339_v58, %v343_v59  ;;  %v350_v1 = vld [vmem:[#allocation5 + $0x440] sm:$0xff]  ;;  %v347_v2 = vld [vmem:[#allocation5 + $0x408] sm:$0xff]  ;;  %v11794_v5 = vcombine.low %v339_v58, %v343_v59 }
  0x7c   : > { %2594 = vmatprep.subr.bf16.mxu0 %v11769_v36  ;;  %2717 = vmatprep.subr.bf16.mxu1 %v11771_v37  ;;  %v351_v3 = vld [vmem:[#allocation5 + $0x448] sm:$0xff]  ;;  %v11801_v6 = vcombine.high %v346_v0, %v350_v1  ;;  %v354_v8 = vld [vmem:[#allocation5 + $0x480] sm:$0xff]  ;;  %v11800_v12 = vcombine.low %v346_v0, %v350_v1 }
  0x7d   : > { %2618 = vmatprep.mubr.bf16.mxu0 %v14956_v57  ;;  %2741 = vmatprep.mubr.bf16.mxu1 %v14956_v57  ;;  %v11803_v7 = vcombine.high %v347_v2, %v351_v3  ;;  %v358_v9 = vld [vmem:[#allocation5 + $0x4c0] sm:$0xff]  ;;  %v355_v10 = vld [vmem:[#allocation5 + $0x488] sm:$0xff]  ;;  %v11802_v13 = vcombine.low %v347_v2, %v351_v3 }
  0x7e   : > { %v359_v11 = vld [vmem:[#allocation5 + $0x4c8] sm:$0xff]  ;;  %v11809_v14 = vcombine.high %v354_v8, %v358_v9  ;;  %v362_v16 = vld [vmem:[#allocation5 + $0x500] sm:$0xff]  ;;  %v11808_v20 = vcombine.low %v354_v8, %v358_v9 }
  0x7f   : > { %2595 = vmatpush1.bf16.msra.mxu0 %v11768_v42  ;;  %2718 = vmatpush1.bf16.msra.mxu1 %v11770_v43  ;;  %v11811_v15 = vcombine.high %v355_v10, %v359_v11  ;;  %v366_v17 = vld [vmem:[#allocation5 + $0x540] sm:$0xff]  ;;  %v363_v18 = vld [vmem:[#allocation5 + $0x508] sm:$0xff]  ;;  %v11810_v21 = vcombine.low %v355_v10, %v359_v11 }
  0x80   : > { %2596 = vmatprep.subr.bf16.mxu0 %v11777_v44  ;;  %2719 = vmatprep.subr.bf16.mxu1 %v11779_v45  ;;  %v367_v19 = vld [vmem:[#allocation5 + $0x548] sm:$0xff]  ;;  %v11817_v22 = vcombine.high %v362_v16, %v366_v17  ;;  %v370_v24 = vld [vmem:[#allocation5 + $0x580] sm:$0xff]  ;;  %v11816_v28 = vcombine.low %v362_v16, %v366_v17 }
  0x81   : > { %v11819_v23 = vcombine.high %v363_v18, %v367_v19  ;;  %v374_v25 = vld [vmem:[#allocation5 + $0x5c0] sm:$0xff]  ;;  %v371_v26 = vld [vmem:[#allocation5 + $0x588] sm:$0xff]  ;;  %v11818_v29 = vcombine.low %v363_v18, %v367_v19 }
  0x82   : > { %v375_v27 = vld [vmem:[#allocation5 + $0x5c8] sm:$0xff]  ;;  %v11825_v30 = vcombine.high %v370_v24, %v374_v25  ;;  %v378_v32 = vld [vmem:[#allocation5 + $0x600] sm:$0xff]  ;;  %v11824_v36 = vcombine.low %v370_v24, %v374_v25 }
  0x83   : > { %2597 = vmatpush1.bf16.msra.mxu0 %v11776_v50  ;;  %2720 = vmatpush1.bf16.msra.mxu1 %v11778_v51  ;;  %v11827_v31 = vcombine.high %v371_v26, %v375_v27  ;;  %v382_v33 = vld [vmem:[#allocation5 + $0x640] sm:$0xff]  ;;  %v379_v34 = vld [vmem:[#allocation5 + $0x608] sm:$0xff]  ;;  %v11826_v37 = vcombine.low %v371_v26, %v375_v27 }
  0x84   : > { %2598 = vmatprep.subr.bf16.mxu0 %v11785_v52  ;;  %2721 = vmatprep.subr.bf16.mxu1 %v11787_v54  ;;  %v383_v35 = vld [vmem:[#allocation5 + $0x648] sm:$0xff]  ;;  %v11833_v38 = vcombine.high %v378_v32, %v382_v33  ;;  %v386_v40 = vld [vmem:[#allocation5 + $0x680] sm:$0xff]  ;;  %v11832_v44 = vcombine.low %v378_v32, %v382_v33 }
  0x85   : > { %v11835_v39 = vcombine.high %v379_v34, %v383_v35  ;;  %v390_v41 = vld [vmem:[#allocation5 + $0x6c0] sm:$0xff]  ;;  %v387_v42 = vld [vmem:[#allocation5 + $0x688] sm:$0xff]  ;;  %v11834_v45 = vcombine.low %v379_v34, %v383_v35 }
  0x86   : > { %v391_v43 = vld [vmem:[#allocation5 + $0x6c8] sm:$0xff]  ;;  %v11841_v46 = vcombine.high %v386_v40, %v390_v41  ;;  %v394_v48 = vld [vmem:[#allocation5 + $0x700] sm:$0xff]  ;;  %v11840_v52 = vcombine.low %v386_v40, %v390_v41 }
  0x87   : > { %2599 = vmatpush1.bf16.msra.mxu0 %v11784_v60  ;;  %2722 = vmatpush1.bf16.msra.mxu1 %v11786_v61  ;;  %v11843_v47 = vcombine.high %v387_v42, %v391_v43  ;;  %v398_v49 = vld [vmem:[#allocation5 + $0x740] sm:$0xff]  ;;  %v395_v50 = vld [vmem:[#allocation5 + $0x708] sm:$0xff]  ;;  %v11842_v53 = vcombine.low %v387_v42, %v391_v43 }
  0x88   : > { %2600 = vmatprep.subr.bf16.mxu0 %v11793_v62  ;;  %2723 = vmatprep.subr.bf16.mxu1 %v11795_v63  ;;  %v399_v51 = vld [vmem:[#allocation5 + $0x748] sm:$0xff]  ;;  %v11849_v54 = vcombine.high %v394_v48, %v398_v49  ;;  %v402_v56 = vld [vmem:[#allocation5 + $0x780] sm:$0xff]  ;;  %v11848_v61 = vcombine.low %v394_v48, %v398_v49 }
  0x89   : > { %v11851_v55 = vcombine.high %v395_v50, %v399_v51  ;;  %v406_v58 = vld [vmem:[#allocation5 + $0x7c0] sm:$0xff]  ;;  %v403_v59 = vld [vmem:[#allocation5 + $0x788] sm:$0xff]  ;;  %v11850_v62 = vcombine.low %v395_v50, %v399_v51 }
  0x8a   : > { %v407_v60 = vld [vmem:[#allocation5 + $0x7c8] sm:$0xff]  ;;  %v11857_v63 = vcombine.high %v402_v56, %v406_v58  ;;  %v410_v1 = vld [vmem:[#allocation5 + $0x800] sm:$0xff] }
  0x8b   : > { %2601 = vmatpush1.bf16.msra.mxu0 %v11792_v4  ;;  %2724 = vmatpush1.bf16.msra.mxu1 %v11794_v5  ;;  %v11859_v0 = vcombine.high %v403_v59, %v407_v60  ;;  %v414_v2 = vld [vmem:[#allocation5 + $0x840] sm:$0xff]  ;;  %v411_v3 = vld [vmem:[#allocation5 + $0x808] sm:$0xff]  ;;  %v11856_v5 = vcombine.low %v402_v56, %v406_v58 }
  0x8c   : > { %2602 = vmatprep.subr.bf16.mxu0 %v11801_v6  ;;  %2725 = vmatprep.subr.bf16.mxu1 %v11803_v7  ;;  %v415_v4 = vld [vmem:[#allocation5 + $0x848] sm:$0xff]  ;;  %v270_v6 = vld [vmem:[%s14945_s23] sm:$0xff]  ;;  %v11858_v7 = vcombine.low %v403_v59, %v407_v60  ;;  %v11865_v8 = vcombine.high %v410_v1, %v414_v2  ;;  %v11864_v16 = vcombine.low %v410_v1, %v414_v2 }
  0x8d   : > { %v11867_v9 = vcombine.high %v411_v3, %v415_v4  ;;  %v418_v10 = vld [vmem:[#allocation5 + $0x880] sm:$0xff]  ;;  %v11866_v17 = vcombine.low %v411_v3, %v415_v4  ;;  %v431_v24 = vld [vmem:[#allocation5 + $0x948] sm:$0xff] }
  0x8e   : > { %v422_v11 = vld [vmem:[#allocation5 + $0x8c0] sm:$0xff]  ;;  %v439_v32 = vld [vmem:[#allocation5 + $0x9c8] sm:$0xff] }
  0x8f   : > { %2603 = vmatpush1.bf16.msra.mxu0 %v11800_v12  ;;  %2726 = vmatpush1.bf16.msra.mxu1 %v11802_v13  ;;  %v14961_v12 = vpack.c.bf16 %v270_v6, %v270_v6  ;;  %v419_v13 = vld [vmem:[#allocation5 + $0x888] sm:$0xff]  ;;  %v11873_v18 = vcombine.high %v418_v10, %v422_v11  ;;  %v11872_v25 = vcombine.low %v418_v10, %v422_v11  ;;  %v478_v6 = vld [vmem:[#allocation5 + $0xc40] sm:$0xff] }
  0x90   : > { %2604 = vmatprep.subr.bf16.mxu0 %v11809_v14  ;;  %2727 = vmatprep.subr.bf16.mxu1 %v11811_v15  ;;  %v423_v14 = vld [vmem:[#allocation5 + $0x8c8] sm:$0xff] }
  0x91   : > { %v273_v15 = vld [vmem:[%s14945_s23 + $0x18] sm:$0xff]  ;;  %v11875_v19 = vcombine.high %v419_v13, %v423_v14  ;;  %v11874_v26 = vcombine.low %v419_v13, %v423_v14  ;;  %v482_v14 = vld [vmem:[#allocation5 + $0xc80] sm:$0xff] }
  0x92   : > { %v447_v40 = vld [vmem:[#allocation5 + $0xa48] sm:$0xff] }
  0x93   : > { %2605 = vmatpush1.bf16.msra.mxu0 %v11808_v20  ;;  %2728 = vmatpush1.bf16.msra.mxu1 %v11810_v21  ;;  %v426_v20 = vld [vmem:[#allocation5 + $0x900] sm:$0xff]  ;;  %v455_v48 = vld [vmem:[#allocation5 + $0xac8] sm:$0xff] }
  0x94   : > { %2606 = vmatprep.subr.bf16.mxu0 %v11817_v22  ;;  %2729 = vmatprep.subr.bf16.mxu1 %v11819_v23  ;;  %v430_v21 = vld [vmem:[#allocation5 + $0x940] sm:$0xff]  ;;  %v427_v22 = vld [vmem:[#allocation5 + $0x908] sm:$0xff]  ;;  %v14964_v23 = vpack.c.bf16 %v273_v15, %v273_v15 }
  0x95   : > { %v11881_v27 = vcombine.high %v426_v20, %v430_v21  ;;  %v11880_v33 = vcombine.low %v426_v20, %v430_v21  ;;  %v11882_v34 = vcombine.low %v427_v22, %v431_v24  ;;  %v463_v56 = vld [vmem:[#allocation5 + $0xb48] sm:$0xff]  ;;  %v486_v15 = vld [vmem:[#allocation5 + $0xcc0] sm:$0xff] }
  0x96   : > { %v471_v1 = vld [vmem:[#allocation5 + $0xbc8] sm:$0xff]  ;;  %v11937_v21 = vcombine.high %v482_v14, %v486_v15 }
  0x97   : > { %2607 = vmatpush1.bf16.msra.mxu0 %v11816_v28  ;;  %2730 = vmatpush1.bf16.msra.mxu1 %v11818_v29  ;;  %v434_v28 = vld [vmem:[#allocation5 + $0x980] sm:$0xff] }
  0x98   : > { %2608 = vmatprep.subr.bf16.mxu0 %v11825_v30  ;;  %2731 = vmatprep.subr.bf16.mxu1 %v11827_v31  ;;  %v438_v29 = vld [vmem:[#allocation5 + $0x9c0] sm:$0xff]  ;;  %v435_v30 = vld [vmem:[#allocation5 + $0x988] sm:$0xff]  ;;  %v11883_v31 = vcombine.high %v427_v22, %v431_v24 }
  0x99   : > { %v11889_v35 = vcombine.high %v434_v28, %v438_v29  ;;  %v11888_v41 = vcombine.low %v434_v28, %v438_v29  ;;  %v11890_v42 = vcombine.low %v435_v30, %v439_v32  ;;  %v490_v22 = vld [vmem:[#allocation5 + $0xd00] sm:$0xff]  ;;  %v11936_v28 = vcombine.low %v482_v14, %v486_v15 }
  0x9a   : > { %v494_v24 = vld [vmem:[#allocation5 + $0xd40] sm:$0xff] }
  0x9b   : > { %2609 = vmatpush1.bf16.msra.mxu0 %v11824_v36  ;;  %2732 = vmatpush1.bf16.msra.mxu1 %v11826_v37  ;;  %v442_v36 = vld [vmem:[#allocation5 + $0xa00] sm:$0xff] }
  0x9c   : > { %2610 = vmatprep.subr.bf16.mxu0 %v11833_v38  ;;  %2733 = vmatprep.subr.bf16.mxu1 %v11835_v39  ;;  %v446_v37 = vld [vmem:[#allocation5 + $0xa40] sm:$0xff]  ;;  %v443_v38 = vld [vmem:[#allocation5 + $0xa08] sm:$0xff]  ;;  %v11891_v39 = vcombine.high %v435_v30, %v439_v32  ;;  %v11945_v30 = vcombine.high %v490_v22, %v494_v24 }
  0x9d   : > { %v11897_v43 = vcombine.high %v442_v36, %v446_v37  ;;  %v11896_v49 = vcombine.low %v442_v36, %v446_v37  ;;  %v11898_v50 = vcombine.low %v443_v38, %v447_v40  ;;  %v502_v32 = vld [vmem:[#allocation5 + $0xdc0] sm:$0xff]  ;;  %v11944_v36 = vcombine.low %v490_v22, %v494_v24  ;;  %v275_v24 = vld [vmem:[%s14945_s23 + $0x28] sm:$0xff] }
  0x9e   : > { %v272_v14 = vld [vmem:[%s14945_s23 + $0x10] sm:$0xff] }
  0x9f   : > { %2611 = vmatpush1.bf16.msra.mxu0 %v11832_v44  ;;  %2734 = vmatpush1.bf16.msra.mxu1 %v11834_v45  ;;  %v450_v44 = vld [vmem:[#allocation5 + $0xa80] sm:$0xff] }
  0xa0   : > { %2612 = vmatprep.subr.bf16.mxu0 %v11841_v46  ;;  %2735 = vmatprep.subr.bf16.mxu1 %v11843_v47  ;;  %v454_v45 = vld [vmem:[#allocation5 + $0xac0] sm:$0xff]  ;;  %v451_v46 = vld [vmem:[#allocation5 + $0xa88] sm:$0xff]  ;;  %v11899_v47 = vcombine.high %v443_v38, %v447_v40 }
  0xa1   : > { %v11905_v51 = vcombine.high %v450_v44, %v454_v45  ;;  %v11904_v58 = vcombine.low %v450_v44, %v454_v45  ;;  %v11906_v59 = vcombine.low %v451_v46, %v455_v48  ;;  %v510_v40 = vld [vmem:[#allocation5 + $0xe40] sm:$0xff] }
  0xa3   : > { %2613 = vmatpush1.bf16.msra.mxu0 %v11840_v52  ;;  %2736 = vmatpush1.bf16.msra.mxu1 %v11842_v53  ;;  %v458_v52 = vld [vmem:[#allocation5 + $0xb00] sm:$0xff] }
  0xa4   : > { %2614 = vmatprep.subr.bf16.mxu0 %v11849_v54  ;;  %2737 = vmatprep.subr.bf16.mxu1 %v11851_v55  ;;  %v462_v53 = vld [vmem:[#allocation5 + $0xb40] sm:$0xff]  ;;  %v459_v54 = vld [vmem:[#allocation5 + $0xb08] sm:$0xff]  ;;  %v11907_v55 = vcombine.high %v451_v46, %v455_v48 }
  0xa5   : > { %v11913_v60 = vcombine.high %v458_v52, %v462_v53  ;;  %v11912_v2 = vcombine.low %v458_v52, %v462_v53  ;;  %v11914_v3 = vcombine.low %v459_v54, %v463_v56  ;;  %v518_v48 = vld [vmem:[#allocation5 + $0xec0] sm:$0xff] }
  0xa7   : > { %2615 = vmatpush1.bf16.msra.mxu0 %v11848_v61  ;;  %2738 = vmatpush1.bf16.msra.mxu1 %v11850_v62  ;;  %v466_v61 = vld [vmem:[#allocation5 + $0xb80] sm:$0xff] }
  0xa8   : > { %2616 = vmatprep.subr.bf16.mxu0 %v11857_v63  ;;  %2739 = vmatprep.subr.bf16.mxu1 %v11859_v0  ;;  %v470_v62 = vld [vmem:[#allocation5 + $0xbc0] sm:$0xff]  ;;  %v467_v63 = vld [vmem:[#allocation5 + $0xb88] sm:$0xff]  ;;  %v11915_v0 = vcombine.high %v459_v54, %v463_v56 }
  0xa9   : > { %v11921_v4 = vcombine.high %v466_v61, %v470_v62  ;;  %v11920_v10 = vcombine.low %v466_v61, %v470_v62  ;;  %v11922_v11 = vcombine.low %v467_v63, %v471_v1  ;;  %v526_v56 = vld [vmem:[#allocation5 + $0xf40] sm:$0xff] }
  0xab   : > { %2617 = vmatpush1.bf16.msra.mxu0 %v11856_v5  ;;  %2740 = vmatpush1.bf16.msra.mxu1 %v11858_v7  ;;  %v474_v5 = vld [vmem:[#allocation5 + $0xc00] sm:$0xff]  ;;  %v475_v7 = vld [vmem:[#allocation5 + $0xc08] sm:$0xff] }
  0xac   : > { %2627 = vmatprep.subr.bf16.mxu0 %v11865_v8  ;;  %2750 = vmatprep.subr.bf16.mxu1 %v11867_v9  ;;  %v11923_v8 = vcombine.high %v467_v63, %v471_v1  ;;  %v479_v9 = vld [vmem:[#allocation5 + $0xc48] sm:$0xff]  ;;  %v11929_v13 = vcombine.high %v474_v5, %v478_v6  ;;  %v534_v1 = vld [vmem:[#allocation5 + $0xfc0] sm:$0xff] }
  0xad   : > { %v11930_v20 = vcombine.low %v475_v7, %v479_v9 }
  0xae   : > { %2619 = vmatmul.mubr.bf16.vlgmr.msra.gmra.mrb[0].mxu0 %v14961_v12  ;;  %2742 = vmatmul.mubr.bf16.vlgmr.msra.gmra.mrb[0].mxu1 %v14961_v12 }
  0xaf   : > { %2628 = vmatpush1.bf16.msra.mxu0 %v11864_v16  ;;  %2751 = vmatpush1.bf16.msra.mxu1 %v11866_v17  ;;  %v483_v16 = vld [vmem:[#allocation5 + $0xc88] sm:$0xff]  ;;  %v11931_v17 = vcombine.high %v475_v7, %v479_v9  ;;  %v542_v9 = vld [vmem:[#allocation5 + $0x1040] sm:$0xff] }
  0xb0   : > { %2629 = vmatprep.subr.bf16.mxu0 %v11873_v18  ;;  %2752 = vmatprep.subr.bf16.mxu1 %v11875_v19  ;;  %v487_v18 = vld [vmem:[#allocation5 + $0xcc8] sm:$0xff]  ;;  %v11928_v19 = vcombine.low %v474_v5, %v478_v6  ;;  %v538_v6 = vld [vmem:[#allocation5 + $0x1000] sm:$0xff] }
  0xb1   : > { %2659 = vmatprep.mubr.bf16.mxu0 %v14964_v23  ;;  %2782 = vmatprep.mubr.bf16.mxu1 %v14964_v23  ;;  %v11938_v29 = vcombine.low %v483_v16, %v487_v18 }
  0xb3   : > { %2630 = vmatpush1.bf16.msra.mxu0 %v11872_v25  ;;  %2753 = vmatpush1.bf16.msra.mxu1 %v11874_v26  ;;  %v491_v25 = vld [vmem:[#allocation5 + $0xd08] sm:$0xff]  ;;  %v11939_v26 = vcombine.high %v483_v16, %v487_v18  ;;  %v546_v16 = vld [vmem:[#allocation5 + $0x1080] sm:$0xff]  ;;  %v11993_v18 = vcombine.high %v538_v6, %v542_v9 }
  0xb4   : > { %2631 = vmatprep.subr.bf16.mxu0 %v11881_v27  ;;  %2754 = vmatprep.subr.bf16.mxu1 %v11883_v31  ;;  %v495_v27 = vld [vmem:[#allocation5 + $0xd48] sm:$0xff]  ;;  %v498_v31 = vld [vmem:[#allocation5 + $0xd80] sm:$0xff] }
  0xb5   : > { %v11946_v37 = vcombine.low %v491_v25, %v495_v27  ;;  %v11953_v38 = vcombine.high %v498_v31, %v502_v32  ;;  %v11952_v44 = vcombine.low %v498_v31, %v502_v32  ;;  %v555_v31 = vld [vmem:[#allocation5 + $0x1108] sm:$0xff] }
  0xb7   : > { %2632 = vmatpush1.bf16.msra.mxu0 %v11880_v33  ;;  %2755 = vmatpush1.bf16.msra.mxu1 %v11882_v34  ;;  %v499_v33 = vld [vmem:[#allocation5 + $0xd88] sm:$0xff]  ;;  %v11947_v34 = vcombine.high %v491_v25, %v495_v27  ;;  %v14972_v25 = vpack.c.bf16 %v272_v14, %v272_v14 }
  0xb8   : > { %2633 = vmatprep.subr.bf16.mxu0 %v11889_v35  ;;  %2756 = vmatprep.subr.bf16.mxu1 %v11891_v39  ;;  %v503_v35 = vld [vmem:[#allocation5 + $0xdc8] sm:$0xff]  ;;  %v506_v39 = vld [vmem:[#allocation5 + $0xe00] sm:$0xff] }
  0xb9   : > { %v11954_v45 = vcombine.low %v499_v33, %v503_v35  ;;  %v11961_v46 = vcombine.high %v506_v39, %v510_v40  ;;  %v11960_v52 = vcombine.low %v506_v39, %v510_v40  ;;  %v566_v39 = vld [vmem:[#allocation5 + $0x11c0] sm:$0xff]  ;;  %v563_v40 = vld [vmem:[#allocation5 + $0x1188] sm:$0xff] }
  0xbb   : > { %2634 = vmatpush1.bf16.msra.mxu0 %v11888_v41  ;;  %2757 = vmatpush1.bf16.msra.mxu1 %v11890_v42  ;;  %v507_v41 = vld [vmem:[#allocation5 + $0xe08] sm:$0xff]  ;;  %v11955_v42 = vcombine.high %v499_v33, %v503_v35 }
  0xbc   : > { %2635 = vmatprep.subr.bf16.mxu0 %v11897_v43  ;;  %2758 = vmatprep.subr.bf16.mxu1 %v11899_v47  ;;  %v511_v43 = vld [vmem:[#allocation5 + $0xe48] sm:$0xff]  ;;  %v514_v47 = vld [vmem:[#allocation5 + $0xe80] sm:$0xff] }
  0xbd   : > { %v11962_v53 = vcombine.low %v507_v41, %v511_v43  ;;  %v11969_v54 = vcombine.high %v514_v47, %v518_v48  ;;  %v11968_v61 = vcombine.low %v514_v47, %v518_v48  ;;  %v559_v33 = vld [vmem:[#allocation5 + $0x1148] sm:$0xff]  ;;  %v574_v47 = vld [vmem:[#allocation5 + $0x1240] sm:$0xff] }
  0xbe   : > { %v571_v48 = vld [vmem:[#allocation5 + $0x1208] sm:$0xff] }
  0xbf   : > { %2636 = vmatpush1.bf16.msra.mxu0 %v11896_v49  ;;  %2759 = vmatpush1.bf16.msra.mxu1 %v11898_v50  ;;  %v515_v49 = vld [vmem:[#allocation5 + $0xe88] sm:$0xff]  ;;  %v11963_v50 = vcombine.high %v507_v41, %v511_v43  ;;  %v12011_v41 = vcombine.high %v555_v31, %v559_v33 }
  0xc0   : > { %2637 = vmatprep.subr.bf16.mxu0 %v11905_v51  ;;  %2760 = vmatprep.subr.bf16.mxu1 %v11907_v55  ;;  %v519_v51 = vld [vmem:[#allocation5 + $0xec8] sm:$0xff]  ;;  %v522_v55 = vld [vmem:[#allocation5 + $0xf00] sm:$0xff] }
  0xc1   : > { %v11970_v62 = vcombine.low %v515_v49, %v519_v51  ;;  %v11977_v63 = vcombine.high %v522_v55, %v526_v56  ;;  %v11976_v5 = vcombine.low %v522_v55, %v526_v56  ;;  %v582_v55 = vld [vmem:[#allocation5 + $0x12c0] sm:$0xff]  ;;  %v579_v56 = vld [vmem:[#allocation5 + $0x1288] sm:$0xff] }
  0xc3   : > { %2638 = vmatpush1.bf16.msra.mxu0 %v11904_v58  ;;  %2761 = vmatpush1.bf16.msra.mxu1 %v11906_v59  ;;  %v523_v58 = vld [vmem:[#allocation5 + $0xf08] sm:$0xff]  ;;  %v11971_v59 = vcombine.high %v515_v49, %v519_v51 }
  0xc4   : > { %2639 = vmatprep.subr.bf16.mxu0 %v11913_v60  ;;  %2762 = vmatprep.subr.bf16.mxu1 %v11915_v0  ;;  %v527_v60 = vld [vmem:[#allocation5 + $0xf48] sm:$0xff]  ;;  %v530_v0 = vld [vmem:[#allocation5 + $0xf80] sm:$0xff] }
  0xc5   : > { %v11978_v7 = vcombine.low %v523_v58, %v527_v60  ;;  %v11984_v15 = vcombine.low %v530_v0, %v534_v1 }
  0xc7   : > { %2640 = vmatpush1.bf16.msra.mxu0 %v11912_v2  ;;  %2763 = vmatpush1.bf16.msra.mxu1 %v11914_v3  ;;  %v531_v2 = vld [vmem:[#allocation5 + $0xf88] sm:$0xff]  ;;  %v11979_v3 = vcombine.high %v523_v58, %v527_v60 }
  0xc8   : > { %2641 = vmatprep.subr.bf16.mxu0 %v11921_v4  ;;  %2764 = vmatprep.subr.bf16.mxu1 %v11923_v8  ;;  %v535_v4 = vld [vmem:[#allocation5 + $0xfc8] sm:$0xff]  ;;  %v11985_v8 = vcombine.high %v530_v0, %v534_v1  ;;  %v590_v0 = vld [vmem:[#allocation5 + $0x1340] sm:$0xff] }
  0xc9   : > { %v587_v1 = vld [vmem:[#allocation5 + $0x1308] sm:$0xff] }
  0xcb   : > { %2642 = vmatpush1.bf16.msra.mxu0 %v11920_v10  ;;  %2765 = vmatpush1.bf16.msra.mxu1 %v11922_v11  ;;  %v539_v10 = vld [vmem:[#allocation5 + $0x1008] sm:$0xff] }
  0xcc   : > { %2643 = vmatprep.subr.bf16.mxu0 %v11929_v13  ;;  %2766 = vmatprep.subr.bf16.mxu1 %v11931_v17  ;;  %v543_v11 = vld [vmem:[#allocation5 + $0x1048] sm:$0xff]  ;;  %v11987_v13 = vcombine.high %v531_v2, %v535_v4  ;;  %v11986_v17 = vcombine.low %v531_v2, %v535_v4 }
  0xcd   : > { %v11995_v22 = vcombine.high %v539_v10, %v543_v11  ;;  %v11994_v27 = vcombine.low %v539_v10, %v543_v11  ;;  %v599_v11 = vld [vmem:[#allocation5 + $0x13c8] sm:$0xff] }
  0xcf   : > { %2644 = vmatpush1.bf16.msra.mxu0 %v11928_v19  ;;  %2767 = vmatpush1.bf16.msra.mxu1 %v11930_v20  ;;  %v550_v19 = vld [vmem:[#allocation5 + $0x10c0] sm:$0xff]  ;;  %v547_v20 = vld [vmem:[#allocation5 + $0x1088] sm:$0xff] }
  0xd0   : > { %2645 = vmatprep.subr.bf16.mxu0 %v11937_v21  ;;  %2768 = vmatprep.subr.bf16.mxu1 %v11939_v26  ;;  %v551_v21 = vld [vmem:[#allocation5 + $0x10c8] sm:$0xff]  ;;  %v11992_v26 = vcombine.low %v538_v6, %v542_v9  ;;  %v12000_v35 = vcombine.low %v546_v16, %v550_v19 }
  0xd1   : > { %v12003_v32 = vcombine.high %v547_v20, %v551_v21  ;;  %v595_v9 = vld [vmem:[#allocation5 + $0x1388] sm:$0xff] }
  0xd3   : > { %2646 = vmatpush1.bf16.msra.mxu0 %v11936_v28  ;;  %2769 = vmatpush1.bf16.msra.mxu1 %v11938_v29  ;;  %v12001_v28 = vcombine.high %v546_v16, %v550_v19  ;;  %v554_v29 = vld [vmem:[#allocation5 + $0x1100] sm:$0xff]  ;;  %v12051_v19 = vcombine.high %v595_v9, %v599_v11 }
  0xd4   : > { %2647 = vmatprep.subr.bf16.mxu0 %v11945_v30  ;;  %2770 = vmatprep.subr.bf16.mxu1 %v11947_v34  ;;  %v558_v30 = vld [vmem:[#allocation5 + $0x1140] sm:$0xff]  ;;  %v14974_v34 = vpack.c.bf16 %v275_v24, %v275_v24 }
  0xd5   : > { %v12008_v43 = vcombine.low %v554_v29, %v558_v30  ;;  %v602_v16 = vld [vmem:[#allocation5 + $0x1400] sm:$0xff] }
  0xd7   : > { %2648 = vmatpush1.bf16.msra.mxu0 %v11944_v36  ;;  %2771 = vmatpush1.bf16.msra.mxu1 %v11946_v37  ;;  %v12002_v36 = vcombine.low %v547_v20, %v551_v21  ;;  %v12009_v37 = vcombine.high %v554_v29, %v558_v30  ;;  %v607_v20 = vld [vmem:[#allocation5 + $0x1448] sm:$0xff] }
  0xd8   : > { %2649 = vmatprep.subr.bf16.mxu0 %v11953_v38  ;;  %2772 = vmatprep.subr.bf16.mxu1 %v11955_v42  ;;  %v562_v38 = vld [vmem:[#allocation5 + $0x1180] sm:$0xff]  ;;  %v567_v42 = vld [vmem:[#allocation5 + $0x11c8] sm:$0xff] }
  0xd9   : > { %v12019_v49 = vcombine.high %v563_v40, %v567_v42  ;;  %v12016_v51 = vcombine.low %v562_v38, %v566_v39  ;;  %v615_v30 = vld [vmem:[#allocation5 + $0x14c8] sm:$0xff] }
  0xdb   : > { %2650 = vmatpush1.bf16.msra.mxu0 %v11952_v44  ;;  %2773 = vmatpush1.bf16.msra.mxu1 %v11954_v45  ;;  %v12010_v44 = vcombine.low %v555_v31, %v559_v33  ;;  %v12017_v45 = vcombine.high %v562_v38, %v566_v39  ;;  %v623_v39 = vld [vmem:[#allocation5 + $0x1548] sm:$0xff] }
  0xdc   : > { %2651 = vmatprep.subr.bf16.mxu0 %v11961_v46  ;;  %2774 = vmatprep.subr.bf16.mxu1 %v11963_v50  ;;  %v570_v46 = vld [vmem:[#allocation5 + $0x1200] sm:$0xff]  ;;  %v575_v50 = vld [vmem:[#allocation5 + $0x1248] sm:$0xff] }
  0xdd   : > { %v12027_v58 = vcombine.high %v571_v48, %v575_v50  ;;  %v12024_v60 = vcombine.low %v570_v46, %v574_v47 }
  0xdf   : > { %2652 = vmatpush1.bf16.msra.mxu0 %v11960_v52  ;;  %2775 = vmatpush1.bf16.msra.mxu1 %v11962_v53  ;;  %v12018_v52 = vcombine.low %v563_v40, %v567_v42  ;;  %v12025_v53 = vcombine.high %v570_v46, %v574_v47  ;;  %v631_v47 = vld [vmem:[#allocation5 + $0x15c8] sm:$0xff] }
  0xe0   : > { %2653 = vmatprep.subr.bf16.mxu0 %v11969_v54  ;;  %2776 = vmatprep.subr.bf16.mxu1 %v11971_v59  ;;  %v578_v54 = vld [vmem:[#allocation5 + $0x1280] sm:$0xff]  ;;  %v583_v59 = vld [vmem:[#allocation5 + $0x12c8] sm:$0xff] }
  0xe1   : > { %v12035_v2 = vcombine.high %v579_v56, %v583_v59  ;;  %v12032_v4 = vcombine.low %v578_v54, %v582_v55 }
  0xe3   : > { %2654 = vmatpush1.bf16.msra.mxu0 %v11968_v61  ;;  %2777 = vmatpush1.bf16.msra.mxu1 %v11970_v62  ;;  %v12026_v61 = vcombine.low %v571_v48, %v575_v50  ;;  %v12033_v62 = vcombine.high %v578_v54, %v582_v55  ;;  %v639_v55 = vld [vmem:[#allocation5 + $0x1648] sm:$0xff] }
  0xe4   : > { %2655 = vmatprep.subr.bf16.mxu0 %v11977_v63  ;;  %2778 = vmatprep.subr.bf16.mxu1 %v11979_v3  ;;  %v586_v63 = vld [vmem:[#allocation5 + $0x1300] sm:$0xff]  ;;  %v591_v3 = vld [vmem:[#allocation5 + $0x1348] sm:$0xff] }
  0xe5   : > { %v12041_v6 = vcombine.high %v586_v63, %v590_v0  ;;  %v12043_v10 = vcombine.high %v587_v1, %v591_v3  ;;  %v12042_v14 = vcombine.low %v587_v1, %v591_v3 }
  0xe7   : > { %2656 = vmatpush1.bf16.msra.mxu0 %v11976_v5  ;;  %2779 = vmatpush1.bf16.msra.mxu1 %v11978_v7  ;;  %v12034_v5 = vcombine.low %v579_v56, %v583_v59  ;;  %v594_v7 = vld [vmem:[#allocation5 + $0x1380] sm:$0xff] }
  0xe8   : > { %2657 = vmatprep.subr.bf16.mxu0 %v11985_v8  ;;  %2780 = vmatprep.subr.bf16.mxu1 %v11987_v13  ;;  %v598_v8 = vld [vmem:[#allocation5 + $0x13c0] sm:$0xff]  ;;  %v12040_v13 = vcombine.low %v586_v63, %v590_v0  ;;  %v647_v0 = vld [vmem:[#allocation5 + $0x16c8] sm:$0xff] }
  0xe9   : > { %v12048_v21 = vcombine.low %v594_v7, %v598_v8 }
  0xeb   : > { %2658 = vmatpush1.bf16.msra.mxu0 %v11984_v15  ;;  %2781 = vmatpush1.bf16.msra.mxu1 %v11986_v17  ;;  %v12049_v15 = vcombine.high %v594_v7, %v598_v8  ;;  %v606_v17 = vld [vmem:[#allocation5 + $0x1440] sm:$0xff]  ;;  %v655_v8 = vld [vmem:[#allocation5 + $0x1748] sm:$0xff] }
  0xec   : > { %2668 = vmatprep.subr.bf16.mxu0 %v11993_v18  ;;  %2791 = vmatprep.subr.bf16.mxu1 %v11995_v22  ;;  %v603_v18 = vld [vmem:[#allocation5 + $0x1408] sm:$0xff]  ;;  %v12050_v22 = vcombine.low %v595_v9, %v599_v11  ;;  %v12057_v24 = vcombine.high %v602_v16, %v606_v17  ;;  %v12056_v31 = vcombine.low %v602_v16, %v606_v17 }
  0xed   : > { %v12059_v29 = vcombine.high %v603_v18, %v607_v20  ;;  %v663_v17 = vld [vmem:[#allocation5 + $0x17c8] sm:$0xff] }
  0xee   : > { %2660 = vmatmul.mubr.bf16.vlgmr.msra.gmra.mrb[0].mxu0 %v14972_v25  ;;  %2783 = vmatmul.mubr.bf16.vlgmr.msra.gmra.mrb[0].mxu1 %v14972_v25 }
  0xef   : > { %2669 = vmatpush1.bf16.msra.mxu0 %v11992_v26  ;;  %2792 = vmatpush1.bf16.msra.mxu1 %v11994_v27  ;;  %v610_v26 = vld [vmem:[#allocation5 + $0x1480] sm:$0xff] }
  0xf0   : > { %2670 = vmatprep.subr.bf16.mxu0 %v12001_v28  ;;  %2793 = vmatprep.subr.bf16.mxu1 %v12003_v32  ;;  %v614_v27 = vld [vmem:[#allocation5 + $0x14c0] sm:$0xff]  ;;  %v611_v28 = vld [vmem:[#allocation5 + $0x1488] sm:$0xff]  ;;  %v12058_v32 = vcombine.low %v603_v18, %v607_v20 }
  0xf1   : > { %2700 = vmatprep.mubr.bf16.mxu0 %v14974_v34  ;;  %2823 = vmatprep.mubr.bf16.mxu1 %v14974_v34  ;;  %v12065_v33 = vcombine.high %v610_v26, %v614_v27  ;;  %v12067_v38 = vcombine.high %v611_v28, %v615_v30  ;;  %v12064_v40 = vcombine.low %v610_v26, %v614_v27  ;;  %v274_v27 = vld [vmem:[%s14945_s23 + $0x20] sm:$0xff] }
  0xf3   : > { %2671 = vmatpush1.bf16.msra.mxu0 %v12000_v35  ;;  %2794 = vmatpush1.bf16.msra.mxu1 %v12002_v36  ;;  %v618_v35 = vld [vmem:[#allocation5 + $0x1500] sm:$0xff] }
  0xf4   : > { %2672 = vmatprep.subr.bf16.mxu0 %v12009_v37  ;;  %2795 = vmatprep.subr.bf16.mxu1 %v12011_v41  ;;  %v622_v36 = vld [vmem:[#allocation5 + $0x1540] sm:$0xff]  ;;  %v619_v37 = vld [vmem:[#allocation5 + $0x1508] sm:$0xff]  ;;  %v12066_v41 = vcombine.low %v611_v28, %v615_v30  ;;  %v289_v28 = vld [vmem:[#allocation5 + $0x58] sm:$0xff] }
  0xf5   : > { %v12073_v42 = vcombine.high %v618_v35, %v622_v36  ;;  %v12075_v46 = vcombine.high %v619_v37, %v623_v39  ;;  %v12072_v48 = vcombine.low %v618_v35, %v622_v36  ;;  %v293_v35 = vld [vmem:[#allocation5 + $0x98] sm:$0xff] }
  0xf7   : > { %2673 = vmatpush1.bf16.msra.mxu0 %v12008_v43  ;;  %2796 = vmatpush1.bf16.msra.mxu1 %v12010_v44  ;;  %v626_v43 = vld [vmem:[#allocation5 + $0x1580] sm:$0xff] }
  0xf8   : > { %2674 = vmatprep.subr.bf16.mxu0 %v12017_v45  ;;  %2797 = vmatprep.subr.bf16.mxu1 %v12019_v49  ;;  %v630_v44 = vld [vmem:[#allocation5 + $0x15c0] sm:$0xff]  ;;  %v627_v45 = vld [vmem:[#allocation5 + $0x1588] sm:$0xff]  ;;  %v12074_v49 = vcombine.low %v619_v37, %v623_v39  ;;  %v297_v37 = vld [vmem:[#allocation5 + $0xd8] sm:$0xff] }
  0xf9   : > { %v12081_v50 = vcombine.high %v626_v43, %v630_v44  ;;  %v12083_v54 = vcombine.high %v627_v45, %v631_v47  ;;  %v12080_v56 = vcombine.low %v626_v43, %v630_v44  ;;  %v304_v43 = vld [vmem:[#allocation5 + $0x150] sm:$0xff]  ;;  %v301_v44 = vld [vmem:[#allocation5 + $0x118] sm:$0xff] }
  0xfb   : > { %2675 = vmatpush1.bf16.msra.mxu0 %v12016_v51  ;;  %2798 = vmatpush1.bf16.msra.mxu1 %v12018_v52  ;;  %v634_v51 = vld [vmem:[#allocation5 + $0x1600] sm:$0xff] }
  0xfc   : > { %2676 = vmatprep.subr.bf16.mxu0 %v12025_v53  ;;  %2799 = vmatprep.subr.bf16.mxu1 %v12027_v58  ;;  %v638_v52 = vld [vmem:[#allocation5 + $0x1640] sm:$0xff]  ;;  %v635_v53 = vld [vmem:[#allocation5 + $0x1608] sm:$0xff]  ;;  %v12082_v58 = vcombine.low %v627_v45, %v631_v47  ;;  %v11751_v45 = vcombine.high %v293_v35, %v297_v37 }
  0xfd   : > { %v12089_v59 = vcombine.high %v634_v51, %v638_v52  ;;  %v12091_v63 = vcombine.high %v635_v53, %v639_v55  ;;  %v12088_v1 = vcombine.low %v634_v51, %v638_v52  ;;  %v312_v51 = vld [vmem:[#allocation5 + $0x1d0] sm:$0xff]  ;;  %v309_v52 = vld [vmem:[#allocation5 + $0x198] sm:$0xff] }
  0xff   : > { %2677 = vmatpush1.bf16.msra.mxu0 %v12024_v60  ;;  %2800 = vmatpush1.bf16.msra.mxu1 %v12026_v61  ;;  %v642_v60 = vld [vmem:[#allocation5 + $0x1680] sm:$0xff] }
 0x100   : > { %2678 = vmatprep.subr.bf16.mxu0 %v12033_v62  ;;  %2801 = vmatprep.subr.bf16.mxu1 %v12035_v2  ;;  %v646_v61 = vld [vmem:[#allocation5 + $0x16c0] sm:$0xff]  ;;  %v643_v62 = vld [vmem:[#allocation5 + $0x1688] sm:$0xff]  ;;  %v12090_v2 = vcombine.low %v635_v53, %v639_v55 }
 0x101   : > { %v12097_v3 = vcombine.high %v642_v60, %v646_v61  ;;  %v12099_v7 = vcombine.high %v643_v62, %v647_v0  ;;  %v12096_v9 = vcombine.low %v642_v60, %v646_v61  ;;  %v320_v60 = vld [vmem:[#allocation5 + $0x250] sm:$0xff]  ;;  %v317_v61 = vld [vmem:[#allocation5 + $0x218] sm:$0xff] }
 0x103   : > { %2679 = vmatpush1.bf16.msra.mxu0 %v12032_v4  ;;  %2802 = vmatpush1.bf16.msra.mxu1 %v12034_v5  ;;  %v650_v4 = vld [vmem:[#allocation5 + $0x1700] sm:$0xff] }
 0x104   : > { %2680 = vmatprep.subr.bf16.mxu0 %v12041_v6  ;;  %2803 = vmatprep.subr.bf16.mxu1 %v12043_v10  ;;  %v654_v5 = vld [vmem:[#allocation5 + $0x1740] sm:$0xff]  ;;  %v651_v6 = vld [vmem:[#allocation5 + $0x1708] sm:$0xff]  ;;  %v12098_v10 = vcombine.low %v643_v62, %v647_v0 }
 0x105   : > { %v12105_v11 = vcombine.high %v650_v4, %v654_v5  ;;  %v12107_v16 = vcombine.high %v651_v6, %v655_v8  ;;  %v12104_v18 = vcombine.low %v650_v4, %v654_v5  ;;  %v328_v4 = vld [vmem:[#allocation5 + $0x2d0] sm:$0xff]  ;;  %v325_v5 = vld [vmem:[#allocation5 + $0x298] sm:$0xff] }
 0x107   : > { %2681 = vmatpush1.bf16.msra.mxu0 %v12040_v13  ;;  %2804 = vmatpush1.bf16.msra.mxu1 %v12042_v14  ;;  %v658_v13 = vld [vmem:[#allocation5 + $0x1780] sm:$0xff] }
 0x108   : > { %2682 = vmatprep.subr.bf16.mxu0 %v12049_v15  ;;  %2805 = vmatprep.subr.bf16.mxu1 %v12051_v19  ;;  %v662_v14 = vld [vmem:[#allocation5 + $0x17c0] sm:$0xff]  ;;  %v659_v15 = vld [vmem:[#allocation5 + $0x1788] sm:$0xff]  ;;  %v12106_v19 = vcombine.low %v651_v6, %v655_v8 }
 0x109   : > { %v12113_v20 = vcombine.high %v658_v13, %v662_v14  ;;  %v12115_v26 = vcombine.high %v659_v15, %v663_v17  ;;  %v12114_v30 = vcombine.low %v659_v15, %v663_v17 }
 0x10b   : > { %2683 = vmatpush1.bf16.msra.mxu0 %v12048_v21  ;;  %2806 = vmatpush1.bf16.msra.mxu1 %v12050_v22  ;;  %v284_v21 = vld [vmem:[#allocation5 + $0x10] sm:$0xff] }
 0x10c   : > { %2684 = vmatprep.subr.bf16.mxu0 %v12057_v24  ;;  %2807 = vmatprep.subr.bf16.mxu1 %v12059_v29  ;;  %v288_v22 = vld [vmem:[#allocation5 + $0x50] sm:$0xff]  ;;  %v285_v24 = vld [vmem:[#allocation5 + $0x18] sm:$0xff]  ;;  %v12112_v29 = vcombine.low %v658_v13, %v662_v14 }
 0x10d   : > { %v11743_v36 = vcombine.high %v285_v24, %v289_v28  ;;  %v11740_v39 = vcombine.low %v284_v21, %v288_v22  ;;  %v336_v13 = vld [vmem:[#allocation5 + $0x350] sm:$0xff]  ;;  %v333_v14 = vld [vmem:[#allocation5 + $0x318] sm:$0xff] }
 0x10f   : > { %2685 = vmatpush1.bf16.msra.mxu0 %v12056_v31  ;;  %2808 = vmatpush1.bf16.msra.mxu1 %v12058_v32  ;;  %v11741_v31 = vcombine.high %v284_v21, %v288_v22  ;;  %v292_v32 = vld [vmem:[#allocation5 + $0x90] sm:$0xff]  ;;  %v341_v22 = vld [vmem:[#allocation5 + $0x398] sm:$0xff] }
 0x110   : > { %2686 = vmatprep.subr.bf16.mxu0 %v12065_v33  ;;  %2809 = vmatprep.subr.bf16.mxu1 %v12067_v38  ;;  %v296_v33 = vld [vmem:[#allocation5 + $0xd0] sm:$0xff]  ;;  %v14981_v38 = vpack.c.bf16 %v274_v27, %v274_v27 }
 0x111   : > { %v11748_v47 = vcombine.low %v292_v32, %v296_v33  ;;  %v344_v21 = vld [vmem:[#allocation5 + $0x3d0] sm:$0xff] }
 0x113   : > { %2687 = vmatpush1.bf16.msra.mxu0 %v12064_v40  ;;  %2810 = vmatpush1.bf16.msra.mxu1 %v12066_v41  ;;  %v11742_v40 = vcombine.low %v285_v24, %v289_v28  ;;  %v11749_v41 = vcombine.high %v292_v32, %v296_v33  ;;  %v349_v32 = vld [vmem:[#allocation5 + $0x418] sm:$0xff] }
 0x114   : > { %2688 = vmatprep.subr.bf16.mxu0 %v12073_v42  ;;  %2811 = vmatprep.subr.bf16.mxu1 %v12075_v46  ;;  %v300_v42 = vld [vmem:[#allocation5 + $0x110] sm:$0xff]  ;;  %v305_v46 = vld [vmem:[#allocation5 + $0x158] sm:$0xff] }
 0x115   : > { %v11759_v53 = vcombine.high %v301_v44, %v305_v46  ;;  %v11756_v55 = vcombine.low %v300_v42, %v304_v43 }
 0x117   : > { %2689 = vmatpush1.bf16.msra.mxu0 %v12072_v48  ;;  %2812 = vmatpush1.bf16.msra.mxu1 %v12074_v49  ;;  %v11750_v48 = vcombine.low %v293_v35, %v297_v37  ;;  %v11757_v49 = vcombine.high %v300_v42, %v304_v43  ;;  %v353_v35 = vld [vmem:[#allocation5 + $0x458] sm:$0xff] }
 0x118   : > { %2690 = vmatprep.subr.bf16.mxu0 %v12081_v50  ;;  %2813 = vmatprep.subr.bf16.mxu1 %v12083_v54  ;;  %v308_v50 = vld [vmem:[#allocation5 + $0x190] sm:$0xff]  ;;  %v313_v54 = vld [vmem:[#allocation5 + $0x1d8] sm:$0xff]  ;;  %v11807_v43 = vcombine.high %v349_v32, %v353_v35 }
 0x119   : > { %v11767_v62 = vcombine.high %v309_v52, %v313_v54  ;;  %v11764_v0 = vcombine.low %v308_v50, %v312_v51  ;;  %v357_v42 = vld [vmem:[#allocation5 + $0x498] sm:$0xff] }
 0x11b   : > { %2691 = vmatpush1.bf16.msra.mxu0 %v12080_v56  ;;  %2814 = vmatpush1.bf16.msra.mxu1 %v12082_v58  ;;  %v11758_v56 = vcombine.low %v301_v44, %v305_v46  ;;  %v11765_v58 = vcombine.high %v308_v50, %v312_v51  ;;  %v361_v44 = vld [vmem:[#allocation5 + $0x4d8] sm:$0xff]  ;;  %v11806_v46 = vcombine.low %v349_v32, %v353_v35 }
 0x11c   : > { %2692 = vmatprep.subr.bf16.mxu0 %v12089_v59  ;;  %2815 = vmatprep.subr.bf16.mxu1 %v12091_v63  ;;  %v316_v59 = vld [vmem:[#allocation5 + $0x210] sm:$0xff]  ;;  %v321_v63 = vld [vmem:[#allocation5 + $0x258] sm:$0xff]  ;;  %v11815_v51 = vcombine.high %v357_v42, %v361_v44 }
 0x11d   : > { %v11775_v6 = vcombine.high %v317_v61, %v321_v63  ;;  %v11772_v8 = vcombine.low %v316_v59, %v320_v60  ;;  %v365_v50 = vld [vmem:[#allocation5 + $0x518] sm:$0xff] }
 0x11e   : > { %v409_v32 = vld [vmem:[#allocation5 + $0x7d8] sm:$0xff] }
 0x11f   : > { %2693 = vmatpush1.bf16.msra.mxu0 %v12088_v1  ;;  %2816 = vmatpush1.bf16.msra.mxu1 %v12090_v2  ;;  %v11766_v1 = vcombine.low %v309_v52, %v313_v54  ;;  %v11773_v2 = vcombine.high %v316_v59, %v320_v60  ;;  %v369_v52 = vld [vmem:[#allocation5 + $0x558] sm:$0xff]  ;;  %v11814_v54 = vcombine.low %v357_v42, %v361_v44 }
 0x120   : > { %2694 = vmatprep.subr.bf16.mxu0 %v12097_v3  ;;  %2817 = vmatprep.subr.bf16.mxu1 %v12099_v7  ;;  %v324_v3 = vld [vmem:[#allocation5 + $0x290] sm:$0xff]  ;;  %v329_v7 = vld [vmem:[#allocation5 + $0x2d8] sm:$0xff]  ;;  %v11823_v60 = vcombine.high %v365_v50, %v369_v52 }
 0x121   : > { %v11783_v15 = vcombine.high %v325_v5, %v329_v7  ;;  %v11780_v17 = vcombine.low %v324_v3, %v328_v4  ;;  %v373_v59 = vld [vmem:[#allocation5 + $0x598] sm:$0xff] }
 0x122   : > { %v417_v42 = vld [vmem:[#allocation5 + $0x858] sm:$0xff] }
 0x123   : > { %2695 = vmatpush1.bf16.msra.mxu0 %v12096_v9  ;;  %2818 = vmatpush1.bf16.msra.mxu1 %v12098_v10  ;;  %v11774_v9 = vcombine.low %v317_v61, %v321_v63  ;;  %v11781_v10 = vcombine.high %v324_v3, %v328_v4  ;;  %v377_v61 = vld [vmem:[#allocation5 + $0x5d8] sm:$0xff]  ;;  %v11822_v63 = vcombine.low %v365_v50, %v369_v52 }
 0x124   : > { %2696 = vmatprep.subr.bf16.mxu0 %v12105_v11  ;;  %2819 = vmatprep.subr.bf16.mxu1 %v12107_v16  ;;  %v332_v11 = vld [vmem:[#allocation5 + $0x310] sm:$0xff]  ;;  %v337_v16 = vld [vmem:[#allocation5 + $0x358] sm:$0xff]  ;;  %v11831_v4 = vcombine.high %v373_v59, %v377_v61 }
 0x125   : > { %v11791_v24 = vcombine.high %v333_v14, %v337_v16  ;;  %v11788_v27 = vcombine.low %v332_v11, %v336_v13  ;;  %v11790_v28 = vcombine.low %v333_v14, %v337_v16  ;;  %v381_v3 = vld [vmem:[#allocation5 + $0x618] sm:$0xff] }
 0x126   : > { %v393_v14 = vld [vmem:[#allocation5 + $0x6d8] sm:$0xff] }
 0x127   : > { %2697 = vmatpush1.bf16.msra.mxu0 %v12104_v18  ;;  %2820 = vmatpush1.bf16.msra.mxu1 %v12106_v19  ;;  %v11782_v18 = vcombine.low %v325_v5, %v329_v7  ;;  %v11789_v19 = vcombine.high %v332_v11, %v336_v13  ;;  %v385_v5 = vld [vmem:[#allocation5 + $0x658] sm:$0xff]  ;;  %v11830_v7 = vcombine.low %v373_v59, %v377_v61 }
 0x128   : > { %2698 = vmatprep.subr.bf16.mxu0 %v12113_v20  ;;  %2821 = vmatprep.subr.bf16.mxu1 %v12115_v26  ;;  %v340_v20 = vld [vmem:[#allocation5 + $0x390] sm:$0xff]  ;;  %v345_v26 = vld [vmem:[#allocation5 + $0x3d8] sm:$0xff]  ;;  %v11839_v13 = vcombine.high %v381_v3, %v385_v5  ;;  %v11838_v16 = vcombine.low %v381_v3, %v385_v5 }
 0x129   : > { %v11799_v33 = vcombine.high %v341_v22, %v345_v26  ;;  %v11798_v37 = vcombine.low %v341_v22, %v345_v26  ;;  %v389_v11 = vld [vmem:[#allocation5 + $0x698] sm:$0xff] }
 0x12a   : > { %v401_v22 = vld [vmem:[#allocation5 + $0x758] sm:$0xff]  ;;  %v11846_v26 = vcombine.low %v389_v11, %v393_v14 }
 0x12b   : > { %2699 = vmatpush1.bf16.msra.mxu0 %v12112_v29  ;;  %2822 = vmatpush1.bf16.msra.mxu1 %v12114_v30  ;;  %v11797_v29 = vcombine.high %v340_v20, %v344_v21  ;;  %v348_v30 = vld [vmem:[#allocation5 + $0x410] sm:$0xff]  ;;  %v425_v50 = vld [vmem:[#allocation5 + $0x8d8] sm:$0xff] }
 0x12c   : > { %2832 = vmatprep.subr.bf16.mxu0 %v11741_v31  ;;  %2955 = vmatprep.subr.bf16.mxu1 %v11743_v36  ;;  %v352_v31 = vld [vmem:[#allocation5 + $0x450] sm:$0xff]  ;;  %v11796_v36 = vcombine.low %v340_v20, %v344_v21  ;;  %v397_v20 = vld [vmem:[#allocation5 + $0x718] sm:$0xff]  ;;  %v11847_v21 = vcombine.high %v389_v11, %v393_v14 }
 0x12d   : > { %v11854_v35 = vcombine.low %v397_v20, %v401_v22  ;;  %v433_v59 = vld [vmem:[#allocation5 + $0x958] sm:$0xff] }
 0x12e   : > { %2701 = vmatmul.mubr.bf16.vlgmr.msra.gmra.mrb[0].mxu0 %v14981_v38  ;;  %2824 = vmatmul.mubr.bf16.vlgmr.msra.gmra.mrb[0].mxu1 %v14981_v38  ;;  %v441_v3 = vld [vmem:[#allocation5 + $0x9d8] sm:$0xff] }
 0x12f   : > { %2833 = vmatpush1.bf16.msra.mxu0 %v11740_v39  ;;  %2956 = vmatpush1.bf16.msra.mxu1 %v11742_v40  ;;  %v11805_v39 = vcombine.high %v348_v30, %v352_v31  ;;  %v356_v40 = vld [vmem:[#allocation5 + $0x490] sm:$0xff]  ;;  %v449_v11 = vld [vmem:[#allocation5 + $0xa58] sm:$0xff] }
 0x130   : > { %2834 = vmatprep.subr.bf16.mxu0 %v11749_v41  ;;  %2957 = vmatprep.subr.bf16.mxu1 %v11751_v45  ;;  %v360_v41 = vld [vmem:[#allocation5 + $0x4d0] sm:$0xff]  ;;  %v11804_v45 = vcombine.low %v348_v30, %v352_v31  ;;  %v405_v30 = vld [vmem:[#allocation5 + $0x798] sm:$0xff]  ;;  %v11855_v31 = vcombine.high %v397_v20, %v401_v22 }
 0x131   : > { %2864 = vmatprep.mubr.bf16.mxu0 %v14956_v57  ;;  %2987 = vmatprep.mubr.bf16.mxu1 %v14956_v57  ;;  %v11862_v44 = vcombine.low %v405_v30, %v409_v32  ;;  %v457_v20 = vld [vmem:[#allocation5 + $0xad8] sm:$0xff] }
 0x133   : > { %2835 = vmatpush1.bf16.msra.mxu0 %v11748_v47  ;;  %2958 = vmatpush1.bf16.msra.mxu1 %v11750_v48  ;;  %v11813_v47 = vcombine.high %v356_v40, %v360_v41  ;;  %v364_v48 = vld [vmem:[#allocation5 + $0x510] sm:$0xff] }
 0x134   : > { %2836 = vmatprep.subr.bf16.mxu0 %v11757_v49  ;;  %2959 = vmatprep.subr.bf16.mxu1 %v11759_v53  ;;  %v368_v49 = vld [vmem:[#allocation5 + $0x550] sm:$0xff]  ;;  %v11812_v53 = vcombine.low %v356_v40, %v360_v41  ;;  %v413_v40 = vld [vmem:[#allocation5 + $0x818] sm:$0xff]  ;;  %v11863_v41 = vcombine.high %v405_v30, %v409_v32 }
 0x135   : > { %v11870_v52 = vcombine.low %v413_v40, %v417_v42  ;;  %v465_v30 = vld [vmem:[#allocation5 + $0xb58] sm:$0xff] }
 0x137   : > { %2837 = vmatpush1.bf16.msra.mxu0 %v11756_v55  ;;  %2960 = vmatpush1.bf16.msra.mxu1 %v11758_v56  ;;  %v11821_v55 = vcombine.high %v364_v48, %v368_v49  ;;  %v372_v56 = vld [vmem:[#allocation5 + $0x590] sm:$0xff] }
 0x138   : > { %2838 = vmatprep.subr.bf16.mxu0 %v11765_v58  ;;  %2961 = vmatprep.subr.bf16.mxu1 %v11767_v62  ;;  %v376_v58 = vld [vmem:[#allocation5 + $0x5d0] sm:$0xff]  ;;  %v11820_v62 = vcombine.low %v364_v48, %v368_v49  ;;  %v421_v48 = vld [vmem:[#allocation5 + $0x898] sm:$0xff]  ;;  %v11871_v49 = vcombine.high %v413_v40, %v417_v42 }
 0x139   : > { %v11878_v61 = vcombine.low %v421_v48, %v425_v50  ;;  %v473_v40 = vld [vmem:[#allocation5 + $0xbd8] sm:$0xff] }
 0x13b   : > { %2839 = vmatpush1.bf16.msra.mxu0 %v11764_v0  ;;  %2962 = vmatpush1.bf16.msra.mxu1 %v11766_v1  ;;  %v11829_v0 = vcombine.high %v372_v56, %v376_v58  ;;  %v380_v1 = vld [vmem:[#allocation5 + $0x610] sm:$0xff] }
 0x13c   : > { %2840 = vmatprep.subr.bf16.mxu0 %v11773_v2  ;;  %2963 = vmatprep.subr.bf16.mxu1 %v11775_v6  ;;  %v384_v2 = vld [vmem:[#allocation5 + $0x650] sm:$0xff]  ;;  %v11828_v6 = vcombine.low %v372_v56, %v376_v58  ;;  %v429_v56 = vld [vmem:[#allocation5 + $0x918] sm:$0xff]  ;;  %v11879_v58 = vcombine.high %v421_v48, %v425_v50 }
 0x13d   : > { %v11886_v5 = vcombine.low %v429_v56, %v433_v59  ;;  %v481_v48 = vld [vmem:[#allocation5 + $0xc58] sm:$0xff] }
 0x13f   : > { %2841 = vmatpush1.bf16.msra.mxu0 %v11772_v8  ;;  %2964 = vmatpush1.bf16.msra.mxu1 %v11774_v9  ;;  %v11837_v8 = vcombine.high %v380_v1, %v384_v2  ;;  %v388_v9 = vld [vmem:[#allocation5 + $0x690] sm:$0xff] }
 0x140   : > { %2842 = vmatprep.subr.bf16.mxu0 %v11781_v10  ;;  %2965 = vmatprep.subr.bf16.mxu1 %v11783_v15  ;;  %v392_v10 = vld [vmem:[#allocation5 + $0x6d0] sm:$0xff]  ;;  %v11836_v15 = vcombine.low %v380_v1, %v384_v2  ;;  %v437_v1 = vld [vmem:[#allocation5 + $0x998] sm:$0xff]  ;;  %v11887_v2 = vcombine.high %v429_v56, %v433_v59 }
 0x141   : > { %v11894_v14 = vcombine.low %v437_v1, %v441_v3  ;;  %v489_v56 = vld [vmem:[#allocation5 + $0xcd8] sm:$0xff] }
 0x143   : > { %2843 = vmatpush1.bf16.msra.mxu0 %v11780_v17  ;;  %2966 = vmatpush1.bf16.msra.mxu1 %v11782_v18  ;;  %v11845_v17 = vcombine.high %v388_v9, %v392_v10  ;;  %v396_v18 = vld [vmem:[#allocation5 + $0x710] sm:$0xff] }
 0x144   : > { %2844 = vmatprep.subr.bf16.mxu0 %v11789_v19  ;;  %2967 = vmatprep.subr.bf16.mxu1 %v11791_v24  ;;  %v400_v19 = vld [vmem:[#allocation5 + $0x750] sm:$0xff]  ;;  %v11844_v24 = vcombine.low %v388_v9, %v392_v10  ;;  %v445_v9 = vld [vmem:[#allocation5 + $0xa18] sm:$0xff]  ;;  %v11895_v10 = vcombine.high %v437_v1, %v441_v3 }
 0x145   : > { %v11902_v22 = vcombine.low %v445_v9, %v449_v11  ;;  %v497_v1 = vld [vmem:[#allocation5 + $0xd58] sm:$0xff] }
 0x147   : > { %2845 = vmatpush1.bf16.msra.mxu0 %v11788_v27  ;;  %2968 = vmatpush1.bf16.msra.mxu1 %v11790_v28  ;;  %v11853_v27 = vcombine.high %v396_v18, %v400_v19  ;;  %v404_v28 = vld [vmem:[#allocation5 + $0x790] sm:$0xff] }
 0x148   : > { %2846 = vmatprep.subr.bf16.mxu0 %v11797_v29  ;;  %2969 = vmatprep.subr.bf16.mxu1 %v11799_v33  ;;  %v408_v29 = vld [vmem:[#allocation5 + $0x7d0] sm:$0xff]  ;;  %v11852_v33 = vcombine.low %v396_v18, %v400_v19  ;;  %v453_v18 = vld [vmem:[#allocation5 + $0xa98] sm:$0xff]  ;;  %v11903_v19 = vcombine.high %v445_v9, %v449_v11 }
 0x149   : > { %v11910_v32 = vcombine.low %v453_v18, %v457_v20  ;;  %v505_v9 = vld [vmem:[#allocation5 + $0xdd8] sm:$0xff] }
 0x14b   : > { %2847 = vmatpush1.bf16.msra.mxu0 %v11796_v36  ;;  %2970 = vmatpush1.bf16.msra.mxu1 %v11798_v37  ;;  %v11861_v36 = vcombine.high %v404_v28, %v408_v29  ;;  %v412_v37 = vld [vmem:[#allocation5 + $0x810] sm:$0xff] }
 0x14c   : > { %2848 = vmatprep.subr.bf16.mxu0 %v11805_v39  ;;  %2971 = vmatprep.subr.bf16.mxu1 %v11807_v43  ;;  %v416_v39 = vld [vmem:[#allocation5 + $0x850] sm:$0xff]  ;;  %v11860_v43 = vcombine.low %v404_v28, %v408_v29  ;;  %v461_v28 = vld [vmem:[#allocation5 + $0xb18] sm:$0xff]  ;;  %v11911_v29 = vcombine.high %v453_v18, %v457_v20 }
 0x14d   : > { %v11918_v42 = vcombine.low %v461_v28, %v465_v30  ;;  %v513_v18 = vld [vmem:[#allocation5 + $0xe58] sm:$0xff] }
 0x14f   : > { %2849 = vmatpush1.bf16.msra.mxu0 %v11804_v45  ;;  %2972 = vmatpush1.bf16.msra.mxu1 %v11806_v46  ;;  %v11869_v45 = vcombine.high %v412_v37, %v416_v39  ;;  %v420_v46 = vld [vmem:[#allocation5 + $0x890] sm:$0xff] }
 0x150   : > { %2850 = vmatprep.subr.bf16.mxu0 %v11813_v47  ;;  %2973 = vmatprep.subr.bf16.mxu1 %v11815_v51  ;;  %v424_v47 = vld [vmem:[#allocation5 + $0x8d0] sm:$0xff]  ;;  %v11868_v51 = vcombine.low %v412_v37, %v416_v39  ;;  %v469_v37 = vld [vmem:[#allocation5 + $0xb98] sm:$0xff]  ;;  %v11919_v39 = vcombine.high %v461_v28, %v465_v30 }
 0x151   : > { %v11926_v50 = vcombine.low %v469_v37, %v473_v40  ;;  %v521_v28 = vld [vmem:[#allocation5 + $0xed8] sm:$0xff] }
 0x153   : > { %2851 = vmatpush1.bf16.msra.mxu0 %v11812_v53  ;;  %2974 = vmatpush1.bf16.msra.mxu1 %v11814_v54  ;;  %v11877_v53 = vcombine.high %v420_v46, %v424_v47  ;;  %v428_v54 = vld [vmem:[#allocation5 + $0x910] sm:$0xff] }
 0x154   : > { %2852 = vmatprep.subr.bf16.mxu0 %v11821_v55  ;;  %2975 = vmatprep.subr.bf16.mxu1 %v11823_v60  ;;  %v432_v55 = vld [vmem:[#allocation5 + $0x950] sm:$0xff]  ;;  %v11876_v60 = vcombine.low %v420_v46, %v424_v47  ;;  %v477_v46 = vld [vmem:[#allocation5 + $0xc18] sm:$0xff]  ;;  %v11927_v47 = vcombine.high %v469_v37, %v473_v40 }
 0x155   : > { %v11934_v59 = vcombine.low %v477_v46, %v481_v48  ;;  %v529_v37 = vld [vmem:[#allocation5 + $0xf58] sm:$0xff] }
 0x157   : > { %2853 = vmatpush1.bf16.msra.mxu0 %v11820_v62  ;;  %2976 = vmatpush1.bf16.msra.mxu1 %v11822_v63  ;;  %v11885_v62 = vcombine.high %v428_v54, %v432_v55  ;;  %v436_v63 = vld [vmem:[#allocation5 + $0x990] sm:$0xff] }
 0x158   : > { %2854 = vmatprep.subr.bf16.mxu0 %v11829_v0  ;;  %2977 = vmatprep.subr.bf16.mxu1 %v11831_v4  ;;  %v440_v0 = vld [vmem:[#allocation5 + $0x9d0] sm:$0xff]  ;;  %v11884_v4 = vcombine.low %v428_v54, %v432_v55  ;;  %v485_v54 = vld [vmem:[#allocation5 + $0xc98] sm:$0xff]  ;;  %v11935_v55 = vcombine.high %v477_v46, %v481_v48 }
 0x159   : > { %v11942_v3 = vcombine.low %v485_v54, %v489_v56  ;;  %v537_v46 = vld [vmem:[#allocation5 + $0xfd8] sm:$0xff] }
 0x15b   : > { %2855 = vmatpush1.bf16.msra.mxu0 %v11828_v6  ;;  %2978 = vmatpush1.bf16.msra.mxu1 %v11830_v7  ;;  %v11893_v6 = vcombine.high %v436_v63, %v440_v0  ;;  %v444_v7 = vld [vmem:[#allocation5 + $0xa10] sm:$0xff] }
 0x15c   : > { %2856 = vmatprep.subr.bf16.mxu0 %v11837_v8  ;;  %2979 = vmatprep.subr.bf16.mxu1 %v11839_v13  ;;  %v448_v8 = vld [vmem:[#allocation5 + $0xa50] sm:$0xff]  ;;  %v11892_v13 = vcombine.low %v436_v63, %v440_v0  ;;  %v493_v63 = vld [vmem:[#allocation5 + $0xd18] sm:$0xff]  ;;  %v11943_v0 = vcombine.high %v485_v54, %v489_v56 }
 0x15d   : > { %v11950_v11 = vcombine.low %v493_v63, %v497_v1  ;;  %v545_v54 = vld [vmem:[#allocation5 + $0x1058] sm:$0xff] }
 0x15f   : > { %2857 = vmatpush1.bf16.msra.mxu0 %v11836_v15  ;;  %2980 = vmatpush1.bf16.msra.mxu1 %v11838_v16  ;;  %v11901_v15 = vcombine.high %v444_v7, %v448_v8  ;;  %v452_v16 = vld [vmem:[#allocation5 + $0xa90] sm:$0xff] }
 0x160   : > { %2858 = vmatprep.subr.bf16.mxu0 %v11845_v17  ;;  %2981 = vmatprep.subr.bf16.mxu1 %v11847_v21  ;;  %v456_v17 = vld [vmem:[#allocation5 + $0xad0] sm:$0xff]  ;;  %v11900_v21 = vcombine.low %v444_v7, %v448_v8  ;;  %v501_v7 = vld [vmem:[#allocation5 + $0xd98] sm:$0xff]  ;;  %v11951_v8 = vcombine.high %v493_v63, %v497_v1 }
 0x161   : > { %v11958_v20 = vcombine.low %v501_v7, %v505_v9  ;;  %v553_v63 = vld [vmem:[#allocation5 + $0x10d8] sm:$0xff] }
 0x163   : > { %2859 = vmatpush1.bf16.msra.mxu0 %v11844_v24  ;;  %2982 = vmatpush1.bf16.msra.mxu1 %v11846_v26  ;;  %v11909_v24 = vcombine.high %v452_v16, %v456_v17  ;;  %v460_v26 = vld [vmem:[#allocation5 + $0xb10] sm:$0xff] }
 0x164   : > { %2860 = vmatprep.subr.bf16.mxu0 %v11853_v27  ;;  %2983 = vmatprep.subr.bf16.mxu1 %v11855_v31  ;;  %v464_v27 = vld [vmem:[#allocation5 + $0xb50] sm:$0xff]  ;;  %v11908_v31 = vcombine.low %v452_v16, %v456_v17  ;;  %v509_v16 = vld [vmem:[#allocation5 + $0xe18] sm:$0xff]  ;;  %v11959_v17 = vcombine.high %v501_v7, %v505_v9 }
 0x165   : > { %v11966_v30 = vcombine.low %v509_v16, %v513_v18  ;;  %v561_v7 = vld [vmem:[#allocation5 + $0x1158] sm:$0xff] }
 0x167   : > { %2861 = vmatpush1.bf16.msra.mxu0 %v11852_v33  ;;  %2984 = vmatpush1.bf16.msra.mxu1 %v11854_v35  ;;  %v11917_v33 = vcombine.high %v460_v26, %v464_v27  ;;  %v468_v35 = vld [vmem:[#allocation5 + $0xb90] sm:$0xff] }
 0x168   : > { %2862 = vmatprep.subr.bf16.mxu0 %v11861_v36  ;;  %2985 = vmatprep.subr.bf16.mxu1 %v11863_v41  ;;  %v472_v36 = vld [vmem:[#allocation5 + $0xbd0] sm:$0xff]  ;;  %v11916_v41 = vcombine.low %v460_v26, %v464_v27  ;;  %v517_v26 = vld [vmem:[#allocation5 + $0xe98] sm:$0xff]  ;;  %v11967_v27 = vcombine.high %v509_v16, %v513_v18 }
 0x169   : > { %v11974_v40 = vcombine.low %v517_v26, %v521_v28  ;;  %v569_v16 = vld [vmem:[#allocation5 + $0x11d8] sm:$0xff] }
 0x16b   : > { %2863 = vmatpush1.bf16.msra.mxu0 %v11860_v43  ;;  %2986 = vmatpush1.bf16.msra.mxu1 %v11862_v44  ;;  %v11925_v43 = vcombine.high %v468_v35, %v472_v36  ;;  %v476_v44 = vld [vmem:[#allocation5 + $0xc10] sm:$0xff] }
 0x16c   : > { %2873 = vmatprep.subr.bf16.mxu0 %v11869_v45  ;;  %2996 = vmatprep.subr.bf16.mxu1 %v11871_v49  ;;  %v480_v45 = vld [vmem:[#allocation5 + $0xc50] sm:$0xff]  ;;  %v11924_v49 = vcombine.low %v468_v35, %v472_v36  ;;  %v525_v35 = vld [vmem:[#allocation5 + $0xf18] sm:$0xff]  ;;  %v11975_v36 = vcombine.high %v517_v26, %v521_v28 }
 0x16d   : > { %v11982_v48 = vcombine.low %v525_v35, %v529_v37  ;;  %v577_v26 = vld [vmem:[#allocation5 + $0x1258] sm:$0xff] }
 0x16e   : > { %2865 = vmatmul.mubr.bf16.vlgmr.msra.gmra.mrb[4].mxu0 %v14961_v12  ;;  %2988 = vmatmul.mubr.bf16.vlgmr.msra.gmra.mrb[4].mxu1 %v14961_v12 }
 0x16f   : > { %2874 = vmatpush1.bf16.msra.mxu0 %v11868_v51  ;;  %2997 = vmatpush1.bf16.msra.mxu1 %v11870_v52  ;;  %v11933_v51 = vcombine.high %v476_v44, %v480_v45  ;;  %v484_v52 = vld [vmem:[#allocation5 + $0xc90] sm:$0xff] }
 0x170   : > { %2875 = vmatprep.subr.bf16.mxu0 %v11877_v53  ;;  %2998 = vmatprep.subr.bf16.mxu1 %v11879_v58  ;;  %v488_v53 = vld [vmem:[#allocation5 + $0xcd0] sm:$0xff]  ;;  %v11932_v58 = vcombine.low %v476_v44, %v480_v45  ;;  %v533_v44 = vld [vmem:[#allocation5 + $0xf98] sm:$0xff]  ;;  %v11983_v45 = vcombine.high %v525_v35, %v529_v37 }
 0x171   : > { %2905 = vmatprep.mubr.bf16.mxu0 %v14964_v23  ;;  %3028 = vmatprep.mubr.bf16.mxu1 %v14964_v23  ;;  %v11990_v56 = vcombine.low %v533_v44, %v537_v46  ;;  %v585_v35 = vld [vmem:[#allocation5 + $0x12d8] sm:$0xff] }
 0x173   : > { %2876 = vmatpush1.bf16.msra.mxu0 %v11876_v60  ;;  %2999 = vmatpush1.bf16.msra.mxu1 %v11878_v61  ;;  %v11941_v60 = vcombine.high %v484_v52, %v488_v53  ;;  %v492_v61 = vld [vmem:[#allocation5 + $0xd10] sm:$0xff] }
 0x174   : > { %2877 = vmatprep.subr.bf16.mxu0 %v11885_v62  ;;  %3000 = vmatprep.subr.bf16.mxu1 %v11887_v2  ;;  %v496_v62 = vld [vmem:[#allocation5 + $0xd50] sm:$0xff]  ;;  %v11940_v2 = vcombine.low %v484_v52, %v488_v53  ;;  %v541_v52 = vld [vmem:[#allocation5 + $0x1018] sm:$0xff]  ;;  %v11991_v53 = vcombine.high %v533_v44, %v537_v46 }
 0x175   : > { %v11998_v1 = vcombine.low %v541_v52, %v545_v54  ;;  %v593_v44 = vld [vmem:[#allocation5 + $0x1358] sm:$0xff] }
 0x177   : > { %2878 = vmatpush1.bf16.msra.mxu0 %v11884_v4  ;;  %3001 = vmatpush1.bf16.msra.mxu1 %v11886_v5  ;;  %v11949_v4 = vcombine.high %v492_v61, %v496_v62  ;;  %v500_v5 = vld [vmem:[#allocation5 + $0xd90] sm:$0xff] }
 0x178   : > { %2879 = vmatprep.subr.bf16.mxu0 %v11893_v6  ;;  %3002 = vmatprep.subr.bf16.mxu1 %v11895_v10  ;;  %v504_v6 = vld [vmem:[#allocation5 + $0xdd0] sm:$0xff]  ;;  %v11948_v10 = vcombine.low %v492_v61, %v496_v62  ;;  %v549_v61 = vld [vmem:[#allocation5 + $0x1098] sm:$0xff]  ;;  %v11999_v62 = vcombine.high %v541_v52, %v545_v54 }
 0x179   : > { %v12006_v9 = vcombine.low %v549_v61, %v553_v63  ;;  %v601_v52 = vld [vmem:[#allocation5 + $0x13d8] sm:$0xff] }
 0x17b   : > { %2880 = vmatpush1.bf16.msra.mxu0 %v11892_v13  ;;  %3003 = vmatpush1.bf16.msra.mxu1 %v11894_v14  ;;  %v11957_v13 = vcombine.high %v500_v5, %v504_v6  ;;  %v508_v14 = vld [vmem:[#allocation5 + $0xe10] sm:$0xff] }
 0x17c   : > { %2881 = vmatprep.subr.bf16.mxu0 %v11901_v15  ;;  %3004 = vmatprep.subr.bf16.mxu1 %v11903_v19  ;;  %v512_v15 = vld [vmem:[#allocation5 + $0xe50] sm:$0xff]  ;;  %v11956_v19 = vcombine.low %v500_v5, %v504_v6  ;;  %v557_v5 = vld [vmem:[#allocation5 + $0x1118] sm:$0xff]  ;;  %v12007_v6 = vcombine.high %v549_v61, %v553_v63 }
 0x17d   : > { %v12014_v18 = vcombine.low %v557_v5, %v561_v7  ;;  %v609_v61 = vld [vmem:[#allocation5 + $0x1458] sm:$0xff] }
 0x17f   : > { %2882 = vmatpush1.bf16.msra.mxu0 %v11900_v21  ;;  %3005 = vmatpush1.bf16.msra.mxu1 %v11902_v22  ;;  %v11965_v21 = vcombine.high %v508_v14, %v512_v15  ;;  %v516_v22 = vld [vmem:[#allocation5 + $0xe90] sm:$0xff] }
 0x180   : > { %2883 = vmatprep.subr.bf16.mxu0 %v11909_v24  ;;  %3006 = vmatprep.subr.bf16.mxu1 %v11911_v29  ;;  %v520_v24 = vld [vmem:[#allocation5 + $0xed0] sm:$0xff]  ;;  %v11964_v29 = vcombine.low %v508_v14, %v512_v15  ;;  %v565_v14 = vld [vmem:[#allocation5 + $0x1198] sm:$0xff]  ;;  %v12015_v15 = vcombine.high %v557_v5, %v561_v7 }
 0x181   : > { %v12022_v28 = vcombine.low %v565_v14, %v569_v16  ;;  %v617_v5 = vld [vmem:[#allocation5 + $0x14d8] sm:$0xff] }
 0x183   : > { %2884 = vmatpush1.bf16.msra.mxu0 %v11908_v31  ;;  %3007 = vmatpush1.bf16.msra.mxu1 %v11910_v32  ;;  %v11973_v31 = vcombine.high %v516_v22, %v520_v24  ;;  %v524_v32 = vld [vmem:[#allocation5 + $0xf10] sm:$0xff] }
 0x184   : > { %2885 = vmatprep.subr.bf16.mxu0 %v11917_v33  ;;  %3008 = vmatprep.subr.bf16.mxu1 %v11919_v39  ;;  %v528_v33 = vld [vmem:[#allocation5 + $0xf50] sm:$0xff]  ;;  %v11972_v39 = vcombine.low %v516_v22, %v520_v24  ;;  %v573_v22 = vld [vmem:[#allocation5 + $0x1218] sm:$0xff]  ;;  %v12023_v24 = vcombine.high %v565_v14, %v569_v16 }
 0x185   : > { %v12030_v37 = vcombine.low %v573_v22, %v577_v26  ;;  %v625_v14 = vld [vmem:[#allocation5 + $0x1558] sm:$0xff] }
 0x187   : > { %2886 = vmatpush1.bf16.msra.mxu0 %v11916_v41  ;;  %3009 = vmatpush1.bf16.msra.mxu1 %v11918_v42  ;;  %v11981_v41 = vcombine.high %v524_v32, %v528_v33  ;;  %v532_v42 = vld [vmem:[#allocation5 + $0xf90] sm:$0xff] }
 0x188   : > { %2887 = vmatprep.subr.bf16.mxu0 %v11925_v43  ;;  %3010 = vmatprep.subr.bf16.mxu1 %v11927_v47  ;;  %v536_v43 = vld [vmem:[#allocation5 + $0xfd0] sm:$0xff]  ;;  %v11980_v47 = vcombine.low %v524_v32, %v528_v33  ;;  %v581_v32 = vld [vmem:[#allocation5 + $0x1298] sm:$0xff]  ;;  %v12031_v33 = vcombine.high %v573_v22, %v577_v26 }
 0x189   : > { %v12038_v46 = vcombine.low %v581_v32, %v585_v35  ;;  %v633_v22 = vld [vmem:[#allocation5 + $0x15d8] sm:$0xff] }
 0x18b   : > { %2888 = vmatpush1.bf16.msra.mxu0 %v11924_v49  ;;  %3011 = vmatpush1.bf16.msra.mxu1 %v11926_v50  ;;  %v11989_v49 = vcombine.high %v532_v42, %v536_v43  ;;  %v540_v50 = vld [vmem:[#allocation5 + $0x1010] sm:$0xff] }
 0x18c   : > { %2889 = vmatprep.subr.bf16.mxu0 %v11933_v51  ;;  %3012 = vmatprep.subr.bf16.mxu1 %v11935_v55  ;;  %v544_v51 = vld [vmem:[#allocation5 + $0x1050] sm:$0xff]  ;;  %v11988_v55 = vcombine.low %v532_v42, %v536_v43  ;;  %v589_v42 = vld [vmem:[#allocation5 + $0x1318] sm:$0xff]  ;;  %v12039_v43 = vcombine.high %v581_v32, %v585_v35 }
 0x18d   : > { %v12046_v54 = vcombine.low %v589_v42, %v593_v44  ;;  %v641_v32 = vld [vmem:[#allocation5 + $0x1658] sm:$0xff] }
 0x18f   : > { %2890 = vmatpush1.bf16.msra.mxu0 %v11932_v58  ;;  %3013 = vmatpush1.bf16.msra.mxu1 %v11934_v59  ;;  %v11997_v58 = vcombine.high %v540_v50, %v544_v51  ;;  %v548_v59 = vld [vmem:[#allocation5 + $0x1090] sm:$0xff] }
 0x190   : > { %2891 = vmatprep.subr.bf16.mxu0 %v11941_v60  ;;  %3014 = vmatprep.subr.bf16.mxu1 %v11943_v0  ;;  %v552_v60 = vld [vmem:[#allocation5 + $0x10d0] sm:$0xff]  ;;  %v11996_v0 = vcombine.low %v540_v50, %v544_v51  ;;  %v597_v50 = vld [vmem:[#allocation5 + $0x1398] sm:$0xff]  ;;  %v12047_v51 = vcombine.high %v589_v42, %v593_v44 }
 0x191   : > { %v12054_v63 = vcombine.low %v597_v50, %v601_v52  ;;  %v649_v42 = vld [vmem:[#allocation5 + $0x16d8] sm:$0xff] }
 0x193   : > { %2892 = vmatpush1.bf16.msra.mxu0 %v11940_v2  ;;  %3015 = vmatpush1.bf16.msra.mxu1 %v11942_v3  ;;  %v12005_v2 = vcombine.high %v548_v59, %v552_v60  ;;  %v556_v3 = vld [vmem:[#allocation5 + $0x1110] sm:$0xff] }
 0x194   : > { %2893 = vmatprep.subr.bf16.mxu0 %v11949_v4  ;;  %3016 = vmatprep.subr.bf16.mxu1 %v11951_v8  ;;  %v560_v4 = vld [vmem:[#allocation5 + $0x1150] sm:$0xff]  ;;  %v12004_v8 = vcombine.low %v548_v59, %v552_v60  ;;  %v605_v59 = vld [vmem:[#allocation5 + $0x1418] sm:$0xff]  ;;  %v12055_v60 = vcombine.high %v597_v50, %v601_v52 }
 0x195   : > { %v12062_v7 = vcombine.low %v605_v59, %v609_v61  ;;  %v657_v50 = vld [vmem:[#allocation5 + $0x1758] sm:$0xff] }
 0x197   : > { %2894 = vmatpush1.bf16.msra.mxu0 %v11948_v10  ;;  %3017 = vmatpush1.bf16.msra.mxu1 %v11950_v11  ;;  %v12013_v10 = vcombine.high %v556_v3, %v560_v4  ;;  %v564_v11 = vld [vmem:[#allocation5 + $0x1190] sm:$0xff] }
 0x198   : > { %2895 = vmatprep.subr.bf16.mxu0 %v11957_v13  ;;  %3018 = vmatprep.subr.bf16.mxu1 %v11959_v17  ;;  %v568_v13 = vld [vmem:[#allocation5 + $0x11d0] sm:$0xff]  ;;  %v12012_v17 = vcombine.low %v556_v3, %v560_v4  ;;  %v613_v3 = vld [vmem:[#allocation5 + $0x1498] sm:$0xff]  ;;  %v12063_v4 = vcombine.high %v605_v59, %v609_v61 }
 0x199   : > { %v12070_v16 = vcombine.low %v613_v3, %v617_v5  ;;  %v665_v59 = vld [vmem:[#allocation5 + $0x17d8] sm:$0xff] }
 0x19b   : > { %2896 = vmatpush1.bf16.msra.mxu0 %v11956_v19  ;;  %3019 = vmatpush1.bf16.msra.mxu1 %v11958_v20  ;;  %v12021_v19 = vcombine.high %v564_v11, %v568_v13  ;;  %v572_v20 = vld [vmem:[#allocation5 + $0x1210] sm:$0xff] }
 0x19c   : > { %2897 = vmatprep.subr.bf16.mxu0 %v11965_v21  ;;  %3020 = vmatprep.subr.bf16.mxu1 %v11967_v27  ;;  %v576_v21 = vld [vmem:[#allocation5 + $0x1250] sm:$0xff]  ;;  %v12020_v27 = vcombine.low %v564_v11, %v568_v13  ;;  %v621_v11 = vld [vmem:[#allocation5 + $0x1518] sm:$0xff]  ;;  %v12071_v13 = vcombine.high %v613_v3, %v617_v5  ;;  %v3483_v3 = vld [vmem:[#allocation5 + $0x68] sm:$0xff] }
 0x19d   : > { %v12078_v26 = vcombine.low %v621_v11, %v625_v14 }
 0x19f   : > { %2898 = vmatpush1.bf16.msra.mxu0 %v11964_v29  ;;  %3021 = vmatpush1.bf16.msra.mxu1 %v11966_v30  ;;  %v12029_v29 = vcombine.high %v572_v20, %v576_v21  ;;  %v580_v30 = vld [vmem:[#allocation5 + $0x1290] sm:$0xff] }
 0x1a0   : > { %2899 = vmatprep.subr.bf16.mxu0 %v11973_v31  ;;  %3022 = vmatprep.subr.bf16.mxu1 %v11975_v36  ;;  %v584_v31 = vld [vmem:[#allocation5 + $0x12d0] sm:$0xff]  ;;  %v12028_v36 = vcombine.low %v572_v20, %v576_v21  ;;  %v629_v20 = vld [vmem:[#allocation5 + $0x1598] sm:$0xff]  ;;  %v12079_v21 = vcombine.high %v621_v11, %v625_v14  ;;  %v3491_v11 = vld [vmem:[#allocation5 + $0xe8] sm:$0xff] }
 0x1a1   : > { %v12086_v35 = vcombine.low %v629_v20, %v633_v22 }
 0x1a3   : > { %2900 = vmatpush1.bf16.msra.mxu0 %v11972_v39  ;;  %3023 = vmatpush1.bf16.msra.mxu1 %v11974_v40  ;;  %v12037_v39 = vcombine.high %v580_v30, %v584_v31  ;;  %v588_v40 = vld [vmem:[#allocation5 + $0x1310] sm:$0xff] }
 0x1a4   : > { %2901 = vmatprep.subr.bf16.mxu0 %v11981_v41  ;;  %3024 = vmatprep.subr.bf16.mxu1 %v11983_v45  ;;  %v592_v41 = vld [vmem:[#allocation5 + $0x1350] sm:$0xff]  ;;  %v12036_v45 = vcombine.low %v580_v30, %v584_v31  ;;  %v637_v30 = vld [vmem:[#allocation5 + $0x1618] sm:$0xff]  ;;  %v12087_v31 = vcombine.high %v629_v20, %v633_v22  ;;  %v3499_v20 = vld [vmem:[#allocation5 + $0x168] sm:$0xff] }
 0x1a5   : > { %v12094_v44 = vcombine.low %v637_v30, %v641_v32 }
 0x1a7   : > { %2902 = vmatpush1.bf16.msra.mxu0 %v11980_v47  ;;  %3025 = vmatpush1.bf16.msra.mxu1 %v11982_v48  ;;  %v12045_v47 = vcombine.high %v588_v40, %v592_v41  ;;  %v596_v48 = vld [vmem:[#allocation5 + $0x1390] sm:$0xff] }
 0x1a8   : > { %2903 = vmatprep.subr.bf16.mxu0 %v11989_v49  ;;  %3026 = vmatprep.subr.bf16.mxu1 %v11991_v53  ;;  %v600_v49 = vld [vmem:[#allocation5 + $0x13d0] sm:$0xff]  ;;  %v12044_v53 = vcombine.low %v588_v40, %v592_v41  ;;  %v645_v40 = vld [vmem:[#allocation5 + $0x1698] sm:$0xff]  ;;  %v12095_v41 = vcombine.high %v637_v30, %v641_v32  ;;  %v3507_v30 = vld [vmem:[#allocation5 + $0x1e8] sm:$0xff] }
 0x1a9   : > { %v12102_v52 = vcombine.low %v645_v40, %v649_v42 }
 0x1ab   : > { %2904 = vmatpush1.bf16.msra.mxu0 %v11988_v55  ;;  %3027 = vmatpush1.bf16.msra.mxu1 %v11990_v56  ;;  %v12053_v55 = vcombine.high %v596_v48, %v600_v49  ;;  %v604_v56 = vld [vmem:[#allocation5 + $0x1410] sm:$0xff] }
 0x1ac   : > { %2914 = vmatprep.subr.bf16.mxu0 %v11997_v58  ;;  %3037 = vmatprep.subr.bf16.mxu1 %v11999_v62  ;;  %v608_v58 = vld [vmem:[#allocation5 + $0x1450] sm:$0xff]  ;;  %v12052_v62 = vcombine.low %v596_v48, %v600_v49  ;;  %v653_v48 = vld [vmem:[#allocation5 + $0x1718] sm:$0xff]  ;;  %v12103_v49 = vcombine.high %v645_v40, %v649_v42  ;;  %v3515_v40 = vld [vmem:[#allocation5 + $0x268] sm:$0xff] }
 0x1ad   : > { %v12110_v61 = vcombine.low %v653_v48, %v657_v50 }
 0x1ae   : > { %2906 = vmatmul.mubr.bf16.vlgmr.msra.gmra.mrb[4].mxu0 %v14972_v25  ;;  %3029 = vmatmul.mubr.bf16.vlgmr.msra.gmra.mrb[4].mxu1 %v14972_v25 }
 0x1af   : > { %2915 = vmatpush1.bf16.msra.mxu0 %v11996_v0  ;;  %3038 = vmatpush1.bf16.msra.mxu1 %v11998_v1  ;;  %v12061_v0 = vcombine.high %v604_v56, %v608_v58  ;;  %v612_v1 = vld [vmem:[#allocation5 + $0x1490] sm:$0xff] }
 0x1b0   : > { %2916 = vmatprep.subr.bf16.mxu0 %v12005_v2  ;;  %3039 = vmatprep.subr.bf16.mxu1 %v12007_v6  ;;  %v616_v2 = vld [vmem:[#allocation5 + $0x14d0] sm:$0xff]  ;;  %v12060_v6 = vcombine.low %v604_v56, %v608_v58  ;;  %v661_v56 = vld [vmem:[#allocation5 + $0x1798] sm:$0xff]  ;;  %v12111_v58 = vcombine.high %v653_v48, %v657_v50  ;;  %v3523_v48 = vld [vmem:[#allocation5 + $0x2e8] sm:$0xff] }
 0x1b1   : > { %2946 = vmatprep.mubr.bf16.mxu0 %v14974_v34  ;;  %3069 = vmatprep.mubr.bf16.mxu1 %v14974_v34  ;;  %v12118_v5 = vcombine.low %v661_v56, %v665_v59 }
 0x1b3   : > { %2917 = vmatpush1.bf16.msra.mxu0 %v12004_v8  ;;  %3040 = vmatpush1.bf16.msra.mxu1 %v12006_v9  ;;  %v12069_v8 = vcombine.high %v612_v1, %v616_v2  ;;  %v620_v9 = vld [vmem:[#allocation5 + $0x1510] sm:$0xff] }
 0x1b4   : > { %2918 = vmatprep.subr.bf16.mxu0 %v12013_v10  ;;  %3041 = vmatprep.subr.bf16.mxu1 %v12015_v15  ;;  %v624_v10 = vld [vmem:[#allocation5 + $0x1550] sm:$0xff]  ;;  %v12068_v15 = vcombine.low %v612_v1, %v616_v2  ;;  %v3479_v1 = vld [vmem:[#allocation5 + $0x28] sm:$0xff]  ;;  %v12119_v2 = vcombine.high %v661_v56, %v665_v59 }
 0x1b5   : > { %v12122_v14 = vcombine.low %v3479_v1, %v3483_v3  ;;  %v3531_v56 = vld [vmem:[#allocation5 + $0x368] sm:$0xff] }
 0x1b7   : > { %2919 = vmatpush1.bf16.msra.mxu0 %v12012_v17  ;;  %3042 = vmatpush1.bf16.msra.mxu1 %v12014_v18  ;;  %v12077_v17 = vcombine.high %v620_v9, %v624_v10  ;;  %v628_v18 = vld [vmem:[#allocation5 + $0x1590] sm:$0xff] }
 0x1b8   : > { %2920 = vmatprep.subr.bf16.mxu0 %v12021_v19  ;;  %3043 = vmatprep.subr.bf16.mxu1 %v12023_v24  ;;  %v632_v19 = vld [vmem:[#allocation5 + $0x15d0] sm:$0xff]  ;;  %v12076_v24 = vcombine.low %v620_v9, %v624_v10  ;;  %v3487_v9 = vld [vmem:[#allocation5 + $0xa8] sm:$0xff]  ;;  %v12123_v10 = vcombine.high %v3479_v1, %v3483_v3 }
 0x1b9   : > { %v12130_v22 = vcombine.low %v3487_v9, %v3491_v11 }
 0x1bb   : > { %2921 = vmatpush1.bf16.msra.mxu0 %v12020_v27  ;;  %3044 = vmatpush1.bf16.msra.mxu1 %v12022_v28  ;;  %v12085_v27 = vcombine.high %v628_v18, %v632_v19  ;;  %v636_v28 = vld [vmem:[#allocation5 + $0x1610] sm:$0xff] }
 0x1bc   : > { %2922 = vmatprep.subr.bf16.mxu0 %v12029_v29  ;;  %3045 = vmatprep.subr.bf16.mxu1 %v12031_v33  ;;  %v640_v29 = vld [vmem:[#allocation5 + $0x1650] sm:$0xff]  ;;  %v12084_v33 = vcombine.low %v628_v18, %v632_v19  ;;  %v3495_v18 = vld [vmem:[#allocation5 + $0x128] sm:$0xff]  ;;  %v12131_v19 = vcombine.high %v3487_v9, %v3491_v11 }
 0x1bd   : > { %v12138_v32 = vcombine.low %v3495_v18, %v3499_v20 }
 0x1bf   : > { %2923 = vmatpush1.bf16.msra.mxu0 %v12028_v36  ;;  %3046 = vmatpush1.bf16.msra.mxu1 %v12030_v37  ;;  %v12093_v36 = vcombine.high %v636_v28, %v640_v29  ;;  %v644_v37 = vld [vmem:[#allocation5 + $0x1690] sm:$0xff] }
 0x1c0   : > { %2924 = vmatprep.subr.bf16.mxu0 %v12037_v39  ;;  %3047 = vmatprep.subr.bf16.mxu1 %v12039_v43  ;;  %v648_v39 = vld [vmem:[#allocation5 + $0x16d0] sm:$0xff]  ;;  %v12092_v43 = vcombine.low %v636_v28, %v640_v29  ;;  %v3503_v28 = vld [vmem:[#allocation5 + $0x1a8] sm:$0xff]  ;;  %v12139_v29 = vcombine.high %v3495_v18, %v3499_v20 }
 0x1c1   : > { %v12146_v42 = vcombine.low %v3503_v28, %v3507_v30  ;;  %v3547_v18 = vld [vmem:[#allocation5 + $0x468] sm:$0xff] }
 0x1c3   : > { %2925 = vmatpush1.bf16.msra.mxu0 %v12036_v45  ;;  %3048 = vmatpush1.bf16.msra.mxu1 %v12038_v46  ;;  %v12101_v45 = vcombine.high %v644_v37, %v648_v39  ;;  %v652_v46 = vld [vmem:[#allocation5 + $0x1710] sm:$0xff] }
 0x1c4   : > { %2926 = vmatprep.subr.bf16.mxu0 %v12045_v47  ;;  %3049 = vmatprep.subr.bf16.mxu1 %v12047_v51  ;;  %v656_v47 = vld [vmem:[#allocation5 + $0x1750] sm:$0xff]  ;;  %v12100_v51 = vcombine.low %v644_v37, %v648_v39  ;;  %v3511_v37 = vld [vmem:[#allocation5 + $0x228] sm:$0xff]  ;;  %v12147_v39 = vcombine.high %v3503_v28, %v3507_v30 }
 0x1c5   : > { %v12154_v50 = vcombine.low %v3511_v37, %v3515_v40  ;;  %v3555_v28 = vld [vmem:[#allocation5 + $0x4e8] sm:$0xff] }
 0x1c7   : > { %2927 = vmatpush1.bf16.msra.mxu0 %v12044_v53  ;;  %3050 = vmatpush1.bf16.msra.mxu1 %v12046_v54  ;;  %v12109_v53 = vcombine.high %v652_v46, %v656_v47  ;;  %v660_v54 = vld [vmem:[#allocation5 + $0x1790] sm:$0xff] }
 0x1c8   : > { %2928 = vmatprep.subr.bf16.mxu0 %v12053_v55  ;;  %3051 = vmatprep.subr.bf16.mxu1 %v12055_v60  ;;  %v664_v55 = vld [vmem:[#allocation5 + $0x17d0] sm:$0xff]  ;;  %v12108_v60 = vcombine.low %v652_v46, %v656_v47  ;;  %v3519_v46 = vld [vmem:[#allocation5 + $0x2a8] sm:$0xff]  ;;  %v12155_v47 = vcombine.high %v3511_v37, %v3515_v40 }
 0x1c9   : > { %v12162_v59 = vcombine.low %v3519_v46, %v3523_v48  ;;  %v3563_v37 = vld [vmem:[#allocation5 + $0x568] sm:$0xff] }
 0x1cb   : > { %2929 = vmatpush1.bf16.msra.mxu0 %v12052_v62  ;;  %3052 = vmatpush1.bf16.msra.mxu1 %v12054_v63  ;;  %v12117_v62 = vcombine.high %v660_v54, %v664_v55  ;;  %v3478_v63 = vld [vmem:[#allocation5 + $0x20] sm:$0xff] }
 0x1cc   : > { %2930 = vmatprep.subr.bf16.mxu0 %v12061_v0  ;;  %3053 = vmatprep.subr.bf16.mxu1 %v12063_v4  ;;  %v3482_v0 = vld [vmem:[#allocation5 + $0x60] sm:$0xff]  ;;  %v12116_v4 = vcombine.low %v660_v54, %v664_v55  ;;  %v3527_v54 = vld [vmem:[#allocation5 + $0x328] sm:$0xff]  ;;  %v12163_v55 = vcombine.high %v3519_v46, %v3523_v48 }
 0x1cd   : > { %v12171_v1 = vcombine.high %v3527_v54, %v3531_v56  ;;  %v3571_v46 = vld [vmem:[#allocation5 + $0x5e8] sm:$0xff] }
 0x1cf   : > { %2931 = vmatpush1.bf16.msra.mxu0 %v12060_v6  ;;  %3054 = vmatpush1.bf16.msra.mxu1 %v12062_v7  ;;  %v12121_v6 = vcombine.high %v3478_v63, %v3482_v0  ;;  %v3486_v7 = vld [vmem:[#allocation5 + $0xa0] sm:$0xff] }
 0x1d0   : > { %2932 = vmatprep.subr.bf16.mxu0 %v12069_v8  ;;  %3055 = vmatprep.subr.bf16.mxu1 %v12071_v13  ;;  %v3490_v8 = vld [vmem:[#allocation5 + $0xe0] sm:$0xff]  ;;  %v12120_v13 = vcombine.low %v3478_v63, %v3482_v0  ;;  %v3535_v63 = vld [vmem:[#allocation5 + $0x3a8] sm:$0xff] }
 0x1d3   : > { %2933 = vmatpush1.bf16.msra.mxu0 %v12068_v15  ;;  %3056 = vmatpush1.bf16.msra.mxu1 %v12070_v16  ;;  %v12129_v15 = vcombine.high %v3486_v7, %v3490_v8  ;;  %v3494_v16 = vld [vmem:[#allocation5 + $0x120] sm:$0xff] }
 0x1d4   : > { %2934 = vmatprep.subr.bf16.mxu0 %v12077_v17  ;;  %3057 = vmatprep.subr.bf16.mxu1 %v12079_v21  ;;  %v3498_v17 = vld [vmem:[#allocation5 + $0x160] sm:$0xff]  ;;  %v12128_v21 = vcombine.low %v3486_v7, %v3490_v8 }
 0x1d7   : > { %2935 = vmatpush1.bf16.msra.mxu0 %v12076_v24  ;;  %3058 = vmatpush1.bf16.msra.mxu1 %v12078_v26  ;;  %v12137_v24 = vcombine.high %v3494_v16, %v3498_v17  ;;  %v3502_v26 = vld [vmem:[#allocation5 + $0x1a0] sm:$0xff] }
 0x1d8   : > { %2936 = vmatprep.subr.bf16.mxu0 %v12085_v27  ;;  %3059 = vmatprep.subr.bf16.mxu1 %v12087_v31  ;;  %v3506_v27 = vld [vmem:[#allocation5 + $0x1e0] sm:$0xff]  ;;  %v12136_v31 = vcombine.low %v3494_v16, %v3498_v17 }
 0x1db   : > { %2937 = vmatpush1.bf16.msra.mxu0 %v12084_v33  ;;  %3060 = vmatpush1.bf16.msra.mxu1 %v12086_v35  ;;  %v12145_v33 = vcombine.high %v3502_v26, %v3506_v27  ;;  %v3510_v35 = vld [vmem:[#allocation5 + $0x220] sm:$0xff] }
 0x1dc   : > { %2938 = vmatprep.subr.bf16.mxu0 %v12093_v36  ;;  %3061 = vmatprep.subr.bf16.mxu1 %v12095_v41  ;;  %v3514_v36 = vld [vmem:[#allocation5 + $0x260] sm:$0xff]  ;;  %v12144_v41 = vcombine.low %v3502_v26, %v3506_v27  ;;  %v3551_v26 = vld [vmem:[#allocation5 + $0x4a8] sm:$0xff] }
 0x1dd   : > { %v12194_v40 = vcombine.low %v3551_v26, %v3555_v28 }
 0x1df   : > { %2939 = vmatpush1.bf16.msra.mxu0 %v12092_v43  ;;  %3062 = vmatpush1.bf16.msra.mxu1 %v12094_v44  ;;  %v12153_v43 = vcombine.high %v3510_v35, %v3514_v36  ;;  %v3518_v44 = vld [vmem:[#allocation5 + $0x2a0] sm:$0xff] }
 0x1e0   : > { %2940 = vmatprep.subr.bf16.mxu0 %v12101_v45  ;;  %3063 = vmatprep.subr.bf16.mxu1 %v12103_v49  ;;  %v3522_v45 = vld [vmem:[#allocation5 + $0x2e0] sm:$0xff]  ;;  %v12152_v49 = vcombine.low %v3510_v35, %v3514_v36  ;;  %v3559_v35 = vld [vmem:[#allocation5 + $0x528] sm:$0xff]  ;;  %v12195_v36 = vcombine.high %v3551_v26, %v3555_v28 }
 0x1e1   : > { %v12202_v48 = vcombine.low %v3559_v35, %v3563_v37  ;;  %v3606_v26 = vld [vmem:[#allocation5 + $0x820] sm:$0xff]  ;;  %v3607_v28 = vld [vmem:[#allocation5 + $0x828] sm:$0xff] }
 0x1e3   : > { %2941 = vmatpush1.bf16.msra.mxu0 %v12100_v51  ;;  %3064 = vmatpush1.bf16.msra.mxu1 %v12102_v52  ;;  %v12161_v51 = vcombine.high %v3518_v44, %v3522_v45  ;;  %v3526_v52 = vld [vmem:[#allocation5 + $0x320] sm:$0xff] }
 0x1e4   : > { %2942 = vmatprep.subr.bf16.mxu0 %v12109_v53  ;;  %3065 = vmatprep.subr.bf16.mxu1 %v12111_v58  ;;  %v3530_v53 = vld [vmem:[#allocation5 + $0x360] sm:$0xff]  ;;  %v12160_v58 = vcombine.low %v3518_v44, %v3522_v45  ;;  %v3567_v44 = vld [vmem:[#allocation5 + $0x5a8] sm:$0xff]  ;;  %v12203_v45 = vcombine.high %v3559_v35, %v3563_v37 }
 0x1e5   : > { %v12168_v7 = vcombine.low %v3526_v52, %v3530_v53  ;;  %v3614_v35 = vld [vmem:[#allocation5 + $0x8a0] sm:$0xff]  ;;  %v3615_v37 = vld [vmem:[#allocation5 + $0x8a8] sm:$0xff] }
 0x1e7   : > { %2943 = vmatpush1.bf16.msra.mxu0 %v12108_v60  ;;  %3066 = vmatpush1.bf16.msra.mxu1 %v12110_v61  ;;  %v12169_v60 = vcombine.high %v3526_v52, %v3530_v53  ;;  %v3534_v61 = vld [vmem:[#allocation5 + $0x3a0] sm:$0xff]  ;;  %v3575_v52 = vld [vmem:[#allocation5 + $0x628] sm:$0xff]  ;;  %v12211_v53 = vcombine.high %v3567_v44, %v3571_v46 }
 0x1e8   : > { %2944 = vmatprep.subr.bf16.mxu0 %v12117_v62  ;;  %3067 = vmatprep.subr.bf16.mxu1 %v12119_v2  ;;  %v3538_v62 = vld [vmem:[#allocation5 + $0x3e0] sm:$0xff]  ;;  %v3539_v2 = vld [vmem:[#allocation5 + $0x3e8] sm:$0xff] }
 0x1e9   : > { %v12177_v11 = vcombine.high %v3534_v61, %v3538_v62  ;;  %v12179_v17 = vcombine.high %v3535_v63, %v3539_v2  ;;  %v12178_v20 = vcombine.low %v3535_v63, %v3539_v2  ;;  %v3587_v63 = vld [vmem:[#allocation5 + $0x6e8] sm:$0xff] }
 0x1eb   : > { %2945 = vmatpush1.bf16.msra.mxu0 %v12116_v4  ;;  %3068 = vmatpush1.bf16.msra.mxu1 %v12118_v5 }
 0x1ec   : > { %5782 = vmatprep.subr.bf16.mxu0 %v12121_v6  ;;  %5905 = vmatprep.subr.bf16.mxu1 %v12123_v10  ;;  %v12170_v10 = vcombine.low %v3527_v54, %v3531_v56  ;;  %v3579_v54 = vld [vmem:[#allocation5 + $0x668] sm:$0xff]  ;;  %v12210_v56 = vcombine.low %v3567_v44, %v3571_v46  ;;  %v3622_v44 = vld [vmem:[#allocation5 + $0x920] sm:$0xff] }
 0x1ed   : > { %v12218_v2 = vcombine.low %v3575_v52, %v3579_v54 }
 0x1ee   : > { %2947 = vmatmul.mubr.bf16.vlgmr.msra.gmra.mrb[4].mxu0 %v14981_v38  ;;  %3070 = vmatmul.mubr.bf16.vlgmr.msra.gmra.mrb[4].mxu1 %v14981_v38 }
 0x1ef   : > { %5783 = vmatpush1.bf16.msra.mxu0 %v12120_v13  ;;  %5906 = vmatpush1.bf16.msra.mxu1 %v12122_v14  ;;  %v3542_v13 = vld [vmem:[#allocation5 + $0x420] sm:$0xff] }
 0x1f0   : > { %5784 = vmatprep.subr.bf16.mxu0 %v12129_v15  ;;  %5907 = vmatprep.subr.bf16.mxu1 %v12131_v19  ;;  %v3546_v14 = vld [vmem:[#allocation5 + $0x460] sm:$0xff]  ;;  %v3543_v15 = vld [vmem:[#allocation5 + $0x428] sm:$0xff]  ;;  %v12176_v19 = vcombine.low %v3534_v61, %v3538_v62  ;;  %v12219_v62 = vcombine.high %v3575_v52, %v3579_v54 }
 0x1f1   : > { %5814 = vmatprep.mubr.bf16.mxu0 %v14956_v57  ;;  %5937 = vmatprep.mubr.bf16.mxu1 %v14956_v57  ;;  %v12187_v27 = vcombine.high %v3543_v15, %v3547_v18  ;;  %v12186_v30 = vcombine.low %v3543_v15, %v3547_v18  ;;  %v3583_v61 = vld [vmem:[#allocation5 + $0x6a8] sm:$0xff]  ;;  %v3634_v54 = vld [vmem:[#allocation5 + $0x9e0] sm:$0xff] }
 0x1f2   : > { %v3599_v18 = vld [vmem:[#allocation5 + $0x7a8] sm:$0xff] }
 0x1f3   : > { %5785 = vmatpush1.bf16.msra.mxu0 %v12128_v21  ;;  %5908 = vmatpush1.bf16.msra.mxu1 %v12130_v22  ;;  %v12185_v21 = vcombine.high %v3542_v13, %v3546_v14  ;;  %v3550_v22 = vld [vmem:[#allocation5 + $0x4a0] sm:$0xff] }
 0x1f4   : > { %5786 = vmatprep.subr.bf16.mxu0 %v12137_v24  ;;  %5909 = vmatprep.subr.bf16.mxu1 %v12139_v29  ;;  %v3554_v24 = vld [vmem:[#allocation5 + $0x4e0] sm:$0xff]  ;;  %v12184_v29 = vcombine.low %v3542_v13, %v3546_v14  ;;  %v12226_v14 = vcombine.low %v3583_v61, %v3587_v63 }
 0x1f7   : > { %5787 = vmatpush1.bf16.msra.mxu0 %v12136_v31  ;;  %5910 = vmatpush1.bf16.msra.mxu1 %v12138_v32  ;;  %v12193_v31 = vcombine.high %v3550_v22, %v3554_v24  ;;  %v3558_v32 = vld [vmem:[#allocation5 + $0x520] sm:$0xff] }
 0x1f8   : > { %5788 = vmatprep.subr.bf16.mxu0 %v12145_v33  ;;  %5911 = vmatprep.subr.bf16.mxu1 %v12147_v39  ;;  %v3562_v33 = vld [vmem:[#allocation5 + $0x560] sm:$0xff]  ;;  %v12192_v39 = vcombine.low %v3550_v22, %v3554_v24 }
 0x1fb   : > { %5789 = vmatpush1.bf16.msra.mxu0 %v12144_v41  ;;  %5912 = vmatpush1.bf16.msra.mxu1 %v12146_v42  ;;  %v12201_v41 = vcombine.high %v3558_v32, %v3562_v33  ;;  %v3566_v42 = vld [vmem:[#allocation5 + $0x5a0] sm:$0xff] }
 0x1fc   : > { %5790 = vmatprep.subr.bf16.mxu0 %v12153_v43  ;;  %5913 = vmatprep.subr.bf16.mxu1 %v12155_v47  ;;  %v3570_v43 = vld [vmem:[#allocation5 + $0x5e0] sm:$0xff]  ;;  %v12200_v47 = vcombine.low %v3558_v32, %v3562_v33 }
 0x1ff   : > { %5791 = vmatpush1.bf16.msra.mxu0 %v12152_v49  ;;  %5914 = vmatpush1.bf16.msra.mxu1 %v12154_v50  ;;  %v12209_v49 = vcombine.high %v3566_v42, %v3570_v43  ;;  %v3574_v50 = vld [vmem:[#allocation5 + $0x620] sm:$0xff] }
 0x200   : > { %5792 = vmatprep.subr.bf16.mxu0 %v12161_v51  ;;  %5915 = vmatprep.subr.bf16.mxu1 %v12163_v55  ;;  %v3578_v51 = vld [vmem:[#allocation5 + $0x660] sm:$0xff]  ;;  %v12208_v55 = vcombine.low %v3566_v42, %v3570_v43 }
 0x201   : > { %v14999_v0 = vpop.f32.mrb[0].mxu0  ;;  %v15001_v3 = vpop.f32.mrb[0].mxu1 }
 0x202   : > { %v15003_v4 = vpop.f32.mrb[1].mxu0  ;;  %v15005_v5 = vpop.f32.mrb[1].mxu1 }
 0x203   : > { %v2706_v6 = vpop.f32.mrb[2].mxu0  ;;  %5793 = vmatpush1.bf16.msra.mxu0 %v12160_v58  ;;  %v2829_v8 = vpop.f32.mrb[2].mxu1  ;;  %5916 = vmatpush1.bf16.msra.mxu1 %v12162_v59  ;;  %v12217_v58 = vcombine.high %v3574_v50, %v3578_v51  ;;  %v3582_v59 = vld [vmem:[#allocation5 + $0x6a0] sm:$0xff] }
 0x204   : > { %v2707_v9 = vpop.f32.mrb[3].mxu0  ;;  %5794 = vmatprep.subr.bf16.mxu0 %v12169_v60  ;;  %v2830_v16 = vpop.f32.mrb[3].mxu1  ;;  %5917 = vmatprep.subr.bf16.mxu1 %v12171_v1  ;;  %v3586_v60 = vld [vmem:[#allocation5 + $0x6e0] sm:$0xff]  ;;  %v12216_v1 = vcombine.low %v3574_v50, %v3578_v51 }
 0x205   : > { %v12225_v6 = vcombine.high %v3582_v59, %v3586_v60  ;;  %v3594_v8 = vld [vmem:[#allocation5 + $0x760] sm:$0xff]  ;;  %v3591_v9 = vld [vmem:[#allocation5 + $0x728] sm:$0xff]  ;;  %v12224_v13 = vcombine.low %v3582_v59, %v3586_v60 }
 0x206   : > { %v3598_v16 = vld [vmem:[#allocation5 + $0x7a0] sm:$0xff] }
 0x207   : > { %5795 = vmatpush1.bf16.msra.mxu0 %v12168_v7  ;;  %5918 = vmatpush1.bf16.msra.mxu1 %v12170_v10  ;;  %v3590_v7 = vld [vmem:[#allocation5 + $0x720] sm:$0xff]  ;;  %v12227_v10 = vcombine.high %v3583_v61, %v3587_v63 }
 0x208   : > { %5796 = vmatprep.subr.bf16.mxu0 %v12177_v11  ;;  %5919 = vmatprep.subr.bf16.mxu1 %v12179_v17  ;;  %v3595_v11 = vld [vmem:[#allocation5 + $0x768] sm:$0xff]  ;;  %v12233_v15 = vcombine.high %v3590_v7, %v3594_v8  ;;  %v3602_v17 = vld [vmem:[#allocation5 + $0x7e0] sm:$0xff] }
 0x209   : > { %v12234_v22 = vcombine.low %v3591_v9, %v3595_v11  ;;  %v12241_v24 = vcombine.high %v3598_v16, %v3602_v17  ;;  %v3642_v63 = vld [vmem:[#allocation5 + $0xa60] sm:$0xff] }
 0x20b   : > { %5797 = vmatpush1.bf16.msra.mxu0 %v12176_v19  ;;  %5920 = vmatpush1.bf16.msra.mxu1 %v12178_v20  ;;  %v12235_v19 = vcombine.high %v3591_v9, %v3595_v11  ;;  %v3603_v20 = vld [vmem:[#allocation5 + $0x7e8] sm:$0xff]  ;;  %v3650_v11 = vld [vmem:[#allocation5 + $0xae0] sm:$0xff] }
 0x20c   : > { %5798 = vmatprep.subr.bf16.mxu0 %v12185_v21  ;;  %5921 = vmatprep.subr.bf16.mxu1 %v12187_v27  ;;  %v12232_v21 = vcombine.low %v3590_v7, %v3594_v8  ;;  %v3610_v27 = vld [vmem:[#allocation5 + $0x860] sm:$0xff]  ;;  %v12242_v32 = vcombine.low %v3599_v18, %v3603_v20 }
 0x20d   : > { %v12249_v33 = vcombine.high %v3606_v26, %v3610_v27 }
 0x20f   : > { %5799 = vmatpush1.bf16.msra.mxu0 %v12184_v29  ;;  %5922 = vmatpush1.bf16.msra.mxu1 %v12186_v30  ;;  %v12243_v29 = vcombine.high %v3599_v18, %v3603_v20  ;;  %v3611_v30 = vld [vmem:[#allocation5 + $0x868] sm:$0xff]  ;;  %v3658_v20 = vld [vmem:[#allocation5 + $0xb60] sm:$0xff] }
 0x210   : > { %5800 = vmatprep.subr.bf16.mxu0 %v12193_v31  ;;  %5923 = vmatprep.subr.bf16.mxu1 %v12195_v36  ;;  %v12240_v31 = vcombine.low %v3598_v16, %v3602_v17  ;;  %v3618_v36 = vld [vmem:[#allocation5 + $0x8e0] sm:$0xff]  ;;  %v12250_v42 = vcombine.low %v3607_v28, %v3611_v30 }
 0x211   : > { %v12257_v43 = vcombine.high %v3614_v35, %v3618_v36 }
 0x213   : > { %5801 = vmatpush1.bf16.msra.mxu0 %v12192_v39  ;;  %5924 = vmatpush1.bf16.msra.mxu1 %v12194_v40  ;;  %v12251_v39 = vcombine.high %v3607_v28, %v3611_v30  ;;  %v3619_v40 = vld [vmem:[#allocation5 + $0x8e8] sm:$0xff]  ;;  %v3666_v30 = vld [vmem:[#allocation5 + $0xbe0] sm:$0xff] }
 0x214   : > { %5802 = vmatprep.subr.bf16.mxu0 %v12201_v41  ;;  %5925 = vmatprep.subr.bf16.mxu1 %v12203_v45  ;;  %v12248_v41 = vcombine.low %v3606_v26, %v3610_v27  ;;  %v3626_v45 = vld [vmem:[#allocation5 + $0x960] sm:$0xff]  ;;  %v12259_v46 = vcombine.high %v3615_v37, %v3619_v40  ;;  %v12258_v50 = vcombine.low %v3615_v37, %v3619_v40 }
 0x215   : > { %v12265_v51 = vcombine.high %v3622_v44, %v3626_v45  ;;  %v3674_v40 = vld [vmem:[#allocation5 + $0xc60] sm:$0xff] }
 0x217   : > { %5803 = vmatpush1.bf16.msra.mxu0 %v12200_v47  ;;  %5926 = vmatpush1.bf16.msra.mxu1 %v12202_v48  ;;  %v3623_v47 = vld [vmem:[#allocation5 + $0x928] sm:$0xff] }
 0x218   : > { %5804 = vmatprep.subr.bf16.mxu0 %v12209_v49  ;;  %5927 = vmatprep.subr.bf16.mxu1 %v12211_v53  ;;  %v3627_v48 = vld [vmem:[#allocation5 + $0x968] sm:$0xff]  ;;  %v12256_v49 = vcombine.low %v3614_v35, %v3618_v36  ;;  %v3630_v53 = vld [vmem:[#allocation5 + $0x9a0] sm:$0xff] }
 0x219   : > { %v12267_v52 = vcombine.high %v3623_v47, %v3627_v48  ;;  %v12266_v59 = vcombine.low %v3623_v47, %v3627_v48  ;;  %v12273_v60 = vcombine.high %v3630_v53, %v3634_v54  ;;  %v3678_v47 = vld [vmem:[#allocation5 + $0xca0] sm:$0xff] }
 0x21a   : > { %v3682_v48 = vld [vmem:[#allocation5 + $0xce0] sm:$0xff] }
 0x21b   : > { %5805 = vmatpush1.bf16.msra.mxu0 %v12208_v55  ;;  %5928 = vmatpush1.bf16.msra.mxu1 %v12210_v56  ;;  %v3631_v55 = vld [vmem:[#allocation5 + $0x9a8] sm:$0xff] }
 0x21c   : > { %5806 = vmatprep.subr.bf16.mxu0 %v12217_v58  ;;  %5929 = vmatprep.subr.bf16.mxu1 %v12219_v62  ;;  %v3635_v56 = vld [vmem:[#allocation5 + $0x9e8] sm:$0xff]  ;;  %v12264_v58 = vcombine.low %v3622_v44, %v3626_v45  ;;  %v3638_v62 = vld [vmem:[#allocation5 + $0xa20] sm:$0xff] }
 0x21d   : > { %v12275_v61 = vcombine.high %v3631_v55, %v3635_v56  ;;  %v12274_v7 = vcombine.low %v3631_v55, %v3635_v56  ;;  %v12281_v8 = vcombine.high %v3638_v62, %v3642_v63  ;;  %v3686_v55 = vld [vmem:[#allocation5 + $0xd20] sm:$0xff] }
 0x21e   : > { %v3690_v56 = vld [vmem:[#allocation5 + $0xd60] sm:$0xff] }
 0x21f   : > { %5807 = vmatpush1.bf16.msra.mxu0 %v12216_v1  ;;  %5930 = vmatpush1.bf16.msra.mxu1 %v12218_v2  ;;  %v3639_v1 = vld [vmem:[#allocation5 + $0xa28] sm:$0xff] }
 0x220   : > { %5808 = vmatprep.subr.bf16.mxu0 %v12225_v6  ;;  %5931 = vmatprep.subr.bf16.mxu1 %v12227_v10  ;;  %v3643_v2 = vld [vmem:[#allocation5 + $0xa68] sm:$0xff]  ;;  %v12272_v6 = vcombine.low %v3630_v53, %v3634_v54  ;;  %v3646_v10 = vld [vmem:[#allocation5 + $0xaa0] sm:$0xff]  ;;  %v12321_v53 = vcombine.high %v3678_v47, %v3682_v48 }
 0x221   : > { %v12283_v9 = vcombine.high %v3639_v1, %v3643_v2  ;;  %v12282_v16 = vcombine.low %v3639_v1, %v3643_v2  ;;  %v12289_v17 = vcombine.high %v3646_v10, %v3650_v11  ;;  %v3694_v1 = vld [vmem:[#allocation5 + $0xda0] sm:$0xff] }
 0x222   : > { %v3698_v2 = vld [vmem:[#allocation5 + $0xde0] sm:$0xff] }
 0x223   : > { %5809 = vmatpush1.bf16.msra.mxu0 %v12224_v13  ;;  %5932 = vmatpush1.bf16.msra.mxu1 %v12226_v14  ;;  %v3647_v13 = vld [vmem:[#allocation5 + $0xaa8] sm:$0xff] }
 0x224   : > { %5810 = vmatprep.subr.bf16.mxu0 %v12233_v15  ;;  %5933 = vmatprep.subr.bf16.mxu1 %v12235_v19  ;;  %v3651_v14 = vld [vmem:[#allocation5 + $0xae8] sm:$0xff]  ;;  %v12280_v15 = vcombine.low %v3638_v62, %v3642_v63  ;;  %v3654_v19 = vld [vmem:[#allocation5 + $0xb20] sm:$0xff]  ;;  %v12329_v62 = vcombine.high %v3686_v55, %v3690_v56 }
 0x225   : > { %v12291_v18 = vcombine.high %v3647_v13, %v3651_v14  ;;  %v12290_v26 = vcombine.low %v3647_v13, %v3651_v14  ;;  %v12297_v27 = vcombine.high %v3654_v19, %v3658_v20  ;;  %v3702_v13 = vld [vmem:[#allocation5 + $0xe20] sm:$0xff] }
 0x226   : > { %v3706_v14 = vld [vmem:[#allocation5 + $0xe60] sm:$0xff] }
 0x227   : > { %5811 = vmatpush1.bf16.msra.mxu0 %v12232_v21  ;;  %5934 = vmatpush1.bf16.msra.mxu1 %v12234_v22  ;;  %v3655_v21 = vld [vmem:[#allocation5 + $0xb28] sm:$0xff] }
 0x228   : > { %5812 = vmatprep.subr.bf16.mxu0 %v12241_v24  ;;  %5935 = vmatprep.subr.bf16.mxu1 %v12243_v29  ;;  %v3659_v22 = vld [vmem:[#allocation5 + $0xb68] sm:$0xff]  ;;  %v12288_v24 = vcombine.low %v3646_v10, %v3650_v11  ;;  %v3662_v29 = vld [vmem:[#allocation5 + $0xba0] sm:$0xff]  ;;  %v12337_v10 = vcombine.high %v3694_v1, %v3698_v2 }
 0x229   : > { %v12299_v28 = vcombine.high %v3655_v21, %v3659_v22  ;;  %v12298_v35 = vcombine.low %v3655_v21, %v3659_v22  ;;  %v12305_v36 = vcombine.high %v3662_v29, %v3666_v30  ;;  %v3710_v21 = vld [vmem:[#allocation5 + $0xea0] sm:$0xff] }
 0x22a   : > { %v3714_v22 = vld [vmem:[#allocation5 + $0xee0] sm:$0xff] }
 0x22b   : > { %5813 = vmatpush1.bf16.msra.mxu0 %v12240_v31  ;;  %5936 = vmatpush1.bf16.msra.mxu1 %v12242_v32  ;;  %v3663_v31 = vld [vmem:[#allocation5 + $0xba8] sm:$0xff] }
 0x22c   : > { %5823 = vmatprep.subr.bf16.mxu0 %v12249_v33  ;;  %5946 = vmatprep.subr.bf16.mxu1 %v12251_v39  ;;  %v3667_v32 = vld [vmem:[#allocation5 + $0xbe8] sm:$0xff]  ;;  %v12296_v33 = vcombine.low %v3654_v19, %v3658_v20  ;;  %v3670_v39 = vld [vmem:[#allocation5 + $0xc20] sm:$0xff]  ;;  %v12345_v19 = vcombine.high %v3702_v13, %v3706_v14 }
 0x22d   : > { %v12307_v37 = vcombine.high %v3663_v31, %v3667_v32  ;;  %v12306_v44 = vcombine.low %v3663_v31, %v3667_v32  ;;  %v12313_v45 = vcombine.high %v3670_v39, %v3674_v40  ;;  %v3718_v31 = vld [vmem:[#allocation5 + $0xf20] sm:$0xff] }
 0x22e   : > { %5815 = vmatmul.mubr.bf16.vlgmr.msra.gmra.mrb[8].mxu0 %v14961_v12  ;;  %5938 = vmatmul.mubr.bf16.vlgmr.msra.gmra.mrb[8].mxu1 %v14961_v12  ;;  %v3722_v32 = vld [vmem:[#allocation5 + $0xf60] sm:$0xff] }
 0x22f   : > { %5824 = vmatpush1.bf16.msra.mxu0 %v12248_v41  ;;  %5947 = vmatpush1.bf16.msra.mxu1 %v12250_v42  ;;  %v3671_v41 = vld [vmem:[#allocation5 + $0xc28] sm:$0xff] }
 0x230   : > { %5825 = vmatprep.subr.bf16.mxu0 %v12257_v43  ;;  %5948 = vmatprep.subr.bf16.mxu1 %v12259_v46  ;;  %v3675_v42 = vld [vmem:[#allocation5 + $0xc68] sm:$0xff]  ;;  %v12304_v43 = vcombine.low %v3662_v29, %v3666_v30  ;;  %v12353_v29 = vcombine.high %v3710_v21, %v3714_v22 }
 0x231   : > { %5855 = vmatprep.mubr.bf16.mxu0 %v14964_v23  ;;  %5978 = vmatprep.mubr.bf16.mxu1 %v14964_v23  ;;  %v12315_v46 = vcombine.high %v3671_v41, %v3675_v42 }
 0x233   : > { %5826 = vmatpush1.bf16.msra.mxu0 %v12256_v49  ;;  %5949 = vmatpush1.bf16.msra.mxu1 %v12258_v50  ;;  %v3679_v49 = vld [vmem:[#allocation5 + $0xca8] sm:$0xff] }
 0x234   : > { %5827 = vmatprep.subr.bf16.mxu0 %v12265_v51  ;;  %5950 = vmatprep.subr.bf16.mxu1 %v12267_v52  ;;  %v3683_v50 = vld [vmem:[#allocation5 + $0xce8] sm:$0xff]  ;;  %v12312_v51 = vcombine.low %v3670_v39, %v3674_v40  ;;  %v12314_v52 = vcombine.low %v3671_v41, %v3675_v42  ;;  %v12361_v39 = vcombine.high %v3718_v31, %v3722_v32  ;;  %v3726_v41 = vld [vmem:[#allocation5 + $0xfa0] sm:$0xff] }
 0x235   : > { %v12323_v54 = vcombine.high %v3679_v49, %v3683_v50  ;;  %v3730_v42 = vld [vmem:[#allocation5 + $0xfe0] sm:$0xff] }
 0x237   : > { %5828 = vmatpush1.bf16.msra.mxu0 %v12264_v58  ;;  %5951 = vmatpush1.bf16.msra.mxu1 %v12266_v59  ;;  %v3687_v58 = vld [vmem:[#allocation5 + $0xd28] sm:$0xff] }
 0x238   : > { %5829 = vmatprep.subr.bf16.mxu0 %v12273_v60  ;;  %5952 = vmatprep.subr.bf16.mxu1 %v12275_v61  ;;  %v3691_v59 = vld [vmem:[#allocation5 + $0xd68] sm:$0xff]  ;;  %v12320_v60 = vcombine.low %v3678_v47, %v3682_v48  ;;  %v12322_v61 = vcombine.low %v3679_v49, %v3683_v50  ;;  %v12369_v47 = vcombine.high %v3726_v41, %v3730_v42  ;;  %v3734_v49 = vld [vmem:[#allocation5 + $0x1020] sm:$0xff] }
 0x239   : > { %v12331_v63 = vcombine.high %v3687_v58, %v3691_v59  ;;  %v3738_v50 = vld [vmem:[#allocation5 + $0x1060] sm:$0xff] }
 0x23b   : > { %5830 = vmatpush1.bf16.msra.mxu0 %v12272_v6  ;;  %5953 = vmatpush1.bf16.msra.mxu1 %v12274_v7  ;;  %v3695_v6 = vld [vmem:[#allocation5 + $0xda8] sm:$0xff] }
 0x23c   : > { %5831 = vmatprep.subr.bf16.mxu0 %v12281_v8  ;;  %5954 = vmatprep.subr.bf16.mxu1 %v12283_v9  ;;  %v3699_v7 = vld [vmem:[#allocation5 + $0xde8] sm:$0xff]  ;;  %v12328_v8 = vcombine.low %v3686_v55, %v3690_v56  ;;  %v12330_v9 = vcombine.low %v3687_v58, %v3691_v59  ;;  %v12377_v55 = vcombine.high %v3734_v49, %v3738_v50  ;;  %v3742_v58 = vld [vmem:[#allocation5 + $0x10a0] sm:$0xff] }
 0x23d   : > { %v12339_v11 = vcombine.high %v3695_v6, %v3699_v7  ;;  %v3746_v59 = vld [vmem:[#allocation5 + $0x10e0] sm:$0xff] }
 0x23f   : > { %5832 = vmatpush1.bf16.msra.mxu0 %v12280_v15  ;;  %5955 = vmatpush1.bf16.msra.mxu1 %v12282_v16  ;;  %v3703_v15 = vld [vmem:[#allocation5 + $0xe28] sm:$0xff] }
 0x240   : > { %5833 = vmatprep.subr.bf16.mxu0 %v12289_v17  ;;  %5956 = vmatprep.subr.bf16.mxu1 %v12291_v18  ;;  %v3707_v16 = vld [vmem:[#allocation5 + $0xe68] sm:$0xff]  ;;  %v12336_v17 = vcombine.low %v3694_v1, %v3698_v2  ;;  %v12338_v18 = vcombine.low %v3695_v6, %v3699_v7  ;;  %v12385_v1 = vcombine.high %v3742_v58, %v3746_v59  ;;  %v3750_v6 = vld [vmem:[#allocation5 + $0x1120] sm:$0xff] }
 0x241   : > { %v12347_v20 = vcombine.high %v3703_v15, %v3707_v16  ;;  %v3754_v7 = vld [vmem:[#allocation5 + $0x1160] sm:$0xff] }
 0x243   : > { %5834 = vmatpush1.bf16.msra.mxu0 %v12288_v24  ;;  %5957 = vmatpush1.bf16.msra.mxu1 %v12290_v26  ;;  %v3711_v24 = vld [vmem:[#allocation5 + $0xea8] sm:$0xff] }
 0x244   : > { %5835 = vmatprep.subr.bf16.mxu0 %v12297_v27  ;;  %5958 = vmatprep.subr.bf16.mxu1 %v12299_v28  ;;  %v3715_v26 = vld [vmem:[#allocation5 + $0xee8] sm:$0xff]  ;;  %v12344_v27 = vcombine.low %v3702_v13, %v3706_v14  ;;  %v12346_v28 = vcombine.low %v3703_v15, %v3707_v16  ;;  %v12393_v13 = vcombine.high %v3750_v6, %v3754_v7  ;;  %v3758_v15 = vld [vmem:[#allocation5 + $0x11a0] sm:$0xff] }
 0x245   : > { %v12355_v30 = vcombine.high %v3711_v24, %v3715_v26  ;;  %v3762_v16 = vld [vmem:[#allocation5 + $0x11e0] sm:$0xff] }
 0x247   : > { %5836 = vmatpush1.bf16.msra.mxu0 %v12296_v33  ;;  %5959 = vmatpush1.bf16.msra.mxu1 %v12298_v35  ;;  %v3719_v33 = vld [vmem:[#allocation5 + $0xf28] sm:$0xff] }
 0x248   : > { %5837 = vmatprep.subr.bf16.mxu0 %v12305_v36  ;;  %5960 = vmatprep.subr.bf16.mxu1 %v12307_v37  ;;  %v3723_v35 = vld [vmem:[#allocation5 + $0xf68] sm:$0xff]  ;;  %v12352_v36 = vcombine.low %v3710_v21, %v3714_v22  ;;  %v12354_v37 = vcombine.low %v3711_v24, %v3715_v26  ;;  %v12401_v21 = vcombine.high %v3758_v15, %v3762_v16  ;;  %v3766_v24 = vld [vmem:[#allocation5 + $0x1220] sm:$0xff] }
 0x249   : > { %v12363_v40 = vcombine.high %v3719_v33, %v3723_v35  ;;  %v3770_v26 = vld [vmem:[#allocation5 + $0x1260] sm:$0xff] }
 0x24b   : > { %5838 = vmatpush1.bf16.msra.mxu0 %v12304_v43  ;;  %5961 = vmatpush1.bf16.msra.mxu1 %v12306_v44  ;;  %v3727_v43 = vld [vmem:[#allocation5 + $0xfa8] sm:$0xff] }
 0x24c   : > { %5839 = vmatprep.subr.bf16.mxu0 %v12313_v45  ;;  %5962 = vmatprep.subr.bf16.mxu1 %v12315_v46  ;;  %v3731_v44 = vld [vmem:[#allocation5 + $0xfe8] sm:$0xff]  ;;  %v12360_v45 = vcombine.low %v3718_v31, %v3722_v32  ;;  %v12362_v46 = vcombine.low %v3719_v33, %v3723_v35  ;;  %v12409_v31 = vcombine.high %v3766_v24, %v3770_v26  ;;  %v3774_v33 = vld [vmem:[#allocation5 + $0x12a0] sm:$0xff] }
 0x24d   : > { %v12371_v48 = vcombine.high %v3727_v43, %v3731_v44  ;;  %v3778_v35 = vld [vmem:[#allocation5 + $0x12e0] sm:$0xff] }
 0x24f   : > { %5840 = vmatpush1.bf16.msra.mxu0 %v12312_v51  ;;  %5963 = vmatpush1.bf16.msra.mxu1 %v12314_v52  ;;  %v3735_v51 = vld [vmem:[#allocation5 + $0x1028] sm:$0xff] }
 0x250   : > { %5841 = vmatprep.subr.bf16.mxu0 %v12321_v53  ;;  %5964 = vmatprep.subr.bf16.mxu1 %v12323_v54  ;;  %v3739_v52 = vld [vmem:[#allocation5 + $0x1068] sm:$0xff]  ;;  %v12368_v53 = vcombine.low %v3726_v41, %v3730_v42  ;;  %v12370_v54 = vcombine.low %v3727_v43, %v3731_v44  ;;  %v12417_v41 = vcombine.high %v3774_v33, %v3778_v35  ;;  %v3782_v43 = vld [vmem:[#allocation5 + $0x1320] sm:$0xff] }
 0x251   : > { %v12379_v56 = vcombine.high %v3735_v51, %v3739_v52  ;;  %v3786_v44 = vld [vmem:[#allocation5 + $0x1360] sm:$0xff] }
 0x253   : > { %5842 = vmatpush1.bf16.msra.mxu0 %v12320_v60  ;;  %5965 = vmatpush1.bf16.msra.mxu1 %v12322_v61  ;;  %v3743_v60 = vld [vmem:[#allocation5 + $0x10a8] sm:$0xff] }
 0x254   : > { %5843 = vmatprep.subr.bf16.mxu0 %v12329_v62  ;;  %5966 = vmatprep.subr.bf16.mxu1 %v12331_v63  ;;  %v3747_v61 = vld [vmem:[#allocation5 + $0x10e8] sm:$0xff]  ;;  %v12376_v62 = vcombine.low %v3734_v49, %v3738_v50  ;;  %v12378_v63 = vcombine.low %v3735_v51, %v3739_v52  ;;  %v12425_v49 = vcombine.high %v3782_v43, %v3786_v44  ;;  %v3790_v51 = vld [vmem:[#allocation5 + $0x13a0] sm:$0xff] }
 0x255   : > { %v12387_v2 = vcombine.high %v3743_v60, %v3747_v61  ;;  %v3794_v52 = vld [vmem:[#allocation5 + $0x13e0] sm:$0xff] }
 0x257   : > { %5844 = vmatpush1.bf16.msra.mxu0 %v12328_v8  ;;  %5967 = vmatpush1.bf16.msra.mxu1 %v12330_v9  ;;  %v3751_v8 = vld [vmem:[#allocation5 + $0x1128] sm:$0xff] }
 0x258   : > { %5845 = vmatprep.subr.bf16.mxu0 %v12337_v10  ;;  %5968 = vmatprep.subr.bf16.mxu1 %v12339_v11  ;;  %v3755_v9 = vld [vmem:[#allocation5 + $0x1168] sm:$0xff]  ;;  %v12384_v10 = vcombine.low %v3742_v58, %v3746_v59  ;;  %v12386_v11 = vcombine.low %v3743_v60, %v3747_v61  ;;  %v12433_v58 = vcombine.high %v3790_v51, %v3794_v52  ;;  %v3798_v60 = vld [vmem:[#allocation5 + $0x1420] sm:$0xff] }
 0x259   : > { %v12395_v14 = vcombine.high %v3751_v8, %v3755_v9  ;;  %v3802_v61 = vld [vmem:[#allocation5 + $0x1460] sm:$0xff] }
 0x25b   : > { %5846 = vmatpush1.bf16.msra.mxu0 %v12336_v17  ;;  %5969 = vmatpush1.bf16.msra.mxu1 %v12338_v18  ;;  %v3759_v17 = vld [vmem:[#allocation5 + $0x11a8] sm:$0xff] }
 0x25c   : > { %5847 = vmatprep.subr.bf16.mxu0 %v12345_v19  ;;  %5970 = vmatprep.subr.bf16.mxu1 %v12347_v20  ;;  %v3763_v18 = vld [vmem:[#allocation5 + $0x11e8] sm:$0xff]  ;;  %v12392_v19 = vcombine.low %v3750_v6, %v3754_v7  ;;  %v12394_v20 = vcombine.low %v3751_v8, %v3755_v9  ;;  %v12441_v6 = vcombine.high %v3798_v60, %v3802_v61  ;;  %v3806_v8 = vld [vmem:[#allocation5 + $0x14a0] sm:$0xff] }
 0x25d   : > { %v12403_v22 = vcombine.high %v3759_v17, %v3763_v18  ;;  %v3810_v9 = vld [vmem:[#allocation5 + $0x14e0] sm:$0xff] }
 0x25f   : > { %5848 = vmatpush1.bf16.msra.mxu0 %v12344_v27  ;;  %5971 = vmatpush1.bf16.msra.mxu1 %v12346_v28  ;;  %v3767_v27 = vld [vmem:[#allocation5 + $0x1228] sm:$0xff] }
 0x260   : > { %5849 = vmatprep.subr.bf16.mxu0 %v12353_v29  ;;  %5972 = vmatprep.subr.bf16.mxu1 %v12355_v30  ;;  %v3771_v28 = vld [vmem:[#allocation5 + $0x1268] sm:$0xff]  ;;  %v12400_v29 = vcombine.low %v3758_v15, %v3762_v16  ;;  %v12402_v30 = vcombine.low %v3759_v17, %v3763_v18  ;;  %v12449_v15 = vcombine.high %v3806_v8, %v3810_v9  ;;  %v3814_v17 = vld [vmem:[#allocation5 + $0x1520] sm:$0xff] }
 0x261   : > { %v12411_v32 = vcombine.high %v3767_v27, %v3771_v28  ;;  %v3818_v18 = vld [vmem:[#allocation5 + $0x1560] sm:$0xff] }
 0x263   : > { %5850 = vmatpush1.bf16.msra.mxu0 %v12352_v36  ;;  %5973 = vmatpush1.bf16.msra.mxu1 %v12354_v37  ;;  %v3775_v36 = vld [vmem:[#allocation5 + $0x12a8] sm:$0xff] }
 0x264   : > { %5851 = vmatprep.subr.bf16.mxu0 %v12361_v39  ;;  %5974 = vmatprep.subr.bf16.mxu1 %v12363_v40  ;;  %v3779_v37 = vld [vmem:[#allocation5 + $0x12e8] sm:$0xff]  ;;  %v12408_v39 = vcombine.low %v3766_v24, %v3770_v26  ;;  %v12410_v40 = vcombine.low %v3767_v27, %v3771_v28  ;;  %v12457_v24 = vcombine.high %v3814_v17, %v3818_v18  ;;  %v3822_v27 = vld [vmem:[#allocation5 + $0x15a0] sm:$0xff] }
 0x265   : > { %v12419_v42 = vcombine.high %v3775_v36, %v3779_v37  ;;  %v3826_v28 = vld [vmem:[#allocation5 + $0x15e0] sm:$0xff] }
 0x267   : > { %5852 = vmatpush1.bf16.msra.mxu0 %v12360_v45  ;;  %5975 = vmatpush1.bf16.msra.mxu1 %v12362_v46  ;;  %v3783_v45 = vld [vmem:[#allocation5 + $0x1328] sm:$0xff] }
 0x268   : > { %5853 = vmatprep.subr.bf16.mxu0 %v12369_v47  ;;  %5976 = vmatprep.subr.bf16.mxu1 %v12371_v48  ;;  %v3787_v46 = vld [vmem:[#allocation5 + $0x1368] sm:$0xff]  ;;  %v12416_v47 = vcombine.low %v3774_v33, %v3778_v35  ;;  %v12418_v48 = vcombine.low %v3775_v36, %v3779_v37  ;;  %v12465_v33 = vcombine.high %v3822_v27, %v3826_v28  ;;  %v3830_v36 = vld [vmem:[#allocation5 + $0x1620] sm:$0xff] }
 0x269   : > { %v12427_v50 = vcombine.high %v3783_v45, %v3787_v46  ;;  %v3834_v37 = vld [vmem:[#allocation5 + $0x1660] sm:$0xff] }
 0x26b   : > { %5854 = vmatpush1.bf16.msra.mxu0 %v12368_v53  ;;  %5977 = vmatpush1.bf16.msra.mxu1 %v12370_v54  ;;  %v3791_v53 = vld [vmem:[#allocation5 + $0x13a8] sm:$0xff] }
 0x26c   : > { %5864 = vmatprep.subr.bf16.mxu0 %v12377_v55  ;;  %5987 = vmatprep.subr.bf16.mxu1 %v12379_v56  ;;  %v3795_v54 = vld [vmem:[#allocation5 + $0x13e8] sm:$0xff]  ;;  %v12424_v55 = vcombine.low %v3782_v43, %v3786_v44  ;;  %v12426_v56 = vcombine.low %v3783_v45, %v3787_v46  ;;  %v12473_v43 = vcombine.high %v3830_v36, %v3834_v37  ;;  %v3838_v45 = vld [vmem:[#allocation5 + $0x16a0] sm:$0xff] }
 0x26d   : > { %v12435_v59 = vcombine.high %v3791_v53, %v3795_v54  ;;  %v3842_v46 = vld [vmem:[#allocation5 + $0x16e0] sm:$0xff] }
 0x26e   : > { %5856 = vmatmul.mubr.bf16.vlgmr.msra.gmra.mrb[8].mxu0 %v14972_v25  ;;  %5979 = vmatmul.mubr.bf16.vlgmr.msra.gmra.mrb[8].mxu1 %v14972_v25 }
 0x26f   : > { %5865 = vmatpush1.bf16.msra.mxu0 %v12376_v62  ;;  %5988 = vmatpush1.bf16.msra.mxu1 %v12378_v63  ;;  %v3799_v62 = vld [vmem:[#allocation5 + $0x1428] sm:$0xff] }
 0x270   : > { %5866 = vmatprep.subr.bf16.mxu0 %v12385_v1  ;;  %5989 = vmatprep.subr.bf16.mxu1 %v12387_v2  ;;  %v3803_v63 = vld [vmem:[#allocation5 + $0x1468] sm:$0xff]  ;;  %v12432_v1 = vcombine.low %v3790_v51, %v3794_v52  ;;  %v12434_v2 = vcombine.low %v3791_v53, %v3795_v54  ;;  %v12481_v51 = vcombine.high %v3838_v45, %v3842_v46  ;;  %v3846_v53 = vld [vmem:[#allocation5 + $0x1720] sm:$0xff] }
 0x271   : > { %5896 = vmatprep.mubr.bf16.mxu0 %v14974_v34  ;;  %6019 = vmatprep.mubr.bf16.mxu1 %v14974_v34  ;;  %v12443_v7 = vcombine.high %v3799_v62, %v3803_v63  ;;  %v3850_v54 = vld [vmem:[#allocation5 + $0x1760] sm:$0xff] }
 0x273   : > { %5867 = vmatpush1.bf16.msra.mxu0 %v12384_v10  ;;  %5990 = vmatpush1.bf16.msra.mxu1 %v12386_v11  ;;  %v3807_v10 = vld [vmem:[#allocation5 + $0x14a8] sm:$0xff] }
 0x274   : > { %5868 = vmatprep.subr.bf16.mxu0 %v12393_v13  ;;  %5991 = vmatprep.subr.bf16.mxu1 %v12395_v14  ;;  %v3811_v11 = vld [vmem:[#allocation5 + $0x14e8] sm:$0xff]  ;;  %v12440_v13 = vcombine.low %v3798_v60, %v3802_v61  ;;  %v12442_v14 = vcombine.low %v3799_v62, %v3803_v63  ;;  %v12489_v60 = vcombine.high %v3846_v53, %v3850_v54  ;;  %v3854_v62 = vld [vmem:[#allocation5 + $0x17a0] sm:$0xff] }
 0x275   : > { %v12451_v16 = vcombine.high %v3807_v10, %v3811_v11  ;;  %v3858_v63 = vld [vmem:[#allocation5 + $0x17e0] sm:$0xff] }
 0x277   : > { %5869 = vmatpush1.bf16.msra.mxu0 %v12392_v19  ;;  %5992 = vmatpush1.bf16.msra.mxu1 %v12394_v20  ;;  %v3815_v19 = vld [vmem:[#allocation5 + $0x1528] sm:$0xff] }
 0x278   : > { %5870 = vmatprep.subr.bf16.mxu0 %v12401_v21  ;;  %5993 = vmatprep.subr.bf16.mxu1 %v12403_v22  ;;  %v3819_v20 = vld [vmem:[#allocation5 + $0x1568] sm:$0xff]  ;;  %v12448_v21 = vcombine.low %v3806_v8, %v3810_v9  ;;  %v12450_v22 = vcombine.low %v3807_v10, %v3811_v11  ;;  %v12497_v8 = vcombine.high %v3854_v62, %v3858_v63  ;;  %v3480_v10 = vld [vmem:[#allocation5 + $0x30] sm:$0xff] }
 0x279   : > { %v12459_v26 = vcombine.high %v3815_v19, %v3819_v20  ;;  %v3484_v11 = vld [vmem:[#allocation5 + $0x70] sm:$0xff] }
 0x27b   : > { %5871 = vmatpush1.bf16.msra.mxu0 %v12400_v29  ;;  %5994 = vmatpush1.bf16.msra.mxu1 %v12402_v30  ;;  %v3823_v29 = vld [vmem:[#allocation5 + $0x15a8] sm:$0xff] }
 0x27c   : > { %5872 = vmatprep.subr.bf16.mxu0 %v12409_v31  ;;  %5995 = vmatprep.subr.bf16.mxu1 %v12411_v32  ;;  %v3827_v30 = vld [vmem:[#allocation5 + $0x15e8] sm:$0xff]  ;;  %v12456_v31 = vcombine.low %v3814_v17, %v3818_v18  ;;  %v12458_v32 = vcombine.low %v3815_v19, %v3819_v20  ;;  %v12125_v17 = vcombine.high %v3480_v10, %v3484_v11  ;;  %v3488_v19 = vld [vmem:[#allocation5 + $0xb0] sm:$0xff] }
 0x27d   : > { %v12467_v35 = vcombine.high %v3823_v29, %v3827_v30  ;;  %v3492_v20 = vld [vmem:[#allocation5 + $0xf0] sm:$0xff] }
 0x27f   : > { %5873 = vmatpush1.bf16.msra.mxu0 %v12408_v39  ;;  %5996 = vmatpush1.bf16.msra.mxu1 %v12410_v40  ;;  %v3831_v39 = vld [vmem:[#allocation5 + $0x1628] sm:$0xff] }
 0x280   : > { %5874 = vmatprep.subr.bf16.mxu0 %v12417_v41  ;;  %5997 = vmatprep.subr.bf16.mxu1 %v12419_v42  ;;  %v3835_v40 = vld [vmem:[#allocation5 + $0x1668] sm:$0xff]  ;;  %v12464_v41 = vcombine.low %v3822_v27, %v3826_v28  ;;  %v12466_v42 = vcombine.low %v3823_v29, %v3827_v30  ;;  %v12133_v27 = vcombine.high %v3488_v19, %v3492_v20  ;;  %v3496_v29 = vld [vmem:[#allocation5 + $0x130] sm:$0xff] }
 0x281   : > { %v12475_v44 = vcombine.high %v3831_v39, %v3835_v40  ;;  %v3500_v30 = vld [vmem:[#allocation5 + $0x170] sm:$0xff] }
 0x283   : > { %5875 = vmatpush1.bf16.msra.mxu0 %v12416_v47  ;;  %5998 = vmatpush1.bf16.msra.mxu1 %v12418_v48  ;;  %v3839_v47 = vld [vmem:[#allocation5 + $0x16a8] sm:$0xff] }
 0x284   : > { %5876 = vmatprep.subr.bf16.mxu0 %v12425_v49  ;;  %5999 = vmatprep.subr.bf16.mxu1 %v12427_v50  ;;  %v3843_v48 = vld [vmem:[#allocation5 + $0x16e8] sm:$0xff]  ;;  %v12472_v49 = vcombine.low %v3830_v36, %v3834_v37  ;;  %v12474_v50 = vcombine.low %v3831_v39, %v3835_v40  ;;  %v12141_v36 = vcombine.high %v3496_v29, %v3500_v30  ;;  %v3504_v39 = vld [vmem:[#allocation5 + $0x1b0] sm:$0xff] }
 0x285   : > { %v12483_v52 = vcombine.high %v3839_v47, %v3843_v48  ;;  %v3508_v40 = vld [vmem:[#allocation5 + $0x1f0] sm:$0xff] }
 0x287   : > { %5877 = vmatpush1.bf16.msra.mxu0 %v12424_v55  ;;  %6000 = vmatpush1.bf16.msra.mxu1 %v12426_v56  ;;  %v3847_v55 = vld [vmem:[#allocation5 + $0x1728] sm:$0xff] }
 0x288   : > { %5878 = vmatprep.subr.bf16.mxu0 %v12433_v58  ;;  %6001 = vmatprep.subr.bf16.mxu1 %v12435_v59  ;;  %v3851_v56 = vld [vmem:[#allocation5 + $0x1768] sm:$0xff]  ;;  %v12480_v58 = vcombine.low %v3838_v45, %v3842_v46  ;;  %v12482_v59 = vcombine.low %v3839_v47, %v3843_v48  ;;  %v12149_v45 = vcombine.high %v3504_v39, %v3508_v40  ;;  %v3512_v47 = vld [vmem:[#allocation5 + $0x230] sm:$0xff] }
 0x289   : > { %v12491_v61 = vcombine.high %v3847_v55, %v3851_v56  ;;  %v3516_v48 = vld [vmem:[#allocation5 + $0x270] sm:$0xff] }
 0x28b   : > { %5879 = vmatpush1.bf16.msra.mxu0 %v12432_v1  ;;  %6002 = vmatpush1.bf16.msra.mxu1 %v12434_v2  ;;  %v3855_v1 = vld [vmem:[#allocation5 + $0x17a8] sm:$0xff] }
 0x28c   : > { %5880 = vmatprep.subr.bf16.mxu0 %v12441_v6  ;;  %6003 = vmatprep.subr.bf16.mxu1 %v12443_v7  ;;  %v3859_v2 = vld [vmem:[#allocation5 + $0x17e8] sm:$0xff]  ;;  %v12488_v6 = vcombine.low %v3846_v53, %v3850_v54  ;;  %v12490_v7 = vcombine.low %v3847_v55, %v3851_v56  ;;  %v12157_v53 = vcombine.high %v3512_v47, %v3516_v48  ;;  %v3520_v54 = vld [vmem:[#allocation5 + $0x2b0] sm:$0xff]  ;;  %v3521_v56 = vld [vmem:[#allocation5 + $0x2b8] sm:$0xff] }
 0x28d   : > { %v12499_v9 = vcombine.high %v3855_v1, %v3859_v2  ;;  %v3524_v55 = vld [vmem:[#allocation5 + $0x2f0] sm:$0xff] }
 0x28f   : > { %5881 = vmatpush1.bf16.msra.mxu0 %v12440_v13  ;;  %6004 = vmatpush1.bf16.msra.mxu1 %v12442_v14  ;;  %v3481_v13 = vld [vmem:[#allocation5 + $0x38] sm:$0xff] }
 0x290   : > { %5882 = vmatprep.subr.bf16.mxu0 %v12449_v15  ;;  %6005 = vmatprep.subr.bf16.mxu1 %v12451_v16  ;;  %v3485_v14 = vld [vmem:[#allocation5 + $0x78] sm:$0xff]  ;;  %v12496_v15 = vcombine.low %v3854_v62, %v3858_v63  ;;  %v12498_v16 = vcombine.low %v3855_v1, %v3859_v2  ;;  %v3528_v63 = vld [vmem:[#allocation5 + $0x330] sm:$0xff] }
 0x291   : > { %v12127_v18 = vcombine.high %v3481_v13, %v3485_v14  ;;  %v3532_v1 = vld [vmem:[#allocation5 + $0x370] sm:$0xff]  ;;  %v3529_v2 = vld [vmem:[#allocation5 + $0x338] sm:$0xff] }
 0x293   : > { %5883 = vmatpush1.bf16.msra.mxu0 %v12448_v21  ;;  %6006 = vmatpush1.bf16.msra.mxu1 %v12450_v22  ;;  %v3489_v21 = vld [vmem:[#allocation5 + $0xb8] sm:$0xff] }
 0x294   : > { %5884 = vmatprep.subr.bf16.mxu0 %v12457_v24  ;;  %6007 = vmatprep.subr.bf16.mxu1 %v12459_v26  ;;  %v3493_v22 = vld [vmem:[#allocation5 + $0xf8] sm:$0xff]  ;;  %v12124_v24 = vcombine.low %v3480_v10, %v3484_v11  ;;  %v12126_v26 = vcombine.low %v3481_v13, %v3485_v14  ;;  %v3536_v13 = vld [vmem:[#allocation5 + $0x3b0] sm:$0xff] }
 0x295   : > { %v12135_v28 = vcombine.high %v3489_v21, %v3493_v22  ;;  %v3540_v14 = vld [vmem:[#allocation5 + $0x3f0] sm:$0xff] }
 0x297   : > { %5885 = vmatpush1.bf16.msra.mxu0 %v12456_v31  ;;  %6008 = vmatpush1.bf16.msra.mxu1 %v12458_v32  ;;  %v3497_v31 = vld [vmem:[#allocation5 + $0x138] sm:$0xff] }
 0x298   : > { %5886 = vmatprep.subr.bf16.mxu0 %v12465_v33  ;;  %6009 = vmatprep.subr.bf16.mxu1 %v12467_v35  ;;  %v3501_v32 = vld [vmem:[#allocation5 + $0x178] sm:$0xff]  ;;  %v12132_v33 = vcombine.low %v3488_v19, %v3492_v20  ;;  %v12134_v35 = vcombine.low %v3489_v21, %v3493_v22  ;;  %v12172_v21 = vcombine.low %v3528_v63, %v3532_v1 }
 0x299   : > { %v12143_v37 = vcombine.high %v3497_v31, %v3501_v32 }
 0x29b   : > { %5887 = vmatpush1.bf16.msra.mxu0 %v12464_v41  ;;  %6010 = vmatpush1.bf16.msra.mxu1 %v12466_v42  ;;  %v3505_v41 = vld [vmem:[#allocation5 + $0x1b8] sm:$0xff] }
 0x29c   : > { %5888 = vmatprep.subr.bf16.mxu0 %v12473_v43  ;;  %6011 = vmatprep.subr.bf16.mxu1 %v12475_v44  ;;  %v3509_v42 = vld [vmem:[#allocation5 + $0x1f8] sm:$0xff]  ;;  %v12140_v43 = vcombine.low %v3496_v29, %v3500_v30  ;;  %v12142_v44 = vcombine.low %v3497_v31, %v3501_v32  ;;  %v3544_v30 = vld [vmem:[#allocation5 + $0x430] sm:$0xff] }
 0x29d   : > { %v12151_v46 = vcombine.high %v3505_v41, %v3509_v42  ;;  %v3548_v31 = vld [vmem:[#allocation5 + $0x470] sm:$0xff]  ;;  %v3545_v32 = vld [vmem:[#allocation5 + $0x438] sm:$0xff] }
 0x29f   : > { %5889 = vmatpush1.bf16.msra.mxu0 %v12472_v49  ;;  %6012 = vmatpush1.bf16.msra.mxu1 %v12474_v50  ;;  %v3513_v49 = vld [vmem:[#allocation5 + $0x238] sm:$0xff] }
 0x2a0   : > { %5890 = vmatprep.subr.bf16.mxu0 %v12481_v51  ;;  %6013 = vmatprep.subr.bf16.mxu1 %v12483_v52  ;;  %v3517_v50 = vld [vmem:[#allocation5 + $0x278] sm:$0xff]  ;;  %v12148_v51 = vcombine.low %v3504_v39, %v3508_v40  ;;  %v12150_v52 = vcombine.low %v3505_v41, %v3509_v42  ;;  %v3552_v40 = vld [vmem:[#allocation5 + $0x4b0] sm:$0xff] }
 0x2a1   : > { %v3556_v41 = vld [vmem:[#allocation5 + $0x4f0] sm:$0xff]  ;;  %v3553_v42 = vld [vmem:[#allocation5 + $0x4b8] sm:$0xff] }
 0x2a3   : > { %5891 = vmatpush1.bf16.msra.mxu0 %v12480_v58  ;;  %6014 = vmatpush1.bf16.msra.mxu1 %v12482_v59  ;;  %v3525_v58 = vld [vmem:[#allocation5 + $0x2f8] sm:$0xff]  ;;  %v12156_v59 = vcombine.low %v3512_v47, %v3516_v48  ;;  %v3560_v48 = vld [vmem:[#allocation5 + $0x530] sm:$0xff] }
 0x2a4   : > { %5892 = vmatprep.subr.bf16.mxu0 %v12489_v60  ;;  %6015 = vmatprep.subr.bf16.mxu1 %v12491_v61  ;;  %v12158_v60 = vcombine.low %v3513_v49, %v3517_v50  ;;  %v12165_v61 = vcombine.high %v3520_v54, %v3524_v55  ;;  %v12167_v62 = vcombine.high %v3521_v56, %v3525_v58 }
 0x2a7   : > { %5893 = vmatpush1.bf16.msra.mxu0 %v12488_v6  ;;  %6016 = vmatpush1.bf16.msra.mxu1 %v12490_v7  ;;  %v3533_v6 = vld [vmem:[#allocation5 + $0x378] sm:$0xff]  ;;  %v12164_v7 = vcombine.low %v3520_v54, %v3524_v55  ;;  %v3568_v55 = vld [vmem:[#allocation5 + $0x5b0] sm:$0xff] }
 0x2a8   : > { %5894 = vmatprep.subr.bf16.mxu0 %v12497_v8  ;;  %6017 = vmatprep.subr.bf16.mxu1 %v12499_v9  ;;  %v12166_v8 = vcombine.low %v3521_v56, %v3525_v58  ;;  %v12173_v9 = vcombine.high %v3528_v63, %v3532_v1  ;;  %v12175_v11 = vcombine.high %v3529_v2, %v3533_v6  ;;  %v3572_v56 = vld [vmem:[#allocation5 + $0x5f0] sm:$0xff]  ;;  %v3569_v58 = vld [vmem:[#allocation5 + $0x5b8] sm:$0xff] }
 0x2a9   : > { %v3576_v1 = vld [vmem:[#allocation5 + $0x630] sm:$0xff] }
 0x2ab   : > { %5895 = vmatpush1.bf16.msra.mxu0 %v12496_v15  ;;  %6018 = vmatpush1.bf16.msra.mxu1 %v12498_v16 }
 0x2ac   : > { %6028 = vmatprep.subr.bf16.mxu0 %v12125_v17  ;;  %6151 = vmatprep.subr.bf16.mxu1 %v12127_v18  ;;  %v3537_v17 = vld [vmem:[#allocation5 + $0x3b8] sm:$0xff] }
 0x2ad   : > { %v3541_v18 = vld [vmem:[#allocation5 + $0x3f8] sm:$0xff] }
 0x2ae   : > { %5897 = vmatmul.mubr.bf16.vlgmr.msra.gmra.mrb[8].mxu0 %v14981_v38  ;;  %6020 = vmatmul.mubr.bf16.vlgmr.msra.gmra.mrb[8].mxu1 %v14981_v38  ;;  %v12183_v29 = vcombine.high %v3537_v17, %v3541_v18 }
 0x2af   : > { %6029 = vmatpush1.bf16.msra.mxu0 %v12124_v24  ;;  %6152 = vmatpush1.bf16.msra.mxu1 %v12126_v26  ;;  %v12174_v26 = vcombine.low %v3529_v2, %v3533_v6  ;;  %v3580_v2 = vld [vmem:[#allocation5 + $0x670] sm:$0xff]  ;;  %v3577_v6 = vld [vmem:[#allocation5 + $0x638] sm:$0xff] }
 0x2b0   : > { %6030 = vmatprep.subr.bf16.mxu0 %v12133_v27  ;;  %6153 = vmatprep.subr.bf16.mxu1 %v12135_v28  ;;  %v12181_v27 = vcombine.high %v3536_v13, %v3540_v14 }
 0x2b1   : > { %6060 = vmatprep.mubr.bf16.mxu0 %v14956_v57  ;;  %6183 = vmatprep.mubr.bf16.mxu1 %v14956_v57  ;;  %v12159_v57 = vcombine.high %v3513_v49, %v3517_v50  ;;  %v3564_v49 = vld [vmem:[#allocation5 + $0x570] sm:$0xff]  ;;  %v3561_v50 = vld [vmem:[#allocation5 + $0x538] sm:$0xff] }
 0x2b3   : > { %6031 = vmatpush1.bf16.msra.mxu0 %v12132_v33  ;;  %6154 = vmatpush1.bf16.msra.mxu1 %v12134_v35  ;;  %v3549_v33 = vld [vmem:[#allocation5 + $0x478] sm:$0xff]  ;;  %v12180_v35 = vcombine.low %v3536_v13, %v3540_v14  ;;  %v3584_v14 = vld [vmem:[#allocation5 + $0x6b0] sm:$0xff] }
 0x2b4   : > { %6032 = vmatprep.subr.bf16.mxu0 %v12141_v36  ;;  %6155 = vmatprep.subr.bf16.mxu1 %v12143_v37  ;;  %v12182_v36 = vcombine.low %v3537_v17, %v3541_v18  ;;  %v12189_v37 = vcombine.high %v3544_v30, %v3548_v31  ;;  %v12191_v39 = vcombine.high %v3545_v32, %v3549_v33  ;;  %v3588_v17 = vld [vmem:[#allocation5 + $0x6f0] sm:$0xff]  ;;  %v3585_v18 = vld [vmem:[#allocation5 + $0x6b8] sm:$0xff] }
 0x2b7   : > { %6033 = vmatpush1.bf16.msra.mxu0 %v12140_v43  ;;  %6156 = vmatpush1.bf16.msra.mxu1 %v12142_v44  ;;  %v3557_v43 = vld [vmem:[#allocation5 + $0x4f8] sm:$0xff]  ;;  %v12188_v44 = vcombine.low %v3544_v30, %v3548_v31  ;;  %v12228_v31 = vcombine.low %v3584_v14, %v3588_v17 }
 0x2b8   : > { %6034 = vmatprep.subr.bf16.mxu0 %v12149_v45  ;;  %6157 = vmatprep.subr.bf16.mxu1 %v12151_v46  ;;  %v12190_v45 = vcombine.low %v3545_v32, %v3549_v33  ;;  %v12197_v46 = vcombine.high %v3552_v40, %v3556_v41  ;;  %v12199_v47 = vcombine.high %v3553_v42, %v3557_v43  ;;  %v3597_v30 = vld [vmem:[#allocation5 + $0x778] sm:$0xff] }
 0x2bb   : > { %6035 = vmatpush1.bf16.msra.mxu0 %v12148_v51  ;;  %6158 = vmatpush1.bf16.msra.mxu1 %v12150_v52  ;;  %v3565_v51 = vld [vmem:[#allocation5 + $0x578] sm:$0xff]  ;;  %v12196_v52 = vcombine.low %v3552_v40, %v3556_v41 }
 0x2bc   : > { %6036 = vmatprep.subr.bf16.mxu0 %v12157_v53  ;;  %6159 = vmatprep.subr.bf16.mxu1 %v12159_v57  ;;  %v12198_v53 = vcombine.low %v3553_v42, %v3557_v43  ;;  %v12205_v57 = vcombine.high %v3560_v48, %v3564_v49  ;;  %v12207_v54 = vcombine.high %v3561_v50, %v3565_v51  ;;  %v3605_v40 = vld [vmem:[#allocation5 + $0x7f8] sm:$0xff] }
 0x2bf   : > { %6037 = vmatpush1.bf16.msra.mxu0 %v12156_v59  ;;  %6160 = vmatpush1.bf16.msra.mxu1 %v12158_v60  ;;  %v3573_v59 = vld [vmem:[#allocation5 + $0x5f8] sm:$0xff]  ;;  %v12204_v60 = vcombine.low %v3560_v48, %v3564_v49 }
 0x2c0   : > { %6038 = vmatprep.subr.bf16.mxu0 %v12165_v61  ;;  %6161 = vmatprep.subr.bf16.mxu1 %v12167_v62  ;;  %v12206_v61 = vcombine.low %v3561_v50, %v3565_v51  ;;  %v12213_v62 = vcombine.high %v3568_v55, %v3572_v56  ;;  %v12215_v63 = vcombine.high %v3569_v58, %v3573_v59  ;;  %v3613_v48 = vld [vmem:[#allocation5 + $0x878] sm:$0xff] }
 0x2c1   : > { %v15019_v10 = vpop.f32.mrb[4].mxu0  ;;  %v15021_v15 = vpop.f32.mrb[4].mxu1 }
 0x2c2   : > { %v15023_v16 = vpop.f32.mrb[5].mxu0  ;;  %v15025_v19 = vpop.f32.mrb[5].mxu1 }
 0x2c3   : > { %v2952_v20 = vpop.f32.mrb[6].mxu0  ;;  %6039 = vmatpush1.bf16.msra.mxu0 %v12164_v7  ;;  %v3075_v22 = vpop.f32.mrb[6].mxu1  ;;  %6162 = vmatpush1.bf16.msra.mxu1 %v12166_v8  ;;  %v3581_v7 = vld [vmem:[#allocation5 + $0x678] sm:$0xff]  ;;  %v12212_v8 = vcombine.low %v3568_v55, %v3572_v56 }
 0x2c4   : > { %v2953_v24 = vpop.f32.mrb[7].mxu0  ;;  %6040 = vmatprep.subr.bf16.mxu0 %v12173_v9  ;;  %v3076_v28 = vpop.f32.mrb[7].mxu1  ;;  %6163 = vmatprep.subr.bf16.mxu1 %v12175_v11  ;;  %v12214_v9 = vcombine.low %v3569_v58, %v3573_v59  ;;  %v12221_v11 = vcombine.high %v3576_v1, %v3580_v2  ;;  %v12223_v13 = vcombine.high %v3577_v6, %v3581_v7  ;;  %v3589_v20 = vld [vmem:[#allocation5 + $0x6f8] sm:$0xff] }
 0x2c5   : > { %v12222_v22 = vcombine.low %v3577_v6, %v3581_v7  ;;  %v12229_v24 = vcombine.high %v3584_v14, %v3588_v17  ;;  %v3596_v28 = vld [vmem:[#allocation5 + $0x770] sm:$0xff]  ;;  %v12230_v32 = vcombine.low %v3585_v18, %v3589_v20  ;;  %v3621_v55 = vld [vmem:[#allocation5 + $0x8f8] sm:$0xff] }
 0x2c6   : > { %v3637_v14 = vld [vmem:[#allocation5 + $0x9f8] sm:$0xff] }
 0x2c7   : > { %6041 = vmatpush1.bf16.msra.mxu0 %v12172_v21  ;;  %6164 = vmatpush1.bf16.msra.mxu1 %v12174_v26  ;;  %v12220_v21 = vcombine.low %v3576_v1, %v3580_v2  ;;  %v12231_v26 = vcombine.high %v3585_v18, %v3589_v20  ;;  %v3629_v1 = vld [vmem:[#allocation5 + $0x978] sm:$0xff] }
 0x2c8   : > { %6042 = vmatprep.subr.bf16.mxu0 %v12181_v27  ;;  %6165 = vmatprep.subr.bf16.mxu1 %v12183_v29  ;;  %v3592_v27 = vld [vmem:[#allocation5 + $0x730] sm:$0xff]  ;;  %v3593_v29 = vld [vmem:[#allocation5 + $0x738] sm:$0xff] }
 0x2c9   : > { %v12237_v33 = vcombine.high %v3592_v27, %v3596_v28  ;;  %v12236_v41 = vcombine.low %v3592_v27, %v3596_v28  ;;  %v12238_v42 = vcombine.low %v3593_v29, %v3597_v30 }
 0x2cb   : > { %6043 = vmatpush1.bf16.msra.mxu0 %v12180_v35  ;;  %6166 = vmatpush1.bf16.msra.mxu1 %v12182_v36  ;;  %v12239_v35 = vcombine.high %v3593_v29, %v3597_v30  ;;  %v3600_v36 = vld [vmem:[#allocation5 + $0x7b0] sm:$0xff] }
 0x2cc   : > { %6044 = vmatprep.subr.bf16.mxu0 %v12189_v37  ;;  %6167 = vmatprep.subr.bf16.mxu1 %v12191_v39  ;;  %v3604_v37 = vld [vmem:[#allocation5 + $0x7f0] sm:$0xff]  ;;  %v3601_v39 = vld [vmem:[#allocation5 + $0x7b8] sm:$0xff] }
 0x2cd   : > { %v12245_v43 = vcombine.high %v3600_v36, %v3604_v37  ;;  %v12244_v49 = vcombine.low %v3600_v36, %v3604_v37  ;;  %v12246_v50 = vcombine.low %v3601_v39, %v3605_v40  ;;  %v3648_v30 = vld [vmem:[#allocation5 + $0xab0] sm:$0xff] }
 0x2cf   : > { %6045 = vmatpush1.bf16.msra.mxu0 %v12188_v44  ;;  %6168 = vmatpush1.bf16.msra.mxu1 %v12190_v45  ;;  %v12247_v44 = vcombine.high %v3601_v39, %v3605_v40  ;;  %v3608_v45 = vld [vmem:[#allocation5 + $0x830] sm:$0xff] }
 0x2d0   : > { %6046 = vmatprep.subr.bf16.mxu0 %v12197_v46  ;;  %6169 = vmatprep.subr.bf16.mxu1 %v12199_v47  ;;  %v3612_v46 = vld [vmem:[#allocation5 + $0x870] sm:$0xff]  ;;  %v3609_v47 = vld [vmem:[#allocation5 + $0x838] sm:$0xff] }
 0x2d1   : > { %v12253_v51 = vcombine.high %v3608_v45, %v3612_v46  ;;  %v12252_v56 = vcombine.low %v3608_v45, %v3612_v46  ;;  %v12254_v58 = vcombine.low %v3609_v47, %v3613_v48  ;;  %v3656_v40 = vld [vmem:[#allocation5 + $0xb30] sm:$0xff] }
 0x2d3   : > { %6047 = vmatpush1.bf16.msra.mxu0 %v12196_v52  ;;  %6170 = vmatpush1.bf16.msra.mxu1 %v12198_v53  ;;  %v12255_v52 = vcombine.high %v3609_v47, %v3613_v48  ;;  %v3616_v53 = vld [vmem:[#allocation5 + $0x8b0] sm:$0xff] }
 0x2d4   : > { %6048 = vmatprep.subr.bf16.mxu0 %v12205_v57  ;;  %6171 = vmatprep.subr.bf16.mxu1 %v12207_v54  ;;  %v3620_v57 = vld [vmem:[#allocation5 + $0x8f0] sm:$0xff]  ;;  %v3617_v54 = vld [vmem:[#allocation5 + $0x8b8] sm:$0xff] }
 0x2d5   : > { %v12261_v59 = vcombine.high %v3616_v53, %v3620_v57  ;;  %v12260_v2 = vcombine.low %v3616_v53, %v3620_v57  ;;  %v12262_v6 = vcombine.low %v3617_v54, %v3621_v55  ;;  %v3664_v48 = vld [vmem:[#allocation5 + $0xbb0] sm:$0xff] }
 0x2d7   : > { %6049 = vmatpush1.bf16.msra.mxu0 %v12204_v60  ;;  %6172 = vmatpush1.bf16.msra.mxu1 %v12206_v61  ;;  %v12263_v60 = vcombine.high %v3617_v54, %v3621_v55  ;;  %v3624_v61 = vld [vmem:[#allocation5 + $0x930] sm:$0xff] }
 0x2d8   : > { %6050 = vmatprep.subr.bf16.mxu0 %v12213_v62  ;;  %6173 = vmatprep.subr.bf16.mxu1 %v12215_v63  ;;  %v3628_v62 = vld [vmem:[#allocation5 + $0x970] sm:$0xff]  ;;  %v3625_v63 = vld [vmem:[#allocation5 + $0x938] sm:$0xff] }
 0x2d9   : > { %v12269_v7 = vcombine.high %v3624_v61, %v3628_v62  ;;  %v12268_v17 = vcombine.low %v3624_v61, %v3628_v62  ;;  %v3672_v55 = vld [vmem:[#allocation5 + $0xc30] sm:$0xff] }
 0x2db   : > { %6051 = vmatpush1.bf16.msra.mxu0 %v12212_v8  ;;  %6174 = vmatpush1.bf16.msra.mxu1 %v12214_v9  ;;  %v12271_v8 = vcombine.high %v3625_v63, %v3629_v1  ;;  %v3632_v9 = vld [vmem:[#allocation5 + $0x9b0] sm:$0xff] }
 0x2dc   : > { %6052 = vmatprep.subr.bf16.mxu0 %v12221_v11  ;;  %6175 = vmatprep.subr.bf16.mxu1 %v12223_v13  ;;  %v3636_v11 = vld [vmem:[#allocation5 + $0x9f0] sm:$0xff]  ;;  %v3633_v13 = vld [vmem:[#allocation5 + $0x9b8] sm:$0xff] }
 0x2dd   : > { %v12277_v18 = vcombine.high %v3632_v9, %v3636_v11  ;;  %v12279_v20 = vcombine.high %v3633_v13, %v3637_v14  ;;  %v12276_v27 = vcombine.low %v3632_v9, %v3636_v11  ;;  %v12278_v28 = vcombine.low %v3633_v13, %v3637_v14  ;;  %v3688_v14 = vld [vmem:[#allocation5 + $0xd30] sm:$0xff] }
 0x2df   : > { %6053 = vmatpush1.bf16.msra.mxu0 %v12220_v21  ;;  %6176 = vmatpush1.bf16.msra.mxu1 %v12222_v22  ;;  %v3640_v21 = vld [vmem:[#allocation5 + $0xa30] sm:$0xff] }
 0x2e0   : > { %6054 = vmatprep.subr.bf16.mxu0 %v12229_v24  ;;  %6177 = vmatprep.subr.bf16.mxu1 %v12231_v26  ;;  %v3644_v22 = vld [vmem:[#allocation5 + $0xa70] sm:$0xff]  ;;  %v3641_v24 = vld [vmem:[#allocation5 + $0xa38] sm:$0xff] }
 0x2e1   : > { %v3645_v26 = vld [vmem:[#allocation5 + $0xa78] sm:$0xff]  ;;  %v12285_v29 = vcombine.high %v3640_v21, %v3644_v22 }
 0x2e2   : > { %v12286_v36 = vcombine.low %v3641_v24, %v3645_v26 }
 0x2e3   : > { %6055 = vmatpush1.bf16.msra.mxu0 %v12228_v31  ;;  %6178 = vmatpush1.bf16.msra.mxu1 %v12230_v32  ;;  %v3652_v31 = vld [vmem:[#allocation5 + $0xaf0] sm:$0xff]  ;;  %v3649_v32 = vld [vmem:[#allocation5 + $0xab8] sm:$0xff] }
 0x2e4   : > { %6056 = vmatprep.subr.bf16.mxu0 %v12237_v33  ;;  %6179 = vmatprep.subr.bf16.mxu1 %v12239_v35  ;;  %v3653_v33 = vld [vmem:[#allocation5 + $0xaf8] sm:$0xff]  ;;  %v12284_v35 = vcombine.low %v3640_v21, %v3644_v22  ;;  %v12293_v37 = vcombine.high %v3648_v30, %v3652_v31 }
 0x2e5   : > { %v12295_v39 = vcombine.high %v3649_v32, %v3653_v33  ;;  %v12294_v45 = vcombine.low %v3649_v32, %v3653_v33  ;;  %v3704_v33 = vld [vmem:[#allocation5 + $0xe30] sm:$0xff] }
 0x2e7   : > { %6057 = vmatpush1.bf16.msra.mxu0 %v12236_v41  ;;  %6180 = vmatpush1.bf16.msra.mxu1 %v12238_v42  ;;  %v3660_v41 = vld [vmem:[#allocation5 + $0xb70] sm:$0xff]  ;;  %v3657_v42 = vld [vmem:[#allocation5 + $0xb38] sm:$0xff] }
 0x2e8   : > { %6058 = vmatprep.subr.bf16.mxu0 %v12245_v43  ;;  %6181 = vmatprep.subr.bf16.mxu1 %v12247_v44  ;;  %v3661_v43 = vld [vmem:[#allocation5 + $0xb78] sm:$0xff]  ;;  %v12292_v44 = vcombine.low %v3648_v30, %v3652_v31  ;;  %v12301_v46 = vcombine.high %v3656_v40, %v3660_v41 }
 0x2e9   : > { %v12303_v47 = vcombine.high %v3657_v42, %v3661_v43  ;;  %v12302_v53 = vcombine.low %v3657_v42, %v3661_v43  ;;  %v3712_v43 = vld [vmem:[#allocation5 + $0xeb0] sm:$0xff] }
 0x2eb   : > { %6059 = vmatpush1.bf16.msra.mxu0 %v12244_v49  ;;  %6182 = vmatpush1.bf16.msra.mxu1 %v12246_v50  ;;  %v3668_v49 = vld [vmem:[#allocation5 + $0xbf0] sm:$0xff]  ;;  %v3665_v50 = vld [vmem:[#allocation5 + $0xbb8] sm:$0xff] }
 0x2ec   : > { %6069 = vmatprep.subr.bf16.mxu0 %v12253_v51  ;;  %6192 = vmatprep.subr.bf16.mxu1 %v12255_v52  ;;  %v3669_v51 = vld [vmem:[#allocation5 + $0xbf8] sm:$0xff]  ;;  %v12300_v52 = vcombine.low %v3656_v40, %v3660_v41  ;;  %v12309_v57 = vcombine.high %v3664_v48, %v3668_v49 }
 0x2ed   : > { %v12311_v54 = vcombine.high %v3665_v50, %v3669_v51  ;;  %v12310_v61 = vcombine.low %v3665_v50, %v3669_v51  ;;  %v3720_v51 = vld [vmem:[#allocation5 + $0xf30] sm:$0xff] }
 0x2ee   : > { %6061 = vmatmul.mubr.bf16.vlgmr.msra.gmra.mrb[12].mxu0 %v14961_v12  ;;  %6184 = vmatmul.mubr.bf16.vlgmr.msra.gmra.mrb[12].mxu1 %v14961_v12  ;;  %v12270_v12 = vcombine.low %v3625_v63, %v3629_v1  ;;  %v3680_v1 = vld [vmem:[#allocation5 + $0xcb0] sm:$0xff] }
 0x2ef   : > { %6070 = vmatpush1.bf16.msra.mxu0 %v12252_v56  ;;  %6193 = vmatpush1.bf16.msra.mxu1 %v12254_v58  ;;  %v3676_v56 = vld [vmem:[#allocation5 + $0xc70] sm:$0xff]  ;;  %v3673_v58 = vld [vmem:[#allocation5 + $0xc38] sm:$0xff] }
 0x2f0   : > { %6071 = vmatprep.subr.bf16.mxu0 %v12261_v59  ;;  %6194 = vmatprep.subr.bf16.mxu1 %v12263_v60  ;;  %v3677_v59 = vld [vmem:[#allocation5 + $0xc78] sm:$0xff]  ;;  %v12308_v60 = vcombine.low %v3664_v48, %v3668_v49  ;;  %v12317_v62 = vcombine.high %v3672_v55, %v3676_v56 }
 0x2f1   : > { %6101 = vmatprep.mubr.bf16.mxu0 %v14964_v23  ;;  %6224 = vmatprep.mubr.bf16.mxu1 %v14964_v23  ;;  %v12287_v23 = vcombine.high %v3641_v24, %v3645_v26  ;;  %v12319_v63 = vcombine.high %v3673_v58, %v3677_v59  ;;  %v12318_v9 = vcombine.low %v3673_v58, %v3677_v59  ;;  %v3696_v26 = vld [vmem:[#allocation5 + $0xdb0] sm:$0xff] }
 0x2f2   : > { %v3728_v59 = vld [vmem:[#allocation5 + $0xfb0] sm:$0xff] }
 0x2f3   : > { %6072 = vmatpush1.bf16.msra.mxu0 %v12260_v2  ;;  %6195 = vmatpush1.bf16.msra.mxu1 %v12262_v6  ;;  %v3684_v2 = vld [vmem:[#allocation5 + $0xcf0] sm:$0xff]  ;;  %v3681_v6 = vld [vmem:[#allocation5 + $0xcb8] sm:$0xff] }
 0x2f4   : > { %6073 = vmatprep.subr.bf16.mxu0 %v12269_v7  ;;  %6196 = vmatprep.subr.bf16.mxu1 %v12271_v8  ;;  %v3685_v7 = vld [vmem:[#allocation5 + $0xcf8] sm:$0xff]  ;;  %v12316_v8 = vcombine.low %v3672_v55, %v3676_v56  ;;  %v12325_v11 = vcombine.high %v3680_v1, %v3684_v2 }
 0x2f5   : > { %v12327_v13 = vcombine.high %v3681_v6, %v3685_v7  ;;  %v12326_v21 = vcombine.low %v3681_v6, %v3685_v7  ;;  %v3736_v7 = vld [vmem:[#allocation5 + $0x1030] sm:$0xff] }
 0x2f7   : > { %6074 = vmatpush1.bf16.msra.mxu0 %v12268_v17  ;;  %6197 = vmatpush1.bf16.msra.mxu1 %v12270_v12  ;;  %v3692_v17 = vld [vmem:[#allocation5 + $0xd70] sm:$0xff]  ;;  %v3689_v12 = vld [vmem:[#allocation5 + $0xd38] sm:$0xff] }
 0x2f8   : > { %6075 = vmatprep.subr.bf16.mxu0 %v12277_v18  ;;  %6198 = vmatprep.subr.bf16.mxu1 %v12279_v20  ;;  %v3693_v18 = vld [vmem:[#allocation5 + $0xd78] sm:$0xff]  ;;  %v12324_v20 = vcombine.low %v3680_v1, %v3684_v2  ;;  %v12333_v22 = vcombine.high %v3688_v14, %v3692_v17 }
 0x2f9   : > { %v12335_v24 = vcombine.high %v3689_v12, %v3693_v18  ;;  %v12334_v30 = vcombine.low %v3689_v12, %v3693_v18  ;;  %v3744_v18 = vld [vmem:[#allocation5 + $0x10b0] sm:$0xff] }
 0x2fb   : > { %6076 = vmatpush1.bf16.msra.mxu0 %v12276_v27  ;;  %6199 = vmatpush1.bf16.msra.mxu1 %v12278_v28  ;;  %v3700_v27 = vld [vmem:[#allocation5 + $0xdf0] sm:$0xff]  ;;  %v3697_v28 = vld [vmem:[#allocation5 + $0xdb8] sm:$0xff] }
 0x2fc   : > { %6077 = vmatprep.subr.bf16.mxu0 %v12285_v29  ;;  %6200 = vmatprep.subr.bf16.mxu1 %v12287_v23  ;;  %v3701_v29 = vld [vmem:[#allocation5 + $0xdf8] sm:$0xff]  ;;  %v12332_v23 = vcombine.low %v3688_v14, %v3692_v17  ;;  %v12341_v31 = vcombine.high %v3696_v26, %v3700_v27 }
 0x2fd   : > { %v12343_v32 = vcombine.high %v3697_v28, %v3701_v29  ;;  %v12342_v40 = vcombine.low %v3697_v28, %v3701_v29  ;;  %v3752_v29 = vld [vmem:[#allocation5 + $0x1130] sm:$0xff] }
 0x2ff   : > { %6078 = vmatpush1.bf16.msra.mxu0 %v12284_v35  ;;  %6201 = vmatpush1.bf16.msra.mxu1 %v12286_v36  ;;  %v3708_v35 = vld [vmem:[#allocation5 + $0xe70] sm:$0xff]  ;;  %v3705_v36 = vld [vmem:[#allocation5 + $0xe38] sm:$0xff] }
 0x300   : > { %6079 = vmatprep.subr.bf16.mxu0 %v12293_v37  ;;  %6202 = vmatprep.subr.bf16.mxu1 %v12295_v39  ;;  %v3709_v37 = vld [vmem:[#allocation5 + $0xe78] sm:$0xff]  ;;  %v12340_v39 = vcombine.low %v3696_v26, %v3700_v27  ;;  %v12349_v41 = vcombine.high %v3704_v33, %v3708_v35 }
 0x301   : > { %v12351_v42 = vcombine.high %v3705_v36, %v3709_v37  ;;  %v12350_v48 = vcombine.low %v3705_v36, %v3709_v37  ;;  %v3760_v37 = vld [vmem:[#allocation5 + $0x11b0] sm:$0xff] }
 0x303   : > { %6080 = vmatpush1.bf16.msra.mxu0 %v12292_v44  ;;  %6203 = vmatpush1.bf16.msra.mxu1 %v12294_v45  ;;  %v3716_v44 = vld [vmem:[#allocation5 + $0xef0] sm:$0xff]  ;;  %v3713_v45 = vld [vmem:[#allocation5 + $0xeb8] sm:$0xff] }
 0x304   : > { %6081 = vmatprep.subr.bf16.mxu0 %v12301_v46  ;;  %6204 = vmatprep.subr.bf16.mxu1 %v12303_v47  ;;  %v3717_v46 = vld [vmem:[#allocation5 + $0xef8] sm:$0xff]  ;;  %v12348_v47 = vcombine.low %v3704_v33, %v3708_v35  ;;  %v12357_v49 = vcombine.high %v3712_v43, %v3716_v44 }
 0x305   : > { %v12359_v50 = vcombine.high %v3713_v45, %v3717_v46  ;;  %v12358_v55 = vcombine.low %v3713_v45, %v3717_v46  ;;  %v3768_v45 = vld [vmem:[#allocation5 + $0x1230] sm:$0xff] }
 0x306   : > { %v3772_v46 = vld [vmem:[#allocation5 + $0x1270] sm:$0xff] }
 0x307   : > { %6082 = vmatpush1.bf16.msra.mxu0 %v12300_v52  ;;  %6205 = vmatpush1.bf16.msra.mxu1 %v12302_v53  ;;  %v3724_v52 = vld [vmem:[#allocation5 + $0xf70] sm:$0xff]  ;;  %v3721_v53 = vld [vmem:[#allocation5 + $0xf38] sm:$0xff] }
 0x308   : > { %6083 = vmatprep.subr.bf16.mxu0 %v12309_v57  ;;  %6206 = vmatprep.subr.bf16.mxu1 %v12311_v54  ;;  %v3725_v57 = vld [vmem:[#allocation5 + $0xf78] sm:$0xff]  ;;  %v12356_v54 = vcombine.low %v3712_v43, %v3716_v44  ;;  %v12365_v56 = vcombine.high %v3720_v51, %v3724_v52 }
 0x309   : > { %v12367_v58 = vcombine.high %v3721_v53, %v3725_v57  ;;  %v12366_v1 = vcombine.low %v3721_v53, %v3725_v57  ;;  %v3780_v53 = vld [vmem:[#allocation5 + $0x12f0] sm:$0xff]  ;;  %v3777_v57 = vld [vmem:[#allocation5 + $0x12b8] sm:$0xff] }
 0x30b   : > { %6084 = vmatpush1.bf16.msra.mxu0 %v12308_v60  ;;  %6207 = vmatpush1.bf16.msra.mxu1 %v12310_v61  ;;  %v3732_v60 = vld [vmem:[#allocation5 + $0xff0] sm:$0xff]  ;;  %v3729_v61 = vld [vmem:[#allocation5 + $0xfb8] sm:$0xff] }
 0x30c   : > { %6085 = vmatprep.subr.bf16.mxu0 %v12317_v62  ;;  %6208 = vmatprep.subr.bf16.mxu1 %v12319_v63  ;;  %v3733_v62 = vld [vmem:[#allocation5 + $0xff8] sm:$0xff]  ;;  %v12364_v63 = vcombine.low %v3720_v51, %v3724_v52  ;;  %v12373_v2 = vcombine.high %v3728_v59, %v3732_v60  ;;  %v12413_v51 = vcombine.high %v3768_v45, %v3772_v46  ;;  %v3776_v52 = vld [vmem:[#allocation5 + $0x12b0] sm:$0xff] }
 0x30d   : > { %v12375_v6 = vcombine.high %v3729_v61, %v3733_v62  ;;  %v12374_v14 = vcombine.low %v3729_v61, %v3733_v62  ;;  %v3788_v61 = vld [vmem:[#allocation5 + $0x1370] sm:$0xff]  ;;  %v3785_v62 = vld [vmem:[#allocation5 + $0x1338] sm:$0xff] }
 0x30f   : > { %6086 = vmatpush1.bf16.msra.mxu0 %v12316_v8  ;;  %6209 = vmatpush1.bf16.msra.mxu1 %v12318_v9  ;;  %v3740_v8 = vld [vmem:[#allocation5 + $0x1070] sm:$0xff]  ;;  %v3737_v9 = vld [vmem:[#allocation5 + $0x1038] sm:$0xff] }
 0x310   : > { %6087 = vmatprep.subr.bf16.mxu0 %v12325_v11  ;;  %6210 = vmatprep.subr.bf16.mxu1 %v12327_v13  ;;  %v3741_v11 = vld [vmem:[#allocation5 + $0x1078] sm:$0xff]  ;;  %v12372_v13 = vcombine.low %v3728_v59, %v3732_v60  ;;  %v12381_v17 = vcombine.high %v3736_v7, %v3740_v8  ;;  %v3784_v60 = vld [vmem:[#allocation5 + $0x1330] sm:$0xff] }
 0x311   : > { %v12383_v12 = vcombine.high %v3737_v9, %v3741_v11  ;;  %v12382_v26 = vcombine.low %v3737_v9, %v3741_v11  ;;  %v3796_v9 = vld [vmem:[#allocation5 + $0x13f0] sm:$0xff]  ;;  %v3793_v11 = vld [vmem:[#allocation5 + $0x13b8] sm:$0xff] }
 0x313   : > { %6088 = vmatpush1.bf16.msra.mxu0 %v12324_v20  ;;  %6211 = vmatpush1.bf16.msra.mxu1 %v12326_v21  ;;  %v3748_v20 = vld [vmem:[#allocation5 + $0x10f0] sm:$0xff]  ;;  %v3745_v21 = vld [vmem:[#allocation5 + $0x10b8] sm:$0xff] }
 0x314   : > { %6089 = vmatprep.subr.bf16.mxu0 %v12333_v22  ;;  %6212 = vmatprep.subr.bf16.mxu1 %v12335_v24  ;;  %v3749_v22 = vld [vmem:[#allocation5 + $0x10f8] sm:$0xff]  ;;  %v12380_v24 = vcombine.low %v3736_v7, %v3740_v8  ;;  %v12389_v27 = vcombine.high %v3744_v18, %v3748_v20  ;;  %v3792_v8 = vld [vmem:[#allocation5 + $0x13b0] sm:$0xff] }
 0x315   : > { %v12391_v28 = vcombine.high %v3745_v21, %v3749_v22  ;;  %v12390_v33 = vcombine.low %v3745_v21, %v3749_v22  ;;  %v3804_v21 = vld [vmem:[#allocation5 + $0x1470] sm:$0xff]  ;;  %v3801_v22 = vld [vmem:[#allocation5 + $0x1438] sm:$0xff] }
 0x317   : > { %6090 = vmatpush1.bf16.msra.mxu0 %v12332_v23  ;;  %6213 = vmatpush1.bf16.msra.mxu1 %v12334_v30  ;;  %v3756_v23 = vld [vmem:[#allocation5 + $0x1170] sm:$0xff]  ;;  %v3753_v30 = vld [vmem:[#allocation5 + $0x1138] sm:$0xff] }
 0x318   : > { %6091 = vmatprep.subr.bf16.mxu0 %v12341_v31  ;;  %6214 = vmatprep.subr.bf16.mxu1 %v12343_v32  ;;  %v3757_v31 = vld [vmem:[#allocation5 + $0x1178] sm:$0xff]  ;;  %v12388_v32 = vcombine.low %v3744_v18, %v3748_v20  ;;  %v12397_v35 = vcombine.high %v3752_v29, %v3756_v23  ;;  %v3800_v20 = vld [vmem:[#allocation5 + $0x1430] sm:$0xff] }
 0x319   : > { %v12399_v36 = vcombine.high %v3753_v30, %v3757_v31 }
 0x31b   : > { %6092 = vmatpush1.bf16.msra.mxu0 %v12340_v39  ;;  %6215 = vmatpush1.bf16.msra.mxu1 %v12342_v40  ;;  %v3764_v39 = vld [vmem:[#allocation5 + $0x11f0] sm:$0xff]  ;;  %v3761_v40 = vld [vmem:[#allocation5 + $0x11b8] sm:$0xff] }
 0x31c   : > { %6093 = vmatprep.subr.bf16.mxu0 %v12349_v41  ;;  %6216 = vmatprep.subr.bf16.mxu1 %v12351_v42  ;;  %v3765_v41 = vld [vmem:[#allocation5 + $0x11f8] sm:$0xff]  ;;  %v12396_v42 = vcombine.low %v3752_v29, %v3756_v23  ;;  %v12405_v43 = vcombine.high %v3760_v37, %v3764_v39  ;;  %v3808_v23 = vld [vmem:[#allocation5 + $0x14b0] sm:$0xff] }
 0x31d   : > { %v12407_v44 = vcombine.high %v3761_v40, %v3765_v41 }
 0x31f   : > { %6094 = vmatpush1.bf16.msra.mxu0 %v12348_v47  ;;  %6217 = vmatpush1.bf16.msra.mxu1 %v12350_v48  ;;  %v3769_v47 = vld [vmem:[#allocation5 + $0x1238] sm:$0xff] }
 0x320   : > { %6095 = vmatprep.subr.bf16.mxu0 %v12357_v49  ;;  %6218 = vmatprep.subr.bf16.mxu1 %v12359_v50  ;;  %v3773_v48 = vld [vmem:[#allocation5 + $0x1278] sm:$0xff]  ;;  %v12404_v49 = vcombine.low %v3760_v37, %v3764_v39  ;;  %v12406_v50 = vcombine.low %v3761_v40, %v3765_v41  ;;  %v3816_v39 = vld [vmem:[#allocation5 + $0x1530] sm:$0xff] }
 0x321   : > { %v3820_v40 = vld [vmem:[#allocation5 + $0x1570] sm:$0xff]  ;;  %v3817_v41 = vld [vmem:[#allocation5 + $0x1538] sm:$0xff] }
 0x323   : > { %6096 = vmatpush1.bf16.msra.mxu0 %v12356_v54  ;;  %6219 = vmatpush1.bf16.msra.mxu1 %v12358_v55  ;;  %v3781_v54 = vld [vmem:[#allocation5 + $0x12f8] sm:$0xff]  ;;  %v12412_v55 = vcombine.low %v3768_v45, %v3772_v46  ;;  %v3824_v46 = vld [vmem:[#allocation5 + $0x15b0] sm:$0xff] }
 0x324   : > { %6097 = vmatprep.subr.bf16.mxu0 %v12365_v56  ;;  %6220 = vmatprep.subr.bf16.mxu1 %v12367_v58  ;;  %v12414_v56 = vcombine.low %v3769_v47, %v3773_v48  ;;  %v12421_v58 = vcombine.high %v3776_v52, %v3780_v53  ;;  %v12423_v59 = vcombine.high %v3777_v57, %v3781_v54 }
 0x327   : > { %6098 = vmatpush1.bf16.msra.mxu0 %v12364_v63  ;;  %6221 = vmatpush1.bf16.msra.mxu1 %v12366_v1  ;;  %v3789_v63 = vld [vmem:[#allocation5 + $0x1378] sm:$0xff]  ;;  %v12420_v1 = vcombine.low %v3776_v52, %v3780_v53  ;;  %v3832_v53 = vld [vmem:[#allocation5 + $0x1630] sm:$0xff] }
 0x328   : > { %6099 = vmatprep.subr.bf16.mxu0 %v12373_v2  ;;  %6222 = vmatprep.subr.bf16.mxu1 %v12375_v6  ;;  %v12422_v2 = vcombine.low %v3777_v57, %v3781_v54  ;;  %v12429_v6 = vcombine.high %v3784_v60, %v3788_v61  ;;  %v12431_v7 = vcombine.high %v3785_v62, %v3789_v63  ;;  %v3836_v57 = vld [vmem:[#allocation5 + $0x1670] sm:$0xff]  ;;  %v3833_v54 = vld [vmem:[#allocation5 + $0x1638] sm:$0xff] }
 0x32b   : > { %6100 = vmatpush1.bf16.msra.mxu0 %v12372_v13  ;;  %6223 = vmatpush1.bf16.msra.mxu1 %v12374_v14  ;;  %v3797_v13 = vld [vmem:[#allocation5 + $0x13f8] sm:$0xff]  ;;  %v12428_v14 = vcombine.low %v3784_v60, %v3788_v61  ;;  %v3840_v61 = vld [vmem:[#allocation5 + $0x16b0] sm:$0xff] }
 0x32c   : > { %6110 = vmatprep.subr.bf16.mxu0 %v12381_v17  ;;  %6233 = vmatprep.subr.bf16.mxu1 %v12383_v12  ;;  %v12430_v17 = vcombine.low %v3785_v62, %v3789_v63  ;;  %v12437_v12 = vcombine.high %v3792_v8, %v3796_v9  ;;  %v12439_v18 = vcombine.high %v3793_v11, %v3797_v13  ;;  %v3844_v62 = vld [vmem:[#allocation5 + $0x16f0] sm:$0xff]  ;;  %v3841_v63 = vld [vmem:[#allocation5 + $0x16b8] sm:$0xff] }
 0x32e   : > { %6102 = vmatmul.mubr.bf16.vlgmr.msra.gmra.mrb[12].mxu0 %v14972_v25  ;;  %6225 = vmatmul.mubr.bf16.vlgmr.msra.gmra.mrb[12].mxu1 %v14972_v25  ;;  %v12398_v25 = vcombine.low %v3753_v30, %v3757_v31  ;;  %v3812_v30 = vld [vmem:[#allocation5 + $0x14f0] sm:$0xff]  ;;  %v3809_v31 = vld [vmem:[#allocation5 + $0x14b8] sm:$0xff] }
 0x32f   : > { %6111 = vmatpush1.bf16.msra.mxu0 %v12380_v24  ;;  %6234 = vmatpush1.bf16.msra.mxu1 %v12382_v26  ;;  %v3805_v24 = vld [vmem:[#allocation5 + $0x1478] sm:$0xff]  ;;  %v12436_v26 = vcombine.low %v3792_v8, %v3796_v9  ;;  %v3848_v9 = vld [vmem:[#allocation5 + $0x1730] sm:$0xff] }
 0x330   : > { %6112 = vmatprep.subr.bf16.mxu0 %v12389_v27  ;;  %6235 = vmatprep.subr.bf16.mxu1 %v12391_v28  ;;  %v12438_v27 = vcombine.low %v3793_v11, %v3797_v13  ;;  %v12445_v28 = vcombine.high %v3800_v20, %v3804_v21  ;;  %v12447_v29 = vcombine.high %v3801_v22, %v3805_v24  ;;  %v3852_v11 = vld [vmem:[#allocation5 + $0x1770] sm:$0xff]  ;;  %v3849_v13 = vld [vmem:[#allocation5 + $0x1738] sm:$0xff] }
 0x331   : > { %6142 = vmatprep.mubr.bf16.mxu0 %v14974_v34  ;;  %6265 = vmatprep.mubr.bf16.mxu1 %v14974_v34  ;;  %v12415_v34 = vcombine.high %v3769_v47, %v3773_v48  ;;  %v3828_v47 = vld [vmem:[#allocation5 + $0x15f0] sm:$0xff]  ;;  %v3825_v48 = vld [vmem:[#allocation5 + $0x15b8] sm:$0xff] }
 0x333   : > { %6113 = vmatpush1.bf16.msra.mxu0 %v12388_v32  ;;  %6236 = vmatpush1.bf16.msra.mxu1 %v12390_v33  ;;  %v3813_v32 = vld [vmem:[#allocation5 + $0x14f8] sm:$0xff]  ;;  %v12444_v33 = vcombine.low %v3800_v20, %v3804_v21  ;;  %v3856_v21 = vld [vmem:[#allocation5 + $0x17b0] sm:$0xff] }
 0x334   : > { %6114 = vmatprep.subr.bf16.mxu0 %v12397_v35  ;;  %6237 = vmatprep.subr.bf16.mxu1 %v12399_v36  ;;  %v12446_v35 = vcombine.low %v3801_v22, %v3805_v24  ;;  %v12453_v36 = vcombine.high %v3808_v23, %v3812_v30  ;;  %v12455_v37 = vcombine.high %v3809_v31, %v3813_v32  ;;  %v3860_v22 = vld [vmem:[#allocation5 + $0x17f0] sm:$0xff]  ;;  %v3857_v24 = vld [vmem:[#allocation5 + $0x17b8] sm:$0xff] }
 0x337   : > { %6115 = vmatpush1.bf16.msra.mxu0 %v12396_v42  ;;  %6238 = vmatpush1.bf16.msra.mxu1 %v12398_v25  ;;  %v3821_v42 = vld [vmem:[#allocation5 + $0x1578] sm:$0xff]  ;;  %v12452_v25 = vcombine.low %v3808_v23, %v3812_v30  ;;  %v12500_v30 = vcombine.low %v3856_v21, %v3860_v22 }
 0x338   : > { %6116 = vmatprep.subr.bf16.mxu0 %v12405_v43  ;;  %6239 = vmatprep.subr.bf16.mxu1 %v12407_v44  ;;  %v12454_v43 = vcombine.low %v3809_v31, %v3813_v32  ;;  %v12461_v44 = vcombine.high %v3816_v39, %v3820_v40  ;;  %v12463_v45 = vcombine.high %v3817_v41, %v3821_v42  ;;  %v13416_v32 = vld [vmem:[#allocation7 + $0xc04] ss:$24 sps:$4 sm:$0xff]  }
 0x33b   : > { %6117 = vmatpush1.bf16.msra.mxu0 %v12404_v49  ;;  %6240 = vmatpush1.bf16.msra.mxu1 %v12406_v50  ;;  %v3829_v49 = vld [vmem:[#allocation5 + $0x15f8] sm:$0xff]  ;;  %v12460_v50 = vcombine.low %v3816_v39, %v3820_v40  ;;  %v13425_v39 = vld [vmem:[#allocation7 + $0xf34] ss:$24 sps:$4 sm:$0xff]   ;;  %v13420_v40 = vld [vmem:[#allocation7 + $0xc30] ss:$24 sps:$4 sm:$0xff]  }
 0x33c   : > { %6118 = vmatprep.subr.bf16.mxu0 %v12413_v51  ;;  %6241 = vmatprep.subr.bf16.mxu1 %v12415_v34  ;;  %v12462_v51 = vcombine.low %v3817_v41, %v3821_v42  ;;  %v12469_v34 = vcombine.high %v3824_v46, %v3828_v47  ;;  %v12471_v52 = vcombine.high %v3825_v48, %v3829_v49  ;;  %v13423_v41 = vld [vmem:[#allocation7 + $0xf30] ss:$24 sps:$4 sm:$0xff]   ;;  %v13428_v42 = vld [vmem:[#allocation7 + $0xc64] ss:$24 sps:$4 sm:$0xff]  }
 0x33f   : > { %6119 = vmatpush1.bf16.msra.mxu0 %v12412_v55  ;;  %6242 = vmatpush1.bf16.msra.mxu1 %v12414_v56  ;;  %v3837_v55 = vld [vmem:[#allocation5 + $0x1678] sm:$0xff]  ;;  %v12468_v56 = vcombine.low %v3824_v46, %v3828_v47  ;;  %v13437_v46 = vld [vmem:[#allocation7 + $0xf94] ss:$24 sps:$4 sm:$0xff]   ;;  %v13432_v47 = vld [vmem:[#allocation7 + $0xc90] ss:$24 sps:$4 sm:$0xff]  }
 0x340   : > { %6120 = vmatprep.subr.bf16.mxu0 %v12421_v58  ;;  %6243 = vmatprep.subr.bf16.mxu1 %v12423_v59  ;;  %v12470_v58 = vcombine.low %v3825_v48, %v3829_v49  ;;  %v12477_v59 = vcombine.high %v3832_v53, %v3836_v57  ;;  %v12479_v60 = vcombine.high %v3833_v54, %v3837_v55  ;;  %v13440_v48 = vld [vmem:[#allocation7 + $0xcc4] ss:$24 sps:$4 sm:$0xff]  }
 0x341   : > { %v13443_v49 = vld [vmem:[#allocation7 + $0xfc4] ss:$24 sps:$4 sm:$0xff]  }
 0x343   : > { %6121 = vmatpush1.bf16.msra.mxu0 %v12420_v1  ;;  %6244 = vmatpush1.bf16.msra.mxu1 %v12422_v2  ;;  %v3845_v1 = vld [vmem:[#allocation5 + $0x16f8] sm:$0xff]  ;;  %v12476_v2 = vcombine.low %v3832_v53, %v3836_v57  ;;  %v13444_v53 = vld [vmem:[#allocation7 + $0xcf0] ss:$24 sps:$4 sm:$0xff]  }
 0x344   : > { %6122 = vmatprep.subr.bf16.mxu0 %v12429_v6  ;;  %6245 = vmatprep.subr.bf16.mxu1 %v12431_v7  ;;  %v12478_v6 = vcombine.low %v3833_v54, %v3837_v55  ;;  %v12485_v7 = vcombine.high %v3840_v61, %v3844_v62  ;;  %v12487_v8 = vcombine.high %v3841_v63, %v3845_v1  ;;  %v13447_v57 = vld [vmem:[#allocation7 + $0xff0] ss:$24 sps:$4 sm:$0xff]   ;;  %v13452_v54 = vld [vmem:[#allocation7 + $0xd24] ss:$24 sps:$4 sm:$0xff]  }
 0x347   : > { %6123 = vmatpush1.bf16.msra.mxu0 %v12428_v14  ;;  %6246 = vmatpush1.bf16.msra.mxu1 %v12430_v17  ;;  %v3853_v14 = vld [vmem:[#allocation5 + $0x1778] sm:$0xff]  ;;  %v12484_v17 = vcombine.low %v3840_v61, %v3844_v62 }
 0x348   : > { %6124 = vmatprep.subr.bf16.mxu0 %v12437_v12  ;;  %6247 = vmatprep.subr.bf16.mxu1 %v12439_v18  ;;  %v12486_v12 = vcombine.low %v3841_v63, %v3845_v1  ;;  %v12493_v18 = vcombine.high %v3848_v9, %v3852_v11  ;;  %v12495_v20 = vcombine.high %v3849_v13, %v3853_v14  ;;  %v13450_v63 = vld [vmem:[#allocation7 + $0xd20] ss:$24 sps:$4 sm:$0xff]  }
 0x34b   : > { %6125 = vmatpush1.bf16.msra.mxu0 %v12436_v26  ;;  %6248 = vmatpush1.bf16.msra.mxu1 %v12438_v27  ;;  %v3861_v26 = vld [vmem:[#allocation5 + $0x17f8] sm:$0xff]  ;;  %v12492_v27 = vcombine.low %v3848_v9, %v3852_v11  ;;  %v13458_v11 = vld [vmem:[#allocation7 + $0xd54] ss:$24 sps:$4 sm:$0xff]  }
 0x34c   : > { %6126 = vmatprep.subr.bf16.mxu0 %v12445_v28  ;;  %6249 = vmatprep.subr.bf16.mxu1 %v12447_v29  ;;  %v12494_v28 = vcombine.low %v3849_v13, %v3853_v14  ;;  %v12501_v29 = vcombine.high %v3856_v21, %v3860_v22  ;;  %v12503_v23 = vcombine.high %v3857_v24, %v3861_v26  ;;  %v13461_v13 = vld [vmem:[#allocation7 + $0x1054] ss:$24 sps:$4 sm:$0xff]   ;;  %v13462_v21 = vld [vmem:[#allocation7 + $0xd80] ss:$24 sps:$4 sm:$0xff]  }
 0x34d   : > { %v12502_v31 = vcombine.low %v3857_v24, %v3861_v26  ;;  %v13465_v22 = vld [vmem:[#allocation7 + $0x1080] ss:$24 sps:$4 sm:$0xff]   ;;  %v13470_v24 = vld [vmem:[#allocation7 + $0xdb4] ss:$24 sps:$4 sm:$0xff]  }
 0x34e   : > { %v13473_v26 = vld [vmem:[#allocation7 + $0x10b4] ss:$24 sps:$4 sm:$0xff]  }
 0x34f   : > { %6127 = vmatpush1.bf16.msra.mxu0 %v12444_v33  ;;  %6250 = vmatpush1.bf16.msra.mxu1 %v12446_v35  ;;  %v13419_v33 = vld [vmem:[#allocation7 + $0xf04] ss:$24 sps:$4 sm:$0xff]   ;;  %v13414_v35 = vld [vmem:[#allocation7 + $0xc00] ss:$24 sps:$4 sm:$0xff]  }
 0x350   : > { %6128 = vmatprep.subr.bf16.mxu0 %v12453_v36  ;;  %6251 = vmatprep.subr.bf16.mxu1 %v12455_v37  ;;  %v13417_v36 = vld [vmem:[#allocation7 + $0xf00] ss:$24 sps:$4 sm:$0xff]   ;;  %v13422_v37 = vld [vmem:[#allocation7 + $0xc34] ss:$24 sps:$4 sm:$0xff]  }
 0x353   : > { %6129 = vmatpush1.bf16.msra.mxu0 %v12452_v25  ;;  %6252 = vmatpush1.bf16.msra.mxu1 %v12454_v43  ;;  %v13431_v25 = vld [vmem:[#allocation7 + $0xf64] ss:$24 sps:$4 sm:$0xff]   ;;  %v13426_v43 = vld [vmem:[#allocation7 + $0xc60] ss:$24 sps:$4 sm:$0xff]  }
 0x354   : > { %6130 = vmatprep.subr.bf16.mxu0 %v12461_v44  ;;  %6253 = vmatprep.subr.bf16.mxu1 %v12463_v45  ;;  %v13429_v44 = vld [vmem:[#allocation7 + $0xf60] ss:$24 sps:$4 sm:$0xff]   ;;  %v13434_v45 = vld [vmem:[#allocation7 + $0xc94] ss:$24 sps:$4 sm:$0xff]  }
 0x357   : > { %6131 = vmatpush1.bf16.msra.mxu0 %v12460_v50  ;;  %6254 = vmatpush1.bf16.msra.mxu1 %v12462_v51  ;;  %v13438_v50 = vld [vmem:[#allocation7 + $0xcc0] ss:$24 sps:$4 sm:$0xff]  }
 0x358   : > { %6132 = vmatprep.subr.bf16.mxu0 %v12469_v34  ;;  %6255 = vmatprep.subr.bf16.mxu1 %v12471_v52  ;;  %v13441_v51 = vld [vmem:[#allocation7 + $0xfc0] ss:$24 sps:$4 sm:$0xff]   ;;  %v13446_v34 = vld [vmem:[#allocation7 + $0xcf4] ss:$24 sps:$4 sm:$0xff]  }
 0x359   : > { %v13449_v52 = vld [vmem:[#allocation7 + $0xff4] ss:$24 sps:$4 sm:$0xff]  }
 0x35b   : > { %6133 = vmatpush1.bf16.msra.mxu0 %v12468_v56  ;;  %6256 = vmatpush1.bf16.msra.mxu1 %v12470_v58  ;;  %v13455_v56 = vld [vmem:[#allocation7 + $0x1024] ss:$24 sps:$4 sm:$0xff]  }
 0x35c   : > { %6134 = vmatprep.subr.bf16.mxu0 %v12477_v59  ;;  %6257 = vmatprep.subr.bf16.mxu1 %v12479_v60 }
 0x35f   : > { %6135 = vmatpush1.bf16.msra.mxu0 %v12476_v2  ;;  %6258 = vmatpush1.bf16.msra.mxu1 %v12478_v6 }
 0x360   : > { %6136 = vmatprep.subr.bf16.mxu0 %v12485_v7  ;;  %6259 = vmatprep.subr.bf16.mxu1 %v12487_v8  ;;  %v13453_v7 = vld [vmem:[#allocation7 + $0x1020] ss:$24 sps:$4 sm:$0xff]  }
 0x363   : > { %6137 = vmatpush1.bf16.msra.mxu0 %v12484_v17  ;;  %6260 = vmatpush1.bf16.msra.mxu1 %v12486_v12  ;;  %v13456_v17 = vld [vmem:[#allocation7 + $0xd50] ss:$24 sps:$4 sm:$0xff]  }
 0x364   : > { %6138 = vmatprep.subr.bf16.mxu0 %v12493_v18  ;;  %6261 = vmatprep.subr.bf16.mxu1 %v12495_v20  ;;  %v13459_v12 = vld [vmem:[#allocation7 + $0x1050] ss:$24 sps:$4 sm:$0xff]   ;;  %v13464_v18 = vld [vmem:[#allocation7 + $0xd84] ss:$24 sps:$4 sm:$0xff]  }
 0x365   : > { %v13467_v20 = vld [vmem:[#allocation7 + $0x1084] ss:$24 sps:$4 sm:$0xff]  }
 0x367   : > { %6139 = vmatpush1.bf16.msra.mxu0 %v12492_v27  ;;  %6262 = vmatpush1.bf16.msra.mxu1 %v12494_v28  ;;  %v13468_v27 = vld [vmem:[#allocation7 + $0xdb0] ss:$24 sps:$4 sm:$0xff]  }
 0x368   : > { %6140 = vmatprep.subr.bf16.mxu0 %v12501_v29  ;;  %6263 = vmatprep.subr.bf16.mxu1 %v12503_v23  ;;  %v13471_v28 = vld [vmem:[#allocation7 + $0x10b0] ss:$24 sps:$4 sm:$0xff]   ;;  %v13476_v29 = vld [vmem:[#allocation7 + $0xde4] ss:$24 sps:$4 sm:$0xff]  }
 0x369   : > { %v13479_v23 = vld [vmem:[#allocation7 + $0x10e4] ss:$24 sps:$4 sm:$0xff]  }
 0x36b   : > { %6141 = vmatpush1.bf16.msra.mxu0 %v12500_v30  ;;  %6264 = vmatpush1.bf16.msra.mxu1 %v12502_v31  ;;  %v13474_v30 = vld [vmem:[#allocation7 + $0xde0] ss:$24 sps:$4 sm:$0xff]  }
 0x36c   : > { %8594 = vmatprep.subr.bf16.mxu0 %v13416_v32  ;;  %8635 = vmatprep.subr.bf16.mxu1 %v13419_v33  ;;  %v13477_v31 = vld [vmem:[#allocation7 + $0x10e0] ss:$24 sps:$4 sm:$0xff]   ;;  %v13482_v32 = vld [vmem:[#allocation7 + $0xe14] ss:$24 sps:$4 sm:$0xff]  }
 0x36d   : > { %v13485_v33 = vld [vmem:[#allocation7 + $0x1114] ss:$24 sps:$4 sm:$0xff]  }
 0x36e   : > { %6143 = vmatmul.mubr.bf16.vlgmr.msra.gmra.mrb[12].mxu0 %v14981_v38  ;;  %6266 = vmatmul.mubr.bf16.vlgmr.msra.gmra.mrb[12].mxu1 %v14981_v38  ;;  %v13435_v38 = vld [vmem:[#allocation7 + $0xf90] ss:$24 sps:$4 sm:$0xff]  }
 0x36f   : > { %8595 = vmatpush1.bf16.msra.mxu0 %v13414_v35  ;;  %8636 = vmatpush1.bf16.msra.mxu1 %v13417_v36  ;;  %v13480_v35 = vld [vmem:[#allocation7 + $0xe10] ss:$24 sps:$4 sm:$0xff]  }
 0x370   : > { %8596 = vmatprep.subr.bf16.mxu0 %v13422_v37  ;;  %8637 = vmatprep.subr.bf16.mxu1 %v13425_v39  ;;  %v13483_v36 = vld [vmem:[#allocation7 + $0x1110] ss:$24 sps:$4 sm:$0xff]   ;;  %v13488_v37 = vld [vmem:[#allocation7 + $0xe44] ss:$24 sps:$4 sm:$0xff]  }
 0x371   : > { %v13491_v39 = vld [vmem:[#allocation7 + $0x1144] ss:$24 sps:$4 sm:$0xff]  }
 0x373   : > { %8597 = vmatpush1.bf16.msra.mxu0 %v13420_v40  ;;  %8638 = vmatpush1.bf16.msra.mxu1 %v13423_v41  ;;  %v13486_v40 = vld [vmem:[#allocation7 + $0xe40] ss:$24 sps:$4 sm:$0xff]  }
 0x374   : > { %8598 = vmatprep.subr.bf16.mxu0 %v13428_v42  ;;  %8639 = vmatprep.subr.bf16.mxu1 %v13431_v25  ;;  %v13489_v41 = vld [vmem:[#allocation7 + $0x1140] ss:$24 sps:$4 sm:$0xff]   ;;  %v13494_v42 = vld [vmem:[#allocation7 + $0xe74] ss:$24 sps:$4 sm:$0xff]  }
 0x375   : > { %v13497_v25 = vld [vmem:[#allocation7 + $0x1174] ss:$24 sps:$4 sm:$0xff]  }
 0x377   : > { %8599 = vmatpush1.bf16.msra.mxu0 %v13426_v43  ;;  %8640 = vmatpush1.bf16.msra.mxu1 %v13429_v44  ;;  %v13492_v43 = vld [vmem:[#allocation7 + $0xe70] ss:$24 sps:$4 sm:$0xff]  }
 0x378   : > { %8600 = vmatprep.subr.bf16.mxu0 %v13434_v45  ;;  %8641 = vmatprep.subr.bf16.mxu1 %v13437_v46  ;;  %v13495_v44 = vld [vmem:[#allocation7 + $0x1170] ss:$24 sps:$4 sm:$0xff]   ;;  %v13500_v45 = vld [vmem:[#allocation7 + $0xea4] ss:$24 sps:$4 sm:$0xff]  }
 0x379   : > { %v13503_v46 = vld [vmem:[#allocation7 + $0x11a4] ss:$24 sps:$4 sm:$0xff]  }
 0x37b   : > { %8601 = vmatpush1.bf16.msra.mxu0 %v13432_v47  ;;  %8642 = vmatpush1.bf16.msra.mxu1 %v13435_v38  ;;  %v13498_v47 = vld [vmem:[#allocation7 + $0xea0] ss:$24 sps:$4 sm:$0xff]  }
 0x37c   : > { %8602 = vmatprep.subr.bf16.mxu0 %v13440_v48  ;;  %8643 = vmatprep.subr.bf16.mxu1 %v13443_v49  ;;  %v13501_v38 = vld [vmem:[#allocation7 + $0x11a0] ss:$24 sps:$4 sm:$0xff]   ;;  %v13506_v48 = vld [vmem:[#allocation7 + $0xed4] ss:$24 sps:$4 sm:$0xff]  }
 0x37d   : > { %v13509_v49 = vld [vmem:[#allocation7 + $0x11d4] ss:$24 sps:$4 sm:$0xff]  }
 0x37f   : > { %8603 = vmatpush1.bf16.msra.mxu0 %v13438_v50  ;;  %8644 = vmatpush1.bf16.msra.mxu1 %v13441_v51  ;;  %v13504_v50 = vld [vmem:[#allocation7 + $0xed0] ss:$24 sps:$4 sm:$0xff]  }
 0x380   : > { %8604 = vmatprep.subr.bf16.mxu0 %v13446_v34  ;;  %8645 = vmatprep.subr.bf16.mxu1 %v13449_v52  ;;  %v13507_v34 = vld [vmem:[#allocation7 + $0x11d0] ss:$24 sps:$4 sm:$0xff]   ;;  %v13512_v52 = vld [vmem:[#allocation7 + $0x1204] ss:$24 sps:$4 sm:$0xff]  }
 0x381   : > { %v15037_v55 = vpop.f32.mrb[8].mxu0  ;;  %v15039_v58 = vpop.f32.mrb[8].mxu1 }
 0x382   : > { %v5900_v59 = vpop.f32.mrb[9].mxu0  ;;  %v6023_v61 = vpop.f32.mrb[9].mxu1  ;;  %v6274_v51 = vmax.f32 %v15037_v55, 0.0  ;;  %v13521_v55 = vld [vmem:[#allocation7 + $0x1534] ss:$24 sps:$4 sm:$0xff]  }
 0x383   : > { %v6275_v60 = vmax.f32 %v5900_v59, 0.0  ;;  %v5902_v62 = vpop.f32.mrb[10].mxu0  ;;  %8605 = vmatpush1.bf16.msra.mxu0 %v13444_v53  ;;  %v6277_v1 = vmax.f32 %v6023_v61, 0.0  ;;  %v6025_v2 = vpop.f32.mrb[10].mxu1  ;;  %8646 = vmatpush1.bf16.msra.mxu1 %v13447_v57  ;;  %v6276_v53 = vmax.f32 %v15039_v58, 0.0 }
 0x384   : > { %v5903_v6 = vpop.f32.mrb[11].mxu0  ;;  %8606 = vmatprep.subr.bf16.mxu0 %v13452_v54  ;;  %v6026_v9 = vpop.f32.mrb[11].mxu1  ;;  %8647 = vmatprep.subr.bf16.mxu1 %v13455_v56  ;;  %v13515_v57 = vld [vmem:[#allocation7 + $0x1504] ss:$24 sps:$4 sm:$0xff]   ;;  %v13510_v54 = vld [vmem:[#allocation7 + $0x1200] ss:$24 sps:$4 sm:$0xff]   ;;  %v15049_v56 = vpack.c.bf16 %v6274_v51, %v6274_v51 }
 0x385   : > { %v15041_v8 = vpack.c.bf16 %v6275_v60, %v6275_v60  ;;  %v15043_v14 = vpack.c.bf16 %v6277_v1, %v6277_v1  ;;  %v13513_v59 = vld [vmem:[#allocation7 + $0x1500] ss:$24 sps:$4 sm:$0xff]   ;;  %v13518_v60 = vld [vmem:[#allocation7 + $0x1234] ss:$24 sps:$4 sm:$0xff]   ;;  %v15051_v61 = vpack.c.bf16 %v6276_v53, %v6276_v53  ;;  %v13516_v58 = vld [vmem:[#allocation7 + $0x1230] ss:$24 sps:$4 sm:$0xff]  }
 0x386   : > { %v13519_v62 = vld [vmem:[#allocation7 + $0x1530] ss:$24 sps:$4 sm:$0xff]   ;;  %v13527_v1 = vld [vmem:[#allocation7 + $0x1564] ss:$24 sps:$4 sm:$0xff]   ;;  %v13522_v2 = vld [vmem:[#allocation7 + $0x1260] ss:$24 sps:$4 sm:$0xff]  }
 0x387   : > { %8607 = vmatpush1.bf16.msra.mxu0 %v13450_v63  ;;  %8626 = vmatprep.mubr.bf16.mxu0 %v15041_v8  ;;  %v13524_v63 = vld [vmem:[#allocation7 + $0x1264] ss:$24 sps:$4 sm:$0xff]   ;;  %v13525_v6 = vld [vmem:[#allocation7 + $0x1560] ss:$24 sps:$4 sm:$0xff]   ;;  %v13533_v9 = vld [vmem:[#allocation7 + $0x1594] ss:$24 sps:$4 sm:$0xff]  }
 0x388   : > { %8648 = vmatpush1.bf16.msra.mxu1 %v13453_v7  ;;  %8667 = vmatprep.mubr.bf16.mxu1 %v15043_v14  ;;  %v13530_v7 = vld [vmem:[#allocation7 + $0x1294] ss:$24 sps:$4 sm:$0xff]   ;;  %v13587_v51 = vld [vmem:[#allocation7 + $0x1744] ss:$24 sps:$4 sm:$0xff]  }
 0x389   : > { %8608 = vmatprep.subr.bf16.mxu0 %v13458_v11  ;;  %8649 = vmatprep.subr.bf16.mxu1 %v13461_v13  ;;  %v13528_v11 = vld [vmem:[#allocation7 + $0x1290] ss:$24 sps:$4 sm:$0xff]   ;;  %v13590_v53 = vld [vmem:[#allocation7 + $0x1474] ss:$24 sps:$4 sm:$0xff]  }
 0x38a   : > { %v13531_v13 = vld [vmem:[#allocation7 + $0x1590] ss:$24 sps:$4 sm:$0xff]  }
 0x38b   : > { %8609 = vmatpush1.bf16.msra.mxu0 %v13456_v17  ;;  %v13536_v17 = vld [vmem:[#allocation7 + $0x12c4] ss:$24 sps:$4 sm:$0xff]  }
 0x38c   : > { %8650 = vmatpush1.bf16.msra.mxu1 %v13459_v12  ;;  %8610 = vmatprep.subr.bf16.mxu0 %v13464_v18  ;;  %v13539_v12 = vld [vmem:[#allocation7 + $0x15c4] ss:$24 sps:$4 sm:$0xff]   ;;  %v13534_v18 = vld [vmem:[#allocation7 + $0x12c0] ss:$24 sps:$4 sm:$0xff]  }
 0x38d   : > { %8651 = vmatprep.subr.bf16.mxu1 %v13467_v20  ;;  %v13537_v20 = vld [vmem:[#allocation7 + $0x15c0] ss:$24 sps:$4 sm:$0xff]  }
 0x38f   : > { %8611 = vmatpush1.bf16.msra.mxu0 %v13462_v21  ;;  %v13542_v21 = vld [vmem:[#allocation7 + $0x12f4] ss:$24 sps:$4 sm:$0xff]  }
 0x390   : > { %8652 = vmatpush1.bf16.msra.mxu1 %v13465_v22  ;;  %8612 = vmatprep.subr.bf16.mxu0 %v13470_v24  ;;  %v13545_v22 = vld [vmem:[#allocation7 + $0x15f4] ss:$24 sps:$4 sm:$0xff]   ;;  %v13540_v24 = vld [vmem:[#allocation7 + $0x12f0] ss:$24 sps:$4 sm:$0xff]  }
 0x391   : > { %8653 = vmatprep.subr.bf16.mxu1 %v13473_v26  ;;  %v13543_v26 = vld [vmem:[#allocation7 + $0x15f0] ss:$24 sps:$4 sm:$0xff]  }
 0x393   : > { %8613 = vmatpush1.bf16.msra.mxu0 %v13468_v27  ;;  %v13548_v27 = vld [vmem:[#allocation7 + $0x1324] ss:$24 sps:$4 sm:$0xff]  }
 0x394   : > { %8654 = vmatpush1.bf16.msra.mxu1 %v13471_v28  ;;  %8614 = vmatprep.subr.bf16.mxu0 %v13476_v29  ;;  %v13551_v28 = vld [vmem:[#allocation7 + $0x1624] ss:$24 sps:$4 sm:$0xff]   ;;  %v13546_v29 = vld [vmem:[#allocation7 + $0x1320] ss:$24 sps:$4 sm:$0xff]  }
 0x395   : > { %8655 = vmatprep.subr.bf16.mxu1 %v13479_v23  ;;  %v13549_v23 = vld [vmem:[#allocation7 + $0x1620] ss:$24 sps:$4 sm:$0xff]  }
 0x397   : > { %8615 = vmatpush1.bf16.msra.mxu0 %v13474_v30  ;;  %v13554_v30 = vld [vmem:[#allocation7 + $0x1354] ss:$24 sps:$4 sm:$0xff]  }
 0x398   : > { %8656 = vmatpush1.bf16.msra.mxu1 %v13477_v31  ;;  %8616 = vmatprep.subr.bf16.mxu0 %v13482_v32  ;;  %v13557_v31 = vld [vmem:[#allocation7 + $0x1654] ss:$24 sps:$4 sm:$0xff]   ;;  %v13552_v32 = vld [vmem:[#allocation7 + $0x1350] ss:$24 sps:$4 sm:$0xff]  }
 0x399   : > { %8657 = vmatprep.subr.bf16.mxu1 %v13485_v33  ;;  %v13555_v33 = vld [vmem:[#allocation7 + $0x1650] ss:$24 sps:$4 sm:$0xff]  }
 0x39b   : > { %8617 = vmatpush1.bf16.msra.mxu0 %v13480_v35  ;;  %v13560_v35 = vld [vmem:[#allocation7 + $0x1384] ss:$24 sps:$4 sm:$0xff]  }
 0x39c   : > { %8658 = vmatpush1.bf16.msra.mxu1 %v13483_v36  ;;  %8618 = vmatprep.subr.bf16.mxu0 %v13488_v37  ;;  %v13563_v36 = vld [vmem:[#allocation7 + $0x1684] ss:$24 sps:$4 sm:$0xff]   ;;  %v13558_v37 = vld [vmem:[#allocation7 + $0x1380] ss:$24 sps:$4 sm:$0xff]  }
 0x39d   : > { %8659 = vmatprep.subr.bf16.mxu1 %v13491_v39  ;;  %v13561_v39 = vld [vmem:[#allocation7 + $0x1680] ss:$24 sps:$4 sm:$0xff]  }
 0x39f   : > { %8619 = vmatpush1.bf16.msra.mxu0 %v13486_v40  ;;  %v13566_v40 = vld [vmem:[#allocation7 + $0x13b4] ss:$24 sps:$4 sm:$0xff]  }
 0x3a0   : > { %8660 = vmatpush1.bf16.msra.mxu1 %v13489_v41  ;;  %8620 = vmatprep.subr.bf16.mxu0 %v13494_v42  ;;  %v13569_v41 = vld [vmem:[#allocation7 + $0x16b4] ss:$24 sps:$4 sm:$0xff]   ;;  %v13564_v42 = vld [vmem:[#allocation7 + $0x13b0] ss:$24 sps:$4 sm:$0xff]  }
 0x3a1   : > { %8661 = vmatprep.subr.bf16.mxu1 %v13497_v25  ;;  %v13567_v25 = vld [vmem:[#allocation7 + $0x16b0] ss:$24 sps:$4 sm:$0xff]  }
 0x3a3   : > { %8621 = vmatpush1.bf16.msra.mxu0 %v13492_v43  ;;  %v13572_v43 = vld [vmem:[#allocation7 + $0x13e4] ss:$24 sps:$4 sm:$0xff]  }
 0x3a4   : > { %8662 = vmatpush1.bf16.msra.mxu1 %v13495_v44  ;;  %8622 = vmatprep.subr.bf16.mxu0 %v13500_v45  ;;  %v13575_v44 = vld [vmem:[#allocation7 + $0x16e4] ss:$24 sps:$4 sm:$0xff]   ;;  %v13570_v45 = vld [vmem:[#allocation7 + $0x13e0] ss:$24 sps:$4 sm:$0xff]  }
 0x3a5   : > { %8663 = vmatprep.subr.bf16.mxu1 %v13503_v46  ;;  %v13573_v46 = vld [vmem:[#allocation7 + $0x16e0] ss:$24 sps:$4 sm:$0xff]  }
 0x3a7   : > { %8623 = vmatpush1.bf16.msra.mxu0 %v13498_v47  ;;  %v13578_v47 = vld [vmem:[#allocation7 + $0x1414] ss:$24 sps:$4 sm:$0xff]  }
 0x3a8   : > { %8664 = vmatpush1.bf16.msra.mxu1 %v13501_v38  ;;  %8624 = vmatprep.subr.bf16.mxu0 %v13506_v48  ;;  %v13581_v38 = vld [vmem:[#allocation7 + $0x1714] ss:$24 sps:$4 sm:$0xff]   ;;  %v13576_v48 = vld [vmem:[#allocation7 + $0x1410] ss:$24 sps:$4 sm:$0xff]  }
 0x3a9   : > { %8665 = vmatprep.subr.bf16.mxu1 %v13509_v49  ;;  %v13579_v49 = vld [vmem:[#allocation7 + $0x1710] ss:$24 sps:$4 sm:$0xff]  }
 0x3ab   : > { %8625 = vmatpush1.bf16.msra.mxu0 %v13504_v50  ;;  %v13584_v50 = vld [vmem:[#allocation7 + $0x1444] ss:$24 sps:$4 sm:$0xff]  }
 0x3ac   : > { %8666 = vmatpush1.bf16.msra.mxu1 %v13507_v34  ;;  %8676 = vmatprep.subr.bf16.mxu0 %v13512_v52  ;;  %v13582_v34 = vld [vmem:[#allocation7 + $0x1440] ss:$24 sps:$4 sm:$0xff]  }
 0x3ad   : > { %8717 = vmatprep.subr.bf16.mxu1 %v13515_v57  ;;  %v13585_v52 = vld [vmem:[#allocation7 + $0x1740] ss:$24 sps:$4 sm:$0xff]   ;;  %v13593_v57 = vld [vmem:[#allocation7 + $0x1774] ss:$24 sps:$4 sm:$0xff]  }
 0x3ae   : > { %8627 = vmatmul.mubr.bf16.vlgmr.msra.gmra.mrb[16].mxu0 %v15049_v56 }
 0x3af   : > { %8668 = vmatmul.mubr.bf16.vlgmr.msra.gmra.mrb[16].mxu1 %v15051_v61  ;;  %8677 = vmatpush1.bf16.msra.mxu0 %v13510_v54  ;;  %v13588_v54 = vld [vmem:[#allocation7 + $0x1470] ss:$24 sps:$4 sm:$0xff]  }
 0x3b0   : > { %8718 = vmatpush1.bf16.msra.mxu1 %v13513_v59  ;;  %8678 = vmatprep.subr.bf16.mxu0 %v13518_v60  ;;  %v13591_v59 = vld [vmem:[#allocation7 + $0x1770] ss:$24 sps:$4 sm:$0xff]   ;;  %v13596_v60 = vld [vmem:[#allocation7 + $0x14a4] ss:$24 sps:$4 sm:$0xff]  }
 0x3b1   : > { %8719 = vmatprep.subr.bf16.mxu1 %v13521_v55  ;;  %v13599_v55 = vld [vmem:[#allocation7 + $0x17a4] ss:$24 sps:$4 sm:$0xff]  }
 0x3b3   : > { %8679 = vmatpush1.bf16.msra.mxu0 %v13516_v58  ;;  %v13594_v58 = vld [vmem:[#allocation7 + $0x14a0] ss:$24 sps:$4 sm:$0xff]  }
 0x3b4   : > { %8720 = vmatpush1.bf16.msra.mxu1 %v13519_v62  ;;  %8680 = vmatprep.subr.bf16.mxu0 %v13524_v63  ;;  %v13597_v62 = vld [vmem:[#allocation7 + $0x17a0] ss:$24 sps:$4 sm:$0xff]   ;;  %v13602_v63 = vld [vmem:[#allocation7 + $0x14d4] ss:$24 sps:$4 sm:$0xff]  }
 0x3b5   : > { %8721 = vmatprep.subr.bf16.mxu1 %v13527_v1  ;;  %v13605_v1 = vld [vmem:[#allocation7 + $0x17d4] ss:$24 sps:$4 sm:$0xff]  }
 0x3b7   : > { %8681 = vmatpush1.bf16.msra.mxu0 %v13522_v2  ;;  %v13600_v2 = vld [vmem:[#allocation7 + $0x14d0] ss:$24 sps:$4 sm:$0xff]  }
 0x3b8   : > { %8722 = vmatpush1.bf16.msra.mxu1 %v13525_v6  ;;  %8682 = vmatprep.subr.bf16.mxu0 %v13530_v7  ;;  %v13603_v6 = vld [vmem:[#allocation7 + $0x17d0] ss:$24 sps:$4 sm:$0xff]   ;;  %v13608_v7 = vld [vmem:[#allocation7 + $0xc0c] ss:$24 sps:$4 sm:$0xff]  }
 0x3b9   : > { %8723 = vmatprep.subr.bf16.mxu1 %v13533_v9  ;;  %v13611_v9 = vld [vmem:[#allocation7 + $0xf0c] ss:$24 sps:$4 sm:$0xff]  }
 0x3bb   : > { %8683 = vmatpush1.bf16.msra.mxu0 %v13528_v11 }
 0x3bc   : > { %8724 = vmatpush1.bf16.msra.mxu1 %v13531_v13  ;;  %8684 = vmatprep.subr.bf16.mxu0 %v13536_v17 }
 0x3bd   : > { %8725 = vmatprep.subr.bf16.mxu1 %v13539_v12 }
 0x3bf   : > { %8685 = vmatpush1.bf16.msra.mxu0 %v13534_v18 }
 0x3c0   : > { %8726 = vmatpush1.bf16.msra.mxu1 %v13537_v20  ;;  %8686 = vmatprep.subr.bf16.mxu0 %v13542_v21 }
 0x3c1   : > { %8727 = vmatprep.subr.bf16.mxu1 %v13545_v22 }
 0x3c3   : > { %8687 = vmatpush1.bf16.msra.mxu0 %v13540_v24 }
 0x3c4   : > { %8728 = vmatpush1.bf16.msra.mxu1 %v13543_v26  ;;  %8688 = vmatprep.subr.bf16.mxu0 %v13548_v27 }
 0x3c5   : > { %8729 = vmatprep.subr.bf16.mxu1 %v13551_v28 }
 0x3c7   : > { %8689 = vmatpush1.bf16.msra.mxu0 %v13546_v29 }
 0x3c8   : > { %8730 = vmatpush1.bf16.msra.mxu1 %v13549_v23  ;;  %8690 = vmatprep.subr.bf16.mxu0 %v13554_v30  ;;  %v13606_v23 = vld [vmem:[#allocation7 + $0xc08] ss:$24 sps:$4 sm:$0xff]  }
 0x3c9   : > { %8731 = vmatprep.subr.bf16.mxu1 %v13557_v31 }
 0x3cb   : > { %8691 = vmatpush1.bf16.msra.mxu0 %v13552_v32  ;;  %v13609_v32 = vld [vmem:[#allocation7 + $0xf08] ss:$24 sps:$4 sm:$0xff]  }
 0x3cc   : > { %8732 = vmatpush1.bf16.msra.mxu1 %v13555_v33  ;;  %8692 = vmatprep.subr.bf16.mxu0 %v13560_v35  ;;  %v13614_v35 = vld [vmem:[#allocation7 + $0xc3c] ss:$24 sps:$4 sm:$0xff]  }
 0x3cd   : > { %8733 = vmatprep.subr.bf16.mxu1 %v13563_v36  ;;  %v13617_v36 = vld [vmem:[#allocation7 + $0xf3c] ss:$24 sps:$4 sm:$0xff]  }
 0x3cf   : > { %8693 = vmatpush1.bf16.msra.mxu0 %v13558_v37  ;;  %v13612_v37 = vld [vmem:[#allocation7 + $0xc38] ss:$24 sps:$4 sm:$0xff]  }
 0x3d0   : > { %8734 = vmatpush1.bf16.msra.mxu1 %v13561_v39  ;;  %8694 = vmatprep.subr.bf16.mxu0 %v13566_v40  ;;  %v13615_v39 = vld [vmem:[#allocation7 + $0xf38] ss:$24 sps:$4 sm:$0xff]   ;;  %v13620_v40 = vld [vmem:[#allocation7 + $0xc6c] ss:$24 sps:$4 sm:$0xff]  }
 0x3d1   : > { %8735 = vmatprep.subr.bf16.mxu1 %v13569_v41  ;;  %v13623_v41 = vld [vmem:[#allocation7 + $0xf6c] ss:$24 sps:$4 sm:$0xff]  }
 0x3d3   : > { %8695 = vmatpush1.bf16.msra.mxu0 %v13564_v42  ;;  %v13618_v42 = vld [vmem:[#allocation7 + $0xc68] ss:$24 sps:$4 sm:$0xff]  }
 0x3d4   : > { %8736 = vmatpush1.bf16.msra.mxu1 %v13567_v25  ;;  %8696 = vmatprep.subr.bf16.mxu0 %v13572_v43  ;;  %v13621_v25 = vld [vmem:[#allocation7 + $0xf68] ss:$24 sps:$4 sm:$0xff]   ;;  %v13626_v43 = vld [vmem:[#allocation7 + $0xc9c] ss:$24 sps:$4 sm:$0xff]  }
 0x3d5   : > { %8737 = vmatprep.subr.bf16.mxu1 %v13575_v44  ;;  %v13629_v44 = vld [vmem:[#allocation7 + $0xf9c] ss:$24 sps:$4 sm:$0xff]  }
 0x3d7   : > { %8697 = vmatpush1.bf16.msra.mxu0 %v13570_v45  ;;  %v13624_v45 = vld [vmem:[#allocation7 + $0xc98] ss:$24 sps:$4 sm:$0xff]  }
 0x3d8   : > { %8738 = vmatpush1.bf16.msra.mxu1 %v13573_v46  ;;  %8698 = vmatprep.subr.bf16.mxu0 %v13578_v47  ;;  %v13627_v46 = vld [vmem:[#allocation7 + $0xf98] ss:$24 sps:$4 sm:$0xff]   ;;  %v13632_v47 = vld [vmem:[#allocation7 + $0xccc] ss:$24 sps:$4 sm:$0xff]  }
 0x3d9   : > { %8739 = vmatprep.subr.bf16.mxu1 %v13581_v38  ;;  %v13635_v38 = vld [vmem:[#allocation7 + $0xfcc] ss:$24 sps:$4 sm:$0xff]  }
 0x3db   : > { %8699 = vmatpush1.bf16.msra.mxu0 %v13576_v48  ;;  %v13630_v48 = vld [vmem:[#allocation7 + $0xcc8] ss:$24 sps:$4 sm:$0xff]  }
 0x3dc   : > { %8740 = vmatpush1.bf16.msra.mxu1 %v13579_v49  ;;  %8700 = vmatprep.subr.bf16.mxu0 %v13584_v50  ;;  %v13633_v49 = vld [vmem:[#allocation7 + $0xfc8] ss:$24 sps:$4 sm:$0xff]   ;;  %v13638_v50 = vld [vmem:[#allocation7 + $0xcfc] ss:$24 sps:$4 sm:$0xff]  }
 0x3dd   : > { %8741 = vmatprep.subr.bf16.mxu1 %v13587_v51  ;;  %v13641_v51 = vld [vmem:[#allocation7 + $0xffc] ss:$24 sps:$4 sm:$0xff]  }
 0x3df   : > { %8701 = vmatpush1.bf16.msra.mxu0 %v13582_v34  ;;  %v13636_v34 = vld [vmem:[#allocation7 + $0xcf8] ss:$24 sps:$4 sm:$0xff]  }
 0x3e0   : > { %8742 = vmatpush1.bf16.msra.mxu1 %v13585_v52  ;;  %8702 = vmatprep.subr.bf16.mxu0 %v13590_v53  ;;  %v13639_v52 = vld [vmem:[#allocation7 + $0xff8] ss:$24 sps:$4 sm:$0xff]   ;;  %v13644_v53 = vld [vmem:[#allocation7 + $0xd2c] ss:$24 sps:$4 sm:$0xff]  }
 0x3e1   : > { %8743 = vmatprep.subr.bf16.mxu1 %v13593_v57  ;;  %v13647_v57 = vld [vmem:[#allocation7 + $0x102c] ss:$24 sps:$4 sm:$0xff]  }
 0x3e3   : > { %8703 = vmatpush1.bf16.msra.mxu0 %v13588_v54  ;;  %v13642_v54 = vld [vmem:[#allocation7 + $0xd28] ss:$24 sps:$4 sm:$0xff]  }
 0x3e4   : > { %8744 = vmatpush1.bf16.msra.mxu1 %v13591_v59  ;;  %8704 = vmatprep.subr.bf16.mxu0 %v13596_v60  ;;  %v13645_v59 = vld [vmem:[#allocation7 + $0x1028] ss:$24 sps:$4 sm:$0xff]   ;;  %v13650_v60 = vld [vmem:[#allocation7 + $0xd5c] ss:$24 sps:$4 sm:$0xff]  }
 0x3e5   : > { %8745 = vmatprep.subr.bf16.mxu1 %v13599_v55  ;;  %v13653_v55 = vld [vmem:[#allocation7 + $0x105c] ss:$24 sps:$4 sm:$0xff]  }
 0x3e7   : > { %8705 = vmatpush1.bf16.msra.mxu0 %v13594_v58  ;;  %v13648_v58 = vld [vmem:[#allocation7 + $0xd58] ss:$24 sps:$4 sm:$0xff]  }
 0x3e8   : > { %8746 = vmatpush1.bf16.msra.mxu1 %v13597_v62  ;;  %8706 = vmatprep.subr.bf16.mxu0 %v13602_v63  ;;  %v13651_v62 = vld [vmem:[#allocation7 + $0x1058] ss:$24 sps:$4 sm:$0xff]   ;;  %v13656_v63 = vld [vmem:[#allocation7 + $0xd8c] ss:$24 sps:$4 sm:$0xff]  }
 0x3e9   : > { %8747 = vmatprep.subr.bf16.mxu1 %v13605_v1  ;;  %v13659_v1 = vld [vmem:[#allocation7 + $0x108c] ss:$24 sps:$4 sm:$0xff]  }
 0x3eb   : > { %8707 = vmatpush1.bf16.msra.mxu0 %v13600_v2  ;;  %v13654_v2 = vld [vmem:[#allocation7 + $0xd88] ss:$24 sps:$4 sm:$0xff]  }
 0x3ec   : > { %8748 = vmatpush1.bf16.msra.mxu1 %v13603_v6  ;;  %8758 = vmatprep.subr.bf16.mxu0 %v13608_v7  ;;  %v13657_v6 = vld [vmem:[#allocation7 + $0x1088] ss:$24 sps:$4 sm:$0xff]   ;;  %v13662_v7 = vld [vmem:[#allocation7 + $0xdbc] ss:$24 sps:$4 sm:$0xff]  }
 0x3ed   : > { %8799 = vmatprep.subr.bf16.mxu1 %v13611_v9  ;;  %v13665_v9 = vld [vmem:[#allocation7 + $0x10bc] ss:$24 sps:$4 sm:$0xff]  }
 0x441   : > { %v6144_v11 = vpop.f32.mrb[12].mxu0  ;;  %v6267_v17 = vpop.f32.mrb[12].mxu1 }
 0x442   : > { %v6278_v13 = vmax.f32 %v6144_v11, 0.0  ;;  %v6146_v12 = vpop.f32.mrb[13].mxu0  ;;  %v6280_v18 = vmax.f32 %v6267_v17, 0.0  ;;  %v6269_v21 = vpop.f32.mrb[13].mxu1  ;;  %v13660_v11 = vld [vmem:[#allocation7 + $0xdb8] ss:$24 sps:$4 sm:$0xff]  }
 0x443   : > { %v6279_v20 = vmax.f32 %v6146_v12, 0.0  ;;  %v6148_v22 = vpop.f32.mrb[14].mxu0  ;;  %v6281_v24 = vmax.f32 %v6269_v21, 0.0  ;;  %v6271_v26 = vpop.f32.mrb[14].mxu1  ;;  %v13668_v17 = vld [vmem:[#allocation7 + $0xdec] ss:$24 sps:$4 sm:$0xff]  }
 0x444   : > { %v6149_v27 = vpop.f32.mrb[15].mxu0  ;;  %v6272_v29 = vpop.f32.mrb[15].mxu1  ;;  %v15057_v30 = vpack.c.bf16 %v6278_v13, %v6278_v13  ;;  %v15061_v33 = vpack.c.bf16 %v6280_v18, %v6280_v18  ;;  %v13663_v13 = vld [vmem:[#allocation7 + $0x10b8] ss:$24 sps:$4 sm:$0xff]   ;;  %v13671_v12 = vld [vmem:[#allocation7 + $0x10ec] ss:$24 sps:$4 sm:$0xff]  }
 0x445   : > { %v15055_v28 = vpack.c.bf16 %v6279_v20, %v6279_v20  ;;  %v15059_v31 = vpack.c.bf16 %v6281_v24, %v6281_v24  ;;  %v13666_v18 = vld [vmem:[#allocation7 + $0xde8] ss:$24 sps:$4 sm:$0xff]   ;;  %v13674_v21 = vld [vmem:[#allocation7 + $0xe1c] ss:$24 sps:$4 sm:$0xff]   ;;  %v13672_v24 = vld [vmem:[#allocation7 + $0xe18] ss:$24 sps:$4 sm:$0xff]  }
 0x446   : > { %v13669_v20 = vld [vmem:[#allocation7 + $0x10e8] ss:$24 sps:$4 sm:$0xff]   ;;  %v13677_v22 = vld [vmem:[#allocation7 + $0x111c] ss:$24 sps:$4 sm:$0xff]   ;;  %v13675_v26 = vld [vmem:[#allocation7 + $0x1118] ss:$24 sps:$4 sm:$0xff]  }
 0x447   : > { %8708 = vmatprep.mubr.bf16.mxu0 %v15055_v28  ;;  %8749 = vmatprep.mubr.bf16.mxu1 %v15059_v31  ;;  %v13680_v27 = vld [vmem:[#allocation7 + $0xe4c] ss:$24 sps:$4 sm:$0xff]  }
 0x448   : > { %8709 = vmatmul.mubr.bf16.vlgmr.msra.gmra.mrb[20].mxu0 %v15057_v30  ;;  %8750 = vmatmul.mubr.bf16.vlgmr.msra.gmra.mrb[20].mxu1 %v15061_v33  ;;  %v13683_v29 = vld [vmem:[#allocation7 + $0x114c] ss:$24 sps:$4 sm:$0xff]  }
 0x449   : > { %8759 = vmatpush1.bf16.msra.mxu0 %v13606_v23  ;;  %8800 = vmatpush1.bf16.msra.mxu1 %v13609_v32  ;;  %v13678_v23 = vld [vmem:[#allocation7 + $0xe48] ss:$24 sps:$4 sm:$0xff]  }
 0x44a   : > { %8790 = vmatprep.mubr.bf16.mxu0 %v15041_v8  ;;  %8831 = vmatprep.mubr.bf16.mxu1 %v15043_v14  ;;  %v13681_v32 = vld [vmem:[#allocation7 + $0x1148] ss:$24 sps:$4 sm:$0xff]  }
 0x44b   : > { %8760 = vmatprep.subr.bf16.mxu0 %v13614_v35  ;;  %8801 = vmatprep.subr.bf16.mxu1 %v13617_v36  ;;  %v13686_v35 = vld [vmem:[#allocation7 + $0xe7c] ss:$24 sps:$4 sm:$0xff]  }
 0x44c   : > { %v13689_v36 = vld [vmem:[#allocation7 + $0x117c] ss:$24 sps:$4 sm:$0xff]  }
 0x44d   : > { %8761 = vmatpush1.bf16.msra.mxu0 %v13612_v37  ;;  %8802 = vmatpush1.bf16.msra.mxu1 %v13615_v39  ;;  %v13684_v37 = vld [vmem:[#allocation7 + $0xe78] ss:$24 sps:$4 sm:$0xff]  }
 0x44e   : > { %8762 = vmatprep.subr.bf16.mxu0 %v13620_v40  ;;  %8803 = vmatprep.subr.bf16.mxu1 %v13623_v41  ;;  %v13687_v39 = vld [vmem:[#allocation7 + $0x1178] ss:$24 sps:$4 sm:$0xff]   ;;  %v13692_v40 = vld [vmem:[#allocation7 + $0xeac] ss:$24 sps:$4 sm:$0xff]  }
 0x44f   : > { %v13695_v41 = vld [vmem:[#allocation7 + $0x11ac] ss:$24 sps:$4 sm:$0xff]  }
 0x451   : > { %8763 = vmatpush1.bf16.msra.mxu0 %v13618_v42  ;;  %8804 = vmatpush1.bf16.msra.mxu1 %v13621_v25  ;;  %v13690_v42 = vld [vmem:[#allocation7 + $0xea8] ss:$24 sps:$4 sm:$0xff]  }
 0x452   : > { %8764 = vmatprep.subr.bf16.mxu0 %v13626_v43  ;;  %8805 = vmatprep.subr.bf16.mxu1 %v13629_v44  ;;  %v13693_v25 = vld [vmem:[#allocation7 + $0x11a8] ss:$24 sps:$4 sm:$0xff]   ;;  %v13698_v43 = vld [vmem:[#allocation7 + $0xedc] ss:$24 sps:$4 sm:$0xff]  }
 0x453   : > { %v13701_v44 = vld [vmem:[#allocation7 + $0x11dc] ss:$24 sps:$4 sm:$0xff]  }
 0x455   : > { %8765 = vmatpush1.bf16.msra.mxu0 %v13624_v45  ;;  %8806 = vmatpush1.bf16.msra.mxu1 %v13627_v46  ;;  %v13696_v46 = vld [vmem:[#allocation7 + $0xed8] ss:$24 sps:$4 sm:$0xff]  }
 0x456   : > { %8766 = vmatprep.subr.bf16.mxu0 %v13632_v47  ;;  %8807 = vmatprep.subr.bf16.mxu1 %v13635_v38 }
 0x459   : > { %8767 = vmatpush1.bf16.msra.mxu0 %v13630_v48  ;;  %8808 = vmatpush1.bf16.msra.mxu1 %v13633_v49  ;;  %v13699_v48 = vld [vmem:[#allocation7 + $0x11d8] ss:$24 sps:$4 sm:$0xff]   ;;  %v13704_v49 = vld [vmem:[#allocation7 + $0x120c] ss:$24 sps:$4 sm:$0xff]  }
 0x45a   : > { %8768 = vmatprep.subr.bf16.mxu0 %v13638_v50  ;;  %8809 = vmatprep.subr.bf16.mxu1 %v13641_v51 }
 0x45d   : > { %8769 = vmatpush1.bf16.msra.mxu0 %v13636_v34  ;;  %8810 = vmatpush1.bf16.msra.mxu1 %v13639_v52  ;;  %v13707_v52 = vld [vmem:[#allocation7 + $0x150c] ss:$24 sps:$4 sm:$0xff]  }
 0x45e   : > { %8770 = vmatprep.subr.bf16.mxu0 %v13644_v53  ;;  %8811 = vmatprep.subr.bf16.mxu1 %v13647_v57 }
 0x461   : > { %8771 = vmatpush1.bf16.msra.mxu0 %v13642_v54  ;;  %8812 = vmatpush1.bf16.msra.mxu1 %v13645_v59 }
 0x462   : > { %8772 = vmatprep.subr.bf16.mxu0 %v13650_v60  ;;  %8813 = vmatprep.subr.bf16.mxu1 %v13653_v55  ;;  %v13702_v60 = vld [vmem:[#allocation7 + $0x1208] ss:$24 sps:$4 sm:$0xff]  }
 0x463   : > { %v13705_v55 = vld [vmem:[#allocation7 + $0x1508] ss:$24 sps:$4 sm:$0xff]  }
 0x465   : > { %8773 = vmatpush1.bf16.msra.mxu0 %v13648_v58  ;;  %8814 = vmatpush1.bf16.msra.mxu1 %v13651_v62  ;;  %v13710_v58 = vld [vmem:[#allocation7 + $0x123c] ss:$24 sps:$4 sm:$0xff]  }
 0x466   : > { %8774 = vmatprep.subr.bf16.mxu0 %v13656_v63  ;;  %8815 = vmatprep.subr.bf16.mxu1 %v13659_v1  ;;  %v13713_v62 = vld [vmem:[#allocation7 + $0x153c] ss:$24 sps:$4 sm:$0xff]   ;;  %v13708_v63 = vld [vmem:[#allocation7 + $0x1238] ss:$24 sps:$4 sm:$0xff]  }
 0x467   : > { %v13711_v1 = vld [vmem:[#allocation7 + $0x1538] ss:$24 sps:$4 sm:$0xff]  }
 0x469   : > { %8775 = vmatpush1.bf16.msra.mxu0 %v13654_v2  ;;  %8816 = vmatpush1.bf16.msra.mxu1 %v13657_v6  ;;  %v13716_v2 = vld [vmem:[#allocation7 + $0x126c] ss:$24 sps:$4 sm:$0xff]  }
 0x46a   : > { %8776 = vmatprep.subr.bf16.mxu0 %v13662_v7  ;;  %8817 = vmatprep.subr.bf16.mxu1 %v13665_v9  ;;  %v13719_v6 = vld [vmem:[#allocation7 + $0x156c] ss:$24 sps:$4 sm:$0xff]   ;;  %v13714_v7 = vld [vmem:[#allocation7 + $0x1268] ss:$24 sps:$4 sm:$0xff]  }
 0x46b   : > { %v13717_v9 = vld [vmem:[#allocation7 + $0x1568] ss:$24 sps:$4 sm:$0xff]  }
 0x46d   : > { %8777 = vmatpush1.bf16.msra.mxu0 %v13660_v11  ;;  %8818 = vmatpush1.bf16.msra.mxu1 %v13663_v13  ;;  %v13722_v11 = vld [vmem:[#allocation7 + $0x129c] ss:$24 sps:$4 sm:$0xff]  }
 0x46e   : > { %8778 = vmatprep.subr.bf16.mxu0 %v13668_v17  ;;  %8819 = vmatprep.subr.bf16.mxu1 %v13671_v12  ;;  %v13725_v13 = vld [vmem:[#allocation7 + $0x159c] ss:$24 sps:$4 sm:$0xff]   ;;  %v13720_v17 = vld [vmem:[#allocation7 + $0x1298] ss:$24 sps:$4 sm:$0xff]  }
 0x46f   : > { %v13723_v12 = vld [vmem:[#allocation7 + $0x1598] ss:$24 sps:$4 sm:$0xff]  }
 0x471   : > { %8779 = vmatpush1.bf16.msra.mxu0 %v13666_v18  ;;  %8820 = vmatpush1.bf16.msra.mxu1 %v13669_v20  ;;  %v13728_v18 = vld [vmem:[#allocation7 + $0x12cc] ss:$24 sps:$4 sm:$0xff]  }
 0x472   : > { %8780 = vmatprep.subr.bf16.mxu0 %v13674_v21  ;;  %8821 = vmatprep.subr.bf16.mxu1 %v13677_v22  ;;  %v13731_v20 = vld [vmem:[#allocation7 + $0x15cc] ss:$24 sps:$4 sm:$0xff]   ;;  %v13726_v21 = vld [vmem:[#allocation7 + $0x12c8] ss:$24 sps:$4 sm:$0xff]  }
 0x473   : > { %v13729_v22 = vld [vmem:[#allocation7 + $0x15c8] ss:$24 sps:$4 sm:$0xff]  }
 0x475   : > { %8781 = vmatpush1.bf16.msra.mxu0 %v13672_v24  ;;  %8822 = vmatpush1.bf16.msra.mxu1 %v13675_v26  ;;  %v13734_v24 = vld [vmem:[#allocation7 + $0x12fc] ss:$24 sps:$4 sm:$0xff]  }
 0x476   : > { %8782 = vmatprep.subr.bf16.mxu0 %v13680_v27  ;;  %8823 = vmatprep.subr.bf16.mxu1 %v13683_v29  ;;  %v13737_v26 = vld [vmem:[#allocation7 + $0x15fc] ss:$24 sps:$4 sm:$0xff]   ;;  %v13732_v27 = vld [vmem:[#allocation7 + $0x12f8] ss:$24 sps:$4 sm:$0xff]  }
 0x477   : > { %v13735_v29 = vld [vmem:[#allocation7 + $0x15f8] ss:$24 sps:$4 sm:$0xff]  }
 0x479   : > { %8783 = vmatpush1.bf16.msra.mxu0 %v13678_v23  ;;  %8824 = vmatpush1.bf16.msra.mxu1 %v13681_v32  ;;  %v13740_v23 = vld [vmem:[#allocation7 + $0x132c] ss:$24 sps:$4 sm:$0xff]  }
 0x47a   : > { %8784 = vmatprep.subr.bf16.mxu0 %v13686_v35  ;;  %8825 = vmatprep.subr.bf16.mxu1 %v13689_v36  ;;  %v13743_v32 = vld [vmem:[#allocation7 + $0x162c] ss:$24 sps:$4 sm:$0xff]   ;;  %v13738_v35 = vld [vmem:[#allocation7 + $0x1328] ss:$24 sps:$4 sm:$0xff]  }
 0x47b   : > { %v13741_v36 = vld [vmem:[#allocation7 + $0x1628] ss:$24 sps:$4 sm:$0xff]  }
 0x47d   : > { %8785 = vmatpush1.bf16.msra.mxu0 %v13684_v37  ;;  %8826 = vmatpush1.bf16.msra.mxu1 %v13687_v39  ;;  %v13746_v37 = vld [vmem:[#allocation7 + $0x135c] ss:$24 sps:$4 sm:$0xff]  }
 0x47e   : > { %8786 = vmatprep.subr.bf16.mxu0 %v13692_v40  ;;  %8827 = vmatprep.subr.bf16.mxu1 %v13695_v41  ;;  %v13749_v39 = vld [vmem:[#allocation7 + $0x165c] ss:$24 sps:$4 sm:$0xff]   ;;  %v13744_v40 = vld [vmem:[#allocation7 + $0x1358] ss:$24 sps:$4 sm:$0xff]  }
 0x47f   : > { %v13747_v41 = vld [vmem:[#allocation7 + $0x1658] ss:$24 sps:$4 sm:$0xff]  }
 0x481   : > { %8787 = vmatpush1.bf16.msra.mxu0 %v13690_v42  ;;  %v8628_v45 = vpop.f32.mrb[16].mxu0  ;;  %8828 = vmatpush1.bf16.msra.mxu1 %v13693_v25  ;;  %v13752_v42 = vld [vmem:[#allocation7 + $0x138c] ss:$24 sps:$4 sm:$0xff]  }
 0x482   : > { %v8669_v47 = vpop.f32.mrb[16].mxu1  ;;  %v8630_v38 = vpop.f32.mrb[17].mxu0  ;;  %8788 = vmatprep.subr.bf16.mxu0 %v13698_v43  ;;  %8829 = vmatprep.subr.bf16.mxu1 %v13701_v44  ;;  %v13755_v25 = vld [vmem:[#allocation7 + $0x168c] ss:$24 sps:$4 sm:$0xff]   ;;  %v13750_v43 = vld [vmem:[#allocation7 + $0x1388] ss:$24 sps:$4 sm:$0xff]  }
 0x483   : > { %v15069_v50 = vadd.f32 %v8669_v47, %v8628_v45  ;;  %v8671_v51 = vpop.f32.mrb[17].mxu1  ;;  %v8632_v34 = vpop.f32.mrb[18].mxu0  ;;  %v13753_v44 = vld [vmem:[#allocation7 + $0x1688] ss:$24 sps:$4 sm:$0xff]   ;;  %v13758_v45 = vld [vmem:[#allocation7 + $0x13bc] ss:$24 sps:$4 sm:$0xff]  }
 0x484   : > { %v15071_v53 = vadd.f32 %v8671_v51, %v8630_v38  ;;  %v8673_v57 = vpop.f32.mrb[18].mxu1  ;;  %v8633_v54 = vpop.f32.mrb[19].mxu0  ;;  %v13756_v47 = vld [vmem:[#allocation7 + $0x13b8] ss:$24 sps:$4 sm:$0xff]   ;;  %v13762_v51 = vld [vmem:[#allocation7 + $0x13e8] ss:$24 sps:$4 sm:$0xff]  }
 0x485   : > { %v8674_v59 = vpop.f32.mrb[19].mxu1  ;;  %8789 = vmatpush1.bf16.msra.mxu0 %v13696_v46  ;;  %8830 = vmatpush1.bf16.msra.mxu1 %v13699_v48  ;;  %v13761_v46 = vld [vmem:[#allocation7 + $0x16bc] ss:$24 sps:$4 sm:$0xff]   ;;  %v13759_v38 = vld [vmem:[#allocation7 + $0x16b8] ss:$24 sps:$4 sm:$0xff]  }
 0x486   : > { %8840 = vmatprep.subr.bf16.mxu0 %v13704_v49  ;;  %8881 = vmatprep.subr.bf16.mxu1 %v13707_v52  ;;  %v13764_v48 = vld [vmem:[#allocation7 + $0x13ec] ss:$24 sps:$4 sm:$0xff]   ;;  %v13765_v34 = vld [vmem:[#allocation7 + $0x16e8] ss:$24 sps:$4 sm:$0xff]   ;;  %v13770_v52 = vld [vmem:[#allocation7 + $0x141c] ss:$24 sps:$4 sm:$0xff]  }
 0x487   : > { %v13767_v49 = vld [vmem:[#allocation7 + $0x16ec] ss:$24 sps:$4 sm:$0xff]   ;;  %v13773_v57 = vld [vmem:[#allocation7 + $0x171c] ss:$24 sps:$4 sm:$0xff]   ;;  %v13768_v54 = vld [vmem:[#allocation7 + $0x1418] ss:$24 sps:$4 sm:$0xff]  }
 0x488   : > { %8791 = vmatmul.mubr.bf16.vlgmr.msra.gmra.mrb[24].mxu0 %v15049_v56  ;;  %8832 = vmatmul.mubr.bf16.vlgmr.msra.gmra.mrb[24].mxu1 %v15051_v61  ;;  %v13771_v59 = vld [vmem:[#allocation7 + $0x1718] ss:$24 sps:$4 sm:$0xff]  }
 0x489   : > { %8841 = vmatpush1.bf16.msra.mxu0 %v13702_v60  ;;  %8872 = vmatprep.mubr.bf16.mxu0 %v15055_v28  ;;  %v13776_v60 = vld [vmem:[#allocation7 + $0x144c] ss:$24 sps:$4 sm:$0xff]  }
 0x48a   : > { %8882 = vmatpush1.bf16.msra.mxu1 %v13705_v55  ;;  %8913 = vmatprep.mubr.bf16.mxu1 %v15059_v31  ;;  %v13779_v55 = vld [vmem:[#allocation7 + $0x174c] ss:$24 sps:$4 sm:$0xff]  }
 0x48b   : > { %8842 = vmatprep.subr.bf16.mxu0 %v13710_v58  ;;  %8883 = vmatprep.subr.bf16.mxu1 %v13713_v62  ;;  %v13774_v58 = vld [vmem:[#allocation7 + $0x1448] ss:$24 sps:$4 sm:$0xff]  }
 0x48c   : > { %v13777_v62 = vld [vmem:[#allocation7 + $0x1748] ss:$24 sps:$4 sm:$0xff]  }
 0x48d   : > { %8843 = vmatpush1.bf16.msra.mxu0 %v13708_v63  ;;  %v13782_v63 = vld [vmem:[#allocation7 + $0x147c] ss:$24 sps:$4 sm:$0xff]  }
 0x48e   : > { %8884 = vmatpush1.bf16.msra.mxu1 %v13711_v1  ;;  %8844 = vmatprep.subr.bf16.mxu0 %v13716_v2  ;;  %v13785_v1 = vld [vmem:[#allocation7 + $0x177c] ss:$24 sps:$4 sm:$0xff]   ;;  %v13780_v2 = vld [vmem:[#allocation7 + $0x1478] ss:$24 sps:$4 sm:$0xff]  }
 0x48f   : > { %8885 = vmatprep.subr.bf16.mxu1 %v13719_v6  ;;  %v13783_v6 = vld [vmem:[#allocation7 + $0x1778] ss:$24 sps:$4 sm:$0xff]  }
 0x491   : > { %8845 = vmatpush1.bf16.msra.mxu0 %v13714_v7  ;;  %v13788_v7 = vld [vmem:[#allocation7 + $0x14ac] ss:$24 sps:$4 sm:$0xff]  }
 0x492   : > { %8886 = vmatpush1.bf16.msra.mxu1 %v13717_v9  ;;  %8846 = vmatprep.subr.bf16.mxu0 %v13722_v11  ;;  %v13791_v9 = vld [vmem:[#allocation7 + $0x17ac] ss:$24 sps:$4 sm:$0xff]   ;;  %v13786_v11 = vld [vmem:[#allocation7 + $0x14a8] ss:$24 sps:$4 sm:$0xff]  }
 0x493   : > { %8887 = vmatprep.subr.bf16.mxu1 %v13725_v13  ;;  %v13789_v13 = vld [vmem:[#allocation7 + $0x17a8] ss:$24 sps:$4 sm:$0xff]  }
 0x495   : > { %8847 = vmatpush1.bf16.msra.mxu0 %v13720_v17  ;;  %v13794_v17 = vld [vmem:[#allocation7 + $0x14dc] ss:$24 sps:$4 sm:$0xff]  }
 0x496   : > { %8888 = vmatpush1.bf16.msra.mxu1 %v13723_v12  ;;  %8848 = vmatprep.subr.bf16.mxu0 %v13728_v18  ;;  %v13797_v12 = vld [vmem:[#allocation7 + $0x17dc] ss:$24 sps:$4 sm:$0xff]   ;;  %v13792_v18 = vld [vmem:[#allocation7 + $0x14d8] ss:$24 sps:$4 sm:$0xff]  }
 0x497   : > { %8889 = vmatprep.subr.bf16.mxu1 %v13731_v20  ;;  %v13795_v20 = vld [vmem:[#allocation7 + $0x17d8] ss:$24 sps:$4 sm:$0xff]  }
 0x499   : > { %8849 = vmatpush1.bf16.msra.mxu0 %v13726_v21  ;;  %v13800_v21 = vld [vmem:[#allocation7 + $0xc14] ss:$24 sps:$4 sm:$0xff]  }
 0x49a   : > { %8890 = vmatpush1.bf16.msra.mxu1 %v13729_v22  ;;  %8850 = vmatprep.subr.bf16.mxu0 %v13734_v24  ;;  %v13803_v22 = vld [vmem:[#allocation7 + $0xf14] ss:$24 sps:$4 sm:$0xff]   ;;  %v13798_v24 = vld [vmem:[#allocation7 + $0xc10] ss:$24 sps:$4 sm:$0xff]  }
 0x49b   : > { %8891 = vmatprep.subr.bf16.mxu1 %v13737_v26  ;;  %v13801_v26 = vld [vmem:[#allocation7 + $0xf10] ss:$24 sps:$4 sm:$0xff]  }
 0x49d   : > { %8851 = vmatpush1.bf16.msra.mxu0 %v13732_v27  ;;  %v13806_v27 = vld [vmem:[#allocation7 + $0xc44] ss:$24 sps:$4 sm:$0xff]  }
 0x49e   : > { %8892 = vmatpush1.bf16.msra.mxu1 %v13735_v29  ;;  %8852 = vmatprep.subr.bf16.mxu0 %v13740_v23  ;;  %v13809_v29 = vld [vmem:[#allocation7 + $0xf44] ss:$24 sps:$4 sm:$0xff]   ;;  %v13804_v23 = vld [vmem:[#allocation7 + $0xc40] ss:$24 sps:$4 sm:$0xff]  }
 0x49f   : > { %8893 = vmatprep.subr.bf16.mxu1 %v13743_v32  ;;  %v13807_v32 = vld [vmem:[#allocation7 + $0xf40] ss:$24 sps:$4 sm:$0xff]  }
 0x4a1   : > { %8853 = vmatpush1.bf16.msra.mxu0 %v13738_v35  ;;  %v13812_v35 = vld [vmem:[#allocation7 + $0xc74] ss:$24 sps:$4 sm:$0xff]  }
 0x4a2   : > { %8894 = vmatpush1.bf16.msra.mxu1 %v13741_v36  ;;  %8854 = vmatprep.subr.bf16.mxu0 %v13746_v37  ;;  %v13815_v36 = vld [vmem:[#allocation7 + $0xf74] ss:$24 sps:$4 sm:$0xff]   ;;  %v13810_v37 = vld [vmem:[#allocation7 + $0xc70] ss:$24 sps:$4 sm:$0xff]  }
 0x4a3   : > { %8895 = vmatprep.subr.bf16.mxu1 %v13749_v39  ;;  %v13813_v39 = vld [vmem:[#allocation7 + $0xf70] ss:$24 sps:$4 sm:$0xff]  }
 0x4a5   : > { %8855 = vmatpush1.bf16.msra.mxu0 %v13744_v40  ;;  %v13818_v40 = vld [vmem:[#allocation7 + $0xca4] ss:$24 sps:$4 sm:$0xff]  }
 0x4a6   : > { %8896 = vmatpush1.bf16.msra.mxu1 %v13747_v41  ;;  %8856 = vmatprep.subr.bf16.mxu0 %v13752_v42  ;;  %v13821_v41 = vld [vmem:[#allocation7 + $0xfa4] ss:$24 sps:$4 sm:$0xff]   ;;  %v13816_v42 = vld [vmem:[#allocation7 + $0xca0] ss:$24 sps:$4 sm:$0xff]  }
 0x4a7   : > { %8897 = vmatprep.subr.bf16.mxu1 %v13755_v25  ;;  %v13824_v25 = vld [vmem:[#allocation7 + $0xcd4] ss:$24 sps:$4 sm:$0xff]  }
 0x4a9   : > { %8857 = vmatpush1.bf16.msra.mxu0 %v13750_v43  ;;  %v13827_v43 = vld [vmem:[#allocation7 + $0xfd4] ss:$24 sps:$4 sm:$0xff]  }
 0x4aa   : > { %8898 = vmatpush1.bf16.msra.mxu1 %v13753_v44  ;;  %8858 = vmatprep.subr.bf16.mxu0 %v13758_v45  ;;  %v13825_v44 = vld [vmem:[#allocation7 + $0xfd0] ss:$24 sps:$4 sm:$0xff]   ;;  %v13830_v45 = vld [vmem:[#allocation7 + $0xd04] ss:$24 sps:$4 sm:$0xff]  }
 0x4ab   : > { %8899 = vmatprep.subr.bf16.mxu1 %v13761_v46  ;;  %v13833_v46 = vld [vmem:[#allocation7 + $0x1004] ss:$24 sps:$4 sm:$0xff]  }
 0x4ad   : > { %8859 = vmatpush1.bf16.msra.mxu0 %v13756_v47  ;;  %v13828_v47 = vld [vmem:[#allocation7 + $0xd00] ss:$24 sps:$4 sm:$0xff]  }
 0x4ae   : > { %8900 = vmatpush1.bf16.msra.mxu1 %v13759_v38  ;;  %8860 = vmatprep.subr.bf16.mxu0 %v13764_v48  ;;  %v13831_v38 = vld [vmem:[#allocation7 + $0x1000] ss:$24 sps:$4 sm:$0xff]   ;;  %v13836_v48 = vld [vmem:[#allocation7 + $0xd34] ss:$24 sps:$4 sm:$0xff]  }
 0x4af   : > { %8901 = vmatprep.subr.bf16.mxu1 %v13767_v49  ;;  %v13839_v49 = vld [vmem:[#allocation7 + $0x1034] ss:$24 sps:$4 sm:$0xff]  }
 0x4b1   : > { %8861 = vmatpush1.bf16.msra.mxu0 %v13762_v51  ;;  %v13834_v51 = vld [vmem:[#allocation7 + $0xd30] ss:$24 sps:$4 sm:$0xff]  }
 0x4b2   : > { %8902 = vmatpush1.bf16.msra.mxu1 %v13765_v34  ;;  %8862 = vmatprep.subr.bf16.mxu0 %v13770_v52  ;;  %v13837_v34 = vld [vmem:[#allocation7 + $0x1030] ss:$24 sps:$4 sm:$0xff]   ;;  %v13842_v52 = vld [vmem:[#allocation7 + $0xd64] ss:$24 sps:$4 sm:$0xff]  }
 0x4b3   : > { %8903 = vmatprep.subr.bf16.mxu1 %v13773_v57  ;;  %v13845_v57 = vld [vmem:[#allocation7 + $0x1064] ss:$24 sps:$4 sm:$0xff]  }
 0x4b5   : > { %8863 = vmatpush1.bf16.msra.mxu0 %v13768_v54  ;;  %v13840_v54 = vld [vmem:[#allocation7 + $0xd60] ss:$24 sps:$4 sm:$0xff]  }
 0x4b6   : > { %8904 = vmatpush1.bf16.msra.mxu1 %v13771_v59  ;;  %8864 = vmatprep.subr.bf16.mxu0 %v13776_v60  ;;  %v13843_v59 = vld [vmem:[#allocation7 + $0x1060] ss:$24 sps:$4 sm:$0xff]   ;;  %v13848_v60 = vld [vmem:[#allocation7 + $0xd94] ss:$24 sps:$4 sm:$0xff]  }
 0x4b7   : > { %8905 = vmatprep.subr.bf16.mxu1 %v13779_v55  ;;  %v13851_v55 = vld [vmem:[#allocation7 + $0x1094] ss:$24 sps:$4 sm:$0xff]  }
 0x4b9   : > { %8865 = vmatpush1.bf16.msra.mxu0 %v13774_v58  ;;  %v13846_v58 = vld [vmem:[#allocation7 + $0xd90] ss:$24 sps:$4 sm:$0xff]  }
 0x4ba   : > { %8906 = vmatpush1.bf16.msra.mxu1 %v13777_v62  ;;  %8866 = vmatprep.subr.bf16.mxu0 %v13782_v63  ;;  %v13849_v62 = vld [vmem:[#allocation7 + $0x1090] ss:$24 sps:$4 sm:$0xff]   ;;  %v13854_v63 = vld [vmem:[#allocation7 + $0xdc4] ss:$24 sps:$4 sm:$0xff]  }
 0x4bb   : > { %8907 = vmatprep.subr.bf16.mxu1 %v13785_v1  ;;  %v13857_v1 = vld [vmem:[#allocation7 + $0x10c4] ss:$24 sps:$4 sm:$0xff]  }
 0x4bd   : > { %8867 = vmatpush1.bf16.msra.mxu0 %v13780_v2  ;;  %v13852_v2 = vld [vmem:[#allocation7 + $0xdc0] ss:$24 sps:$4 sm:$0xff]  }
 0x4be   : > { %8908 = vmatpush1.bf16.msra.mxu1 %v13783_v6  ;;  %8868 = vmatprep.subr.bf16.mxu0 %v13788_v7  ;;  %v13855_v6 = vld [vmem:[#allocation7 + $0x10c0] ss:$24 sps:$4 sm:$0xff]   ;;  %v13860_v7 = vld [vmem:[#allocation7 + $0xdf4] ss:$24 sps:$4 sm:$0xff]  }
 0x4bf   : > { %8909 = vmatprep.subr.bf16.mxu1 %v13791_v9  ;;  %v13863_v9 = vld [vmem:[#allocation7 + $0x10f4] ss:$24 sps:$4 sm:$0xff]  }
 0x4c1   : > { %8869 = vmatpush1.bf16.msra.mxu0 %v13786_v11  ;;  %v13858_v11 = vld [vmem:[#allocation7 + $0xdf0] ss:$24 sps:$4 sm:$0xff]  }
 0x4c2   : > { %8910 = vmatpush1.bf16.msra.mxu1 %v13789_v13  ;;  %8870 = vmatprep.subr.bf16.mxu0 %v13794_v17  ;;  %v13861_v13 = vld [vmem:[#allocation7 + $0x10f0] ss:$24 sps:$4 sm:$0xff]   ;;  %v13866_v17 = vld [vmem:[#allocation7 + $0xe24] ss:$24 sps:$4 sm:$0xff]  }
 0x4c3   : > { %8911 = vmatprep.subr.bf16.mxu1 %v13797_v12  ;;  %v13869_v12 = vld [vmem:[#allocation7 + $0x1124] ss:$24 sps:$4 sm:$0xff]  }
 0x4c5   : > { %8871 = vmatpush1.bf16.msra.mxu0 %v13792_v18  ;;  %v13864_v18 = vld [vmem:[#allocation7 + $0xe20] ss:$24 sps:$4 sm:$0xff]  }
 0x4c6   : > { %8912 = vmatpush1.bf16.msra.mxu1 %v13795_v20  ;;  %8922 = vmatprep.subr.bf16.mxu0 %v13800_v21  ;;  %v13867_v20 = vld [vmem:[#allocation7 + $0x1120] ss:$24 sps:$4 sm:$0xff]   ;;  %v13872_v21 = vld [vmem:[#allocation7 + $0xe54] ss:$24 sps:$4 sm:$0xff]  }
 0x4c7   : > { %8963 = vmatprep.subr.bf16.mxu1 %v13803_v22  ;;  %v13875_v22 = vld [vmem:[#allocation7 + $0x1154] ss:$24 sps:$4 sm:$0xff]  }
 0x4c8   : > { %8873 = vmatmul.mubr.bf16.vlgmr.msra.gmra.mrb[28].mxu0 %v15057_v30 }
 0x4c9   : > { %8914 = vmatmul.mubr.bf16.vlgmr.msra.gmra.mrb[28].mxu1 %v15061_v33  ;;  %8923 = vmatpush1.bf16.msra.mxu0 %v13798_v24  ;;  %v13870_v24 = vld [vmem:[#allocation7 + $0xe50] ss:$24 sps:$4 sm:$0xff]  }
 0x4ca   : > { %8954 = vmatprep.mubr.bf16.mxu0 %v15041_v8  ;;  %8964 = vmatpush1.bf16.msra.mxu1 %v13801_v26  ;;  %v13819_v8 = vld [vmem:[#allocation7 + $0xfa0] ss:$24 sps:$4 sm:$0xff]   ;;  %v13873_v26 = vld [vmem:[#allocation7 + $0x1150] ss:$24 sps:$4 sm:$0xff]  }
 0x4cb   : > { %8995 = vmatprep.mubr.bf16.mxu1 %v15043_v14  ;;  %8924 = vmatprep.subr.bf16.mxu0 %v13806_v27  ;;  %v13822_v14 = vld [vmem:[#allocation7 + $0xcd0] ss:$24 sps:$4 sm:$0xff]   ;;  %v13878_v27 = vld [vmem:[#allocation7 + $0xe84] ss:$24 sps:$4 sm:$0xff]  }
 0x4cc   : > { %8965 = vmatprep.subr.bf16.mxu1 %v13809_v29  ;;  %v13881_v29 = vld [vmem:[#allocation7 + $0x1184] ss:$24 sps:$4 sm:$0xff]  }
 0x4cd   : > { %8925 = vmatpush1.bf16.msra.mxu0 %v13804_v23  ;;  %v13876_v23 = vld [vmem:[#allocation7 + $0xe80] ss:$24 sps:$4 sm:$0xff]  }
 0x4ce   : > { %8966 = vmatpush1.bf16.msra.mxu1 %v13807_v32  ;;  %8926 = vmatprep.subr.bf16.mxu0 %v13812_v35  ;;  %v13879_v32 = vld [vmem:[#allocation7 + $0x1180] ss:$24 sps:$4 sm:$0xff]   ;;  %v13884_v35 = vld [vmem:[#allocation7 + $0xeb4] ss:$24 sps:$4 sm:$0xff]  }
 0x4cf   : > { %8967 = vmatprep.subr.bf16.mxu1 %v13815_v36  ;;  %v13887_v36 = vld [vmem:[#allocation7 + $0x11b4] ss:$24 sps:$4 sm:$0xff]  }
 0x4d1   : > { %8927 = vmatpush1.bf16.msra.mxu0 %v13810_v37  ;;  %v13882_v37 = vld [vmem:[#allocation7 + $0xeb0] ss:$24 sps:$4 sm:$0xff]  }
 0x4d2   : > { %8968 = vmatpush1.bf16.msra.mxu1 %v13813_v39  ;;  %8928 = vmatprep.subr.bf16.mxu0 %v13818_v40  ;;  %v13885_v39 = vld [vmem:[#allocation7 + $0x11b0] ss:$24 sps:$4 sm:$0xff]   ;;  %v13890_v40 = vld [vmem:[#allocation7 + $0xee4] ss:$24 sps:$4 sm:$0xff]  }
 0x4d3   : > { %8969 = vmatprep.subr.bf16.mxu1 %v13821_v41  ;;  %v13893_v41 = vld [vmem:[#allocation7 + $0x11e4] ss:$24 sps:$4 sm:$0xff]  }
 0x4d5   : > { %8929 = vmatpush1.bf16.msra.mxu0 %v13816_v42  ;;  %v13888_v42 = vld [vmem:[#allocation7 + $0xee0] ss:$24 sps:$4 sm:$0xff]  }
 0x4d6   : > { %8970 = vmatpush1.bf16.msra.mxu1 %v13819_v8  ;;  %8930 = vmatprep.subr.bf16.mxu0 %v13824_v25  ;;  %v13891_v8 = vld [vmem:[#allocation7 + $0x11e0] ss:$24 sps:$4 sm:$0xff]   ;;  %v13896_v25 = vld [vmem:[#allocation7 + $0x1214] ss:$24 sps:$4 sm:$0xff]  }
 0x4d7   : > { %8971 = vmatprep.subr.bf16.mxu1 %v13827_v43  ;;  %v13899_v43 = vld [vmem:[#allocation7 + $0x1514] ss:$24 sps:$4 sm:$0xff]  }
 0x4d9   : > { %8931 = vmatpush1.bf16.msra.mxu0 %v13822_v14  ;;  %v13894_v14 = vld [vmem:[#allocation7 + $0x1210] ss:$24 sps:$4 sm:$0xff]  }
 0x4da   : > { %8972 = vmatpush1.bf16.msra.mxu1 %v13825_v44  ;;  %8932 = vmatprep.subr.bf16.mxu0 %v13830_v45  ;;  %v13897_v44 = vld [vmem:[#allocation7 + $0x1510] ss:$24 sps:$4 sm:$0xff]   ;;  %v13902_v45 = vld [vmem:[#allocation7 + $0x1244] ss:$24 sps:$4 sm:$0xff]  }
 0x4db   : > { %8973 = vmatprep.subr.bf16.mxu1 %v13833_v46  ;;  %v13905_v46 = vld [vmem:[#allocation7 + $0x1544] ss:$24 sps:$4 sm:$0xff]  }
 0x4dd   : > { %8933 = vmatpush1.bf16.msra.mxu0 %v13828_v47  ;;  %v13900_v47 = vld [vmem:[#allocation7 + $0x1240] ss:$24 sps:$4 sm:$0xff]  }
 0x4de   : > { %8974 = vmatpush1.bf16.msra.mxu1 %v13831_v38  ;;  %8934 = vmatprep.subr.bf16.mxu0 %v13836_v48  ;;  %v13903_v38 = vld [vmem:[#allocation7 + $0x1540] ss:$24 sps:$4 sm:$0xff]   ;;  %v13908_v48 = vld [vmem:[#allocation7 + $0x1274] ss:$24 sps:$4 sm:$0xff]  }
 0x4df   : > { %8975 = vmatprep.subr.bf16.mxu1 %v13839_v49  ;;  %v13911_v49 = vld [vmem:[#allocation7 + $0x1574] ss:$24 sps:$4 sm:$0xff]  }
 0x4e1   : > { %8935 = vmatpush1.bf16.msra.mxu0 %v13834_v51  ;;  %v13906_v51 = vld [vmem:[#allocation7 + $0x1270] ss:$24 sps:$4 sm:$0xff]  }
 0x4e2   : > { %8976 = vmatpush1.bf16.msra.mxu1 %v13837_v34  ;;  %8936 = vmatprep.subr.bf16.mxu0 %v13842_v52  ;;  %v13914_v34 = vld [vmem:[#allocation7 + $0x12a4] ss:$24 sps:$4 sm:$0xff]   ;;  %v13912_v52 = vld [vmem:[#allocation7 + $0x12a0] ss:$24 sps:$4 sm:$0xff]  }
 0x4e3   : > { %8977 = vmatprep.subr.bf16.mxu1 %v13845_v57  ;;  %v13920_v57 = vld [vmem:[#allocation7 + $0x12d4] ss:$24 sps:$4 sm:$0xff]  }
 0x4e5   : > { %8937 = vmatpush1.bf16.msra.mxu0 %v13840_v54  ;;  %v13923_v54 = vld [vmem:[#allocation7 + $0x15d4] ss:$24 sps:$4 sm:$0xff]  }
 0x4e6   : > { %8978 = vmatpush1.bf16.msra.mxu1 %v13843_v59  ;;  %8938 = vmatprep.subr.bf16.mxu0 %v13848_v60  ;;  %v13921_v59 = vld [vmem:[#allocation7 + $0x15d0] ss:$24 sps:$4 sm:$0xff]   ;;  %v13926_v60 = vld [vmem:[#allocation7 + $0x1304] ss:$24 sps:$4 sm:$0xff]  }
 0x4e7   : > { %8979 = vmatprep.subr.bf16.mxu1 %v13851_v55  ;;  %v13929_v55 = vld [vmem:[#allocation7 + $0x1604] ss:$24 sps:$4 sm:$0xff]  }
 0x4e9   : > { %8939 = vmatpush1.bf16.msra.mxu0 %v13846_v58  ;;  %v13924_v58 = vld [vmem:[#allocation7 + $0x1300] ss:$24 sps:$4 sm:$0xff]  }
 0x4ea   : > { %8980 = vmatpush1.bf16.msra.mxu1 %v13849_v62  ;;  %8940 = vmatprep.subr.bf16.mxu0 %v13854_v63  ;;  %v13927_v62 = vld [vmem:[#allocation7 + $0x1600] ss:$24 sps:$4 sm:$0xff]   ;;  %v13932_v63 = vld [vmem:[#allocation7 + $0x1334] ss:$24 sps:$4 sm:$0xff]  }
 0x4eb   : > { %8981 = vmatprep.subr.bf16.mxu1 %v13857_v1 }
 0x4ed   : > { %8941 = vmatpush1.bf16.msra.mxu0 %v13852_v2  ;;  %v13935_v2 = vld [vmem:[#allocation7 + $0x1634] ss:$24 sps:$4 sm:$0xff]  }
 0x4ee   : > { %8982 = vmatpush1.bf16.msra.mxu1 %v13855_v6  ;;  %8942 = vmatprep.subr.bf16.mxu0 %v13860_v7 }
 0x4ef   : > { %8983 = vmatprep.subr.bf16.mxu1 %v13863_v9 }
 0x4f1   : > { %8943 = vmatpush1.bf16.msra.mxu0 %v13858_v11 }
 0x4f2   : > { %8984 = vmatpush1.bf16.msra.mxu1 %v13861_v13  ;;  %8944 = vmatprep.subr.bf16.mxu0 %v13866_v17 }
 0x4f3   : > { %8985 = vmatprep.subr.bf16.mxu1 %v13869_v12  ;;  %v13930_v12 = vld [vmem:[#allocation7 + $0x1330] ss:$24 sps:$4 sm:$0xff]  }
 0x4f5   : > { %8945 = vmatpush1.bf16.msra.mxu0 %v13864_v18 }
 0x4f6   : > { %8986 = vmatpush1.bf16.msra.mxu1 %v13867_v20  ;;  %8946 = vmatprep.subr.bf16.mxu0 %v13872_v21 }
 0x4f7   : > { %8987 = vmatprep.subr.bf16.mxu1 %v13875_v22  ;;  %v13933_v22 = vld [vmem:[#allocation7 + $0x1630] ss:$24 sps:$4 sm:$0xff]  }
 0x4f9   : > { %8947 = vmatpush1.bf16.msra.mxu0 %v13870_v24  ;;  %v13938_v24 = vld [vmem:[#allocation7 + $0x1364] ss:$24 sps:$4 sm:$0xff]  }
 0x4fa   : > { %8988 = vmatpush1.bf16.msra.mxu1 %v13873_v26  ;;  %8948 = vmatprep.subr.bf16.mxu0 %v13878_v27 }
 0x4fb   : > { %8989 = vmatprep.subr.bf16.mxu1 %v13881_v29  ;;  %v13936_v29 = vld [vmem:[#allocation7 + $0x1360] ss:$24 sps:$4 sm:$0xff]  }
 0x4fd   : > { %8949 = vmatpush1.bf16.msra.mxu0 %v13876_v23  ;;  %v13944_v23 = vld [vmem:[#allocation7 + $0x1394] ss:$24 sps:$4 sm:$0xff]  }
 0x4fe   : > { %8990 = vmatpush1.bf16.msra.mxu1 %v13879_v32  ;;  %8950 = vmatprep.subr.bf16.mxu0 %v13884_v35  ;;  %v13947_v32 = vld [vmem:[#allocation7 + $0x1694] ss:$24 sps:$4 sm:$0xff]   ;;  %v13942_v35 = vld [vmem:[#allocation7 + $0x1390] ss:$24 sps:$4 sm:$0xff]  }
 0x4ff   : > { %8991 = vmatprep.subr.bf16.mxu1 %v13887_v36  ;;  %v13945_v36 = vld [vmem:[#allocation7 + $0x1690] ss:$24 sps:$4 sm:$0xff]  }
 0x501   : > { %8951 = vmatpush1.bf16.msra.mxu0 %v13882_v37  ;;  %v13950_v37 = vld [vmem:[#allocation7 + $0x13c4] ss:$24 sps:$4 sm:$0xff]  }
 0x502   : > { %8992 = vmatpush1.bf16.msra.mxu1 %v13885_v39  ;;  %8952 = vmatprep.subr.bf16.mxu0 %v13890_v40  ;;  %v13953_v39 = vld [vmem:[#allocation7 + $0x16c4] ss:$24 sps:$4 sm:$0xff]   ;;  %v13948_v40 = vld [vmem:[#allocation7 + $0x13c0] ss:$24 sps:$4 sm:$0xff]  }
 0x503   : > { %8993 = vmatprep.subr.bf16.mxu1 %v13893_v41  ;;  %v13951_v41 = vld [vmem:[#allocation7 + $0x16c0] ss:$24 sps:$4 sm:$0xff]  }
 0x505   : > { %8953 = vmatpush1.bf16.msra.mxu0 %v13888_v42  ;;  %v13956_v42 = vld [vmem:[#allocation7 + $0x13f4] ss:$24 sps:$4 sm:$0xff]  }
 0x506   : > { %8994 = vmatpush1.bf16.msra.mxu1 %v13891_v8  ;;  %9004 = vmatprep.subr.bf16.mxu0 %v13896_v25  ;;  %v13959_v8 = vld [vmem:[#allocation7 + $0x16f4] ss:$24 sps:$4 sm:$0xff]   ;;  %v13954_v25 = vld [vmem:[#allocation7 + $0x13f0] ss:$24 sps:$4 sm:$0xff]  }
 0x507   : > { %9045 = vmatprep.subr.bf16.mxu1 %v13899_v43  ;;  %v13957_v43 = vld [vmem:[#allocation7 + $0x16f0] ss:$24 sps:$4 sm:$0xff]  }
 0x508   : > { %8955 = vmatmul.mubr.bf16.vlgmr.msra.gmra.mrb[32].mxu0 %v15049_v56  ;;  %v13909_v56 = vld [vmem:[#allocation7 + $0x1570] ss:$24 sps:$4 sm:$0xff]  }
 0x509   : > { %8996 = vmatmul.mubr.bf16.vlgmr.msra.gmra.mrb[32].mxu1 %v15051_v61  ;;  %9005 = vmatpush1.bf16.msra.mxu0 %v13894_v14  ;;  %v13917_v61 = vld [vmem:[#allocation7 + $0x15a4] ss:$24 sps:$4 sm:$0xff]  }
 0x50a   : > { %9036 = vmatprep.mubr.bf16.mxu0 %v15055_v28  ;;  %9046 = vmatpush1.bf16.msra.mxu1 %v13897_v44  ;;  %v13915_v28 = vld [vmem:[#allocation7 + $0x15a0] ss:$24 sps:$4 sm:$0xff]   ;;  %v13962_v14 = vld [vmem:[#allocation7 + $0x1424] ss:$24 sps:$4 sm:$0xff]  }
 0x50b   : > { %9077 = vmatprep.mubr.bf16.mxu1 %v15059_v31  ;;  %9006 = vmatprep.subr.bf16.mxu0 %v13902_v45  ;;  %v13918_v31 = vld [vmem:[#allocation7 + $0x12d0] ss:$24 sps:$4 sm:$0xff]   ;;  %v13965_v44 = vld [vmem:[#allocation7 + $0x1724] ss:$24 sps:$4 sm:$0xff]   ;;  %v13960_v45 = vld [vmem:[#allocation7 + $0x1420] ss:$24 sps:$4 sm:$0xff]  }
 0x50c   : > { %9047 = vmatprep.subr.bf16.mxu1 %v13905_v46  ;;  %v13963_v46 = vld [vmem:[#allocation7 + $0x1720] ss:$24 sps:$4 sm:$0xff]  }
 0x50d   : > { %9007 = vmatpush1.bf16.msra.mxu0 %v13900_v47  ;;  %v13968_v47 = vld [vmem:[#allocation7 + $0x1454] ss:$24 sps:$4 sm:$0xff]  }
 0x50e   : > { %9048 = vmatpush1.bf16.msra.mxu1 %v13903_v38  ;;  %9008 = vmatprep.subr.bf16.mxu0 %v13908_v48  ;;  %v13971_v38 = vld [vmem:[#allocation7 + $0x1754] ss:$24 sps:$4 sm:$0xff]   ;;  %v13966_v48 = vld [vmem:[#allocation7 + $0x1450] ss:$24 sps:$4 sm:$0xff]  }
 0x50f   : > { %9049 = vmatprep.subr.bf16.mxu1 %v13911_v49  ;;  %v13969_v49 = vld [vmem:[#allocation7 + $0x1750] ss:$24 sps:$4 sm:$0xff]  }
 0x511   : > { %9009 = vmatpush1.bf16.msra.mxu0 %v13906_v51  ;;  %v13974_v51 = vld [vmem:[#allocation7 + $0x1484] ss:$24 sps:$4 sm:$0xff]  }
 0x512   : > { %9050 = vmatpush1.bf16.msra.mxu1 %v13909_v56  ;;  %9010 = vmatprep.subr.bf16.mxu0 %v13914_v34  ;;  %v13977_v56 = vld [vmem:[#allocation7 + $0x1784] ss:$24 sps:$4 sm:$0xff]   ;;  %v13972_v34 = vld [vmem:[#allocation7 + $0x1480] ss:$24 sps:$4 sm:$0xff]  }
 0x513   : > { %9051 = vmatprep.subr.bf16.mxu1 %v13917_v61  ;;  %v13975_v61 = vld [vmem:[#allocation7 + $0x1780] ss:$24 sps:$4 sm:$0xff]  }
 0x515   : > { %9011 = vmatpush1.bf16.msra.mxu0 %v13912_v52  ;;  %v13980_v52 = vld [vmem:[#allocation7 + $0x14b4] ss:$24 sps:$4 sm:$0xff]  }
 0x516   : > { %9052 = vmatpush1.bf16.msra.mxu1 %v13915_v28  ;;  %9012 = vmatprep.subr.bf16.mxu0 %v13920_v57  ;;  %v13983_v28 = vld [vmem:[#allocation7 + $0x17b4] ss:$24 sps:$4 sm:$0xff]   ;;  %v13978_v57 = vld [vmem:[#allocation7 + $0x14b0] ss:$24 sps:$4 sm:$0xff]  }
 0x517   : > { %9053 = vmatprep.subr.bf16.mxu1 %v13923_v54  ;;  %v13981_v54 = vld [vmem:[#allocation7 + $0x17b0] ss:$24 sps:$4 sm:$0xff]  }
 0x519   : > { %9013 = vmatpush1.bf16.msra.mxu0 %v13918_v31  ;;  %v13986_v31 = vld [vmem:[#allocation7 + $0x14e4] ss:$24 sps:$4 sm:$0xff]  }
 0x51a   : > { %9054 = vmatpush1.bf16.msra.mxu1 %v13921_v59  ;;  %9014 = vmatprep.subr.bf16.mxu0 %v13926_v60  ;;  %v13989_v59 = vld [vmem:[#allocation7 + $0x17e4] ss:$24 sps:$4 sm:$0xff]   ;;  %v13984_v60 = vld [vmem:[#allocation7 + $0x14e0] ss:$24 sps:$4 sm:$0xff]  }
 0x51b   : > { %v8710_v1 = vpop.f32.mrb[20].mxu0  ;;  %9055 = vmatprep.subr.bf16.mxu1 %v13929_v55  ;;  %v8751_v7 = vpop.f32.mrb[20].mxu1  ;;  %v13987_v55 = vld [vmem:[#allocation7 + $0x17e0] ss:$24 sps:$4 sm:$0xff]  }
 0x51c   : > { %v8711_v6 = vadd.f32 %v8710_v1, %v15069_v50  ;;  %v8712_v9 = vpop.f32.mrb[21].mxu0  ;;  %v8753_v13 = vpop.f32.mrb[21].mxu1  ;;  %v13941_v50 = vld [vmem:[#allocation7 + $0x1664] ss:$24 sps:$4 sm:$0xff]   ;;  %v3081_v1 = vmax.f32 %v15005_v5, 0.0 }
 0x51d   : > { %v8713_v11 = vadd.f32 %v8712_v9, %v15071_v53  ;;  %9015 = vmatpush1.bf16.msra.mxu0 %v13924_v58  ;;  %v8714_v17 = vpop.f32.mrb[22].mxu0  ;;  %v8755_v20 = vpop.f32.mrb[22].mxu1  ;;  %v13939_v53 = vld [vmem:[#allocation7 + $0x1660] ss:$24 sps:$4 sm:$0xff]   ;;  %v13992_v58 = vld [vmem:[#allocation7 + $0x4] ss:$24 sps:$4 sm:$0xff]  }
 0x51e   : > { %v15087_v18 = vadd.f32 %v8751_v7, %v8711_v6  ;;  %9056 = vmatpush1.bf16.msra.mxu1 %v13927_v62  ;;  %v8715_v21 = vpop.f32.mrb[23].mxu0  ;;  %9016 = vmatprep.subr.bf16.mxu0 %v13932_v63  ;;  %v8756_v27 = vpop.f32.mrb[23].mxu1  ;;  %v13995_v62 = vld [vmem:[#allocation7 + $0x304] ss:$24 sps:$4 sm:$0xff]   ;;  %v3079_v63 = vmax.f32 %v15003_v4, 0.0 }
 0x51f   : > { %v15089_v26 = vadd.f32 %v8753_v13, %v8713_v11  ;;  %9057 = vmatprep.subr.bf16.mxu1 %v13935_v2  ;;  %v13990_v2 = vld [vmem:[#allocation7] ss:$24 sps:$4 sm:$0xff]   ;;  %v13998_v7 = vld [vmem:[#allocation7 + $0x34] ss:$24 sps:$4 sm:$0xff]   ;;  %v15096_v13 = vpack.c.bf16 %v3081_v1, %v3081_v1  ;;  %v13996_v4 = vld [vmem:[#allocation7 + $0x30] ss:$24 sps:$4 sm:$0xff]  }
 0x520   : > { %v13993_v6 = vld [vmem:[#allocation7 + $0x300] ss:$24 sps:$4 sm:$0xff]   ;;  %v15093_v9 = vpack.c.bf16 %v3079_v63, %v3079_v63  ;;  %v14001_v11 = vld [vmem:[#allocation7 + $0x334] ss:$24 sps:$4 sm:$0xff]   ;;  %v13999_v5 = vld [vmem:[#allocation7 + $0x330] ss:$24 sps:$4 sm:$0xff]  }
 0x521   : > { %9017 = vmatpush1.bf16.msra.mxu0 %v13930_v12  ;;  %v14004_v17 = vld [vmem:[#allocation7 + $0x64] ss:$24 sps:$4 sm:$0xff]   ;;  %v14002_v20 = vld [vmem:[#allocation7 + $0x60] ss:$24 sps:$4 sm:$0xff]   ;;  %v14010_v21 = vld [vmem:[#allocation7 + $0x94] ss:$24 sps:$4 sm:$0xff]  }
 0x522   : > { %9058 = vmatpush1.bf16.msra.mxu1 %v13933_v22  ;;  %9018 = vmatprep.subr.bf16.mxu0 %v13938_v24  ;;  %v14007_v12 = vld [vmem:[#allocation7 + $0x364] ss:$24 sps:$4 sm:$0xff]   ;;  %v14008_v22 = vld [vmem:[#allocation7 + $0x90] ss:$24 sps:$4 sm:$0xff]   ;;  %v14058_v63 = vld [vmem:[#allocation7 + $0x214] ss:$24 sps:$4 sm:$0xff]  }
 0x523   : > { %9059 = vmatprep.subr.bf16.mxu1 %v13941_v50  ;;  %v14011_v24 = vld [vmem:[#allocation7 + $0x390] ss:$24 sps:$4 sm:$0xff]   ;;  %v14016_v27 = vld [vmem:[#allocation7 + $0xc4] ss:$24 sps:$4 sm:$0xff]   ;;  %v14061_v1 = vld [vmem:[#allocation7 + $0x514] ss:$24 sps:$4 sm:$0xff]  }
 0x524   : > { %v14019_v50 = vld [vmem:[#allocation7 + $0x3c4] ss:$24 sps:$4 sm:$0xff]  }
 0x525   : > { %9019 = vmatpush1.bf16.msra.mxu0 %v13936_v29  ;;  %v14014_v29 = vld [vmem:[#allocation7 + $0xc0] ss:$24 sps:$4 sm:$0xff]  }
 0x526   : > { %9060 = vmatpush1.bf16.msra.mxu1 %v13939_v53  ;;  %9020 = vmatprep.subr.bf16.mxu0 %v13944_v23  ;;  %v14017_v53 = vld [vmem:[#allocation7 + $0x3c0] ss:$24 sps:$4 sm:$0xff]   ;;  %v14022_v23 = vld [vmem:[#allocation7 + $0xf4] ss:$24 sps:$4 sm:$0xff]  }
 0x527   : > { %9061 = vmatprep.subr.bf16.mxu1 %v13947_v32  ;;  %v14025_v32 = vld [vmem:[#allocation7 + $0x3f4] ss:$24 sps:$4 sm:$0xff]  }
 0x529   : > { %9021 = vmatpush1.bf16.msra.mxu0 %v13942_v35  ;;  %v14020_v35 = vld [vmem:[#allocation7 + $0xf0] ss:$24 sps:$4 sm:$0xff]  }
 0x52a   : > { %9062 = vmatpush1.bf16.msra.mxu1 %v13945_v36  ;;  %9022 = vmatprep.subr.bf16.mxu0 %v13950_v37  ;;  %v14023_v36 = vld [vmem:[#allocation7 + $0x3f0] ss:$24 sps:$4 sm:$0xff]   ;;  %v14028_v37 = vld [vmem:[#allocation7 + $0x124] ss:$24 sps:$4 sm:$0xff]  }
 0x52b   : > { %9063 = vmatprep.subr.bf16.mxu1 %v13953_v39 }
 0x52d   : > { %9023 = vmatpush1.bf16.msra.mxu0 %v13948_v40  ;;  %v14031_v40 = vld [vmem:[#allocation7 + $0x424] ss:$24 sps:$4 sm:$0xff]  }
 0x52e   : > { %9064 = vmatpush1.bf16.msra.mxu1 %v13951_v41  ;;  %9024 = vmatprep.subr.bf16.mxu0 %v13956_v42 }
 0x52f   : > { %9065 = vmatprep.subr.bf16.mxu1 %v13959_v8 }
 0x531   : > { %9025 = vmatpush1.bf16.msra.mxu0 %v13954_v25 }
 0x532   : > { %9066 = vmatpush1.bf16.msra.mxu1 %v13957_v43  ;;  %9026 = vmatprep.subr.bf16.mxu0 %v13962_v14  ;;  %v14026_v14 = vld [vmem:[#allocation7 + $0x120] ss:$24 sps:$4 sm:$0xff]  }
 0x533   : > { %9067 = vmatprep.subr.bf16.mxu1 %v13965_v44 }
 0x535   : > { %9027 = vmatpush1.bf16.msra.mxu0 %v13960_v45 }
 0x536   : > { %9068 = vmatpush1.bf16.msra.mxu1 %v13963_v46  ;;  %9028 = vmatprep.subr.bf16.mxu0 %v13968_v47  ;;  %v14029_v47 = vld [vmem:[#allocation7 + $0x420] ss:$24 sps:$4 sm:$0xff]  }
 0x537   : > { %9069 = vmatprep.subr.bf16.mxu1 %v13971_v38  ;;  %v14034_v38 = vld [vmem:[#allocation7 + $0x154] ss:$24 sps:$4 sm:$0xff]  }
 0x539   : > { %9029 = vmatpush1.bf16.msra.mxu0 %v13966_v48 }
 0x53a   : > { %9070 = vmatpush1.bf16.msra.mxu1 %v13969_v49  ;;  %9030 = vmatprep.subr.bf16.mxu0 %v13974_v51  ;;  %v14037_v49 = vld [vmem:[#allocation7 + $0x454] ss:$24 sps:$4 sm:$0xff]   ;;  %v14032_v51 = vld [vmem:[#allocation7 + $0x150] ss:$24 sps:$4 sm:$0xff]  }
 0x53b   : > { %9071 = vmatprep.subr.bf16.mxu1 %v13977_v56  ;;  %v14035_v56 = vld [vmem:[#allocation7 + $0x450] ss:$24 sps:$4 sm:$0xff]  }
 0x53d   : > { %9031 = vmatpush1.bf16.msra.mxu0 %v13972_v34  ;;  %v14040_v34 = vld [vmem:[#allocation7 + $0x184] ss:$24 sps:$4 sm:$0xff]  }
 0x53e   : > { %9072 = vmatpush1.bf16.msra.mxu1 %v13975_v61  ;;  %9032 = vmatprep.subr.bf16.mxu0 %v13980_v52  ;;  %v14043_v61 = vld [vmem:[#allocation7 + $0x484] ss:$24 sps:$4 sm:$0xff]   ;;  %v14038_v52 = vld [vmem:[#allocation7 + $0x180] ss:$24 sps:$4 sm:$0xff]  }
 0x53f   : > { %9073 = vmatprep.subr.bf16.mxu1 %v13983_v28  ;;  %v14041_v28 = vld [vmem:[#allocation7 + $0x480] ss:$24 sps:$4 sm:$0xff]  }
 0x541   : > { %9033 = vmatpush1.bf16.msra.mxu0 %v13978_v57  ;;  %v14046_v57 = vld [vmem:[#allocation7 + $0x1b4] ss:$24 sps:$4 sm:$0xff]  }
 0x542   : > { %9074 = vmatpush1.bf16.msra.mxu1 %v13981_v54  ;;  %9034 = vmatprep.subr.bf16.mxu0 %v13986_v31  ;;  %v14049_v54 = vld [vmem:[#allocation7 + $0x4b4] ss:$24 sps:$4 sm:$0xff]   ;;  %v14044_v31 = vld [vmem:[#allocation7 + $0x1b0] ss:$24 sps:$4 sm:$0xff]  }
 0x543   : > { %9075 = vmatprep.subr.bf16.mxu1 %v13989_v59  ;;  %v14047_v59 = vld [vmem:[#allocation7 + $0x4b0] ss:$24 sps:$4 sm:$0xff]  }
 0x545   : > { %9035 = vmatpush1.bf16.msra.mxu0 %v13984_v60  ;;  %v14052_v60 = vld [vmem:[#allocation7 + $0x1e4] ss:$24 sps:$4 sm:$0xff]  }
 0x546   : > { %9076 = vmatpush1.bf16.msra.mxu1 %v13987_v55  ;;  %11006 = vmatprep.subr.bf16.mxu0 %v13992_v58  ;;  %v14055_v55 = vld [vmem:[#allocation7 + $0x4e4] ss:$24 sps:$4 sm:$0xff]   ;;  %v14050_v58 = vld [vmem:[#allocation7 + $0x1e0] ss:$24 sps:$4 sm:$0xff]  }
 0x547   : > { %11047 = vmatprep.subr.bf16.mxu1 %v13995_v62  ;;  %v14053_v62 = vld [vmem:[#allocation7 + $0x4e0] ss:$24 sps:$4 sm:$0xff]  }
 0x548   : > { %9037 = vmatmul.mubr.bf16.vlgmr.msra.gmra.mrb[36].mxu0 %v15057_v30  ;;  %v14005_v30 = vld [vmem:[#allocation7 + $0x360] ss:$24 sps:$4 sm:$0xff]  }
 0x549   : > { %9078 = vmatmul.mubr.bf16.vlgmr.msra.gmra.mrb[36].mxu1 %v15061_v33  ;;  %11007 = vmatpush1.bf16.msra.mxu0 %v13990_v2  ;;  %v14013_v33 = vld [vmem:[#allocation7 + $0x394] ss:$24 sps:$4 sm:$0xff]   ;;  %v14056_v2 = vld [vmem:[#allocation7 + $0x210] ss:$24 sps:$4 sm:$0xff]  }
 0x54a   : > { %11038 = vmatprep.mubr.bf16.mxu0 %v15093_v9  ;;  %11048 = vmatpush1.bf16.msra.mxu1 %v13993_v6  ;;  %v14059_v6 = vld [vmem:[#allocation7 + $0x510] ss:$24 sps:$4 sm:$0xff]  }
 0x54b   : > { %11079 = vmatprep.mubr.bf16.mxu1 %v15096_v13  ;;  %11008 = vmatprep.subr.bf16.mxu0 %v13998_v7  ;;  %v14064_v7 = vld [vmem:[#allocation7 + $0x244] ss:$24 sps:$4 sm:$0xff]  }
 0x54c   : > { %11049 = vmatprep.subr.bf16.mxu1 %v14001_v11  ;;  %v14067_v11 = vld [vmem:[#allocation7 + $0x544] ss:$24 sps:$4 sm:$0xff]  }
 0x54d   : > { %11009 = vmatpush1.bf16.msra.mxu0 %v13996_v4  ;;  %v14062_v4 = vld [vmem:[#allocation7 + $0x240] ss:$24 sps:$4 sm:$0xff]  }
 0x54e   : > { %11050 = vmatpush1.bf16.msra.mxu1 %v13999_v5  ;;  %11010 = vmatprep.subr.bf16.mxu0 %v14004_v17  ;;  %v14065_v5 = vld [vmem:[#allocation7 + $0x540] ss:$24 sps:$4 sm:$0xff]   ;;  %v14070_v17 = vld [vmem:[#allocation7 + $0x274] ss:$24 sps:$4 sm:$0xff]  }
 0x54f   : > { %11051 = vmatprep.subr.bf16.mxu1 %v14007_v12  ;;  %v14073_v12 = vld [vmem:[#allocation7 + $0x574] ss:$24 sps:$4 sm:$0xff]  }
 0x551   : > { %11011 = vmatpush1.bf16.msra.mxu0 %v14002_v20  ;;  %v14068_v20 = vld [vmem:[#allocation7 + $0x270] ss:$24 sps:$4 sm:$0xff]  }
 0x552   : > { %11052 = vmatpush1.bf16.msra.mxu1 %v14005_v30  ;;  %11012 = vmatprep.subr.bf16.mxu0 %v14010_v21  ;;  %v14071_v30 = vld [vmem:[#allocation7 + $0x570] ss:$24 sps:$4 sm:$0xff]   ;;  %v14076_v21 = vld [vmem:[#allocation7 + $0x2a4] ss:$24 sps:$4 sm:$0xff]  }
 0x553   : > { %11053 = vmatprep.subr.bf16.mxu1 %v14013_v33  ;;  %v14079_v33 = vld [vmem:[#allocation7 + $0x5a4] ss:$24 sps:$4 sm:$0xff]  }
 0x555   : > { %11013 = vmatpush1.bf16.msra.mxu0 %v14008_v22  ;;  %v14074_v22 = vld [vmem:[#allocation7 + $0x2a0] ss:$24 sps:$4 sm:$0xff]  }
 0x556   : > { %11054 = vmatpush1.bf16.msra.mxu1 %v14011_v24  ;;  %11014 = vmatprep.subr.bf16.mxu0 %v14016_v27  ;;  %v14077_v24 = vld [vmem:[#allocation7 + $0x5a0] ss:$24 sps:$4 sm:$0xff]   ;;  %v14082_v27 = vld [vmem:[#allocation7 + $0x2d4] ss:$24 sps:$4 sm:$0xff]  }
 0x557   : > { %11055 = vmatprep.subr.bf16.mxu1 %v14019_v50  ;;  %v14085_v50 = vld [vmem:[#allocation7 + $0x5d4] ss:$24 sps:$4 sm:$0xff]  }
 0x559   : > { %11015 = vmatpush1.bf16.msra.mxu0 %v14014_v29  ;;  %v14080_v29 = vld [vmem:[#allocation7 + $0x2d0] ss:$24 sps:$4 sm:$0xff]  }
 0x55a   : > { %11056 = vmatpush1.bf16.msra.mxu1 %v14017_v53  ;;  %11016 = vmatprep.subr.bf16.mxu0 %v14022_v23  ;;  %v3078_v53 = vmax.f32 %v14999_v0, 0.0  ;;  %v14083_v23 = vld [vmem:[#allocation7 + $0x5d0] ss:$24 sps:$4 sm:$0xff]  }
 0x55b   : > { %v8792_v39 = vpop.f32.mrb[24].mxu0  ;;  %11057 = vmatprep.subr.bf16.mxu1 %v14025_v32  ;;  %v8833_v41 = vpop.f32.mrb[24].mxu1  ;;  %v14088_v32 = vld [vmem:[#allocation7 + $0x604] ss:$24 sps:$4 sm:$0xff]  }
 0x55c   : > { %v8794_v42 = vpop.f32.mrb[25].mxu0  ;;  %v15101_v8 = vadd.f32 %v8833_v41, %v8792_v39  ;;  %v8835_v25 = vpop.f32.mrb[25].mxu1  ;;  %v3085_v39 = vmax.f32 %v15025_v19, 0.0  ;;  %v15109_v41 = vpack.c.bf16 %v3078_v53, %v3078_v53  ;;  %v14095_v19 = vld [vmem:[#allocation7 + $0x930] ss:$24 sps:$4 sm:$0xff]  }
 0x55d   : > { %v8796_v43 = vpop.f32.mrb[26].mxu0  ;;  %11017 = vmatpush1.bf16.msra.mxu0 %v14020_v35  ;;  %v15103_v44 = vadd.f32 %v8835_v25, %v8794_v42  ;;  %v8837_v45 = vpop.f32.mrb[26].mxu1  ;;  %v3080_v35 = vmax.f32 %v15001_v3, 0.0  ;;  %v14089_v42 = vld [vmem:[#allocation7 + $0x900] ss:$24 sps:$4 sm:$0xff]  }
 0x55e   : > { %11058 = vmatpush1.bf16.msra.mxu1 %v14023_v36  ;;  %v8797_v46 = vpop.f32.mrb[27].mxu0  ;;  %11018 = vmatprep.subr.bf16.mxu0 %v14028_v37  ;;  %v8838_v48 = vpop.f32.mrb[27].mxu1  ;;  %v14091_v36 = vld [vmem:[#allocation7 + $0x904] ss:$24 sps:$4 sm:$0xff]   ;;  %v3083_v37 = vmax.f32 %v15023_v16, 0.0 }
 0x55f   : > { %11059 = vmatprep.subr.bf16.mxu1 %v14031_v40  ;;  %v14086_v40 = vld [vmem:[#allocation7 + $0x600] ss:$24 sps:$4 sm:$0xff]   ;;  %v15111_v0 = vpack.c.bf16 %v3080_v35, %v3080_v35  ;;  %v14094_v25 = vld [vmem:[#allocation7 + $0x634] ss:$24 sps:$4 sm:$0xff]   ;;  %v14092_v16 = vld [vmem:[#allocation7 + $0x630] ss:$24 sps:$4 sm:$0xff]  }
 0x560   : > { %v15113_v43 = vpack.c.bf16 %v3083_v37, %v3083_v37  ;;  %v14097_v3 = vld [vmem:[#allocation7 + $0x934] ss:$24 sps:$4 sm:$0xff]   ;;  %v14100_v45 = vld [vmem:[#allocation7 + $0x664] ss:$24 sps:$4 sm:$0xff]   ;;  %v14146_v37 = vld [vmem:[#allocation7 + $0x7e0] ss:$24 sps:$4 sm:$0xff]  }
 0x561   : > { %11019 = vmatpush1.bf16.msra.mxu0 %v14026_v14  ;;  %v15116_v14 = vpack.c.bf16 %v3085_v39, %v3085_v39  ;;  %v14103_v46 = vld [vmem:[#allocation7 + $0x964] ss:$24 sps:$4 sm:$0xff]   ;;  %v14106_v48 = vld [vmem:[#allocation7 + $0x694] ss:$24 sps:$4 sm:$0xff]   ;;  %v14149_v39 = vld [vmem:[#allocation7 + $0xae0] ss:$24 sps:$4 sm:$0xff]  }
 0x562   : > { %11060 = vmatpush1.bf16.msra.mxu1 %v14029_v47  ;;  %11020 = vmatprep.subr.bf16.mxu0 %v14034_v38  ;;  %v14098_v47 = vld [vmem:[#allocation7 + $0x660] ss:$24 sps:$4 sm:$0xff]   ;;  %v14145_v53 = vld [vmem:[#allocation7 + $0xab4] ss:$24 sps:$4 sm:$0xff]   ;;  %v14148_v35 = vld [vmem:[#allocation7 + $0x7e4] ss:$24 sps:$4 sm:$0xff]  }
 0x563   : > { %11061 = vmatprep.subr.bf16.mxu1 %v14037_v49  ;;  %v14101_v38 = vld [vmem:[#allocation7 + $0x960] ss:$24 sps:$4 sm:$0xff]   ;;  %v14109_v49 = vld [vmem:[#allocation7 + $0x994] ss:$24 sps:$4 sm:$0xff]  }
 0x565   : > { %11021 = vmatpush1.bf16.msra.mxu0 %v14032_v51  ;;  %v14104_v51 = vld [vmem:[#allocation7 + $0x690] ss:$24 sps:$4 sm:$0xff]  }
 0x566   : > { %11062 = vmatpush1.bf16.msra.mxu1 %v14035_v56  ;;  %11022 = vmatprep.subr.bf16.mxu0 %v14040_v34  ;;  %v14107_v56 = vld [vmem:[#allocation7 + $0x990] ss:$24 sps:$4 sm:$0xff]   ;;  %v14112_v34 = vld [vmem:[#allocation7 + $0x6c4] ss:$24 sps:$4 sm:$0xff]  }
 0x567   : > { %11063 = vmatprep.subr.bf16.mxu1 %v14043_v61  ;;  %v14115_v61 = vld [vmem:[#allocation7 + $0x9c4] ss:$24 sps:$4 sm:$0xff]  }
 0x569   : > { %11023 = vmatpush1.bf16.msra.mxu0 %v14038_v52  ;;  %v14110_v52 = vld [vmem:[#allocation7 + $0x6c0] ss:$24 sps:$4 sm:$0xff]  }
 0x56a   : > { %11064 = vmatpush1.bf16.msra.mxu1 %v14041_v28  ;;  %11024 = vmatprep.subr.bf16.mxu0 %v14046_v57  ;;  %v14113_v28 = vld [vmem:[#allocation7 + $0x9c0] ss:$24 sps:$4 sm:$0xff]   ;;  %v14118_v57 = vld [vmem:[#allocation7 + $0x6f4] ss:$24 sps:$4 sm:$0xff]  }
 0x56b   : > { %11065 = vmatprep.subr.bf16.mxu1 %v14049_v54  ;;  %v14121_v54 = vld [vmem:[#allocation7 + $0x9f4] ss:$24 sps:$4 sm:$0xff]  }
 0x56d   : > { %11025 = vmatpush1.bf16.msra.mxu0 %v14044_v31  ;;  %v14116_v31 = vld [vmem:[#allocation7 + $0x6f0] ss:$24 sps:$4 sm:$0xff]  }
 0x56e   : > { %11066 = vmatpush1.bf16.msra.mxu1 %v14047_v59  ;;  %11026 = vmatprep.subr.bf16.mxu0 %v14052_v60  ;;  %v14119_v59 = vld [vmem:[#allocation7 + $0x9f0] ss:$24 sps:$4 sm:$0xff]   ;;  %v14124_v60 = vld [vmem:[#allocation7 + $0x724] ss:$24 sps:$4 sm:$0xff]  }
 0x56f   : > { %11067 = vmatprep.subr.bf16.mxu1 %v14055_v55 }
 0x571   : > { %11027 = vmatpush1.bf16.msra.mxu0 %v14050_v58  ;;  %v14127_v58 = vld [vmem:[#allocation7 + $0xa24] ss:$24 sps:$4 sm:$0xff]  }
 0x572   : > { %11068 = vmatpush1.bf16.msra.mxu1 %v14053_v62  ;;  %11028 = vmatprep.subr.bf16.mxu0 %v14058_v63 }
 0x573   : > { %11069 = vmatprep.subr.bf16.mxu1 %v14061_v1 }
 0x575   : > { %11029 = vmatpush1.bf16.msra.mxu0 %v14056_v2 }
 0x576   : > { %11070 = vmatpush1.bf16.msra.mxu1 %v14059_v6  ;;  %11030 = vmatprep.subr.bf16.mxu0 %v14064_v7 }
 0x577   : > { %11071 = vmatprep.subr.bf16.mxu1 %v14067_v11  ;;  %v14122_v11 = vld [vmem:[#allocation7 + $0x720] ss:$24 sps:$4 sm:$0xff]  }
 0x579   : > { %11031 = vmatpush1.bf16.msra.mxu0 %v14062_v4 }
 0x57a   : > { %11072 = vmatpush1.bf16.msra.mxu1 %v14065_v5  ;;  %11032 = vmatprep.subr.bf16.mxu0 %v14070_v17 }
 0x57b   : > { %11073 = vmatprep.subr.bf16.mxu1 %v14073_v12  ;;  %v14125_v12 = vld [vmem:[#allocation7 + $0xa20] ss:$24 sps:$4 sm:$0xff]  }
 0x57d   : > { %11033 = vmatpush1.bf16.msra.mxu0 %v14068_v20  ;;  %v14130_v20 = vld [vmem:[#allocation7 + $0x754] ss:$24 sps:$4 sm:$0xff]  }
 0x57e   : > { %11074 = vmatpush1.bf16.msra.mxu1 %v14071_v30  ;;  %11034 = vmatprep.subr.bf16.mxu0 %v14076_v21 }
 0x57f   : > { %11075 = vmatprep.subr.bf16.mxu1 %v14079_v33  ;;  %v14128_v33 = vld [vmem:[#allocation7 + $0x750] ss:$24 sps:$4 sm:$0xff]  }
 0x581   : > { %11035 = vmatpush1.bf16.msra.mxu0 %v14074_v22  ;;  %v14136_v22 = vld [vmem:[#allocation7 + $0x784] ss:$24 sps:$4 sm:$0xff]  }
 0x582   : > { %11076 = vmatpush1.bf16.msra.mxu1 %v14077_v24  ;;  %11036 = vmatprep.subr.bf16.mxu0 %v14082_v27  ;;  %v14139_v24 = vld [vmem:[#allocation7 + $0xa84] ss:$24 sps:$4 sm:$0xff]   ;;  %v14134_v27 = vld [vmem:[#allocation7 + $0x780] ss:$24 sps:$4 sm:$0xff]  }
 0x583   : > { %11077 = vmatprep.subr.bf16.mxu1 %v14085_v50  ;;  %v14137_v50 = vld [vmem:[#allocation7 + $0xa80] ss:$24 sps:$4 sm:$0xff]  }
 0x585   : > { %11037 = vmatpush1.bf16.msra.mxu0 %v14080_v29  ;;  %v14142_v29 = vld [vmem:[#allocation7 + $0x7b4] ss:$24 sps:$4 sm:$0xff]  }
 0x586   : > { %11078 = vmatpush1.bf16.msra.mxu1 %v14083_v23  ;;  %11088 = vmatprep.subr.bf16.mxu0 %v14088_v32  ;;  %v14140_v23 = vld [vmem:[#allocation7 + $0x7b0] ss:$24 sps:$4 sm:$0xff]  }
 0x587   : > { %11129 = vmatprep.subr.bf16.mxu1 %v14091_v36  ;;  %v14143_v32 = vld [vmem:[#allocation7 + $0xab0] ss:$24 sps:$4 sm:$0xff]   ;;  %v14151_v36 = vld [vmem:[#allocation7 + $0xae4] ss:$24 sps:$4 sm:$0xff]  }
 0x588   : > { %11039 = vmatmul.mubr.bf16.vlgmr.msra.gmra.mrb[40].mxu0 %v15109_v41 }
 0x589   : > { %11080 = vmatmul.mubr.bf16.vlgmr.msra.gmra.mrb[40].mxu1 %v15111_v0  ;;  %11089 = vmatpush1.bf16.msra.mxu0 %v14086_v40  ;;  %v14154_v40 = vld [vmem:[#allocation7 + $0x814] ss:$24 sps:$4 sm:$0xff]  }
 0x58a   : > { %11120 = vmatprep.mubr.bf16.mxu0 %v15113_v43  ;;  %11130 = vmatpush1.bf16.msra.mxu1 %v14089_v42  ;;  %v14157_v42 = vld [vmem:[#allocation7 + $0xb14] ss:$24 sps:$4 sm:$0xff]  }
 0x58b   : > { %11161 = vmatprep.mubr.bf16.mxu1 %v15116_v14  ;;  %11090 = vmatprep.subr.bf16.mxu0 %v14094_v25  ;;  %v14152_v25 = vld [vmem:[#allocation7 + $0x810] ss:$24 sps:$4 sm:$0xff]  }
 0x58c   : > { %11131 = vmatprep.subr.bf16.mxu1 %v14097_v3  ;;  %v14155_v3 = vld [vmem:[#allocation7 + $0xb10] ss:$24 sps:$4 sm:$0xff]  }
 0x58d   : > { %11091 = vmatpush1.bf16.msra.mxu0 %v14092_v16  ;;  %v14160_v16 = vld [vmem:[#allocation7 + $0x844] ss:$24 sps:$4 sm:$0xff]  }
 0x58e   : > { %11132 = vmatpush1.bf16.msra.mxu1 %v14095_v19  ;;  %11092 = vmatprep.subr.bf16.mxu0 %v14100_v45  ;;  %v14163_v19 = vld [vmem:[#allocation7 + $0xb44] ss:$24 sps:$4 sm:$0xff]   ;;  %v14158_v45 = vld [vmem:[#allocation7 + $0x840] ss:$24 sps:$4 sm:$0xff]  }
 0x58f   : > { %11133 = vmatprep.subr.bf16.mxu1 %v14103_v46  ;;  %v14161_v46 = vld [vmem:[#allocation7 + $0xb40] ss:$24 sps:$4 sm:$0xff]  }
 0x591   : > { %11093 = vmatpush1.bf16.msra.mxu0 %v14098_v47  ;;  %v14166_v47 = vld [vmem:[#allocation7 + $0x874] ss:$24 sps:$4 sm:$0xff]  }
 0x592   : > { %11134 = vmatpush1.bf16.msra.mxu1 %v14101_v38  ;;  %11094 = vmatprep.subr.bf16.mxu0 %v14106_v48  ;;  %v14169_v38 = vld [vmem:[#allocation7 + $0xb74] ss:$24 sps:$4 sm:$0xff]   ;;  %v14164_v48 = vld [vmem:[#allocation7 + $0x870] ss:$24 sps:$4 sm:$0xff]  }
 0x593   : > { %11135 = vmatprep.subr.bf16.mxu1 %v14109_v49  ;;  %v14167_v49 = vld [vmem:[#allocation7 + $0xb70] ss:$24 sps:$4 sm:$0xff]  }
 0x595   : > { %11095 = vmatpush1.bf16.msra.mxu0 %v14104_v51  ;;  %v14172_v51 = vld [vmem:[#allocation7 + $0x8a4] ss:$24 sps:$4 sm:$0xff]  }
 0x596   : > { %11136 = vmatpush1.bf16.msra.mxu1 %v14107_v56  ;;  %11096 = vmatprep.subr.bf16.mxu0 %v14112_v34  ;;  %v14175_v56 = vld [vmem:[#allocation7 + $0xba4] ss:$24 sps:$4 sm:$0xff]   ;;  %v14170_v34 = vld [vmem:[#allocation7 + $0x8a0] ss:$24 sps:$4 sm:$0xff]  }
 0x597   : > { %11137 = vmatprep.subr.bf16.mxu1 %v14115_v61  ;;  %v14173_v61 = vld [vmem:[#allocation7 + $0xba0] ss:$24 sps:$4 sm:$0xff]  }
 0x599   : > { %11097 = vmatpush1.bf16.msra.mxu0 %v14110_v52  ;;  %v14178_v52 = vld [vmem:[#allocation7 + $0x8d4] ss:$24 sps:$4 sm:$0xff]  }
 0x59a   : > { %11138 = vmatpush1.bf16.msra.mxu1 %v14113_v28  ;;  %11098 = vmatprep.subr.bf16.mxu0 %v14118_v57  ;;  %v14181_v28 = vld [vmem:[#allocation7 + $0xbd4] ss:$24 sps:$4 sm:$0xff]   ;;  %v14176_v57 = vld [vmem:[#allocation7 + $0x8d0] ss:$24 sps:$4 sm:$0xff]  }
 0x59b   : > { %v8874_v55 = vpop.f32.mrb[28].mxu0  ;;  %11139 = vmatprep.subr.bf16.mxu1 %v14121_v54  ;;  %v3082_v54 = vmax.f32 %v15019_v10, 0.0  ;;  %v14193_v10 = vld [vmem:[#allocation7 + $0x33c] ss:$24 sps:$4 sm:$0xff]  }
 0x59c   : > { %v8875_v62 = vadd.f32 %v8874_v55, %v15101_v8  ;;  %v8915_v63 = vpop.f32.mrb[28].mxu1  ;;  %v8876_v1 = vpop.f32.mrb[29].mxu0  ;;  %v14133_v8 = vld [vmem:[#allocation7 + $0xa54] ss:$24 sps:$4 sm:$0xff]  }
 0x59d   : > { %v8877_v2 = vadd.f32 %v8876_v1, %v15103_v44  ;;  %v8917_v6 = vpop.f32.mrb[29].mxu1  ;;  %v8878_v7 = vpop.f32.mrb[30].mxu0  ;;  %11099 = vmatpush1.bf16.msra.mxu0 %v14116_v31  ;;  %v14131_v44 = vld [vmem:[#allocation7 + $0xa50] ss:$24 sps:$4 sm:$0xff]   ;;  %v14187_v55 = vld [vmem:[#allocation7 + $0x30c] ss:$24 sps:$4 sm:$0xff]  }
 0x59e   : > { %v15123_v4 = vadd.f32 %v8915_v63, %v8875_v62  ;;  %v8919_v5 = vpop.f32.mrb[30].mxu1  ;;  %11140 = vmatpush1.bf16.msra.mxu1 %v14119_v59  ;;  %v8879_v17 = vpop.f32.mrb[31].mxu0  ;;  %11100 = vmatprep.subr.bf16.mxu0 %v14124_v60  ;;  %v14179_v31 = vld [vmem:[#allocation7 + $0xbd0] ss:$24 sps:$4 sm:$0xff]   ;;  %v14184_v59 = vld [vmem:[#allocation7 + $0xc] ss:$24 sps:$4 sm:$0xff]   ;;  %v15129_v62 = vpack.c.bf16 %v3082_v54, %v3082_v54 }
 0x59f   : > { %v15125_v30 = vadd.f32 %v8917_v6, %v8877_v2  ;;  %v8920_v21 = vpop.f32.mrb[31].mxu1  ;;  %11141 = vmatprep.subr.bf16.mxu1 %v14127_v58  ;;  %v3084_v60 = vmax.f32 %v15021_v15, 0.0  ;;  %v14182_v58 = vld [vmem:[#allocation7 + $0x8] ss:$24 sps:$4 sm:$0xff]   ;;  %v14190_v2 = vld [vmem:[#allocation7 + $0x3c] ss:$24 sps:$4 sm:$0xff]  }
 0x5a0   : > { %v14185_v63 = vld [vmem:[#allocation7 + $0x308] ss:$24 sps:$4 sm:$0xff]   ;;  %v14188_v15 = vld [vmem:[#allocation7 + $0x38] ss:$24 sps:$4 sm:$0xff]   ;;  %v14196_v7 = vld [vmem:[#allocation7 + $0x6c] ss:$24 sps:$4 sm:$0xff]  }
 0x5a1   : > { %11101 = vmatpush1.bf16.msra.mxu0 %v14122_v11  ;;  %v15131_v1 = vpack.c.bf16 %v3084_v60, %v3084_v60  ;;  %v14191_v6 = vld [vmem:[#allocation7 + $0x338] ss:$24 sps:$4 sm:$0xff]   ;;  %v14199_v11 = vld [vmem:[#allocation7 + $0x36c] ss:$24 sps:$4 sm:$0xff]   ;;  %v14194_v5 = vld [vmem:[#allocation7 + $0x68] ss:$24 sps:$4 sm:$0xff]  }
 0x5a2   : > { %11142 = vmatpush1.bf16.msra.mxu1 %v14125_v12  ;;  %11102 = vmatprep.subr.bf16.mxu0 %v14130_v20  ;;  %v14197_v17 = vld [vmem:[#allocation7 + $0x368] ss:$24 sps:$4 sm:$0xff]   ;;  %v14202_v12 = vld [vmem:[#allocation7 + $0x9c] ss:$24 sps:$4 sm:$0xff]   ;;  %v14200_v21 = vld [vmem:[#allocation7 + $0x98] ss:$24 sps:$4 sm:$0xff]  }
 0x5a3   : > { %11143 = vmatprep.subr.bf16.mxu1 %v14133_v8  ;;  %v14205_v20 = vld [vmem:[#allocation7 + $0x39c] ss:$24 sps:$4 sm:$0xff]   ;;  %v14203_v8 = vld [vmem:[#allocation7 + $0x398] ss:$24 sps:$4 sm:$0xff]   ;;  %v14242_v60 = vld [vmem:[#allocation7 + $0x1e8] ss:$24 sps:$4 sm:$0xff]  }
 0x5a4   : > { %v14239_v54 = vld [vmem:[#allocation7 + $0x4b8] ss:$24 sps:$4 sm:$0xff]  }
 0x5a5   : > { %11103 = vmatpush1.bf16.msra.mxu0 %v14128_v33  ;;  %v14208_v33 = vld [vmem:[#allocation7 + $0xcc] ss:$24 sps:$4 sm:$0xff]  }
 0x5a6   : > { %11144 = vmatpush1.bf16.msra.mxu1 %v14131_v44  ;;  %11104 = vmatprep.subr.bf16.mxu0 %v14136_v22  ;;  %v14211_v44 = vld [vmem:[#allocation7 + $0x3cc] ss:$24 sps:$4 sm:$0xff]   ;;  %v14206_v22 = vld [vmem:[#allocation7 + $0xc8] ss:$24 sps:$4 sm:$0xff]  }
 0x5a7   : > { %11145 = vmatprep.subr.bf16.mxu1 %v14139_v24  ;;  %v14209_v24 = vld [vmem:[#allocation7 + $0x3c8] ss:$24 sps:$4 sm:$0xff]  }
 0x5a9   : > { %11105 = vmatpush1.bf16.msra.mxu0 %v14134_v27  ;;  %v14214_v27 = vld [vmem:[#allocation7 + $0xfc] ss:$24 sps:$4 sm:$0xff]  }
 0x5aa   : > { %11146 = vmatpush1.bf16.msra.mxu1 %v14137_v50  ;;  %11106 = vmatprep.subr.bf16.mxu0 %v14142_v29  ;;  %v14217_v50 = vld [vmem:[#allocation7 + $0x3fc] ss:$24 sps:$4 sm:$0xff]   ;;  %v14212_v29 = vld [vmem:[#allocation7 + $0xf8] ss:$24 sps:$4 sm:$0xff]  }
 0x5ab   : > { %11147 = vmatprep.subr.bf16.mxu1 %v14145_v53  ;;  %v14215_v53 = vld [vmem:[#allocation7 + $0x3f8] ss:$24 sps:$4 sm:$0xff]  }
 0x5ad   : > { %11107 = vmatpush1.bf16.msra.mxu0 %v14140_v23  ;;  %v14220_v23 = vld [vmem:[#allocation7 + $0x12c] ss:$24 sps:$4 sm:$0xff]  }
 0x5ae   : > { %11148 = vmatpush1.bf16.msra.mxu1 %v14143_v32  ;;  %11108 = vmatprep.subr.bf16.mxu0 %v14148_v35  ;;  %v14223_v35 = vld [vmem:[#allocation7 + $0x42c] ss:$24 sps:$4 sm:$0xff]  }
 0x5af   : > { %11149 = vmatprep.subr.bf16.mxu1 %v14151_v36 }
 0x5b1   : > { %11109 = vmatpush1.bf16.msra.mxu0 %v14146_v37 }
 0x5b2   : > { %11150 = vmatpush1.bf16.msra.mxu1 %v14149_v39  ;;  %11110 = vmatprep.subr.bf16.mxu0 %v14154_v40 }
 0x5b3   : > { %11151 = vmatprep.subr.bf16.mxu1 %v14157_v42 }
 0x5b5   : > { %11111 = vmatpush1.bf16.msra.mxu0 %v14152_v25  ;;  %v14218_v25 = vld [vmem:[#allocation7 + $0x128] ss:$24 sps:$4 sm:$0xff]  }
 0x5b6   : > { %11152 = vmatpush1.bf16.msra.mxu1 %v14155_v3  ;;  %11112 = vmatprep.subr.bf16.mxu0 %v14160_v16 }
 0x5b7   : > { %11153 = vmatprep.subr.bf16.mxu1 %v14163_v19 }
 0x5b9   : > { %11113 = vmatpush1.bf16.msra.mxu0 %v14158_v45  ;;  %v14221_v45 = vld [vmem:[#allocation7 + $0x428] ss:$24 sps:$4 sm:$0xff]  }
 0x5ba   : > { %11154 = vmatpush1.bf16.msra.mxu1 %v14161_v46  ;;  %11114 = vmatprep.subr.bf16.mxu0 %v14166_v47  ;;  %v14226_v46 = vld [vmem:[#allocation7 + $0x15c] ss:$24 sps:$4 sm:$0xff]  }
 0x5bb   : > { %11155 = vmatprep.subr.bf16.mxu1 %v14169_v38  ;;  %v14229_v38 = vld [vmem:[#allocation7 + $0x45c] ss:$24 sps:$4 sm:$0xff]  }
 0x5bd   : > { %11115 = vmatpush1.bf16.msra.mxu0 %v14164_v48  ;;  %v14224_v48 = vld [vmem:[#allocation7 + $0x158] ss:$24 sps:$4 sm:$0xff]  }
 0x5be   : > { %11156 = vmatpush1.bf16.msra.mxu1 %v14167_v49  ;;  %11116 = vmatprep.subr.bf16.mxu0 %v14172_v51  ;;  %v14227_v49 = vld [vmem:[#allocation7 + $0x458] ss:$24 sps:$4 sm:$0xff]   ;;  %v14232_v51 = vld [vmem:[#allocation7 + $0x18c] ss:$24 sps:$4 sm:$0xff]  }
 0x5bf   : > { %11157 = vmatprep.subr.bf16.mxu1 %v14175_v56  ;;  %v14235_v56 = vld [vmem:[#allocation7 + $0x48c] ss:$24 sps:$4 sm:$0xff]  }
 0x5c1   : > { %11117 = vmatpush1.bf16.msra.mxu0 %v14170_v34  ;;  %v14230_v34 = vld [vmem:[#allocation7 + $0x188] ss:$24 sps:$4 sm:$0xff]  }
 0x5c2   : > { %11158 = vmatpush1.bf16.msra.mxu1 %v14173_v61  ;;  %11118 = vmatprep.subr.bf16.mxu0 %v14178_v52  ;;  %v14233_v61 = vld [vmem:[#allocation7 + $0x488] ss:$24 sps:$4 sm:$0xff]   ;;  %v14238_v52 = vld [vmem:[#allocation7 + $0x1bc] ss:$24 sps:$4 sm:$0xff]  }
 0x5c3   : > { %11159 = vmatprep.subr.bf16.mxu1 %v14181_v28  ;;  %v14241_v28 = vld [vmem:[#allocation7 + $0x4bc] ss:$24 sps:$4 sm:$0xff]  }
 0x5c5   : > { %11119 = vmatpush1.bf16.msra.mxu0 %v14176_v57  ;;  %v14236_v57 = vld [vmem:[#allocation7 + $0x1b8] ss:$24 sps:$4 sm:$0xff]  }
 0x5c6   : > { %11160 = vmatpush1.bf16.msra.mxu1 %v14179_v31  ;;  %11170 = vmatprep.subr.bf16.mxu0 %v14184_v59  ;;  %v14244_v31 = vld [vmem:[#allocation7 + $0x1ec] ss:$24 sps:$4 sm:$0xff]  }
 0x5c7   : > { %11211 = vmatprep.subr.bf16.mxu1 %v14187_v55  ;;  %v14247_v59 = vld [vmem:[#allocation7 + $0x4ec] ss:$24 sps:$4 sm:$0xff]   ;;  %v14245_v55 = vld [vmem:[#allocation7 + $0x4e8] ss:$24 sps:$4 sm:$0xff]  }
 0x5c8   : > { %11121 = vmatmul.mubr.bf16.vlgmr.msra.gmra.mrb[44].mxu0 %v15129_v62 }
 0x5c9   : > { %11162 = vmatmul.mubr.bf16.vlgmr.msra.gmra.mrb[44].mxu1 %v15131_v1  ;;  %11171 = vmatpush1.bf16.msra.mxu0 %v14182_v58  ;;  %v14250_v58 = vld [vmem:[#allocation7 + $0x21c] ss:$24 sps:$4 sm:$0xff]  }
 0x5ca   : > { %11202 = vmatprep.mubr.bf16.mxu0 %v15093_v9  ;;  %11212 = vmatpush1.bf16.msra.mxu1 %v14185_v63  ;;  %v14253_v63 = vld [vmem:[#allocation7 + $0x51c] ss:$24 sps:$4 sm:$0xff]  }
 0x5cb   : > { %11243 = vmatprep.mubr.bf16.mxu1 %v15096_v13  ;;  %11172 = vmatprep.subr.bf16.mxu0 %v14190_v2  ;;  %v14248_v2 = vld [vmem:[#allocation7 + $0x218] ss:$24 sps:$4 sm:$0xff]  }
 0x5cc   : > { %11213 = vmatprep.subr.bf16.mxu1 %v14193_v10  ;;  %v14251_v10 = vld [vmem:[#allocation7 + $0x518] ss:$24 sps:$4 sm:$0xff]  }
 0x5cd   : > { %11173 = vmatpush1.bf16.msra.mxu0 %v14188_v15  ;;  %v14256_v15 = vld [vmem:[#allocation7 + $0x24c] ss:$24 sps:$4 sm:$0xff]  }
 0x5ce   : > { %11214 = vmatpush1.bf16.msra.mxu1 %v14191_v6  ;;  %11174 = vmatprep.subr.bf16.mxu0 %v14196_v7  ;;  %v14259_v6 = vld [vmem:[#allocation7 + $0x54c] ss:$24 sps:$4 sm:$0xff]   ;;  %v14254_v7 = vld [vmem:[#allocation7 + $0x248] ss:$24 sps:$4 sm:$0xff]  }
 0x5cf   : > { %11215 = vmatprep.subr.bf16.mxu1 %v14199_v11  ;;  %v14257_v11 = vld [vmem:[#allocation7 + $0x548] ss:$24 sps:$4 sm:$0xff]  }
 0x5d1   : > { %11175 = vmatpush1.bf16.msra.mxu0 %v14194_v5  ;;  %v14262_v5 = vld [vmem:[#allocation7 + $0x27c] ss:$24 sps:$4 sm:$0xff]  }
 0x5d2   : > { %11216 = vmatpush1.bf16.msra.mxu1 %v14197_v17  ;;  %11176 = vmatprep.subr.bf16.mxu0 %v14202_v12  ;;  %v14265_v17 = vld [vmem:[#allocation7 + $0x57c] ss:$24 sps:$4 sm:$0xff]   ;;  %v14260_v12 = vld [vmem:[#allocation7 + $0x278] ss:$24 sps:$4 sm:$0xff]  }
 0x5d3   : > { %11217 = vmatprep.subr.bf16.mxu1 %v14205_v20  ;;  %v14263_v20 = vld [vmem:[#allocation7 + $0x578] ss:$24 sps:$4 sm:$0xff]  }
 0x5d5   : > { %11177 = vmatpush1.bf16.msra.mxu0 %v14200_v21  ;;  %v14268_v21 = vld [vmem:[#allocation7 + $0x2ac] ss:$24 sps:$4 sm:$0xff]  }
 0x5d6   : > { %11218 = vmatpush1.bf16.msra.mxu1 %v14203_v8  ;;  %11178 = vmatprep.subr.bf16.mxu0 %v14208_v33  ;;  %v14271_v8 = vld [vmem:[#allocation7 + $0x5ac] ss:$24 sps:$4 sm:$0xff]   ;;  %v14266_v33 = vld [vmem:[#allocation7 + $0x2a8] ss:$24 sps:$4 sm:$0xff]  }
 0x5d7   : > { %11219 = vmatprep.subr.bf16.mxu1 %v14211_v44  ;;  %v14269_v44 = vld [vmem:[#allocation7 + $0x5a8] ss:$24 sps:$4 sm:$0xff]  }
 0x5d9   : > { %11179 = vmatpush1.bf16.msra.mxu0 %v14206_v22  ;;  %v14274_v22 = vld [vmem:[#allocation7 + $0x2dc] ss:$24 sps:$4 sm:$0xff]  }
 0x5da   : > { %11220 = vmatpush1.bf16.msra.mxu1 %v14209_v24  ;;  %11180 = vmatprep.subr.bf16.mxu0 %v14214_v27  ;;  %v14277_v24 = vld [vmem:[#allocation7 + $0x5dc] ss:$24 sps:$4 sm:$0xff]   ;;  %v14272_v27 = vld [vmem:[#allocation7 + $0x2d8] ss:$24 sps:$4 sm:$0xff]  }
 0x5db   : > { %v8956_v32 = vpop.f32.mrb[32].mxu0  ;;  %11221 = vmatprep.subr.bf16.mxu1 %v14217_v50  ;;  %v14275_v50 = vld [vmem:[#allocation7 + $0x5d8] ss:$24 sps:$4 sm:$0xff]  }
 0x5dc   : > { %v8997_v36 = vpop.f32.mrb[32].mxu1  ;;  %v8958_v37 = vpop.f32.mrb[33].mxu0 }
 0x5dd   : > { %v15137_v39 = vadd.f32 %v8997_v36, %v8956_v32  ;;  %v8999_v40 = vpop.f32.mrb[33].mxu1  ;;  %v8960_v42 = vpop.f32.mrb[34].mxu0  ;;  %11181 = vmatpush1.bf16.msra.mxu0 %v14212_v29  ;;  %v14280_v29 = vld [vmem:[#allocation7 + $0x60c] ss:$24 sps:$4 sm:$0xff]   ;;  %v14281_v32 = vld [vmem:[#allocation7 + $0x908] ss:$24 sps:$4 sm:$0xff]  }
 0x5de   : > { %v15139_v3 = vadd.f32 %v8999_v40, %v8958_v37  ;;  %v9001_v16 = vpop.f32.mrb[34].mxu1  ;;  %11222 = vmatpush1.bf16.msra.mxu1 %v14215_v53  ;;  %v8961_v19 = vpop.f32.mrb[35].mxu0  ;;  %11182 = vmatprep.subr.bf16.mxu0 %v14220_v23  ;;  %v14283_v53 = vld [vmem:[#allocation7 + $0x90c] ss:$24 sps:$4 sm:$0xff]   ;;  %v14278_v23 = vld [vmem:[#allocation7 + $0x608] ss:$24 sps:$4 sm:$0xff]  }
 0x5df   : > { %v9002_v47 = vpop.f32.mrb[35].mxu1  ;;  %11223 = vmatprep.subr.bf16.mxu1 %v14223_v35  ;;  %v14286_v35 = vld [vmem:[#allocation7 + $0x63c] ss:$24 sps:$4 sm:$0xff]   ;;  %v14284_v37 = vld [vmem:[#allocation7 + $0x638] ss:$24 sps:$4 sm:$0xff]  }
 0x5e0   : > { %v14289_v36 = vld [vmem:[#allocation7 + $0x93c] ss:$24 sps:$4 sm:$0xff]   ;;  %v14287_v40 = vld [vmem:[#allocation7 + $0x938] ss:$24 sps:$4 sm:$0xff]   ;;  %v14292_v42 = vld [vmem:[#allocation7 + $0x66c] ss:$24 sps:$4 sm:$0xff]  }
 0x5e1   : > { %11183 = vmatpush1.bf16.msra.mxu0 %v14218_v25  ;;  %v14295_v25 = vld [vmem:[#allocation7 + $0x96c] ss:$24 sps:$4 sm:$0xff]   ;;  %v14290_v16 = vld [vmem:[#allocation7 + $0x668] ss:$24 sps:$4 sm:$0xff]   ;;  %v14296_v47 = vld [vmem:[#allocation7 + $0x698] ss:$24 sps:$4 sm:$0xff]  }
 0x5e2   : > { %11224 = vmatpush1.bf16.msra.mxu1 %v14221_v45  ;;  %11184 = vmatprep.subr.bf16.mxu0 %v14226_v46  ;;  %v14293_v19 = vld [vmem:[#allocation7 + $0x968] ss:$24 sps:$4 sm:$0xff]   ;;  %v14298_v45 = vld [vmem:[#allocation7 + $0x69c] ss:$24 sps:$4 sm:$0xff]  }
 0x5e3   : > { %11225 = vmatprep.subr.bf16.mxu1 %v14229_v38  ;;  %v14301_v46 = vld [vmem:[#allocation7 + $0x99c] ss:$24 sps:$4 sm:$0xff]   ;;  %v14299_v38 = vld [vmem:[#allocation7 + $0x998] ss:$24 sps:$4 sm:$0xff]  }
 0x5e5   : > { %11185 = vmatpush1.bf16.msra.mxu0 %v14224_v48  ;;  %v14304_v48 = vld [vmem:[#allocation7 + $0x6cc] ss:$24 sps:$4 sm:$0xff]  }
 0x5e6   : > { %11226 = vmatpush1.bf16.msra.mxu1 %v14227_v49  ;;  %11186 = vmatprep.subr.bf16.mxu0 %v14232_v51  ;;  %v14307_v49 = vld [vmem:[#allocation7 + $0x9cc] ss:$24 sps:$4 sm:$0xff]   ;;  %v14302_v51 = vld [vmem:[#allocation7 + $0x6c8] ss:$24 sps:$4 sm:$0xff]  }
 0x5e7   : > { %11227 = vmatprep.subr.bf16.mxu1 %v14235_v56  ;;  %v14305_v56 = vld [vmem:[#allocation7 + $0x9c8] ss:$24 sps:$4 sm:$0xff]  }
 0x5e9   : > { %11187 = vmatpush1.bf16.msra.mxu0 %v14230_v34  ;;  %v14310_v34 = vld [vmem:[#allocation7 + $0x6fc] ss:$24 sps:$4 sm:$0xff]  }
 0x5ea   : > { %11228 = vmatpush1.bf16.msra.mxu1 %v14233_v61  ;;  %11188 = vmatprep.subr.bf16.mxu0 %v14238_v52  ;;  %v14313_v61 = vld [vmem:[#allocation7 + $0x9fc] ss:$24 sps:$4 sm:$0xff]   ;;  %v14308_v52 = vld [vmem:[#allocation7 + $0x6f8] ss:$24 sps:$4 sm:$0xff]  }
 0x5eb   : > { %11229 = vmatprep.subr.bf16.mxu1 %v14241_v28  ;;  %v14311_v28 = vld [vmem:[#allocation7 + $0x9f8] ss:$24 sps:$4 sm:$0xff]  }
 0x5ed   : > { %11189 = vmatpush1.bf16.msra.mxu0 %v14236_v57  ;;  %v14316_v57 = vld [vmem:[#allocation7 + $0x72c] ss:$24 sps:$4 sm:$0xff]  }
 0x5ee   : > { %11230 = vmatpush1.bf16.msra.mxu1 %v14239_v54  ;;  %11190 = vmatprep.subr.bf16.mxu0 %v14244_v31  ;;  %v14319_v31 = vld [vmem:[#allocation7 + $0xa2c] ss:$24 sps:$4 sm:$0xff]  }
 0x5ef   : > { %11231 = vmatprep.subr.bf16.mxu1 %v14247_v59 }
 0x5f1   : > { %11191 = vmatpush1.bf16.msra.mxu0 %v14242_v60 }
 0x5f2   : > { %11232 = vmatpush1.bf16.msra.mxu1 %v14245_v55  ;;  %11192 = vmatprep.subr.bf16.mxu0 %v14250_v58 }
 0x5f3   : > { %11233 = vmatprep.subr.bf16.mxu1 %v14253_v63 }
 0x5f5   : > { %11193 = vmatpush1.bf16.msra.mxu0 %v14248_v2 }
 0x5f6   : > { %11234 = vmatpush1.bf16.msra.mxu1 %v14251_v10  ;;  %11194 = vmatprep.subr.bf16.mxu0 %v14256_v15  ;;  %v14314_v10 = vld [vmem:[#allocation7 + $0x728] ss:$24 sps:$4 sm:$0xff]  }
 0x5f7   : > { %11235 = vmatprep.subr.bf16.mxu1 %v14259_v6 }
 0x5f9   : > { %11195 = vmatpush1.bf16.msra.mxu0 %v14254_v7 }
 0x5fa   : > { %11236 = vmatpush1.bf16.msra.mxu1 %v14257_v11  ;;  %11196 = vmatprep.subr.bf16.mxu0 %v14262_v5  ;;  %v14317_v11 = vld [vmem:[#allocation7 + $0xa28] ss:$24 sps:$4 sm:$0xff]   ;;  %v14322_v5 = vld [vmem:[#allocation7 + $0x75c] ss:$24 sps:$4 sm:$0xff]  }
 0x5fb   : > { %11237 = vmatprep.subr.bf16.mxu1 %v14265_v17 }
 0x5fd   : > { %11197 = vmatpush1.bf16.msra.mxu0 %v14260_v12 }
 0x5fe   : > { %11238 = vmatpush1.bf16.msra.mxu1 %v14263_v20  ;;  %11198 = vmatprep.subr.bf16.mxu0 %v14268_v21  ;;  %v14320_v20 = vld [vmem:[#allocation7 + $0x758] ss:$24 sps:$4 sm:$0xff]   ;;  %v14328_v21 = vld [vmem:[#allocation7 + $0x78c] ss:$24 sps:$4 sm:$0xff]  }
 0x5ff   : > { %11239 = vmatprep.subr.bf16.mxu1 %v14271_v8  ;;  %v14331_v8 = vld [vmem:[#allocation7 + $0xa8c] ss:$24 sps:$4 sm:$0xff]  }
 0x601   : > { %11199 = vmatpush1.bf16.msra.mxu0 %v14266_v33  ;;  %v14326_v33 = vld [vmem:[#allocation7 + $0x788] ss:$24 sps:$4 sm:$0xff]  }
 0x602   : > { %11240 = vmatpush1.bf16.msra.mxu1 %v14269_v44  ;;  %11200 = vmatprep.subr.bf16.mxu0 %v14274_v22  ;;  %v14329_v44 = vld [vmem:[#allocation7 + $0xa88] ss:$24 sps:$4 sm:$0xff]   ;;  %v14334_v22 = vld [vmem:[#allocation7 + $0x7bc] ss:$24 sps:$4 sm:$0xff]  }
 0x603   : > { %11241 = vmatprep.subr.bf16.mxu1 %v14277_v24  ;;  %v14337_v24 = vld [vmem:[#allocation7 + $0xabc] ss:$24 sps:$4 sm:$0xff]  }
 0x605   : > { %11201 = vmatpush1.bf16.msra.mxu0 %v14272_v27  ;;  %v14332_v27 = vld [vmem:[#allocation7 + $0x7b8] ss:$24 sps:$4 sm:$0xff]  }
 0x606   : > { %11242 = vmatpush1.bf16.msra.mxu1 %v14275_v50  ;;  %11252 = vmatprep.subr.bf16.mxu0 %v14280_v29  ;;  %v14335_v50 = vld [vmem:[#allocation7 + $0xab8] ss:$24 sps:$4 sm:$0xff]   ;;  %v14340_v29 = vld [vmem:[#allocation7 + $0x7ec] ss:$24 sps:$4 sm:$0xff]  }
 0x607   : > { %11293 = vmatprep.subr.bf16.mxu1 %v14283_v53  ;;  %v14343_v53 = vld [vmem:[#allocation7 + $0xaec] ss:$24 sps:$4 sm:$0xff]  }
 0x608   : > { %11203 = vmatmul.mubr.bf16.vlgmr.msra.gmra.mrb[48].mxu0 %v15109_v41 }
 0x609   : > { %11244 = vmatmul.mubr.bf16.vlgmr.msra.gmra.mrb[48].mxu1 %v15111_v0  ;;  %11253 = vmatpush1.bf16.msra.mxu0 %v14278_v23  ;;  %v14338_v23 = vld [vmem:[#allocation7 + $0x7e8] ss:$24 sps:$4 sm:$0xff]  }
 0x60a   : > { %11284 = vmatprep.mubr.bf16.mxu0 %v15113_v43  ;;  %11294 = vmatpush1.bf16.msra.mxu1 %v14281_v32  ;;  %v14341_v32 = vld [vmem:[#allocation7 + $0xae8] ss:$24 sps:$4 sm:$0xff]  }
 0x60b   : > { %11325 = vmatprep.mubr.bf16.mxu1 %v15116_v14  ;;  %11254 = vmatprep.subr.bf16.mxu0 %v14286_v35  ;;  %v14346_v35 = vld [vmem:[#allocation7 + $0x81c] ss:$24 sps:$4 sm:$0xff]  }
 0x60c   : > { %11295 = vmatprep.subr.bf16.mxu1 %v14289_v36  ;;  %v14349_v36 = vld [vmem:[#allocation7 + $0xb1c] ss:$24 sps:$4 sm:$0xff]  }
 0x60d   : > { %11255 = vmatpush1.bf16.msra.mxu0 %v14284_v37  ;;  %v14344_v37 = vld [vmem:[#allocation7 + $0x818] ss:$24 sps:$4 sm:$0xff]  }
 0x60e   : > { %11296 = vmatpush1.bf16.msra.mxu1 %v14287_v40  ;;  %11256 = vmatprep.subr.bf16.mxu0 %v14292_v42  ;;  %v14347_v40 = vld [vmem:[#allocation7 + $0xb18] ss:$24 sps:$4 sm:$0xff]   ;;  %v14352_v42 = vld [vmem:[#allocation7 + $0x84c] ss:$24 sps:$4 sm:$0xff]  }
 0x60f   : > { %11297 = vmatprep.subr.bf16.mxu1 %v14295_v25  ;;  %v14355_v25 = vld [vmem:[#allocation7 + $0xb4c] ss:$24 sps:$4 sm:$0xff]  }
 0x611   : > { %11257 = vmatpush1.bf16.msra.mxu0 %v14290_v16  ;;  %v14350_v16 = vld [vmem:[#allocation7 + $0x848] ss:$24 sps:$4 sm:$0xff]  }
 0x612   : > { %11298 = vmatpush1.bf16.msra.mxu1 %v14293_v19  ;;  %11258 = vmatprep.subr.bf16.mxu0 %v14298_v45  ;;  %v14353_v19 = vld [vmem:[#allocation7 + $0xb48] ss:$24 sps:$4 sm:$0xff]   ;;  %v14358_v45 = vld [vmem:[#allocation7 + $0x87c] ss:$24 sps:$4 sm:$0xff]  }
 0x613   : > { %11299 = vmatprep.subr.bf16.mxu1 %v14301_v46  ;;  %v14361_v46 = vld [vmem:[#allocation7 + $0xb7c] ss:$24 sps:$4 sm:$0xff]  }
 0x615   : > { %11259 = vmatpush1.bf16.msra.mxu0 %v14296_v47  ;;  %v14356_v47 = vld [vmem:[#allocation7 + $0x878] ss:$24 sps:$4 sm:$0xff]  }
 0x616   : > { %11300 = vmatpush1.bf16.msra.mxu1 %v14299_v38  ;;  %11260 = vmatprep.subr.bf16.mxu0 %v14304_v48  ;;  %v14359_v38 = vld [vmem:[#allocation7 + $0xb78] ss:$24 sps:$4 sm:$0xff]   ;;  %v14364_v48 = vld [vmem:[#allocation7 + $0x8ac] ss:$24 sps:$4 sm:$0xff]  }
 0x617   : > { %11301 = vmatprep.subr.bf16.mxu1 %v14307_v49  ;;  %v14367_v49 = vld [vmem:[#allocation7 + $0xbac] ss:$24 sps:$4 sm:$0xff]  }
 0x619   : > { %11261 = vmatpush1.bf16.msra.mxu0 %v14302_v51  ;;  %v14362_v51 = vld [vmem:[#allocation7 + $0x8a8] ss:$24 sps:$4 sm:$0xff]  }
 0x61a   : > { %11302 = vmatpush1.bf16.msra.mxu1 %v14305_v56  ;;  %11262 = vmatprep.subr.bf16.mxu0 %v14310_v34  ;;  %v14365_v56 = vld [vmem:[#allocation7 + $0xba8] ss:$24 sps:$4 sm:$0xff]   ;;  %v14370_v34 = vld [vmem:[#allocation7 + $0x8dc] ss:$24 sps:$4 sm:$0xff]  }
 0x61b   : > { %v9038_v54 = vpop.f32.mrb[36].mxu0  ;;  %11303 = vmatprep.subr.bf16.mxu1 %v14313_v61  ;;  %v14373_v61 = vld [vmem:[#allocation7 + $0xbdc] ss:$24 sps:$4 sm:$0xff]  }
 0x61c   : > { %v9039_v59 = vadd.f32 %v9038_v54, %v15137_v39  ;;  %v9079_v60 = vpop.f32.mrb[36].mxu1  ;;  %v9040_v55 = vpop.f32.mrb[37].mxu0  ;;  %v14325_v39 = vld [vmem:[#allocation7 + $0xa5c] ss:$24 sps:$4 sm:$0xff]  }
 0x61d   : > { %v9041_v58 = vadd.f32 %v9040_v55, %v15139_v3  ;;  %v9081_v63 = vpop.f32.mrb[37].mxu1  ;;  %v9042_v2 = vpop.f32.mrb[38].mxu0  ;;  %11263 = vmatpush1.bf16.msra.mxu0 %v14308_v52  ;;  %v14323_v3 = vld [vmem:[#allocation7 + $0xa58] ss:$24 sps:$4 sm:$0xff]   ;;  %v14379_v54 = vld [vmem:[#allocation7 + $0x314] ss:$24 sps:$4 sm:$0xff]  }
 0x61e   : > { %v15147_v15 = vadd.f32 %v9079_v60, %v9039_v59  ;;  %v9083_v6 = vpop.f32.mrb[38].mxu1  ;;  %11304 = vmatpush1.bf16.msra.mxu1 %v14311_v28  ;;  %v9043_v7 = vpop.f32.mrb[39].mxu0  ;;  %11264 = vmatprep.subr.bf16.mxu0 %v14316_v57  ;;  %v14368_v52 = vld [vmem:[#allocation7 + $0x8d8] ss:$24 sps:$4 sm:$0xff]   ;;  %v14376_v57 = vld [vmem:[#allocation7 + $0x14] ss:$24 sps:$4 sm:$0xff]  }
 0x61f   : > { %v15149_v17 = vadd.f32 %v9081_v63, %v9041_v58  ;;  %v9084_v12 = vpop.f32.mrb[39].mxu1  ;;  %11305 = vmatprep.subr.bf16.mxu1 %v14319_v31  ;;  %v14371_v28 = vld [vmem:[#allocation7 + $0xbd8] ss:$24 sps:$4 sm:$0xff]   ;;  %v14382_v60 = vld [vmem:[#allocation7 + $0x44] ss:$24 sps:$4 sm:$0xff]  }
 0x620   : > { %v14374_v31 = vld [vmem:[#allocation7 + $0x10] ss:$24 sps:$4 sm:$0xff]   ;;  %v14385_v55 = vld [vmem:[#allocation7 + $0x344] ss:$24 sps:$4 sm:$0xff]   ;;  %v14380_v58 = vld [vmem:[#allocation7 + $0x40] ss:$24 sps:$4 sm:$0xff]  }
 0x621   : > { %11265 = vmatpush1.bf16.msra.mxu0 %v14314_v10  ;;  %v14377_v59 = vld [vmem:[#allocation7 + $0x310] ss:$24 sps:$4 sm:$0xff]   ;;  %v14383_v63 = vld [vmem:[#allocation7 + $0x340] ss:$24 sps:$4 sm:$0xff]   ;;  %v14388_v2 = vld [vmem:[#allocation7 + $0x74] ss:$24 sps:$4 sm:$0xff]  }
 0x622   : > { %11306 = vmatpush1.bf16.msra.mxu1 %v14317_v11  ;;  %11266 = vmatprep.subr.bf16.mxu0 %v14322_v5  ;;  %v14391_v10 = vld [vmem:[#allocation7 + $0x374] ss:$24 sps:$4 sm:$0xff]   ;;  %v14386_v6 = vld [vmem:[#allocation7 + $0x70] ss:$24 sps:$4 sm:$0xff]   ;;  %v14394_v11 = vld [vmem:[#allocation7 + $0xa4] ss:$24 sps:$4 sm:$0xff]  }
 0x623   : > { %11307 = vmatprep.subr.bf16.mxu1 %v14325_v39  ;;  %v14389_v7 = vld [vmem:[#allocation7 + $0x370] ss:$24 sps:$4 sm:$0xff]   ;;  %v14397_v5 = vld [vmem:[#allocation7 + $0x3a4] ss:$24 sps:$4 sm:$0xff]   ;;  %v14392_v12 = vld [vmem:[#allocation7 + $0xa0] ss:$24 sps:$4 sm:$0xff]  }
 0x624   : > { %v14400_v39 = vld [vmem:[#allocation7 + $0xd4] ss:$24 sps:$4 sm:$0xff]  }
 0x625   : > { %11267 = vmatpush1.bf16.msra.mxu0 %v14320_v20  ;;  %v14403_v20 = vld [vmem:[#allocation7 + $0x3d4] ss:$24 sps:$4 sm:$0xff]  }
 0x626   : > { %11308 = vmatpush1.bf16.msra.mxu1 %v14323_v3  ;;  %11268 = vmatprep.subr.bf16.mxu0 %v14328_v21  ;;  %v14401_v3 = vld [vmem:[#allocation7 + $0x3d0] ss:$24 sps:$4 sm:$0xff]   ;;  %v14406_v21 = vld [vmem:[#allocation7 + $0x104] ss:$24 sps:$4 sm:$0xff]  }
 0x627   : > { %11309 = vmatprep.subr.bf16.mxu1 %v14331_v8  ;;  %v14409_v8 = vld [vmem:[#allocation7 + $0x404] ss:$24 sps:$4 sm:$0xff]  }
 0x629   : > { %11269 = vmatpush1.bf16.msra.mxu0 %v14326_v33  ;;  %v14404_v33 = vld [vmem:[#allocation7 + $0x100] ss:$24 sps:$4 sm:$0xff]  }
 0x62a   : > { %11310 = vmatpush1.bf16.msra.mxu1 %v14329_v44  ;;  %11270 = vmatprep.subr.bf16.mxu0 %v14334_v22  ;;  %v14407_v44 = vld [vmem:[#allocation7 + $0x400] ss:$24 sps:$4 sm:$0xff]   ;;  %v14412_v22 = vld [vmem:[#allocation7 + $0x134] ss:$24 sps:$4 sm:$0xff]  }
 0x62b   : > { %11311 = vmatprep.subr.bf16.mxu1 %v14337_v24 }
 0x62d   : > { %11271 = vmatpush1.bf16.msra.mxu0 %v14332_v27  ;;  %v14415_v27 = vld [vmem:[#allocation7 + $0x434] ss:$24 sps:$4 sm:$0xff]  }
 0x62e   : > { %11312 = vmatpush1.bf16.msra.mxu1 %v14335_v50  ;;  %11272 = vmatprep.subr.bf16.mxu0 %v14340_v29 }
 0x62f   : > { %11313 = vmatprep.subr.bf16.mxu1 %v14343_v53 }
 0x631   : > { %11273 = vmatpush1.bf16.msra.mxu0 %v14338_v23 }
 0x632   : > { %11314 = vmatpush1.bf16.msra.mxu1 %v14341_v32  ;;  %11274 = vmatprep.subr.bf16.mxu0 %v14346_v35 }
 0x633   : > { %11315 = vmatprep.subr.bf16.mxu1 %v14349_v36  ;;  %v14410_v36 = vld [vmem:[#allocation7 + $0x130] ss:$24 sps:$4 sm:$0xff]  }
 0x635   : > { %11275 = vmatpush1.bf16.msra.mxu0 %v14344_v37 }
 0x636   : > { %11316 = vmatpush1.bf16.msra.mxu1 %v14347_v40  ;;  %11276 = vmatprep.subr.bf16.mxu0 %v14352_v42 }
 0x637   : > { %11317 = vmatprep.subr.bf16.mxu1 %v14355_v25  ;;  %v14413_v25 = vld [vmem:[#allocation7 + $0x430] ss:$24 sps:$4 sm:$0xff]  }
 0x639   : > { %11277 = vmatpush1.bf16.msra.mxu0 %v14350_v16  ;;  %v14418_v16 = vld [vmem:[#allocation7 + $0x164] ss:$24 sps:$4 sm:$0xff]  }
 0x63a   : > { %11318 = vmatpush1.bf16.msra.mxu1 %v14353_v19  ;;  %11278 = vmatprep.subr.bf16.mxu0 %v14358_v45 }
 0x63b   : > { %11319 = vmatprep.subr.bf16.mxu1 %v14361_v46  ;;  %v14416_v46 = vld [vmem:[#allocation7 + $0x160] ss:$24 sps:$4 sm:$0xff]  }
 0x63d   : > { %11279 = vmatpush1.bf16.msra.mxu0 %v14356_v47  ;;  %v14424_v47 = vld [vmem:[#allocation7 + $0x194] ss:$24 sps:$4 sm:$0xff]  }
 0x63e   : > { %11320 = vmatpush1.bf16.msra.mxu1 %v14359_v38  ;;  %11280 = vmatprep.subr.bf16.mxu0 %v14364_v48  ;;  %v14427_v38 = vld [vmem:[#allocation7 + $0x494] ss:$24 sps:$4 sm:$0xff]   ;;  %v14422_v48 = vld [vmem:[#allocation7 + $0x190] ss:$24 sps:$4 sm:$0xff]  }
 0x63f   : > { %11321 = vmatprep.subr.bf16.mxu1 %v14367_v49  ;;  %v14425_v49 = vld [vmem:[#allocation7 + $0x490] ss:$24 sps:$4 sm:$0xff]  }
 0x641   : > { %11281 = vmatpush1.bf16.msra.mxu0 %v14362_v51  ;;  %v14430_v51 = vld [vmem:[#allocation7 + $0x1c4] ss:$24 sps:$4 sm:$0xff]  }
 0x642   : > { %11322 = vmatpush1.bf16.msra.mxu1 %v14365_v56  ;;  %11282 = vmatprep.subr.bf16.mxu0 %v14370_v34  ;;  %v14433_v56 = vld [vmem:[#allocation7 + $0x4c4] ss:$24 sps:$4 sm:$0xff]   ;;  %v14428_v34 = vld [vmem:[#allocation7 + $0x1c0] ss:$24 sps:$4 sm:$0xff]  }
 0x643   : > { %11323 = vmatprep.subr.bf16.mxu1 %v14373_v61  ;;  %v14431_v61 = vld [vmem:[#allocation7 + $0x4c0] ss:$24 sps:$4 sm:$0xff]  }
 0x645   : > { %11283 = vmatpush1.bf16.msra.mxu0 %v14368_v52  ;;  %v14436_v52 = vld [vmem:[#allocation7 + $0x1f4] ss:$24 sps:$4 sm:$0xff]  }
 0x646   : > { %11324 = vmatpush1.bf16.msra.mxu1 %v14371_v28  ;;  %11334 = vmatprep.subr.bf16.mxu0 %v14376_v57  ;;  %v14439_v28 = vld [vmem:[#allocation7 + $0x4f4] ss:$24 sps:$4 sm:$0xff]   ;;  %v14434_v57 = vld [vmem:[#allocation7 + $0x1f0] ss:$24 sps:$4 sm:$0xff]  }
 0x647   : > { %11375 = vmatprep.subr.bf16.mxu1 %v14379_v54  ;;  %v14437_v54 = vld [vmem:[#allocation7 + $0x4f0] ss:$24 sps:$4 sm:$0xff]  }
 0x648   : > { %11285 = vmatmul.mubr.bf16.vlgmr.msra.gmra.mrb[52].mxu0 %v15129_v62 }
 0x649   : > { %11326 = vmatmul.mubr.bf16.vlgmr.msra.gmra.mrb[52].mxu1 %v15131_v1  ;;  %11335 = vmatpush1.bf16.msra.mxu0 %v14374_v31  ;;  %v14442_v31 = vld [vmem:[#allocation7 + $0x224] ss:$24 sps:$4 sm:$0xff]  }
 0x64a   : > { %11366 = vmatprep.mubr.bf16.mxu0 %v15093_v9  ;;  %11376 = vmatpush1.bf16.msra.mxu1 %v14377_v59  ;;  %v14395_v9 = vld [vmem:[#allocation7 + $0x3a0] ss:$24 sps:$4 sm:$0xff]   ;;  %v14445_v59 = vld [vmem:[#allocation7 + $0x524] ss:$24 sps:$4 sm:$0xff]  }
 0x64b   : > { %11407 = vmatprep.mubr.bf16.mxu1 %v15096_v13  ;;  %11336 = vmatprep.subr.bf16.mxu0 %v14382_v60  ;;  %v14398_v13 = vld [vmem:[#allocation7 + $0xd0] ss:$24 sps:$4 sm:$0xff]   ;;  %v14440_v60 = vld [vmem:[#allocation7 + $0x220] ss:$24 sps:$4 sm:$0xff]  }
 0x64c   : > { %11377 = vmatprep.subr.bf16.mxu1 %v14385_v55  ;;  %v14443_v55 = vld [vmem:[#allocation7 + $0x520] ss:$24 sps:$4 sm:$0xff]  }
 0x64d   : > { %11337 = vmatpush1.bf16.msra.mxu0 %v14380_v58  ;;  %v14448_v58 = vld [vmem:[#allocation7 + $0x254] ss:$24 sps:$4 sm:$0xff]  }
 0x64e   : > { %11378 = vmatpush1.bf16.msra.mxu1 %v14383_v63  ;;  %11338 = vmatprep.subr.bf16.mxu0 %v14388_v2  ;;  %v14451_v63 = vld [vmem:[#allocation7 + $0x554] ss:$24 sps:$4 sm:$0xff]   ;;  %v14446_v2 = vld [vmem:[#allocation7 + $0x250] ss:$24 sps:$4 sm:$0xff]  }
 0x64f   : > { %11379 = vmatprep.subr.bf16.mxu1 %v14391_v10  ;;  %v14449_v10 = vld [vmem:[#allocation7 + $0x550] ss:$24 sps:$4 sm:$0xff]  }
 0x651   : > { %11339 = vmatpush1.bf16.msra.mxu0 %v14386_v6  ;;  %v14454_v6 = vld [vmem:[#allocation7 + $0x284] ss:$24 sps:$4 sm:$0xff]  }
 0x652   : > { %11380 = vmatpush1.bf16.msra.mxu1 %v14389_v7  ;;  %11340 = vmatprep.subr.bf16.mxu0 %v14394_v11  ;;  %v14457_v7 = vld [vmem:[#allocation7 + $0x584] ss:$24 sps:$4 sm:$0xff]   ;;  %v14452_v11 = vld [vmem:[#allocation7 + $0x280] ss:$24 sps:$4 sm:$0xff]  }
 0x653   : > { %11381 = vmatprep.subr.bf16.mxu1 %v14397_v5  ;;  %v14455_v5 = vld [vmem:[#allocation7 + $0x580] ss:$24 sps:$4 sm:$0xff]  }
 0x655   : > { %11341 = vmatpush1.bf16.msra.mxu0 %v14392_v12  ;;  %v14460_v12 = vld [vmem:[#allocation7 + $0x2b4] ss:$24 sps:$4 sm:$0xff]  }
 0x656   : > { %11382 = vmatpush1.bf16.msra.mxu1 %v14395_v9  ;;  %11342 = vmatprep.subr.bf16.mxu0 %v14400_v39  ;;  %v14463_v9 = vld [vmem:[#allocation7 + $0x5b4] ss:$24 sps:$4 sm:$0xff]   ;;  %v14458_v39 = vld [vmem:[#allocation7 + $0x2b0] ss:$24 sps:$4 sm:$0xff]  }
 0x657   : > { %11383 = vmatprep.subr.bf16.mxu1 %v14403_v20  ;;  %v14461_v20 = vld [vmem:[#allocation7 + $0x5b0] ss:$24 sps:$4 sm:$0xff]  }
 0x659   : > { %11343 = vmatpush1.bf16.msra.mxu0 %v14398_v13  ;;  %v14466_v13 = vld [vmem:[#allocation7 + $0x2e4] ss:$24 sps:$4 sm:$0xff]  }
 0x65a   : > { %11384 = vmatpush1.bf16.msra.mxu1 %v14401_v3  ;;  %11344 = vmatprep.subr.bf16.mxu0 %v14406_v21  ;;  %v14469_v3 = vld [vmem:[#allocation7 + $0x5e4] ss:$24 sps:$4 sm:$0xff]   ;;  %v14464_v21 = vld [vmem:[#allocation7 + $0x2e0] ss:$24 sps:$4 sm:$0xff]  }
 0x65b   : > { %v11040_v24 = vpop.f32.mrb[40].mxu0  ;;  %11385 = vmatprep.subr.bf16.mxu1 %v14409_v8  ;;  %v14467_v8 = vld [vmem:[#allocation7 + $0x5e0] ss:$24 sps:$4 sm:$0xff]  }
 0x65c   : > { %v11041_v50 = vadd.f32 %v11040_v24, %v15087_v18  ;;  %v11081_v29 = vpop.f32.mrb[40].mxu1  ;;  %v11042_v53 = vpop.f32.mrb[41].mxu0  ;;  %v14421_v18 = vld [vmem:[#allocation7 + $0x464] ss:$24 sps:$4 sm:$0xff]   ;;  %v14473_v24 = vld [vmem:[#allocation7 + $0x910] ss:$24 sps:$4 sm:$0xff]  }
 0x65d   : > { %v11043_v23 = vadd.f32 %v11042_v53, %v15089_v26  ;;  %v11083_v32 = vpop.f32.mrb[41].mxu1  ;;  %v11044_v35 = vpop.f32.mrb[42].mxu0  ;;  %11345 = vmatpush1.bf16.msra.mxu0 %v14404_v33  ;;  %v14419_v26 = vld [vmem:[#allocation7 + $0x460] ss:$24 sps:$4 sm:$0xff]   ;;  %v14472_v33 = vld [vmem:[#allocation7 + $0x614] ss:$24 sps:$4 sm:$0xff]  }
 0x65e   : > { %v15157_v37 = vadd.f32 %v11081_v29, %v11041_v50  ;;  %v11085_v40 = vpop.f32.mrb[42].mxu1  ;;  %11386 = vmatpush1.bf16.msra.mxu1 %v14407_v44  ;;  %v11045_v42 = vpop.f32.mrb[43].mxu0  ;;  %11346 = vmatprep.subr.bf16.mxu0 %v14412_v22  ;;  %v14475_v44 = vld [vmem:[#allocation7 + $0x914] ss:$24 sps:$4 sm:$0xff]   ;;  %v14470_v22 = vld [vmem:[#allocation7 + $0x610] ss:$24 sps:$4 sm:$0xff]  }
 0x65f   : > { %v15159_v19 = vadd.f32 %v11083_v32, %v11043_v23  ;;  %v11086_v45 = vpop.f32.mrb[43].mxu1  ;;  %11387 = vmatprep.subr.bf16.mxu1 %v14415_v27  ;;  %v14478_v27 = vld [vmem:[#allocation7 + $0x644] ss:$24 sps:$4 sm:$0xff]   ;;  %v14476_v29 = vld [vmem:[#allocation7 + $0x640] ss:$24 sps:$4 sm:$0xff]  }
 0x660   : > { %v14481_v50 = vld [vmem:[#allocation7 + $0x944] ss:$24 sps:$4 sm:$0xff]   ;;  %v14479_v53 = vld [vmem:[#allocation7 + $0x940] ss:$24 sps:$4 sm:$0xff]   ;;  %v14484_v23 = vld [vmem:[#allocation7 + $0x674] ss:$24 sps:$4 sm:$0xff]  }
 0x661   : > { %11347 = vmatpush1.bf16.msra.mxu0 %v14410_v36  ;;  %v14487_v32 = vld [vmem:[#allocation7 + $0x974] ss:$24 sps:$4 sm:$0xff]   ;;  %v14482_v35 = vld [vmem:[#allocation7 + $0x670] ss:$24 sps:$4 sm:$0xff]   ;;  %v14490_v36 = vld [vmem:[#allocation7 + $0x6a4] ss:$24 sps:$4 sm:$0xff]  }
 0x662   : > { %11388 = vmatpush1.bf16.msra.mxu1 %v14413_v25  ;;  %11348 = vmatprep.subr.bf16.mxu0 %v14418_v16  ;;  %v14488_v40 = vld [vmem:[#allocation7 + $0x6a0] ss:$24 sps:$4 sm:$0xff]   ;;  %v14496_v42 = vld [vmem:[#allocation7 + $0x6d4] ss:$24 sps:$4 sm:$0xff]   ;;  %v14497_v16 = vld [vmem:[#allocation7 + $0x9d0] ss:$24 sps:$4 sm:$0xff]  }
 0x663   : > { %11389 = vmatprep.subr.bf16.mxu1 %v14421_v18  ;;  %v14499_v25 = vld [vmem:[#allocation7 + $0x9d4] ss:$24 sps:$4 sm:$0xff]   ;;  %v14502_v45 = vld [vmem:[#allocation7 + $0x704] ss:$24 sps:$4 sm:$0xff]  }
 0x664   : > { %v14505_v18 = vld [vmem:[#allocation7 + $0xa04] ss:$24 sps:$4 sm:$0xff]  }
 0x665   : > { %11349 = vmatpush1.bf16.msra.mxu0 %v14416_v46  ;;  %v14500_v46 = vld [vmem:[#allocation7 + $0x700] ss:$24 sps:$4 sm:$0xff]  }
 0x666   : > { %11390 = vmatpush1.bf16.msra.mxu1 %v14419_v26  ;;  %11350 = vmatprep.subr.bf16.mxu0 %v14424_v47  ;;  %v14503_v26 = vld [vmem:[#allocation7 + $0xa00] ss:$24 sps:$4 sm:$0xff]   ;;  %v14508_v47 = vld [vmem:[#allocation7 + $0x734] ss:$24 sps:$4 sm:$0xff]  }
 0x667   : > { %11391 = vmatprep.subr.bf16.mxu1 %v14427_v38 }
 0x669   : > { %11351 = vmatpush1.bf16.msra.mxu0 %v14422_v48  ;;  %v14511_v48 = vld [vmem:[#allocation7 + $0xa34] ss:$24 sps:$4 sm:$0xff]  }
 0x66a   : > { %11392 = vmatpush1.bf16.msra.mxu1 %v14425_v49  ;;  %11352 = vmatprep.subr.bf16.mxu0 %v14430_v51 }
 0x66b   : > { %11393 = vmatprep.subr.bf16.mxu1 %v14433_v56 }
 0x66d   : > { %11353 = vmatpush1.bf16.msra.mxu0 %v14428_v34 }
 0x66e   : > { %11394 = vmatpush1.bf16.msra.mxu1 %v14431_v61  ;;  %11354 = vmatprep.subr.bf16.mxu0 %v14436_v52 }
 0x66f   : > { %11395 = vmatprep.subr.bf16.mxu1 %v14439_v28  ;;  %v14506_v28 = vld [vmem:[#allocation7 + $0x730] ss:$24 sps:$4 sm:$0xff]  }
 0x671   : > { %11355 = vmatpush1.bf16.msra.mxu0 %v14434_v57 }
 0x672   : > { %11396 = vmatpush1.bf16.msra.mxu1 %v14437_v54  ;;  %11356 = vmatprep.subr.bf16.mxu0 %v14442_v31 }
 0x673   : > { %11397 = vmatprep.subr.bf16.mxu1 %v14445_v59  ;;  %v14509_v59 = vld [vmem:[#allocation7 + $0xa30] ss:$24 sps:$4 sm:$0xff]  }
 0x675   : > { %11357 = vmatpush1.bf16.msra.mxu0 %v14440_v60  ;;  %v14514_v60 = vld [vmem:[#allocation7 + $0x764] ss:$24 sps:$4 sm:$0xff]  }
 0x676   : > { %11398 = vmatpush1.bf16.msra.mxu1 %v14443_v55  ;;  %11358 = vmatprep.subr.bf16.mxu0 %v14448_v58 }
 0x677   : > { %11399 = vmatprep.subr.bf16.mxu1 %v14451_v63  ;;  %v14512_v63 = vld [vmem:[#allocation7 + $0x760] ss:$24 sps:$4 sm:$0xff]  }
 0x679   : > { %11359 = vmatpush1.bf16.msra.mxu0 %v14446_v2  ;;  %v14520_v2 = vld [vmem:[#allocation7 + $0x794] ss:$24 sps:$4 sm:$0xff]  }
 0x67a   : > { %11400 = vmatpush1.bf16.msra.mxu1 %v14449_v10  ;;  %11360 = vmatprep.subr.bf16.mxu0 %v14454_v6  ;;  %v14523_v10 = vld [vmem:[#allocation7 + $0xa94] ss:$24 sps:$4 sm:$0xff]   ;;  %v14518_v6 = vld [vmem:[#allocation7 + $0x790] ss:$24 sps:$4 sm:$0xff]  }
 0x67b   : > { %11401 = vmatprep.subr.bf16.mxu1 %v14457_v7  ;;  %v14521_v7 = vld [vmem:[#allocation7 + $0xa90] ss:$24 sps:$4 sm:$0xff]  }
 0x67d   : > { %11361 = vmatpush1.bf16.msra.mxu0 %v14452_v11  ;;  %v14526_v11 = vld [vmem:[#allocation7 + $0x7c4] ss:$24 sps:$4 sm:$0xff]  }
 0x67e   : > { %11402 = vmatpush1.bf16.msra.mxu1 %v14455_v5  ;;  %11362 = vmatprep.subr.bf16.mxu0 %v14460_v12  ;;  %v14529_v5 = vld [vmem:[#allocation7 + $0xac4] ss:$24 sps:$4 sm:$0xff]   ;;  %v14524_v12 = vld [vmem:[#allocation7 + $0x7c0] ss:$24 sps:$4 sm:$0xff]  }
 0x67f   : > { %11403 = vmatprep.subr.bf16.mxu1 %v14463_v9  ;;  %v14527_v9 = vld [vmem:[#allocation7 + $0xac0] ss:$24 sps:$4 sm:$0xff]  }
 0x681   : > { %11363 = vmatpush1.bf16.msra.mxu0 %v14458_v39  ;;  %v14532_v39 = vld [vmem:[#allocation7 + $0x7f4] ss:$24 sps:$4 sm:$0xff]  }
 0x682   : > { %11404 = vmatpush1.bf16.msra.mxu1 %v14461_v20  ;;  %11364 = vmatprep.subr.bf16.mxu0 %v14466_v13  ;;  %v14535_v20 = vld [vmem:[#allocation7 + $0xaf4] ss:$24 sps:$4 sm:$0xff]   ;;  %v14530_v13 = vld [vmem:[#allocation7 + $0x7f0] ss:$24 sps:$4 sm:$0xff]  }
 0x683   : > { %11405 = vmatprep.subr.bf16.mxu1 %v14469_v3  ;;  %v14533_v3 = vld [vmem:[#allocation7 + $0xaf0] ss:$24 sps:$4 sm:$0xff]  }
 0x685   : > { %11365 = vmatpush1.bf16.msra.mxu0 %v14464_v21  ;;  %v14538_v21 = vld [vmem:[#allocation7 + $0x824] ss:$24 sps:$4 sm:$0xff]  }
 0x686   : > { %11406 = vmatpush1.bf16.msra.mxu1 %v14467_v8  ;;  %11416 = vmatprep.subr.bf16.mxu0 %v14472_v33  ;;  %v14541_v8 = vld [vmem:[#allocation7 + $0xb24] ss:$24 sps:$4 sm:$0xff]   ;;  %v14536_v33 = vld [vmem:[#allocation7 + $0x820] ss:$24 sps:$4 sm:$0xff]  }
 0x687   : > { %11457 = vmatprep.subr.bf16.mxu1 %v14475_v44  ;;  %v14539_v44 = vld [vmem:[#allocation7 + $0xb20] ss:$24 sps:$4 sm:$0xff]  }
 0x688   : > { %11367 = vmatmul.mubr.bf16.vlgmr.msra.gmra.mrb[56].mxu0 %v15109_v41  ;;  %v14485_v41 = vld [vmem:[#allocation7 + $0x970] ss:$24 sps:$4 sm:$0xff]  }
 0x689   : > { %11408 = vmatmul.mubr.bf16.vlgmr.msra.gmra.mrb[56].mxu1 %v15111_v0  ;;  %11417 = vmatpush1.bf16.msra.mxu0 %v14470_v22  ;;  %v14493_v0 = vld [vmem:[#allocation7 + $0x9a4] ss:$24 sps:$4 sm:$0xff]   ;;  %v14544_v22 = vld [vmem:[#allocation7 + $0x854] ss:$24 sps:$4 sm:$0xff]  }
 0x68a   : > { %11448 = vmatprep.mubr.bf16.mxu0 %v15113_v43  ;;  %11458 = vmatpush1.bf16.msra.mxu1 %v14473_v24  ;;  %v14491_v43 = vld [vmem:[#allocation7 + $0x9a0] ss:$24 sps:$4 sm:$0xff]   ;;  %v14547_v24 = vld [vmem:[#allocation7 + $0xb54] ss:$24 sps:$4 sm:$0xff]  }
 0x68b   : > { %11489 = vmatprep.mubr.bf16.mxu1 %v15116_v14  ;;  %11418 = vmatprep.subr.bf16.mxu0 %v14478_v27  ;;  %v14494_v14 = vld [vmem:[#allocation7 + $0x6d0] ss:$24 sps:$4 sm:$0xff]  }
 0x68c   : > { %11459 = vmatprep.subr.bf16.mxu1 %v14481_v50  ;;  %v14542_v27 = vld [vmem:[#allocation7 + $0x850] ss:$24 sps:$4 sm:$0xff]  }
 0x68d   : > { %11419 = vmatpush1.bf16.msra.mxu0 %v14476_v29  ;;  %v14545_v50 = vld [vmem:[#allocation7 + $0xb50] ss:$24 sps:$4 sm:$0xff]   ;;  %v14550_v29 = vld [vmem:[#allocation7 + $0x884] ss:$24 sps:$4 sm:$0xff]  }
 0x68e   : > { %11460 = vmatpush1.bf16.msra.mxu1 %v14479_v53  ;;  %11420 = vmatprep.subr.bf16.mxu0 %v14484_v23  ;;  %v14553_v53 = vld [vmem:[#allocation7 + $0xb84] ss:$24 sps:$4 sm:$0xff]   ;;  %v14548_v23 = vld [vmem:[#allocation7 + $0x880] ss:$24 sps:$4 sm:$0xff]  }
 0x68f   : > { %11461 = vmatprep.subr.bf16.mxu1 %v14487_v32  ;;  %v14551_v32 = vld [vmem:[#allocation7 + $0xb80] ss:$24 sps:$4 sm:$0xff]  }
 0x691   : > { %11421 = vmatpush1.bf16.msra.mxu0 %v14482_v35  ;;  %v14556_v35 = vld [vmem:[#allocation7 + $0x8b4] ss:$24 sps:$4 sm:$0xff]  }
 0x692   : > { %11462 = vmatpush1.bf16.msra.mxu1 %v14485_v41  ;;  %11422 = vmatprep.subr.bf16.mxu0 %v14490_v36  ;;  %v14559_v41 = vld [vmem:[#allocation7 + $0xbb4] ss:$24 sps:$4 sm:$0xff]   ;;  %v14554_v36 = vld [vmem:[#allocation7 + $0x8b0] ss:$24 sps:$4 sm:$0xff]  }
 0x693   : > { %11463 = vmatprep.subr.bf16.mxu1 %v14493_v0  ;;  %v14557_v0 = vld [vmem:[#allocation7 + $0xbb0] ss:$24 sps:$4 sm:$0xff]  }
 0x695   : > { %11423 = vmatpush1.bf16.msra.mxu0 %v14488_v40  ;;  %v14562_v40 = vld [vmem:[#allocation7 + $0x8e4] ss:$24 sps:$4 sm:$0xff]  }
 0x696   : > { %11464 = vmatpush1.bf16.msra.mxu1 %v14491_v43  ;;  %11424 = vmatprep.subr.bf16.mxu0 %v14496_v42  ;;  %v14565_v43 = vld [vmem:[#allocation7 + $0xbe4] ss:$24 sps:$4 sm:$0xff]   ;;  %v14560_v42 = vld [vmem:[#allocation7 + $0x8e0] ss:$24 sps:$4 sm:$0xff]  }
 0x697   : > { %11465 = vmatprep.subr.bf16.mxu1 %v14499_v25  ;;  %v14563_v25 = vld [vmem:[#allocation7 + $0xbe0] ss:$24 sps:$4 sm:$0xff]  }
 0x699   : > { %11425 = vmatpush1.bf16.msra.mxu0 %v14494_v14 }
 0x69a   : > { %11466 = vmatpush1.bf16.msra.mxu1 %v14497_v16  ;;  %11426 = vmatprep.subr.bf16.mxu0 %v14502_v45 }
 0x69b   : > { %v11122_v38 = vpop.f32.mrb[44].mxu0  ;;  %11467 = vmatprep.subr.bf16.mxu1 %v14505_v18 }
 0x69c   : > { %v11123_v49 = vadd.f32 %v11122_v38, %v15157_v37  ;;  %v11163_v51 = vpop.f32.mrb[44].mxu1  ;;  %v11124_v56 = vpop.f32.mrb[45].mxu0  ;;  %v14517_v37 = vld [vmem:[#allocation7 + $0xa64] ss:$24 sps:$4 sm:$0xff]  }
 0x69d   : > { %v11125_v34 = vadd.f32 %v11124_v56, %v15159_v19  ;;  %v11165_v61 = vpop.f32.mrb[45].mxu1  ;;  %v11126_v52 = vpop.f32.mrb[46].mxu0  ;;  %11427 = vmatpush1.bf16.msra.mxu0 %v14500_v46  ;;  %v14515_v19 = vld [vmem:[#allocation7 + $0xa60] ss:$24 sps:$4 sm:$0xff]  }
 0x69e   : > { %v15167_v57 = vadd.f32 %v11163_v51, %v11123_v49  ;;  %v11167_v54 = vpop.f32.mrb[46].mxu1  ;;  %11468 = vmatpush1.bf16.msra.mxu1 %v14503_v26  ;;  %v11127_v31 = vpop.f32.mrb[47].mxu0  ;;  %11428 = vmatprep.subr.bf16.mxu0 %v14508_v47 }
 0x69f   : > { %v15169_v55 = vadd.f32 %v11165_v61, %v11125_v34  ;;  %v11168_v58 = vpop.f32.mrb[47].mxu1  ;;  %11469 = vmatprep.subr.bf16.mxu1 %v14511_v48 }
 0x6a1   : > { %11429 = vmatpush1.bf16.msra.mxu0 %v14506_v28 }
 0x6a2   : > { %11470 = vmatpush1.bf16.msra.mxu1 %v14509_v59  ;;  %11430 = vmatprep.subr.bf16.mxu0 %v14514_v60 }
 0x6a3   : > { %11471 = vmatprep.subr.bf16.mxu1 %v14517_v37 }
 0x6a5   : > { %11431 = vmatpush1.bf16.msra.mxu0 %v14512_v63 }
 0x6a6   : > { %11472 = vmatpush1.bf16.msra.mxu1 %v14515_v19  ;;  %11432 = vmatprep.subr.bf16.mxu0 %v14520_v2 }
 0x6a7   : > { %11473 = vmatprep.subr.bf16.mxu1 %v14523_v10 }
 0x6a9   : > { %11433 = vmatpush1.bf16.msra.mxu0 %v14518_v6 }
 0x6aa   : > { %11474 = vmatpush1.bf16.msra.mxu1 %v14521_v7  ;;  %11434 = vmatprep.subr.bf16.mxu0 %v14526_v11 }
 0x6ab   : > { %11475 = vmatprep.subr.bf16.mxu1 %v14529_v5 }
 0x6ad   : > { %11435 = vmatpush1.bf16.msra.mxu0 %v14524_v12 }
 0x6ae   : > { %11476 = vmatpush1.bf16.msra.mxu1 %v14527_v9  ;;  %11436 = vmatprep.subr.bf16.mxu0 %v14532_v39  ;;  %v14568_v39 = vld [vmem:[%s14945_s23] sm:$0xff] }
 0x6af   : > { %11477 = vmatprep.subr.bf16.mxu1 %v14535_v20  ;;  %v11498_v20 = vadd.f32 %v14568_v39, %v15167_v57 }
 0x6b1   : > { %11437 = vmatpush1.bf16.msra.mxu0 %v14530_v13  ;;  %v14569_v13 = vld [vmem:[%s14945_s23 + $0x8] sm:$0xff] }
 0x6b2   : > { %11478 = vmatpush1.bf16.msra.mxu1 %v14533_v3  ;;  %11438 = vmatprep.subr.bf16.mxu0 %v14538_v21  ;;  %v11499_v3 = vadd.f32 %v14569_v13, %v15169_v55  ;;  %v14570_v21 = vld [vmem:[%s14945_s23 + $0x10] sm:$0xff] }
 0x6b3   : > { %11479 = vmatprep.subr.bf16.mxu1 %v14541_v8 }
 0x6b4   : > { %v11504_v8 = vadd.f32 %v11499_v3, %v11498_v20 }
 0x6b5   : > { %11439 = vmatpush1.bf16.msra.mxu0 %v14536_v33 }
 0x6b6   : > { %11480 = vmatpush1.bf16.msra.mxu1 %v14539_v44  ;;  %11440 = vmatprep.subr.bf16.mxu0 %v14544_v22  ;;  %v14571_v44 = vld [vmem:[%s14945_s23 + $0x18] sm:$0xff] }
 0x6b7   : > { %11481 = vmatprep.subr.bf16.mxu1 %v14547_v24 }
 0x6b9   : > { %11441 = vmatpush1.bf16.msra.mxu0 %v14542_v27 }
 0x6ba   : > { %11482 = vmatpush1.bf16.msra.mxu1 %v14545_v50  ;;  %11442 = vmatprep.subr.bf16.mxu0 %v14550_v29 }
 0x6bb   : > { %11483 = vmatprep.subr.bf16.mxu1 %v14553_v53 }
 0x6bd   : > { %11443 = vmatpush1.bf16.msra.mxu0 %v14548_v23 }
 0x6be   : > { %11484 = vmatpush1.bf16.msra.mxu1 %v14551_v32  ;;  %11444 = vmatprep.subr.bf16.mxu0 %v14556_v35 }
 0x6bf   : > { %11485 = vmatprep.subr.bf16.mxu1 %v14559_v41 }
 0x6c1   : > { %11445 = vmatpush1.bf16.msra.mxu0 %v14554_v36  ;;  %v14572_v36 = vld [vmem:[%s14945_s23 + $0x20] sm:$0xff] }
 0x6c2   : > { %11486 = vmatpush1.bf16.msra.mxu1 %v14557_v0  ;;  %11446 = vmatprep.subr.bf16.mxu0 %v14562_v40 }
 0x6c3   : > { %11487 = vmatprep.subr.bf16.mxu1 %v14565_v43  ;;  %v14573_v43 = vld [vmem:[%s14945_s23 + $0x28] sm:$0xff] }
 0x6c5   : > { %11447 = vmatpush1.bf16.msra.mxu0 %v14560_v42 }
 0x6c6   : > { %11488 = vmatpush1.bf16.msra.mxu1 %v14563_v25 }
 0x6c8   : > { %11449 = vmatmul.mubr.bf16.vlgmr.msra.gmra.mrb[60].mxu0 %v15129_v62 }
 0x6c9   : > { %11490 = vmatmul.mubr.bf16.vlgmr.msra.gmra.mrb[60].mxu1 %v15131_v1 }
 0x6db   : > { %v11204_v14 = vpop.f32.mrb[48].mxu0 }
 0x6dc   : > { %v11205_v16 = vadd.f32 %v11204_v14, %v15123_v4  ;;  %v11245_v45 = vpop.f32.mrb[48].mxu1  ;;  %v11206_v18 = vpop.f32.mrb[49].mxu0 }
 0x6dd   : > { %v11207_v46 = vadd.f32 %v11206_v18, %v15125_v30  ;;  %v11247_v26 = vpop.f32.mrb[49].mxu1  ;;  %v11208_v47 = vpop.f32.mrb[50].mxu0 }
 0x6de   : > { %v11246_v38 = vadd.f32 %v11245_v45, %v11205_v16  ;;  %v11249_v48 = vpop.f32.mrb[50].mxu1  ;;  %v11209_v49 = vpop.f32.mrb[51].mxu0 }
 0x6df   : > { %v11248_v51 = vadd.f32 %v11247_v26, %v11207_v46  ;;  %v11250_v56 = vpop.f32.mrb[51].mxu1 }
 0x71b   : > { %v11286_v34 = vpop.f32.mrb[52].mxu0 }
 0x71c   : > { %v11287_v61 = vadd.f32 %v11286_v34, %v11246_v38  ;;  %v11327_v52 = vpop.f32.mrb[52].mxu1  ;;  %v11288_v62 = vpop.f32.mrb[53].mxu0 }
 0x71d   : > { %v11289_v28 = vadd.f32 %v11288_v62, %v11248_v51  ;;  %v11329_v1 = vpop.f32.mrb[53].mxu1  ;;  %v11290_v54 = vpop.f32.mrb[54].mxu0 }
 0x71e   : > { %v11328_v31 = vadd.f32 %v11327_v52, %v11287_v61  ;;  %v11331_v4 = vpop.f32.mrb[54].mxu1  ;;  %v11291_v59 = vpop.f32.mrb[55].mxu0 }
 0x71f   : > { %v11330_v60 = vadd.f32 %v11329_v1, %v11289_v28  ;;  %v11332_v30 = vpop.f32.mrb[55].mxu1 }
 0x721   : > { %v11501_v22 = vadd.f32 %v14571_v44, %v11330_v60  ;;  %v11543_v60 = vlaneseq }
 0x75b   : > { %v11368_v58 = vpop.f32.mrb[56].mxu0 }
 0x75c   : > { %v11369_v37 = vadd.f32 %v11368_v58, %v15147_v15  ;;  %v11409_v63 = vpop.f32.mrb[56].mxu1  ;;  %v11370_v19 = vpop.f32.mrb[57].mxu0  ;;  %v11500_v15 = vadd.f32 %v14570_v21, %v11328_v31  ;;  %v11544_v58 = vshrl.u32 %v11543_v60, 7 }
 0x75d   : > { %v11371_v2 = vadd.f32 %v11370_v19, %v15149_v17  ;;  %v11411_v10 = vpop.f32.mrb[57].mxu1  ;;  %v11372_v6 = vpop.f32.mrb[58].mxu0  ;;  %v11541_v19 = vld [vmem:[%s15244_s3] sm:$0x3f] }
 0x75e   : > { %v11410_v7 = vadd.f32 %v11409_v63, %v11369_v37  ;;  %v11413_v11 = vpop.f32.mrb[58].mxu1  ;;  %v11373_v5 = vpop.f32.mrb[59].mxu0  ;;  %v11505_v17 = vadd.f32 %v11504_v8, %v11500_v15  ;;  %v11545_v37 = vsub.s32 0, %v11544_v58  ;;  %v11549_v63 = vsub.s32 1, %v11544_v58 }
 0x75f   : > { %v11412_v12 = vadd.f32 %v11411_v10, %v11371_v2  ;;  %v11414_v9 = vpop.f32.mrb[59].mxu1  ;;  %v11553_v2 = vsub.s32 2, %v11544_v58  ;;  %v11557_v10 = vsub.s32 3, %v11544_v58  ;;  %v11561_v6 = vsub.s32 4, %v11544_v58  ;;  %v11579_v11 = vld [vmem:[%s15245_s4] sm:$0x3f] }
 0x760   : > { %v11506_v40 = vadd.f32 %v11505_v17, %v11501_v22  ;;  %v11546_v5 = vrot.slane %v11541_v19, %v11545_v37  ;;  %v11584_v21 = vrot.slane %v11579_v11, %v11545_v37 }
 0x761   : > { %v11554_v9 = vrot.slane %v11541_v19, %v11553_v2  ;;  %v11558_v39 = vrot.slane %v11541_v19, %v11557_v10  ;;  %v11592_v8 = vrot.slane %v11579_v11, %v11553_v2 }
 0x79b   : > { %v11450_v33 = vpop.f32.mrb[60].mxu0 }
 0x79c   : > { %v11451_v24 = vadd.f32 %v11450_v33, %v11410_v7  ;;  %v11491_v27 = vpop.f32.mrb[60].mxu1  ;;  %v11452_v50 = vpop.f32.mrb[61].mxu0  ;;  %v11565_v7 = vsub.s32 5, %v11544_v58  ;;  %v11596_v33 = vrot.slane %v11579_v11, %v11557_v10 }
 0x79d   : > { %v11453_v29 = vadd.f32 %v11452_v50, %v11412_v12  ;;  %v11493_v53 = vpop.f32.mrb[61].mxu1  ;;  %v11454_v23 = vpop.f32.mrb[62].mxu0  ;;  %v11550_v12 = vrot.slane %v11541_v19, %v11549_v63 }
 0x79e   : > { %v11492_v32 = vadd.f32 %v11491_v27, %v11451_v24  ;;  %v11495_v57 = vpop.f32.mrb[62].mxu1  ;;  %v11455_v35 = vpop.f32.mrb[63].mxu0  ;;  %v11566_v13 = vrot.slane %v11541_v19, %v11565_v7 }
 0x79f   : > { %v11494_v41 = vadd.f32 %v11493_v53, %v11453_v29  ;;  %v11496_v55 = vpop.f32.mrb[63].mxu1  ;;  %v11600_v29 = vrot.slane %v11579_v11, %v11561_v6  ;;  %v11604_v53 = vrot.slane %v11579_v11, %v11565_v7 }
 0x7a0   : > { %v11502_v0 = vadd.f32 %v14572_v36, %v11492_v32 }
 0x7a1   : > { %v11503_v42 = vadd.f32 %v14573_v43, %v11494_v41 }
 0x7a2   : > { %v11507_v25 = vadd.f32 %v11506_v40, %v11502_v0 }
 0x7a4   : > { %v11508_v14 = vadd.f32 %v11507_v25, %v11503_v42 }
 0x7a6   : > { %11509 = vadd.xlane.f32.xlu0 %v11508_v14 }
 0x833   : > { %v11510_v16 = vpop.xlane.xlu0 %11509 }
 0x834   : > { %v11512_v45 = vmul.f32 0.0013020834, %v11510_v16 }
 0x836   : > { %v11513_v18 = vsub.f32 %v11498_v20, %v11512_v45  ;;  %v11514_v46 = vsub.f32 %v11499_v3, %v11512_v45  ;;  %v11515_v26 = vsub.f32 %v11500_v15, %v11512_v45  ;;  %v11516_v47 = vsub.f32 %v11501_v22, %v11512_v45 }
 0x837   : > { %v11517_v49 = vsub.f32 %v11502_v0, %v11512_v45  ;;  %v11518_v34 = vsub.f32 %v11503_v42, %v11512_v45  ;;  %v11562_v20 = vrot.slane %v11541_v19, %v11561_v6  ;;  %v11588_v15 = vrot.slane %v11579_v11, %v11549_v63 }
 0x838   : > { %v11519_v38 = vmul.f32 %v11513_v18, %v11513_v18  ;;  %v11520_v48 = vmul.f32 %v11514_v46, %v11514_v46  ;;  %v11521_v51 = vmul.f32 %v11515_v26, %v11515_v26  ;;  %v11522_v61 = vmul.f32 %v11516_v47, %v11516_v47 }
 0x839   : > { %v11523_v62 = vmul.f32 %v11517_v49, %v11517_v49  ;;  %v11524_v1 = vmul.f32 %v11518_v34, %v11518_v34 }
 0x83a   : > { %v11525_v56 = vadd.f32 %v11520_v48, %v11519_v38 }
 0x83c   : > { %v11526_v52 = vadd.f32 %v11525_v56, %v11521_v51 }
 0x83e   : > { %v11527_v28 = vadd.f32 %v11526_v52, %v11522_v61 }
 0x840   : > { %v11528_v54 = vadd.f32 %v11527_v28, %v11523_v62 }
 0x842   : > { %v11529_v31 = vadd.f32 %v11528_v54, %v11524_v1 }
 0x844   : > { %11530 = vadd.xlane.f32.xlu0 %v11529_v31 }
 0x8d1   : > { %v11531_v4 = vpop.xlane.xlu0 %11530 }
 0x8d2   : > { %v11532_v59 = vmul.f32 0.0013020834, %v11531_v4 }
 0x8d4   : > { %v11533_v30 = vadd.f32 1e-05, %v11532_v59 }
 0x8d6   : > { %14566 = vrsqrt.f32 %v11533_v30 }
 0x8e0   : > { %v14567_v3 = vpop.eup %14566 }
 0x8e1   : > { %v11535_v17 = vmul.f32 %v14567_v3, %v11513_v18  ;;  %v11536_v44 = vmul.f32 %v14567_v3, %v11514_v46  ;;  %v11537_v22 = vmul.f32 %v14567_v3, %v11515_v26  ;;  %v11538_v24 = vmul.f32 %v14567_v3, %v11516_v47 }
 0x8e2   : > { %v11539_v27 = vmul.f32 %v14567_v3, %v11517_v49  ;;  %v11540_v50 = vmul.f32 %v14567_v3, %v11518_v34 }
 0x8e3   : > { %v11573_v23 = vmul.f32 %v11546_v5, %v11535_v17  ;;  %v11574_v32 = vmul.f32 %v11550_v12, %v11536_v44  ;;  %v11575_v57 = vmul.f32 %v11554_v9, %v11537_v22  ;;  %v11576_v35 = vmul.f32 %v11558_v39, %v11538_v24 }
 0x8e4   : > { %v11577_v41 = vmul.f32 %v11562_v20, %v11539_v27  ;;  %v11578_v55 = vmul.f32 %v11566_v13, %v11540_v50 }
 0x8e5   : > { %v11611_v36 = vadd.f32 %v11584_v21, %v11573_v23  ;;  %v11612_v0 = vadd.f32 %v11588_v15, %v11574_v32  ;;  %v11613_v40 = vadd.f32 %v11592_v8, %v11575_v57  ;;  %v11614_v43 = vadd.f32 %v11596_v33, %v11576_v35 }
 0x8e6   : > { %v11615_v42 = vadd.f32 %v11600_v29, %v11577_v41  ;;  %v11616_v25 = vadd.f32 %v11604_v53, %v11578_v55 }
 0x8e7   : > { %11617 = vst [vmem:[%s269_s13] sm:$0xff] %v11611_v36  ;;  %11618 = vst [vmem:[%s269_s13 + $0x8] sm:$0xff] %v11612_v0 }
 0x8e8   : > { %11619 = vst [vmem:[%s269_s13 + $0x10] sm:$0xff] %v11613_v40  ;;  %11620 = vst [vmem:[%s269_s13 + $0x18] sm:$0xff] %v11614_v43 }
 0x8e9   : > { %11621 = vst [vmem:[%s269_s13 + $0x20] sm:$0xff] %v11615_v42  ;;  %11622 = vst [vmem:[%s269_s13 + $0x28] sm:$0xff] %v11616_v25 }
 0x8ea   : > { %14673 = shalt.err (!%p14670_p2)
}
 0x8eb   : > { %s14674_s14 = scalar_lea.hbm %s15197_s22, 768  ;;  %s14678_s26 = scalar_lea.hbm %s15246_s5, 1536 }
 0x8ec   : > { %p14675_p13 = scmp.ne.s32.totalorder %s15197_s22, %s14674_s14  ;;  %p14679_p4 = scmp.lt.u32.totalorder %s15197_s22, %s15246_s5 }
 0x8ed   : > { %p14680_p7 = scmp.lt.u32.totalorder %s14678_s26, %s14674_s14  ;;  %p14682_p11 = scmp.lt.u32.totalorder %s14674_s14, %s15197_s22 }
 0x8ee   : > { %p14676_p6 = pnand %p14675_p13, %p15260_p0 }
 0x8ef   : > { %p14681_p8 = por %p14680_p7, %p14679_p4 }
 0x8f0   : > { %p14677_p10 = pneg %p14676_p6 }
 0x8f1   : > { %p14683_p1 = por %p14682_p11, %p14681_p8 }
 0x8f3   : > { %p14684_p3 = pnand %p14683_p1, %p14677_p10 }
 0x8f5   : > { %14687 = shalt.err (!%p14684_p3)
}
 0x8f6   : > { %13353 = dma.vmem_to_hbm [thread:$0]  (%p15260_p0), %s15199_s6, 768, %s15197_s22, %s11624_s7  }
 0x8f7 PF: > { %s11650_s12 = sand.u32 1, %s14718_s18   ;;  %p15261_p5 = scmp.ne.s32.totalorder %s15251_s25, 0 }
 0x8f8   : > { %p15262_p9 = scmp.ge.s32.totalorder %s14730_s21, 2  ;;  %s11651_s13 = scalar_lea.sflag [#allocation4], %s11650_s12 }
 0x8fa   : > { %p13367_p12 = pnand %p15262_p9, %p15261_p5 }
 0x8fc   : > { %14713 = dma.done.wait (!%p13367_p12), %s11651_s13, 768  }
 0x8fd   : > { %14715 = vsyncadd (!%p13367_p12), %s11651_s13, 4294966528  ;;  %p19_p2 = scmp.ge.s32.totalorder %s14880_s16, 4   ;;  %s15263_s18 = smov %s14722_s19 }
 0x8fe   : > { %s15264_s19 = smov %s14726_s20  ;;  %s15265_s20 = smov %s14889_s27 }
 0x8ff   : > { %s15266_s21 = smov %s14880_s16  ;;  %21 = sbr.rel (!%p19_p2) target bundleno = 6 (0x6), region = 93 }
 0x906   :  { %11656 = vsyncpa [#allocation3], 1 }
 0x907   :  { %11658 = vsyncpa [#allocation3 + $0x1], 1 }
 0x908   :  { %11659 = vsyncpa [#allocation6], 1 }
 0x909   :  { %11660 = vsyncpa [#allocation4], 1 }
 0x90a   :  { %11662 = vsyncpa [#allocation4 + $0x1], 1 }

</bundles_post_ra>
